<compile_context>
chip_gen: v6e
topology: v6e:2x2x1
jax: 0.10.0
libtpu: 0.0.40
codegen_flags: <defaults>
</compile_context>

<pallas_src>
import numpy as np
import jax
import jax.numpy as jnp
from jax.experimental import pallas as pl
from jax.experimental.pallas import tpu as pltpu

NEG = -1.0e30           # finite stand-in for -inf (keeps exp/log NaN-free)
LANES = 128
S_PAD_DEFAULT = 128     # default padded extended-label length (2*Lmax+1 <= 128)
BB = 16                 # sequences packed per grid step (2 x (8,128) vregs)

# aux mask rows (f32, shape (NUM_AUX, B_pad, S_PAD))
AUX_SKIP = 0            # 0 where the s-2 transition is allowed, NEG otherwise
AUX_VALID = 1           # 0 where s < 2*L_b + 1, NEG otherwise
AUX_FINAL = 2           # 0 at the two terminal positions, NEG otherwise
AUX_INIT = 3            # 0 at s in {0, 1 (if S_b>1)}, NEG otherwise
AUX_LEN = 4             # act_lens[b] broadcast over lanes (f32)
NUM_AUX = 5


def _ctc_kernel(tmax_ref,    # SMEM (num_blocks,) int32: max act_len per block
                acts_ref,    # VMEM (T, BB, C) f32 logits slab (native layout)
                ext_ref,     # VMEM (BB, S_PAD) int32 extended labels (-1 pad)
                aux_ref,     # VMEM (NUM_AUX, BB, S_PAD) f32 additive masks
                cost_ref,    # VMEM (BB, LANES) f32 out (loss broadcast on lanes)
                e_ref):      # VMEM scratch (T, BB, S_PAD) f32 emission log-probs
    g = pl.program_id(0)
    T = acts_ref.shape[0]
    nbb = acts_ref.shape[1]
    C = acts_ref.shape[2]
    s_pad = ext_ref.shape[1]

    # ---- emissions E[t, bb, s] = logp[t, bb, ext[bb, s]] (one-hot MXU gather) ----
    c_iota = jax.lax.broadcasted_iota(jnp.int32, (C, s_pad), 0)   # class id / row
    for bb in range(nbb):                                          # static unroll
        x = acts_ref[:, bb, :].astype(jnp.float32)                 # (T, C)
        mx = jnp.max(x, axis=-1, keepdims=True)
        logz = mx + jnp.log(jnp.sum(jnp.exp(x - mx), axis=-1, keepdims=True))
        logp = x - logz                                            # (T, C) log-softmax
        # in-kernel one-hot of the extended labels for this sequence
        oh = (c_iota == ext_ref[pl.ds(bb, 1), :]).astype(jnp.float32)   # (C, S_PAD)
        e_b = jax.lax.dot_general(logp, oh, (((1,), (0,)), ((), ())),
                                  preferred_element_type=jnp.float32)   # (T, S_PAD)
        valid_row = aux_ref[AUX_VALID, pl.ds(bb, 1), :]            # (1, S_PAD)
        e_ref[:, bb, :] = jnp.maximum(e_b + valid_row, NEG)

    # ---- additive masks for the recursion (loaded once, add-only in the loop) ----
    m_skip = aux_ref[AUX_SKIP]                                     # (BB, S_PAD)
    m_init = aux_ref[AUX_INIT]
    m_final = aux_ref[AUX_FINAL]
    m_len = aux_ref[AUX_LEN]                                       # f32 act_lens
    lane = jax.lax.broadcasted_iota(jnp.int32, (nbb, s_pad), 1)
    m_lane1 = jnp.where(lane >= 1, 0.0, NEG)                       # s>=1 boundary

    alpha0 = jnp.maximum(e_ref[0] + m_init, NEG)                   # (BB, S_PAD)
    t_hi = jnp.minimum(tmax_ref[g], T)                             # dynamic bound

    # ---- CTC alpha recursion over time (serial; lane-parallel over s, rows=BB) ----
    def step(t, alpha):
        e_t = e_ref[t]                                             # (BB, S_PAD)
        a1 = pltpu.roll(alpha, 1, axis=1) + m_lane1                # alpha[s-1]
        a2 = pltpu.roll(alpha, 2, axis=1) + m_skip                 # alpha[s-2]
        m = jnp.maximum(jnp.maximum(alpha, a1), a2)
        lse = m + jnp.log(jnp.exp(alpha - m) + jnp.exp(a1 - m) + jnp.exp(a2 - m))
        upd = jnp.maximum(e_t + lse, NEG)
        # per-row freeze past each sequence's own act_len (ragged lengths)
        return jnp.where(t.astype(jnp.float32) < m_len, upd, alpha)

    alpha_T = jax.lax.fori_loop(1, t_hi, step, alpha0)

    fa = alpha_T + m_final
    fm = jnp.max(fa, axis=-1, keepdims=True)
    nll = -(fm + jnp.log(jnp.sum(jnp.exp(fa - fm), axis=-1, keepdims=True)))  # (BB,1)
    cost_ref[...] = jnp.broadcast_to(nll, (nbb, LANES)).astype(cost_ref.dtype)


def _choose_s_pad(label_lens):
    """Adaptive extended-label width: round 2*Lmax+1 up to a lane multiple."""
    try:
        max_l = int(jax.device_get(jnp.max(label_lens)))
        need = 2 * max_l + 1
        return max(LANES, ((need + LANES - 1) // LANES) * LANES)
    except Exception:
        return S_PAD_DEFAULT    # traced under jit -- cannot inspect statically


def _build_aux(labels, label_lens, act_lens, B_pad, blank, s_pad):
    """Glue: build padded extended labels (int32) and additive-mask rows."""
    labels = labels.astype(jnp.int32)
    label_lens = label_lens.astype(jnp.int32)
    act_lens = act_lens.astype(jnp.int32)
    B = label_lens.shape[0]
    pad = B_pad - B

    label_lens_p = jnp.pad(label_lens, (0, pad))
    act_lens_p = jnp.pad(act_lens, (0, pad))
    offsets = jnp.concatenate(
        [jnp.zeros((1,), jnp.int32), jnp.cumsum(label_lens)[:-1]])
    offsets_p = jnp.pad(offsets, (0, pad))

    Lmax = (s_pad - 1) // 2
    j = jnp.arange(Lmax, dtype=jnp.int32)
    idx = jnp.clip(offsets_p[:, None] + j[None, :], 0, max(labels.shape[0] - 1, 0))
    lab = jnp.where(j[None, :] < label_lens_p[:, None], labels[idx], -1)  # (B_pad, Lmax)

    s = jnp.arange(s_pad, dtype=jnp.int32)
    S_b = 2 * label_lens_p + 1                                            # (B_pad,)
    lab_idx = jnp.clip((s - 1) // 2, 0, Lmax - 1)
    ext = jnp.where((s % 2 == 1)[None, :], lab[:, lab_idx], blank)
    ext = jnp.where(s[None, :] < S_b[:, None], ext, -1)                   # (B_pad, s_pad)

    ext_m2 = jnp.pad(ext, ((0, 0), (2, 0)), constant_values=-2)[:, :s_pad]
    skip_ok = (s[None, :] >= 2) & (ext >= 0) & (ext != blank) & (ext != ext_m2)
    m_skip = jnp.where(skip_ok, 0.0, NEG)
    m_valid = jnp.where(s[None, :] < S_b[:, None], 0.0, NEG)
    m_final = jnp.where((s[None, :] == S_b[:, None] - 1)
                        | (s[None, :] == S_b[:, None] - 2), 0.0, NEG)
    m_init = jnp.where((s[None, :] == 0)
                       | ((s[None, :] == 1) & (S_b[:, None] > 1)), 0.0, NEG)
    m_len = jnp.broadcast_to(act_lens_p[:, None].astype(jnp.float32),
                             (B_pad, s_pad))
    aux = jnp.stack([m_skip, m_valid, m_final, m_init, m_len],
                    axis=0).astype(jnp.float32)                           # (5, B_pad, s_pad)
    return ext.astype(jnp.int32), aux, act_lens_p


def ctc_loss(acts, labels, act_lens, label_lens, *, blank=0,
             size_average=False, length_average=False):
    T, B, C = acts.shape
    acts = acts.astype(jnp.float32)
    act_lens = act_lens.astype(jnp.int32)
    label_lens = label_lens.astype(jnp.int32)

    s_pad = _choose_s_pad(label_lens)

    B_pad = pl.cdiv(B, BB) * BB
    if B_pad != B:
        acts = jnp.pad(acts, ((0, 0), (0, B_pad - B), (0, 0)))

    ext, aux, act_lens_p = _build_aux(labels, label_lens, act_lens, B_pad, blank, s_pad)
    num_blocks = B_pad // BB
    block_tmax = jnp.max(act_lens_p.reshape(num_blocks, BB), axis=1).astype(jnp.int32)

    grid_spec = pltpu.PrefetchScalarGridSpec(
        num_scalar_prefetch=1,
        grid=(num_blocks,),
        in_specs=[
            pl.BlockSpec((T, BB, C), lambda g, tm: (0, g, 0)),            # acts (T,B,C)
            pl.BlockSpec((BB, s_pad), lambda g, tm: (g, 0)),              # ext labels
            pl.BlockSpec((NUM_AUX, BB, s_pad), lambda g, tm: (0, g, 0)),  # masks
        ],
        out_specs=pl.BlockSpec((BB, LANES), lambda g, tm: (g, 0)),
        scratch_shapes=[pltpu.VMEM((T, BB, s_pad), jnp.float32)],
    )

    # conservative per-block VMEM budget (double-buffered inputs + scratch)
    block_bytes = (2 * T * BB * C * 4          # acts (x2 buffers)
                   + 2 * BB * s_pad * 4        # ext
                   + 2 * NUM_AUX * BB * s_pad * 4
                   + T * BB * s_pad * 4        # emission scratch
                   + 2 * BB * LANES * 4)       # cost
    vmem_limit = int(min(max(block_bytes + (8 << 20), 32 << 20), 64 << 20))

    cost_hint = pl.CostEstimate(
        flops=int(B_pad * T * (6 * C + 2 * C * s_pad + 16 * s_pad)),
        transcendentals=int(B_pad * T * (C + 4 * s_pad)),
        bytes_accessed=int(acts.size * 4 + ext.size * 4 + aux.size * 4
                           + B_pad * LANES * 4),
    )
    cost_tiles = pl.pallas_call(
        _ctc_kernel,
        grid_spec=grid_spec,
        out_shape=jax.ShapeDtypeStruct((B_pad, LANES), jnp.float32),
        compiler_params=pltpu.CompilerParams(
            dimension_semantics=("parallel",),
            vmem_limit_bytes=vmem_limit),
        cost_estimate=cost_hint,
    )(block_tmax, acts, ext, aux)

    costs = cost_tiles[:B, 0]                         # (B,) per-example NLL
    costs = jnp.where(act_lens > 0, costs, 0.0)       # empty input -> 0 loss
    total = jnp.sum(costs)
    if length_average:
        total = total / jnp.maximum(jnp.sum(act_lens).astype(jnp.float32), 1.0)
    elif size_average:
        total = total / jnp.float32(B)
    return jnp.reshape(total, (1,)).astype(jnp.float32)


class CTCLoss:
    def __init__(self, reuse_acts=True, blank=0, size_average=False,
                 length_average=False):
        self.blank = blank
        self.size_average = size_average
        self.length_average = length_average
        self.reuse_acts = reuse_acts   # grads-only concern; no effect on loss

    def __call__(self, acts, labels, act_lens, label_lens):
        return ctc_loss(acts, labels, act_lens, label_lens, blank=self.blank,
                        size_average=self.size_average,
                        length_average=self.length_average)


# ----------------------- pure-numpy reference ------------------------------
def _np_logsumexp(vals):
    vals = np.asarray(vals, dtype=np.float64)
    m = np.max(vals)
    if not np.isfinite(m):
        return -np.inf
    return float(m + np.log(np.sum(np.exp(vals - m))))


def _ctc_reference(acts, labels, act_lens, label_lens, blank=0):
    acts = np.asarray(acts, dtype=np.float64)
    T, B, C = acts.shape
    costs = np.zeros(B, dtype=np.float64)
    off = 0
    for b in range(B):
        L = int(label_lens[b]); Tb = int(act_lens[b])
        lab = [int(v) for v in labels[off:off + L]]; off += L
        ext = [blank]
        for v in lab:
            ext += [v, blank]
        S = len(ext)
        x = acts[:Tb, b, :]
        m = x.max(axis=-1, keepdims=True)
        logp = x - (m + np.log(np.exp(x - m).sum(axis=-1, keepdims=True)))
        alpha = np.full((Tb, S), -np.inf)
        alpha[0, 0] = logp[0, ext[0]]
        if S > 1:
            alpha[0, 1] = logp[0, ext[1]]
        for t in range(1, Tb):
            for si in range(S):
                cands = [alpha[t - 1, si]]
                if si >= 1:
                    cands.append(alpha[t - 1, si - 1])
                if si >= 2 and ext[si] != blank and ext[si] != ext[si - 2]:
                    cands.append(alpha[t - 1, si - 2])
                alpha[t, si] = logp[t, ext[si]] + _np_logsumexp(cands)
        fin = [alpha[Tb - 1, S - 1]]
        if S > 1:
            fin.append(alpha[Tb - 1, S - 2])
        costs[b] = -_np_logsumexp(fin)
    return costs


if __name__ == "__main__":
    key = jax.random.PRNGKey(0)
    T, B, C = 16, 2, 8                      # seq x batch x output dim (incl. blank)
    acts = jax.random.normal(key, (T, B, C), dtype=jnp.float32)
    labels = jnp.array([1, 3, 2, 4, 1], dtype=jnp.int32)      # flat batch labels
    label_lens = jnp.array([3, 2], dtype=jnp.int32)
    act_lens = jnp.array([16, 12], dtype=jnp.int32)

    loss_fn = CTCLoss()
    out = jax.block_until_ready(loss_fn(acts, labels, act_lens, label_lens))

    ref = _ctc_reference(np.asarray(acts), np.asarray(labels),
                         np.asarray(act_lens), np.asarray(label_lens), blank=0)
    assert out.shape == (1,), out.shape
    assert np.allclose(float(out[0]), ref.sum(), rtol=1e-3, atol=1e-3), \
        (float(out[0]), ref.sum())
    print("KERNEL_OK")
</pallas_src>

<mosaic_0001>
module attributes {stable_mosaic.version = 11 : i64} {
  func.func @_ctc_kernel(%arg0: i32, %arg1: memref<1xi32, #tpu.memory_space<smem>>, %arg2: memref<16x16x8xf32, #tpu.memory_space<vmem>>, %arg3: memref<16x128xi32, #tpu.memory_space<vmem>>, %arg4: memref<5x16x128xf32, #tpu.memory_space<vmem>>, %arg5: memref<16x128xf32, #tpu.memory_space<vmem>>, %arg6: memref<16x16x128xf32, #tpu.memory_space<vmem>>) attributes {dimension_semantics = [#tpu.dimension_semantics<parallel>], iteration_bounds = array<i64: 1>, scalar_prefetch = 1 : i64, scratch_operands = 1 : i64, tpu.core_type = #tpu.core_type<tc>, window_params = [{transform_indices = @transform_0, window_bounds = array<i64: 16, 16, 8>}, {transform_indices = @transform_1, window_bounds = array<i64: 16, 128>}, {transform_indices = @transform_2, window_bounds = array<i64: 5, 16, 128>}, {transform_indices = @transform_3, window_bounds = array<i64: 16, 128>}]} {
    %0 = tpu.iota {dimensions = array<i32: 0>} : vector<8x128xi32>
    %c0 = arith.constant 0 : index
    %c0_0 = arith.constant 0 : index
    %c0_1 = arith.constant 0 : index
    %1 = vector.load %arg2[%c0, %c0_0, %c0_1] : memref<16x16x8xf32, #tpu.memory_space<vmem>>, vector<16x1x8xf32>
    %2 = vector.shape_cast %1 : vector<16x1x8xf32> to vector<16x8xf32>
    %cst = arith.constant dense<0xFF800000> : vector<16xf32>
    %3 = vector.multi_reduction <maximumf>, %2, %cst [1] : vector<16x8xf32> to vector<16xf32>
    %4 = vector.shape_cast %3 : vector<16xf32> to vector<16x1xf32>
    %5 = vector.broadcast %4 : vector<16x1xf32> to vector<16x8xf32>
    %6 = arith.subf %2, %5 : vector<16x8xf32>
    %7 = math.exp %6 : vector<16x8xf32>
    %cst_2 = arith.constant dense<0.000000e+00> : vector<16xf32>
    %8 = vector.multi_reduction <add>, %7, %cst_2 [1] : vector<16x8xf32> to vector<16xf32>
    %9 = vector.shape_cast %8 : vector<16xf32> to vector<16x1xf32>
    %10 = math.log %9 : vector<16x1xf32>
    %11 = arith.addf %4, %10 : vector<16x1xf32>
    %12 = vector.broadcast %11 : vector<16x1xf32> to vector<16x8xf32>
    %13 = arith.subf %2, %12 : vector<16x8xf32>
    %c0_3 = arith.constant 0 : index
    %c0_4 = arith.constant 0 : index
    %14 = vector.load %arg3[%c0_3, %c0_4] : memref<16x128xi32, #tpu.memory_space<vmem>>, vector<1x128xi32>
    %15 = vector.broadcast %14 : vector<1x128xi32> to vector<8x128xi32>
    %16 = arith.cmpi eq, %0, %15 : vector<8x128xi32>
    %17 = arith.extui %16 : vector<8x128xi1> to vector<8x128xi32>
    %18 = arith.sitofp %17 : vector<8x128xi32> to vector<8x128xf32>
    %cst_5 = arith.constant dense<0.000000e+00> : vector<16x128xf32>
    %19 = tpu.matmul %13, %18, %cst_5 {dimension_numbers = #tpu.dot_dimension_numbers<[1], [0], [0], [1], [0, 0, 1, 1], [], []>} : vector<16x8xf32>, vector<8x128xf32>, vector<16x128xf32> -> vector<16x128xf32>
    %c1 = arith.constant 1 : index
    %c0_6 = arith.constant 0 : index
    %c0_7 = arith.constant 0 : index
    %20 = vector.load %arg4[%c1, %c0_6, %c0_7] : memref<5x16x128xf32, #tpu.memory_space<vmem>>, vector<1x1x128xf32>
    %21 = vector.shape_cast %20 : vector<1x1x128xf32> to vector<1x128xf32>
    %22 = vector.broadcast %21 : vector<1x128xf32> to vector<16x128xf32>
    %23 = arith.addf %19, %22 : vector<16x128xf32>
    %cst_8 = arith.constant -1.000000e+30 : f32
    %24 = vector.broadcast %cst_8 : f32 to vector<16x128xf32>
    %25 = arith.maximumf %23, %24 : vector<16x128xf32>
    %c0_9 = arith.constant 0 : index
    %c0_10 = arith.constant 0 : index
    %c0_11 = arith.constant 0 : index
    %26 = vector.load %arg6[%c0_9, %c0_10, %c0_11] : memref<16x16x128xf32, #tpu.memory_space<vmem>>, vector<16x1x128xf32>
    %27 = vector.shape_cast %26 : vector<16x1x128xf32> to vector<16x128xf32>
    %28 = vector.shape_cast %25 : vector<16x128xf32> to vector<16x1x128xf32>
    tpu.vector_store %arg6[%c0_9, %c0_10, %c0_11], %28 {strides = array<i32>} : memref<16x16x128xf32, #tpu.memory_space<vmem>>, vector<16x1x128xf32>,
    %c0_12 = arith.constant 0 : index
    %c1_13 = arith.constant 1 : index
    %c0_14 = arith.constant 0 : index
    %29 = vector.load %arg2[%c0_12, %c1_13, %c0_14] : memref<16x16x8xf32, #tpu.memory_space<vmem>>, vector<16x1x8xf32>
    %30 = vector.shape_cast %29 : vector<16x1x8xf32> to vector<16x8xf32>
    %cst_15 = arith.constant dense<0xFF800000> : vector<16xf32>
    %31 = vector.multi_reduction <maximumf>, %30, %cst_15 [1] : vector<16x8xf32> to vector<16xf32>
    %32 = vector.shape_cast %31 : vector<16xf32> to vector<16x1xf32>
    %33 = vector.broadcast %32 : vector<16x1xf32> to vector<16x8xf32>
    %34 = arith.subf %30, %33 : vector<16x8xf32>
    %35 = math.exp %34 : vector<16x8xf32>
    %cst_16 = arith.constant dense<0.000000e+00> : vector<16xf32>
    %36 = vector.multi_reduction <add>, %35, %cst_16 [1] : vector<16x8xf32> to vector<16xf32>
    %37 = vector.shape_cast %36 : vector<16xf32> to vector<16x1xf32>
    %38 = math.log %37 : vector<16x1xf32>
    %39 = arith.addf %32, %38 : vector<16x1xf32>
    %40 = vector.broadcast %39 : vector<16x1xf32> to vector<16x8xf32>
    %41 = arith.subf %30, %40 : vector<16x8xf32>
    %c1_17 = arith.constant 1 : index
    %c0_18 = arith.constant 0 : index
    %42 = vector.load %arg3[%c1_17, %c0_18] : memref<16x128xi32, #tpu.memory_space<vmem>>, vector<1x128xi32>
    %43 = vector.broadcast %42 : vector<1x128xi32> to vector<8x128xi32>
    %44 = arith.cmpi eq, %0, %43 : vector<8x128xi32>
    %45 = arith.extui %44 : vector<8x128xi1> to vector<8x128xi32>
    %46 = arith.sitofp %45 : vector<8x128xi32> to vector<8x128xf32>
    %cst_19 = arith.constant dense<0.000000e+00> : vector<16x128xf32>
    %47 = tpu.matmul %41, %46, %cst_19 {dimension_numbers = #tpu.dot_dimension_numbers<[1], [0], [0], [1], [0, 0, 1, 1], [], []>} : vector<16x8xf32>, vector<8x128xf32>, vector<16x128xf32> -> vector<16x128xf32>
    %c1_20 = arith.constant 1 : index
    %c1_21 = arith.constant 1 : index
    %c0_22 = arith.constant 0 : index
    %48 = vector.load %arg4[%c1_20, %c1_21, %c0_22] : memref<5x16x128xf32, #tpu.memory_space<vmem>>, vector<1x1x128xf32>
    %49 = vector.shape_cast %48 : vector<1x1x128xf32> to vector<1x128xf32>
    %50 = vector.broadcast %49 : vector<1x128xf32> to vector<16x128xf32>
    %51 = arith.addf %47, %50 : vector<16x128xf32>
    %cst_23 = arith.constant -1.000000e+30 : f32
    %52 = vector.broadcast %cst_23 : f32 to vector<16x128xf32>
    %53 = arith.maximumf %51, %52 : vector<16x128xf32>
    %c0_24 = arith.constant 0 : index
    %c1_25 = arith.constant 1 : index
    %c0_26 = arith.constant 0 : index
    %54 = vector.load %arg6[%c0_24, %c1_25, %c0_26] : memref<16x16x128xf32, #tpu.memory_space<vmem>>, vector<16x1x128xf32>
    %55 = vector.shape_cast %54 : vector<16x1x128xf32> to vector<16x128xf32>
    %56 = vector.shape_cast %53 : vector<16x128xf32> to vector<16x1x128xf32>
    tpu.vector_store %arg6[%c0_24, %c1_25, %c0_26], %56 {strides = array<i32>} : memref<16x16x128xf32, #tpu.memory_space<vmem>>, vector<16x1x128xf32>,
    %c0_27 = arith.constant 0 : index
    %c2 = arith.constant 2 : index
    %c0_28 = arith.constant 0 : index
    %57 = vector.load %arg2[%c0_27, %c2, %c0_28] : memref<16x16x8xf32, #tpu.memory_space<vmem>>, vector<16x1x8xf32>
    %58 = vector.shape_cast %57 : vector<16x1x8xf32> to vector<16x8xf32>
    %cst_29 = arith.constant dense<0xFF800000> : vector<16xf32>
    %59 = vector.multi_reduction <maximumf>, %58, %cst_29 [1] : vector<16x8xf32> to vector<16xf32>
    %60 = vector.shape_cast %59 : vector<16xf32> to vector<16x1xf32>
    %61 = vector.broadcast %60 : vector<16x1xf32> to vector<16x8xf32>
    %62 = arith.subf %58, %61 : vector<16x8xf32>
    %63 = math.exp %62 : vector<16x8xf32>
    %cst_30 = arith.constant dense<0.000000e+00> : vector<16xf32>
    %64 = vector.multi_reduction <add>, %63, %cst_30 [1] : vector<16x8xf32> to vector<16xf32>
    %65 = vector.shape_cast %64 : vector<16xf32> to vector<16x1xf32>
    %66 = math.log %65 : vector<16x1xf32>
    %67 = arith.addf %60, %66 : vector<16x1xf32>
    %68 = vector.broadcast %67 : vector<16x1xf32> to vector<16x8xf32>
    %69 = arith.subf %58, %68 : vector<16x8xf32>
    %c2_31 = arith.constant 2 : index
    %c0_32 = arith.constant 0 : index
    %70 = vector.load %arg3[%c2_31, %c0_32] : memref<16x128xi32, #tpu.memory_space<vmem>>, vector<1x128xi32>
    %71 = vector.broadcast %70 : vector<1x128xi32> to vector<8x128xi32>
    %72 = arith.cmpi eq, %0, %71 : vector<8x128xi32>
    %73 = arith.extui %72 : vector<8x128xi1> to vector<8x128xi32>
    %74 = arith.sitofp %73 : vector<8x128xi32> to vector<8x128xf32>
    %cst_33 = arith.constant dense<0.000000e+00> : vector<16x128xf32>
    %75 = tpu.matmul %69, %74, %cst_33 {dimension_numbers = #tpu.dot_dimension_numbers<[1], [0], [0], [1], [0, 0, 1, 1], [], []>} : vector<16x8xf32>, vector<8x128xf32>, vector<16x128xf32> -> vector<16x128xf32>
    %c1_34 = arith.constant 1 : index
    %c2_35 = arith.constant 2 : index
    %c0_36 = arith.constant 0 : index
    %76 = vector.load %arg4[%c1_34, %c2_35, %c0_36] : memref<5x16x128xf32, #tpu.memory_space<vmem>>, vector<1x1x128xf32>
    %77 = vector.shape_cast %76 : vector<1x1x128xf32> to vector<1x128xf32>
    %78 = vector.broadcast %77 : vector<1x128xf32> to vector<16x128xf32>
    %79 = arith.addf %75, %78 : vector<16x128xf32>
    %cst_37 = arith.constant -1.000000e+30 : f32
    %80 = vector.broadcast %cst_37 : f32 to vector<16x128xf32>
    %81 = arith.maximumf %79, %80 : vector<16x128xf32>
    %c0_38 = arith.constant 0 : index
    %c2_39 = arith.constant 2 : index
    %c0_40 = arith.constant 0 : index
    %82 = vector.load %arg6[%c0_38, %c2_39, %c0_40] : memref<16x16x128xf32, #tpu.memory_space<vmem>>, vector<16x1x128xf32>
    %83 = vector.shape_cast %82 : vector<16x1x128xf32> to vector<16x128xf32>
    %84 = vector.shape_cast %81 : vector<16x128xf32> to vector<16x1x128xf32>
    tpu.vector_store %arg6[%c0_38, %c2_39, %c0_40], %84 {strides = array<i32>} : memref<16x16x128xf32, #tpu.memory_space<vmem>>, vector<16x1x128xf32>,
    %c0_41 = arith.constant 0 : index
    %c3 = arith.constant 3 : index
    %c0_42 = arith.constant 0 : index
    %85 = vector.load %arg2[%c0_41, %c3, %c0_42] : memref<16x16x8xf32, #tpu.memory_space<vmem>>, vector<16x1x8xf32>
    %86 = vector.shape_cast %85 : vector<16x1x8xf32> to vector<16x8xf32>
    %cst_43 = arith.constant dense<0xFF800000> : vector<16xf32>
    %87 = vector.multi_reduction <maximumf>, %86, %cst_43 [1] : vector<16x8xf32> to vector<16xf32>
    %88 = vector.shape_cast %87 : vector<16xf32> to vector<16x1xf32>
    %89 = vector.broadcast %88 : vector<16x1xf32> to vector<16x8xf32>
    %90 = arith.subf %86, %89 : vector<16x8xf32>
    %91 = math.exp %90 : vector<16x8xf32>
    %cst_44 = arith.constant dense<0.000000e+00> : vector<16xf32>
    %92 = vector.multi_reduction <add>, %91, %cst_44 [1] : vector<16x8xf32> to vector<16xf32>
    %93 = vector.shape_cast %92 : vector<16xf32> to vector<16x1xf32>
    %94 = math.log %93 : vector<16x1xf32>
    %95 = arith.addf %88, %94 : vector<16x1xf32>
    %96 = vector.broadcast %95 : vector<16x1xf32> to vector<16x8xf32>
    %97 = arith.subf %86, %96 : vector<16x8xf32>
    %c3_45 = arith.constant 3 : index
    %c0_46 = arith.constant 0 : index
    %98 = vector.load %arg3[%c3_45, %c0_46] : memref<16x128xi32, #tpu.memory_space<vmem>>, vector<1x128xi32>
    %99 = vector.broadcast %98 : vector<1x128xi32> to vector<8x128xi32>
    %100 = arith.cmpi eq, %0, %99 : vector<8x128xi32>
    %101 = arith.extui %100 : vector<8x128xi1> to vector<8x128xi32>
    %102 = arith.sitofp %101 : vector<8x128xi32> to vector<8x128xf32>
    %cst_47 = arith.constant dense<0.000000e+00> : vector<16x128xf32>
    %103 = tpu.matmul %97, %102, %cst_47 {dimension_numbers = #tpu.dot_dimension_numbers<[1], [0], [0], [1], [0, 0, 1, 1], [], []>} : vector<16x8xf32>, vector<8x128xf32>, vector<16x128xf32> -> vector<16x128xf32>
    %c1_48 = arith.constant 1 : index
    %c3_49 = arith.constant 3 : index
    %c0_50 = arith.constant 0 : index
    %104 = vector.load %arg4[%c1_48, %c3_49, %c0_50] : memref<5x16x128xf32, #tpu.memory_space<vmem>>, vector<1x1x128xf32>
    %105 = vector.shape_cast %104 : vector<1x1x128xf32> to vector<1x128xf32>
    %106 = vector.broadcast %105 : vector<1x128xf32> to vector<16x128xf32>
    %107 = arith.addf %103, %106 : vector<16x128xf32>
    %cst_51 = arith.constant -1.000000e+30 : f32
    %108 = vector.broadcast %cst_51 : f32 to vector<16x128xf32>
    %109 = arith.maximumf %107, %108 : vector<16x128xf32>
    %c0_52 = arith.constant 0 : index
    %c3_53 = arith.constant 3 : index
    %c0_54 = arith.constant 0 : index
    %110 = vector.load %arg6[%c0_52, %c3_53, %c0_54] : memref<16x16x128xf32, #tpu.memory_space<vmem>>, vector<16x1x128xf32>
    %111 = vector.shape_cast %110 : vector<16x1x128xf32> to vector<16x128xf32>
    %112 = vector.shape_cast %109 : vector<16x128xf32> to vector<16x1x128xf32>
    tpu.vector_store %arg6[%c0_52, %c3_53, %c0_54], %112 {strides = array<i32>} : memref<16x16x128xf32, #tpu.memory_space<vmem>>, vector<16x1x128xf32>,
    %c0_55 = arith.constant 0 : index
    %c4 = arith.constant 4 : index
    %c0_56 = arith.constant 0 : index
    %113 = vector.load %arg2[%c0_55, %c4, %c0_56] : memref<16x16x8xf32, #tpu.memory_space<vmem>>, vector<16x1x8xf32>
    %114 = vector.shape_cast %113 : vector<16x1x8xf32> to vector<16x8xf32>
    %cst_57 = arith.constant dense<0xFF800000> : vector<16xf32>
    %115 = vector.multi_reduction <maximumf>, %114, %cst_57 [1] : vector<16x8xf32> to vector<16xf32>
    %116 = vector.shape_cast %115 : vector<16xf32> to vector<16x1xf32>
    %117 = vector.broadcast %116 : vector<16x1xf32> to vector<16x8xf32>
    %118 = arith.subf %114, %117 : vector<16x8xf32>
    %119 = math.exp %118 : vector<16x8xf32>
    %cst_58 = arith.constant dense<0.000000e+00> : vector<16xf32>
    %120 = vector.multi_reduction <add>, %119, %cst_58 [1] : vector<16x8xf32> to vector<16xf32>
    %121 = vector.shape_cast %120 : vector<16xf32> to vector<16x1xf32>
    %122 = math.log %121 : vector<16x1xf32>
    %123 = arith.addf %116, %122 : vector<16x1xf32>
    %124 = vector.broadcast %123 : vector<16x1xf32> to vector<16x8xf32>
    %125 = arith.subf %114, %124 : vector<16x8xf32>
    %c4_59 = arith.constant 4 : index
    %c0_60 = arith.constant 0 : index
    %126 = vector.load %arg3[%c4_59, %c0_60] : memref<16x128xi32, #tpu.memory_space<vmem>>, vector<1x128xi32>
    %127 = vector.broadcast %126 : vector<1x128xi32> to vector<8x128xi32>
    %128 = arith.cmpi eq, %0, %127 : vector<8x128xi32>
    %129 = arith.extui %128 : vector<8x128xi1> to vector<8x128xi32>
    %130 = arith.sitofp %129 : vector<8x128xi32> to vector<8x128xf32>
    %cst_61 = arith.constant dense<0.000000e+00> : vector<16x128xf32>
    %131 = tpu.matmul %125, %130, %cst_61 {dimension_numbers = #tpu.dot_dimension_numbers<[1], [0], [0], [1], [0, 0, 1, 1], [], []>} : vector<16x8xf32>, vector<8x128xf32>, vector<16x128xf32> -> vector<16x128xf32>
    %c1_62 = arith.constant 1 : index
    %c4_63 = arith.constant 4 : index
    %c0_64 = arith.constant 0 : index
    %132 = vector.load %arg4[%c1_62, %c4_63, %c0_64] : memref<5x16x128xf32, #tpu.memory_space<vmem>>, vector<1x1x128xf32>
    %133 = vector.shape_cast %132 : vector<1x1x128xf32> to vector<1x128xf32>
    %134 = vector.broadcast %133 : vector<1x128xf32> to vector<16x128xf32>
    %135 = arith.addf %131, %134 : vector<16x128xf32>
    %cst_65 = arith.constant -1.000000e+30 : f32
    %136 = vector.broadcast %cst_65 : f32 to vector<16x128xf32>
    %137 = arith.maximumf %135, %136 : vector<16x128xf32>
    %c0_66 = arith.constant 0 : index
    %c4_67 = arith.constant 4 : index
    %c0_68 = arith.constant 0 : index
    %138 = vector.load %arg6[%c0_66, %c4_67, %c0_68] : memref<16x16x128xf32, #tpu.memory_space<vmem>>, vector<16x1x128xf32>
    %139 = vector.shape_cast %138 : vector<16x1x128xf32> to vector<16x128xf32>
    %140 = vector.shape_cast %137 : vector<16x128xf32> to vector<16x1x128xf32>
    tpu.vector_store %arg6[%c0_66, %c4_67, %c0_68], %140 {strides = array<i32>} : memref<16x16x128xf32, #tpu.memory_space<vmem>>, vector<16x1x128xf32>,
    %c0_69 = arith.constant 0 : index
    %c5 = arith.constant 5 : index
    %c0_70 = arith.constant 0 : index
    %141 = vector.load %arg2[%c0_69, %c5, %c0_70] : memref<16x16x8xf32, #tpu.memory_space<vmem>>, vector<16x1x8xf32>
    %142 = vector.shape_cast %141 : vector<16x1x8xf32> to vector<16x8xf32>
    %cst_71 = arith.constant dense<0xFF800000> : vector<16xf32>
    %143 = vector.multi_reduction <maximumf>, %142, %cst_71 [1] : vector<16x8xf32> to vector<16xf32>
    %144 = vector.shape_cast %143 : vector<16xf32> to vector<16x1xf32>
    %145 = vector.broadcast %144 : vector<16x1xf32> to vector<16x8xf32>
    %146 = arith.subf %142, %145 : vector<16x8xf32>
    %147 = math.exp %146 : vector<16x8xf32>
    %cst_72 = arith.constant dense<0.000000e+00> : vector<16xf32>
    %148 = vector.multi_reduction <add>, %147, %cst_72 [1] : vector<16x8xf32> to vector<16xf32>
    %149 = vector.shape_cast %148 : vector<16xf32> to vector<16x1xf32>
    %150 = math.log %149 : vector<16x1xf32>
    %151 = arith.addf %144, %150 : vector<16x1xf32>
    %152 = vector.broadcast %151 : vector<16x1xf32> to vector<16x8xf32>
    %153 = arith.subf %142, %152 : vector<16x8xf32>
    %c5_73 = arith.constant 5 : index
    %c0_74 = arith.constant 0 : index
    %154 = vector.load %arg3[%c5_73, %c0_74] : memref<16x128xi32, #tpu.memory_space<vmem>>, vector<1x128xi32>
    %155 = vector.broadcast %154 : vector<1x128xi32> to vector<8x128xi32>
    %156 = arith.cmpi eq, %0, %155 : vector<8x128xi32>
    %157 = arith.extui %156 : vector<8x128xi1> to vector<8x128xi32>
    %158 = arith.sitofp %157 : vector<8x128xi32> to vector<8x128xf32>
    %cst_75 = arith.constant dense<0.000000e+00> : vector<16x128xf32>
    %159 = tpu.matmul %153, %158, %cst_75 {dimension_numbers = #tpu.dot_dimension_numbers<[1], [0], [0], [1], [0, 0, 1, 1], [], []>} : vector<16x8xf32>, vector<8x128xf32>, vector<16x128xf32> -> vector<16x128xf32>
    %c1_76 = arith.constant 1 : index
    %c5_77 = arith.constant 5 : index
    %c0_78 = arith.constant 0 : index
    %160 = vector.load %arg4[%c1_76, %c5_77, %c0_78] : memref<5x16x128xf32, #tpu.memory_space<vmem>>, vector<1x1x128xf32>
    %161 = vector.shape_cast %160 : vector<1x1x128xf32> to vector<1x128xf32>
    %162 = vector.broadcast %161 : vector<1x128xf32> to vector<16x128xf32>
    %163 = arith.addf %159, %162 : vector<16x128xf32>
    %cst_79 = arith.constant -1.000000e+30 : f32
    %164 = vector.broadcast %cst_79 : f32 to vector<16x128xf32>
    %165 = arith.maximumf %163, %164 : vector<16x128xf32>
    %c0_80 = arith.constant 0 : index
    %c5_81 = arith.constant 5 : index
    %c0_82 = arith.constant 0 : index
    %166 = vector.load %arg6[%c0_80, %c5_81, %c0_82] : memref<16x16x128xf32, #tpu.memory_space<vmem>>, vector<16x1x128xf32>
    %167 = vector.shape_cast %166 : vector<16x1x128xf32> to vector<16x128xf32>
    %168 = vector.shape_cast %165 : vector<16x128xf32> to vector<16x1x128xf32>
    tpu.vector_store %arg6[%c0_80, %c5_81, %c0_82], %168 {strides = array<i32>} : memref<16x16x128xf32, #tpu.memory_space<vmem>>, vector<16x1x128xf32>,
    %c0_83 = arith.constant 0 : index
    %c6 = arith.constant 6 : index
    %c0_84 = arith.constant 0 : index
    %169 = vector.load %arg2[%c0_83, %c6, %c0_84] : memref<16x16x8xf32, #tpu.memory_space<vmem>>, vector<16x1x8xf32>
    %170 = vector.shape_cast %169 : vector<16x1x8xf32> to vector<16x8xf32>
    %cst_85 = arith.constant dense<0xFF800000> : vector<16xf32>
    %171 = vector.multi_reduction <maximumf>, %170, %cst_85 [1] : vector<16x8xf32> to vector<16xf32>
    %172 = vector.shape_cast %171 : vector<16xf32> to vector<16x1xf32>
    %173 = vector.broadcast %172 : vector<16x1xf32> to vector<16x8xf32>
    %174 = arith.subf %170, %173 : vector<16x8xf32>
    %175 = math.exp %174 : vector<16x8xf32>
    %cst_86 = arith.constant dense<0.000000e+00> : vector<16xf32>
    %176 = vector.multi_reduction <add>, %175, %cst_86 [1] : vector<16x8xf32> to vector<16xf32>
    %177 = vector.shape_cast %176 : vector<16xf32> to vector<16x1xf32>
    %178 = math.log %177 : vector<16x1xf32>
    %179 = arith.addf %172, %178 : vector<16x1xf32>
    %180 = vector.broadcast %179 : vector<16x1xf32> to vector<16x8xf32>
    %181 = arith.subf %170, %180 : vector<16x8xf32>
    %c6_87 = arith.constant 6 : index
    %c0_88 = arith.constant 0 : index
    %182 = vector.load %arg3[%c6_87, %c0_88] : memref<16x128xi32, #tpu.memory_space<vmem>>, vector<1x128xi32>
    %183 = vector.broadcast %182 : vector<1x128xi32> to vector<8x128xi32>
    %184 = arith.cmpi eq, %0, %183 : vector<8x128xi32>
    %185 = arith.extui %184 : vector<8x128xi1> to vector<8x128xi32>
    %186 = arith.sitofp %185 : vector<8x128xi32> to vector<8x128xf32>
    %cst_89 = arith.constant dense<0.000000e+00> : vector<16x128xf32>
    %187 = tpu.matmul %181, %186, %cst_89 {dimension_numbers = #tpu.dot_dimension_numbers<[1], [0], [0], [1], [0, 0, 1, 1], [], []>} : vector<16x8xf32>, vector<8x128xf32>, vector<16x128xf32> -> vector<16x128xf32>
    %c1_90 = arith.constant 1 : index
    %c6_91 = arith.constant 6 : index
    %c0_92 = arith.constant 0 : index
    %188 = vector.load %arg4[%c1_90, %c6_91, %c0_92] : memref<5x16x128xf32, #tpu.memory_space<vmem>>, vector<1x1x128xf32>
    %189 = vector.shape_cast %188 : vector<1x1x128xf32> to vector<1x128xf32>
    %190 = vector.broadcast %189 : vector<1x128xf32> to vector<16x128xf32>
    %191 = arith.addf %187, %190 : vector<16x128xf32>
    %cst_93 = arith.constant -1.000000e+30 : f32
    %192 = vector.broadcast %cst_93 : f32 to vector<16x128xf32>
    %193 = arith.maximumf %191, %192 : vector<16x128xf32>
    %c0_94 = arith.constant 0 : index
    %c6_95 = arith.constant 6 : index
    %c0_96 = arith.constant 0 : index
    %194 = vector.load %arg6[%c0_94, %c6_95, %c0_96] : memref<16x16x128xf32, #tpu.memory_space<vmem>>, vector<16x1x128xf32>
    %195 = vector.shape_cast %194 : vector<16x1x128xf32> to vector<16x128xf32>
    %196 = vector.shape_cast %193 : vector<16x128xf32> to vector<16x1x128xf32>
    tpu.vector_store %arg6[%c0_94, %c6_95, %c0_96], %196 {strides = array<i32>} : memref<16x16x128xf32, #tpu.memory_space<vmem>>, vector<16x1x128xf32>,
    %c0_97 = arith.constant 0 : index
    %c7 = arith.constant 7 : index
    %c0_98 = arith.constant 0 : index
    %197 = vector.load %arg2[%c0_97, %c7, %c0_98] : memref<16x16x8xf32, #tpu.memory_space<vmem>>, vector<16x1x8xf32>
    %198 = vector.shape_cast %197 : vector<16x1x8xf32> to vector<16x8xf32>
    %cst_99 = arith.constant dense<0xFF800000> : vector<16xf32>
    %199 = vector.multi_reduction <maximumf>, %198, %cst_99 [1] : vector<16x8xf32> to vector<16xf32>
    %200 = vector.shape_cast %199 : vector<16xf32> to vector<16x1xf32>
    %201 = vector.broadcast %200 : vector<16x1xf32> to vector<16x8xf32>
    %202 = arith.subf %198, %201 : vector<16x8xf32>
    %203 = math.exp %202 : vector<16x8xf32>
    %cst_100 = arith.constant dense<0.000000e+00> : vector<16xf32>
    %204 = vector.multi_reduction <add>, %203, %cst_100 [1] : vector<16x8xf32> to vector<16xf32>
    %205 = vector.shape_cast %204 : vector<16xf32> to vector<16x1xf32>
    %206 = math.log %205 : vector<16x1xf32>
    %207 = arith.addf %200, %206 : vector<16x1xf32>
    %208 = vector.broadcast %207 : vector<16x1xf32> to vector<16x8xf32>
    %209 = arith.subf %198, %208 : vector<16x8xf32>
    %c7_101 = arith.constant 7 : index
    %c0_102 = arith.constant 0 : index
    %210 = vector.load %arg3[%c7_101, %c0_102] : memref<16x128xi32, #tpu.memory_space<vmem>>, vector<1x128xi32>
    %211 = vector.broadcast %210 : vector<1x128xi32> to vector<8x128xi32>
    %212 = arith.cmpi eq, %0, %211 : vector<8x128xi32>
    %213 = arith.extui %212 : vector<8x128xi1> to vector<8x128xi32>
    %214 = arith.sitofp %213 : vector<8x128xi32> to vector<8x128xf32>
    %cst_103 = arith.constant dense<0.000000e+00> : vector<16x128xf32>
    %215 = tpu.matmul %209, %214, %cst_103 {dimension_numbers = #tpu.dot_dimension_numbers<[1], [0], [0], [1], [0, 0, 1, 1], [], []>} : vector<16x8xf32>, vector<8x128xf32>, vector<16x128xf32> -> vector<16x128xf32>
    %c1_104 = arith.constant 1 : index
    %c7_105 = arith.constant 7 : index
    %c0_106 = arith.constant 0 : index
    %216 = vector.load %arg4[%c1_104, %c7_105, %c0_106] : memref<5x16x128xf32, #tpu.memory_space<vmem>>, vector<1x1x128xf32>
    %217 = vector.shape_cast %216 : vector<1x1x128xf32> to vector<1x128xf32>
    %218 = vector.broadcast %217 : vector<1x128xf32> to vector<16x128xf32>
    %219 = arith.addf %215, %218 : vector<16x128xf32>
    %cst_107 = arith.constant -1.000000e+30 : f32
    %220 = vector.broadcast %cst_107 : f32 to vector<16x128xf32>
    %221 = arith.maximumf %219, %220 : vector<16x128xf32>
    %c0_108 = arith.constant 0 : index
    %c7_109 = arith.constant 7 : index
    %c0_110 = arith.constant 0 : index
    %222 = vector.load %arg6[%c0_108, %c7_109, %c0_110] : memref<16x16x128xf32, #tpu.memory_space<vmem>>, vector<16x1x128xf32>
    %223 = vector.shape_cast %222 : vector<16x1x128xf32> to vector<16x128xf32>
    %224 = vector.shape_cast %221 : vector<16x128xf32> to vector<16x1x128xf32>
    tpu.vector_store %arg6[%c0_108, %c7_109, %c0_110], %224 {strides = array<i32>} : memref<16x16x128xf32, #tpu.memory_space<vmem>>, vector<16x1x128xf32>,
    %c0_111 = arith.constant 0 : index
    %c8 = arith.constant 8 : index
    %c0_112 = arith.constant 0 : index
    %225 = vector.load %arg2[%c0_111, %c8, %c0_112] : memref<16x16x8xf32, #tpu.memory_space<vmem>>, vector<16x1x8xf32>
    %226 = vector.shape_cast %225 : vector<16x1x8xf32> to vector<16x8xf32>
    %cst_113 = arith.constant dense<0xFF800000> : vector<16xf32>
    %227 = vector.multi_reduction <maximumf>, %226, %cst_113 [1] : vector<16x8xf32> to vector<16xf32>
    %228 = vector.shape_cast %227 : vector<16xf32> to vector<16x1xf32>
    %229 = vector.broadcast %228 : vector<16x1xf32> to vector<16x8xf32>
    %230 = arith.subf %226, %229 : vector<16x8xf32>
    %231 = math.exp %230 : vector<16x8xf32>
    %cst_114 = arith.constant dense<0.000000e+00> : vector<16xf32>
    %232 = vector.multi_reduction <add>, %231, %cst_114 [1] : vector<16x8xf32> to vector<16xf32>
    %233 = vector.shape_cast %232 : vector<16xf32> to vector<16x1xf32>
    %234 = math.log %233 : vector<16x1xf32>
    %235 = arith.addf %228, %234 : vector<16x1xf32>
    %236 = vector.broadcast %235 : vector<16x1xf32> to vector<16x8xf32>
    %237 = arith.subf %226, %236 : vector<16x8xf32>
    %c8_115 = arith.constant 8 : index
    %c0_116 = arith.constant 0 : index
    %238 = vector.load %arg3[%c8_115, %c0_116] : memref<16x128xi32, #tpu.memory_space<vmem>>, vector<1x128xi32>
    %239 = vector.broadcast %238 : vector<1x128xi32> to vector<8x128xi32>
    %240 = arith.cmpi eq, %0, %239 : vector<8x128xi32>
    %241 = arith.extui %240 : vector<8x128xi1> to vector<8x128xi32>
    %242 = arith.sitofp %241 : vector<8x128xi32> to vector<8x128xf32>
    %cst_117 = arith.constant dense<0.000000e+00> : vector<16x128xf32>
    %243 = tpu.matmul %237, %242, %cst_117 {dimension_numbers = #tpu.dot_dimension_numbers<[1], [0], [0], [1], [0, 0, 1, 1], [], []>} : vector<16x8xf32>, vector<8x128xf32>, vector<16x128xf32> -> vector<16x128xf32>
    %c1_118 = arith.constant 1 : index
    %c8_119 = arith.constant 8 : index
    %c0_120 = arith.constant 0 : index
    %244 = vector.load %arg4[%c1_118, %c8_119, %c0_120] : memref<5x16x128xf32, #tpu.memory_space<vmem>>, vector<1x1x128xf32>
    %245 = vector.shape_cast %244 : vector<1x1x128xf32> to vector<1x128xf32>
    %246 = vector.broadcast %245 : vector<1x128xf32> to vector<16x128xf32>
    %247 = arith.addf %243, %246 : vector<16x128xf32>
    %cst_121 = arith.constant -1.000000e+30 : f32
    %248 = vector.broadcast %cst_121 : f32 to vector<16x128xf32>
    %249 = arith.maximumf %247, %248 : vector<16x128xf32>
    %c0_122 = arith.constant 0 : index
    %c8_123 = arith.constant 8 : index
    %c0_124 = arith.constant 0 : index
    %250 = vector.load %arg6[%c0_122, %c8_123, %c0_124] : memref<16x16x128xf32, #tpu.memory_space<vmem>>, vector<16x1x128xf32>
    %251 = vector.shape_cast %250 : vector<16x1x128xf32> to vector<16x128xf32>
    %252 = vector.shape_cast %249 : vector<16x128xf32> to vector<16x1x128xf32>
    tpu.vector_store %arg6[%c0_122, %c8_123, %c0_124], %252 {strides = array<i32>} : memref<16x16x128xf32, #tpu.memory_space<vmem>>, vector<16x1x128xf32>,
    %c0_125 = arith.constant 0 : index
    %c9 = arith.constant 9 : index
    %c0_126 = arith.constant 0 : index
    %253 = vector.load %arg2[%c0_125, %c9, %c0_126] : memref<16x16x8xf32, #tpu.memory_space<vmem>>, vector<16x1x8xf32>
    %254 = vector.shape_cast %253 : vector<16x1x8xf32> to vector<16x8xf32>
    %cst_127 = arith.constant dense<0xFF800000> : vector<16xf32>
    %255 = vector.multi_reduction <maximumf>, %254, %cst_127 [1] : vector<16x8xf32> to vector<16xf32>
    %256 = vector.shape_cast %255 : vector<16xf32> to vector<16x1xf32>
    %257 = vector.broadcast %256 : vector<16x1xf32> to vector<16x8xf32>
    %258 = arith.subf %254, %257 : vector<16x8xf32>
    %259 = math.exp %258 : vector<16x8xf32>
    %cst_128 = arith.constant dense<0.000000e+00> : vector<16xf32>
    %260 = vector.multi_reduction <add>, %259, %cst_128 [1] : vector<16x8xf32> to vector<16xf32>
    %261 = vector.shape_cast %260 : vector<16xf32> to vector<16x1xf32>
    %262 = math.log %261 : vector<16x1xf32>
    %263 = arith.addf %256, %262 : vector<16x1xf32>
    %264 = vector.broadcast %263 : vector<16x1xf32> to vector<16x8xf32>
    %265 = arith.subf %254, %264 : vector<16x8xf32>
    %c9_129 = arith.constant 9 : index
    %c0_130 = arith.constant 0 : index
    %266 = vector.load %arg3[%c9_129, %c0_130] : memref<16x128xi32, #tpu.memory_space<vmem>>, vector<1x128xi32>
    %267 = vector.broadcast %266 : vector<1x128xi32> to vector<8x128xi32>
    %268 = arith.cmpi eq, %0, %267 : vector<8x128xi32>
    %269 = arith.extui %268 : vector<8x128xi1> to vector<8x128xi32>
    %270 = arith.sitofp %269 : vector<8x128xi32> to vector<8x128xf32>
    %cst_131 = arith.constant dense<0.000000e+00> : vector<16x128xf32>
    %271 = tpu.matmul %265, %270, %cst_131 {dimension_numbers = #tpu.dot_dimension_numbers<[1], [0], [0], [1], [0, 0, 1, 1], [], []>} : vector<16x8xf32>, vector<8x128xf32>, vector<16x128xf32> -> vector<16x128xf32>
    %c1_132 = arith.constant 1 : index
    %c9_133 = arith.constant 9 : index
    %c0_134 = arith.constant 0 : index
    %272 = vector.load %arg4[%c1_132, %c9_133, %c0_134] : memref<5x16x128xf32, #tpu.memory_space<vmem>>, vector<1x1x128xf32>
    %273 = vector.shape_cast %272 : vector<1x1x128xf32> to vector<1x128xf32>
    %274 = vector.broadcast %273 : vector<1x128xf32> to vector<16x128xf32>
    %275 = arith.addf %271, %274 : vector<16x128xf32>
    %cst_135 = arith.constant -1.000000e+30 : f32
    %276 = vector.broadcast %cst_135 : f32 to vector<16x128xf32>
    %277 = arith.maximumf %275, %276 : vector<16x128xf32>
    %c0_136 = arith.constant 0 : index
    %c9_137 = arith.constant 9 : index
    %c0_138 = arith.constant 0 : index
    %278 = vector.load %arg6[%c0_136, %c9_137, %c0_138] : memref<16x16x128xf32, #tpu.memory_space<vmem>>, vector<16x1x128xf32>
    %279 = vector.shape_cast %278 : vector<16x1x128xf32> to vector<16x128xf32>
    %280 = vector.shape_cast %277 : vector<16x128xf32> to vector<16x1x128xf32>
    tpu.vector_store %arg6[%c0_136, %c9_137, %c0_138], %280 {strides = array<i32>} : memref<16x16x128xf32, #tpu.memory_space<vmem>>, vector<16x1x128xf32>,
    %c0_139 = arith.constant 0 : index
    %c10 = arith.constant 10 : index
    %c0_140 = arith.constant 0 : index
    %281 = vector.load %arg2[%c0_139, %c10, %c0_140] : memref<16x16x8xf32, #tpu.memory_space<vmem>>, vector<16x1x8xf32>
    %282 = vector.shape_cast %281 : vector<16x1x8xf32> to vector<16x8xf32>
    %cst_141 = arith.constant dense<0xFF800000> : vector<16xf32>
    %283 = vector.multi_reduction <maximumf>, %282, %cst_141 [1] : vector<16x8xf32> to vector<16xf32>
    %284 = vector.shape_cast %283 : vector<16xf32> to vector<16x1xf32>
    %285 = vector.broadcast %284 : vector<16x1xf32> to vector<16x8xf32>
    %286 = arith.subf %282, %285 : vector<16x8xf32>
    %287 = math.exp %286 : vector<16x8xf32>
    %cst_142 = arith.constant dense<0.000000e+00> : vector<16xf32>
    %288 = vector.multi_reduction <add>, %287, %cst_142 [1] : vector<16x8xf32> to vector<16xf32>
    %289 = vector.shape_cast %288 : vector<16xf32> to vector<16x1xf32>
    %290 = math.log %289 : vector<16x1xf32>
    %291 = arith.addf %284, %290 : vector<16x1xf32>
    %292 = vector.broadcast %291 : vector<16x1xf32> to vector<16x8xf32>
    %293 = arith.subf %282, %292 : vector<16x8xf32>
    %c10_143 = arith.constant 10 : index
    %c0_144 = arith.constant 0 : index
    %294 = vector.load %arg3[%c10_143, %c0_144] : memref<16x128xi32, #tpu.memory_space<vmem>>, vector<1x128xi32>
    %295 = vector.broadcast %294 : vector<1x128xi32> to vector<8x128xi32>
    %296 = arith.cmpi eq, %0, %295 : vector<8x128xi32>
    %297 = arith.extui %296 : vector<8x128xi1> to vector<8x128xi32>
    %298 = arith.sitofp %297 : vector<8x128xi32> to vector<8x128xf32>
    %cst_145 = arith.constant dense<0.000000e+00> : vector<16x128xf32>
    %299 = tpu.matmul %293, %298, %cst_145 {dimension_numbers = #tpu.dot_dimension_numbers<[1], [0], [0], [1], [0, 0, 1, 1], [], []>} : vector<16x8xf32>, vector<8x128xf32>, vector<16x128xf32> -> vector<16x128xf32>
    %c1_146 = arith.constant 1 : index
    %c10_147 = arith.constant 10 : index
    %c0_148 = arith.constant 0 : index
    %300 = vector.load %arg4[%c1_146, %c10_147, %c0_148] : memref<5x16x128xf32, #tpu.memory_space<vmem>>, vector<1x1x128xf32>
    %301 = vector.shape_cast %300 : vector<1x1x128xf32> to vector<1x128xf32>
    %302 = vector.broadcast %301 : vector<1x128xf32> to vector<16x128xf32>
    %303 = arith.addf %299, %302 : vector<16x128xf32>
    %cst_149 = arith.constant -1.000000e+30 : f32
    %304 = vector.broadcast %cst_149 : f32 to vector<16x128xf32>
    %305 = arith.maximumf %303, %304 : vector<16x128xf32>
    %c0_150 = arith.constant 0 : index
    %c10_151 = arith.constant 10 : index
    %c0_152 = arith.constant 0 : index
    %306 = vector.load %arg6[%c0_150, %c10_151, %c0_152] : memref<16x16x128xf32, #tpu.memory_space<vmem>>, vector<16x1x128xf32>
    %307 = vector.shape_cast %306 : vector<16x1x128xf32> to vector<16x128xf32>
    %308 = vector.shape_cast %305 : vector<16x128xf32> to vector<16x1x128xf32>
    tpu.vector_store %arg6[%c0_150, %c10_151, %c0_152], %308 {strides = array<i32>} : memref<16x16x128xf32, #tpu.memory_space<vmem>>, vector<16x1x128xf32>,
    %c0_153 = arith.constant 0 : index
    %c11 = arith.constant 11 : index
    %c0_154 = arith.constant 0 : index
    %309 = vector.load %arg2[%c0_153, %c11, %c0_154] : memref<16x16x8xf32, #tpu.memory_space<vmem>>, vector<16x1x8xf32>
    %310 = vector.shape_cast %309 : vector<16x1x8xf32> to vector<16x8xf32>
    %cst_155 = arith.constant dense<0xFF800000> : vector<16xf32>
    %311 = vector.multi_reduction <maximumf>, %310, %cst_155 [1] : vector<16x8xf32> to vector<16xf32>
    %312 = vector.shape_cast %311 : vector<16xf32> to vector<16x1xf32>
    %313 = vector.broadcast %312 : vector<16x1xf32> to vector<16x8xf32>
    %314 = arith.subf %310, %313 : vector<16x8xf32>
    %315 = math.exp %314 : vector<16x8xf32>
    %cst_156 = arith.constant dense<0.000000e+00> : vector<16xf32>
    %316 = vector.multi_reduction <add>, %315, %cst_156 [1] : vector<16x8xf32> to vector<16xf32>
    %317 = vector.shape_cast %316 : vector<16xf32> to vector<16x1xf32>
    %318 = math.log %317 : vector<16x1xf32>
    %319 = arith.addf %312, %318 : vector<16x1xf32>
    %320 = vector.broadcast %319 : vector<16x1xf32> to vector<16x8xf32>
    %321 = arith.subf %310, %320 : vector<16x8xf32>
    %c11_157 = arith.constant 11 : index
    %c0_158 = arith.constant 0 : index
    %322 = vector.load %arg3[%c11_157, %c0_158] : memref<16x128xi32, #tpu.memory_space<vmem>>, vector<1x128xi32>
    %323 = vector.broadcast %322 : vector<1x128xi32> to vector<8x128xi32>
    %324 = arith.cmpi eq, %0, %323 : vector<8x128xi32>
    %325 = arith.extui %324 : vector<8x128xi1> to vector<8x128xi32>
    %326 = arith.sitofp %325 : vector<8x128xi32> to vector<8x128xf32>
    %cst_159 = arith.constant dense<0.000000e+00> : vector<16x128xf32>
    %327 = tpu.matmul %321, %326, %cst_159 {dimension_numbers = #tpu.dot_dimension_numbers<[1], [0], [0], [1], [0, 0, 1, 1], [], []>} : vector<16x8xf32>, vector<8x128xf32>, vector<16x128xf32> -> vector<16x128xf32>
    %c1_160 = arith.constant 1 : index
    %c11_161 = arith.constant 11 : index
    %c0_162 = arith.constant 0 : index
    %328 = vector.load %arg4[%c1_160, %c11_161, %c0_162] : memref<5x16x128xf32, #tpu.memory_space<vmem>>, vector<1x1x128xf32>
    %329 = vector.shape_cast %328 : vector<1x1x128xf32> to vector<1x128xf32>
    %330 = vector.broadcast %329 : vector<1x128xf32> to vector<16x128xf32>
    %331 = arith.addf %327, %330 : vector<16x128xf32>
    %cst_163 = arith.constant -1.000000e+30 : f32
    %332 = vector.broadcast %cst_163 : f32 to vector<16x128xf32>
    %333 = arith.maximumf %331, %332 : vector<16x128xf32>
    %c0_164 = arith.constant 0 : index
    %c11_165 = arith.constant 11 : index
    %c0_166 = arith.constant 0 : index
    %334 = vector.load %arg6[%c0_164, %c11_165, %c0_166] : memref<16x16x128xf32, #tpu.memory_space<vmem>>, vector<16x1x128xf32>
    %335 = vector.shape_cast %334 : vector<16x1x128xf32> to vector<16x128xf32>
    %336 = vector.shape_cast %333 : vector<16x128xf32> to vector<16x1x128xf32>
    tpu.vector_store %arg6[%c0_164, %c11_165, %c0_166], %336 {strides = array<i32>} : memref<16x16x128xf32, #tpu.memory_space<vmem>>, vector<16x1x128xf32>,
    %c0_167 = arith.constant 0 : index
    %c12 = arith.constant 12 : index
    %c0_168 = arith.constant 0 : index
    %337 = vector.load %arg2[%c0_167, %c12, %c0_168] : memref<16x16x8xf32, #tpu.memory_space<vmem>>, vector<16x1x8xf32>
    %338 = vector.shape_cast %337 : vector<16x1x8xf32> to vector<16x8xf32>
    %cst_169 = arith.constant dense<0xFF800000> : vector<16xf32>
    %339 = vector.multi_reduction <maximumf>, %338, %cst_169 [1] : vector<16x8xf32> to vector<16xf32>
    %340 = vector.shape_cast %339 : vector<16xf32> to vector<16x1xf32>
    %341 = vector.broadcast %340 : vector<16x1xf32> to vector<16x8xf32>
    %342 = arith.subf %338, %341 : vector<16x8xf32>
    %343 = math.exp %342 : vector<16x8xf32>
    %cst_170 = arith.constant dense<0.000000e+00> : vector<16xf32>
    %344 = vector.multi_reduction <add>, %343, %cst_170 [1] : vector<16x8xf32> to vector<16xf32>
    %345 = vector.shape_cast %344 : vector<16xf32> to vector<16x1xf32>
    %346 = math.log %345 : vector<16x1xf32>
    %347 = arith.addf %340, %346 : vector<16x1xf32>
    %348 = vector.broadcast %347 : vector<16x1xf32> to vector<16x8xf32>
    %349 = arith.subf %338, %348 : vector<16x8xf32>
    %c12_171 = arith.constant 12 : index
    %c0_172 = arith.constant 0 : index
    %350 = vector.load %arg3[%c12_171, %c0_172] : memref<16x128xi32, #tpu.memory_space<vmem>>, vector<1x128xi32>
    %351 = vector.broadcast %350 : vector<1x128xi32> to vector<8x128xi32>
    %352 = arith.cmpi eq, %0, %351 : vector<8x128xi32>
    %353 = arith.extui %352 : vector<8x128xi1> to vector<8x128xi32>
    %354 = arith.sitofp %353 : vector<8x128xi32> to vector<8x128xf32>
    %cst_173 = arith.constant dense<0.000000e+00> : vector<16x128xf32>
    %355 = tpu.matmul %349, %354, %cst_173 {dimension_numbers = #tpu.dot_dimension_numbers<[1], [0], [0], [1], [0, 0, 1, 1], [], []>} : vector<16x8xf32>, vector<8x128xf32>, vector<16x128xf32> -> vector<16x128xf32>
    %c1_174 = arith.constant 1 : index
    %c12_175 = arith.constant 12 : index
    %c0_176 = arith.constant 0 : index
    %356 = vector.load %arg4[%c1_174, %c12_175, %c0_176] : memref<5x16x128xf32, #tpu.memory_space<vmem>>, vector<1x1x128xf32>
    %357 = vector.shape_cast %356 : vector<1x1x128xf32> to vector<1x128xf32>
    %358 = vector.broadcast %357 : vector<1x128xf32> to vector<16x128xf32>
    %359 = arith.addf %355, %358 : vector<16x128xf32>
    %cst_177 = arith.constant -1.000000e+30 : f32
    %360 = vector.broadcast %cst_177 : f32 to vector<16x128xf32>
    %361 = arith.maximumf %359, %360 : vector<16x128xf32>
    %c0_178 = arith.constant 0 : index
    %c12_179 = arith.constant 12 : index
    %c0_180 = arith.constant 0 : index
    %362 = vector.load %arg6[%c0_178, %c12_179, %c0_180] : memref<16x16x128xf32, #tpu.memory_space<vmem>>, vector<16x1x128xf32>
    %363 = vector.shape_cast %362 : vector<16x1x128xf32> to vector<16x128xf32>
    %364 = vector.shape_cast %361 : vector<16x128xf32> to vector<16x1x128xf32>
    tpu.vector_store %arg6[%c0_178, %c12_179, %c0_180], %364 {strides = array<i32>} : memref<16x16x128xf32, #tpu.memory_space<vmem>>, vector<16x1x128xf32>,
    %c0_181 = arith.constant 0 : index
    %c13 = arith.constant 13 : index
    %c0_182 = arith.constant 0 : index
    %365 = vector.load %arg2[%c0_181, %c13, %c0_182] : memref<16x16x8xf32, #tpu.memory_space<vmem>>, vector<16x1x8xf32>
    %366 = vector.shape_cast %365 : vector<16x1x8xf32> to vector<16x8xf32>
    %cst_183 = arith.constant dense<0xFF800000> : vector<16xf32>
    %367 = vector.multi_reduction <maximumf>, %366, %cst_183 [1] : vector<16x8xf32> to vector<16xf32>
    %368 = vector.shape_cast %367 : vector<16xf32> to vector<16x1xf32>
    %369 = vector.broadcast %368 : vector<16x1xf32> to vector<16x8xf32>
    %370 = arith.subf %366, %369 : vector<16x8xf32>
    %371 = math.exp %370 : vector<16x8xf32>
    %cst_184 = arith.constant dense<0.000000e+00> : vector<16xf32>
    %372 = vector.multi_reduction <add>, %371, %cst_184 [1] : vector<16x8xf32> to vector<16xf32>
    %373 = vector.shape_cast %372 : vector<16xf32> to vector<16x1xf32>
    %374 = math.log %373 : vector<16x1xf32>
    %375 = arith.addf %368, %374 : vector<16x1xf32>
    %376 = vector.broadcast %375 : vector<16x1xf32> to vector<16x8xf32>
    %377 = arith.subf %366, %376 : vector<16x8xf32>
    %c13_185 = arith.constant 13 : index
    %c0_186 = arith.constant 0 : index
    %378 = vector.load %arg3[%c13_185, %c0_186] : memref<16x128xi32, #tpu.memory_space<vmem>>, vector<1x128xi32>
    %379 = vector.broadcast %378 : vector<1x128xi32> to vector<8x128xi32>
    %380 = arith.cmpi eq, %0, %379 : vector<8x128xi32>
    %381 = arith.extui %380 : vector<8x128xi1> to vector<8x128xi32>
    %382 = arith.sitofp %381 : vector<8x128xi32> to vector<8x128xf32>
    %cst_187 = arith.constant dense<0.000000e+00> : vector<16x128xf32>
    %383 = tpu.matmul %377, %382, %cst_187 {dimension_numbers = #tpu.dot_dimension_numbers<[1], [0], [0], [1], [0, 0, 1, 1], [], []>} : vector<16x8xf32>, vector<8x128xf32>, vector<16x128xf32> -> vector<16x128xf32>
    %c1_188 = arith.constant 1 : index
    %c13_189 = arith.constant 13 : index
    %c0_190 = arith.constant 0 : index
    %384 = vector.load %arg4[%c1_188, %c13_189, %c0_190] : memref<5x16x128xf32, #tpu.memory_space<vmem>>, vector<1x1x128xf32>
    %385 = vector.shape_cast %384 : vector<1x1x128xf32> to vector<1x128xf32>
    %386 = vector.broadcast %385 : vector<1x128xf32> to vector<16x128xf32>
    %387 = arith.addf %383, %386 : vector<16x128xf32>
    %cst_191 = arith.constant -1.000000e+30 : f32
    %388 = vector.broadcast %cst_191 : f32 to vector<16x128xf32>
    %389 = arith.maximumf %387, %388 : vector<16x128xf32>
    %c0_192 = arith.constant 0 : index
    %c13_193 = arith.constant 13 : index
    %c0_194 = arith.constant 0 : index
    %390 = vector.load %arg6[%c0_192, %c13_193, %c0_194] : memref<16x16x128xf32, #tpu.memory_space<vmem>>, vector<16x1x128xf32>
    %391 = vector.shape_cast %390 : vector<16x1x128xf32> to vector<16x128xf32>
    %392 = vector.shape_cast %389 : vector<16x128xf32> to vector<16x1x128xf32>
    tpu.vector_store %arg6[%c0_192, %c13_193, %c0_194], %392 {strides = array<i32>} : memref<16x16x128xf32, #tpu.memory_space<vmem>>, vector<16x1x128xf32>,
    %c0_195 = arith.constant 0 : index
    %c14 = arith.constant 14 : index
    %c0_196 = arith.constant 0 : index
    %393 = vector.load %arg2[%c0_195, %c14, %c0_196] : memref<16x16x8xf32, #tpu.memory_space<vmem>>, vector<16x1x8xf32>
    %394 = vector.shape_cast %393 : vector<16x1x8xf32> to vector<16x8xf32>
    %cst_197 = arith.constant dense<0xFF800000> : vector<16xf32>
    %395 = vector.multi_reduction <maximumf>, %394, %cst_197 [1] : vector<16x8xf32> to vector<16xf32>
    %396 = vector.shape_cast %395 : vector<16xf32> to vector<16x1xf32>
    %397 = vector.broadcast %396 : vector<16x1xf32> to vector<16x8xf32>
    %398 = arith.subf %394, %397 : vector<16x8xf32>
    %399 = math.exp %398 : vector<16x8xf32>
    %cst_198 = arith.constant dense<0.000000e+00> : vector<16xf32>
    %400 = vector.multi_reduction <add>, %399, %cst_198 [1] : vector<16x8xf32> to vector<16xf32>
    %401 = vector.shape_cast %400 : vector<16xf32> to vector<16x1xf32>
    %402 = math.log %401 : vector<16x1xf32>
    %403 = arith.addf %396, %402 : vector<16x1xf32>
    %404 = vector.broadcast %403 : vector<16x1xf32> to vector<16x8xf32>
    %405 = arith.subf %394, %404 : vector<16x8xf32>
    %c14_199 = arith.constant 14 : index
    %c0_200 = arith.constant 0 : index
    %406 = vector.load %arg3[%c14_199, %c0_200] : memref<16x128xi32, #tpu.memory_space<vmem>>, vector<1x128xi32>
    %407 = vector.broadcast %406 : vector<1x128xi32> to vector<8x128xi32>
    %408 = arith.cmpi eq, %0, %407 : vector<8x128xi32>
    %409 = arith.extui %408 : vector<8x128xi1> to vector<8x128xi32>
    %410 = arith.sitofp %409 : vector<8x128xi32> to vector<8x128xf32>
    %cst_201 = arith.constant dense<0.000000e+00> : vector<16x128xf32>
    %411 = tpu.matmul %405, %410, %cst_201 {dimension_numbers = #tpu.dot_dimension_numbers<[1], [0], [0], [1], [0, 0, 1, 1], [], []>} : vector<16x8xf32>, vector<8x128xf32>, vector<16x128xf32> -> vector<16x128xf32>
    %c1_202 = arith.constant 1 : index
    %c14_203 = arith.constant 14 : index
    %c0_204 = arith.constant 0 : index
    %412 = vector.load %arg4[%c1_202, %c14_203, %c0_204] : memref<5x16x128xf32, #tpu.memory_space<vmem>>, vector<1x1x128xf32>
    %413 = vector.shape_cast %412 : vector<1x1x128xf32> to vector<1x128xf32>
    %414 = vector.broadcast %413 : vector<1x128xf32> to vector<16x128xf32>
    %415 = arith.addf %411, %414 : vector<16x128xf32>
    %cst_205 = arith.constant -1.000000e+30 : f32
    %416 = vector.broadcast %cst_205 : f32 to vector<16x128xf32>
    %417 = arith.maximumf %415, %416 : vector<16x128xf32>
    %c0_206 = arith.constant 0 : index
    %c14_207 = arith.constant 14 : index
    %c0_208 = arith.constant 0 : index
    %418 = vector.load %arg6[%c0_206, %c14_207, %c0_208] : memref<16x16x128xf32, #tpu.memory_space<vmem>>, vector<16x1x128xf32>
    %419 = vector.shape_cast %418 : vector<16x1x128xf32> to vector<16x128xf32>
    %420 = vector.shape_cast %417 : vector<16x128xf32> to vector<16x1x128xf32>
    tpu.vector_store %arg6[%c0_206, %c14_207, %c0_208], %420 {strides = array<i32>} : memref<16x16x128xf32, #tpu.memory_space<vmem>>, vector<16x1x128xf32>,
    %c0_209 = arith.constant 0 : index
    %c15 = arith.constant 15 : index
    %c0_210 = arith.constant 0 : index
    %421 = vector.load %arg2[%c0_209, %c15, %c0_210] : memref<16x16x8xf32, #tpu.memory_space<vmem>>, vector<16x1x8xf32>
    %422 = vector.shape_cast %421 : vector<16x1x8xf32> to vector<16x8xf32>
    %cst_211 = arith.constant dense<0xFF800000> : vector<16xf32>
    %423 = vector.multi_reduction <maximumf>, %422, %cst_211 [1] : vector<16x8xf32> to vector<16xf32>
    %424 = vector.shape_cast %423 : vector<16xf32> to vector<16x1xf32>
    %425 = vector.broadcast %424 : vector<16x1xf32> to vector<16x8xf32>
    %426 = arith.subf %422, %425 : vector<16x8xf32>
    %427 = math.exp %426 : vector<16x8xf32>
    %cst_212 = arith.constant dense<0.000000e+00> : vector<16xf32>
    %428 = vector.multi_reduction <add>, %427, %cst_212 [1] : vector<16x8xf32> to vector<16xf32>
    %429 = vector.shape_cast %428 : vector<16xf32> to vector<16x1xf32>
    %430 = math.log %429 : vector<16x1xf32>
    %431 = arith.addf %424, %430 : vector<16x1xf32>
    %432 = vector.broadcast %431 : vector<16x1xf32> to vector<16x8xf32>
    %433 = arith.subf %422, %432 : vector<16x8xf32>
    %c15_213 = arith.constant 15 : index
    %c0_214 = arith.constant 0 : index
    %434 = vector.load %arg3[%c15_213, %c0_214] : memref<16x128xi32, #tpu.memory_space<vmem>>, vector<1x128xi32>
    %435 = vector.broadcast %434 : vector<1x128xi32> to vector<8x128xi32>
    %436 = arith.cmpi eq, %0, %435 : vector<8x128xi32>
    %437 = arith.extui %436 : vector<8x128xi1> to vector<8x128xi32>
    %438 = arith.sitofp %437 : vector<8x128xi32> to vector<8x128xf32>
    %cst_215 = arith.constant dense<0.000000e+00> : vector<16x128xf32>
    %439 = tpu.matmul %433, %438, %cst_215 {dimension_numbers = #tpu.dot_dimension_numbers<[1], [0], [0], [1], [0, 0, 1, 1], [], []>} : vector<16x8xf32>, vector<8x128xf32>, vector<16x128xf32> -> vector<16x128xf32>
    %c1_216 = arith.constant 1 : index
    %c15_217 = arith.constant 15 : index
    %c0_218 = arith.constant 0 : index
    %440 = vector.load %arg4[%c1_216, %c15_217, %c0_218] : memref<5x16x128xf32, #tpu.memory_space<vmem>>, vector<1x1x128xf32>
    %441 = vector.shape_cast %440 : vector<1x1x128xf32> to vector<1x128xf32>
    %442 = vector.broadcast %441 : vector<1x128xf32> to vector<16x128xf32>
    %443 = arith.addf %439, %442 : vector<16x128xf32>
    %cst_219 = arith.constant -1.000000e+30 : f32
    %444 = vector.broadcast %cst_219 : f32 to vector<16x128xf32>
    %445 = arith.maximumf %443, %444 : vector<16x128xf32>
    %c0_220 = arith.constant 0 : index
    %c15_221 = arith.constant 15 : index
    %c0_222 = arith.constant 0 : index
    %446 = vector.load %arg6[%c0_220, %c15_221, %c0_222] : memref<16x16x128xf32, #tpu.memory_space<vmem>>, vector<16x1x128xf32>
    %447 = vector.shape_cast %446 : vector<16x1x128xf32> to vector<16x128xf32>
    %448 = vector.shape_cast %445 : vector<16x128xf32> to vector<16x1x128xf32>
    tpu.vector_store %arg6[%c0_220, %c15_221, %c0_222], %448 {strides = array<i32>} : memref<16x16x128xf32, #tpu.memory_space<vmem>>, vector<16x1x128xf32>,
    %c0_223 = arith.constant 0 : index
    %c0_224 = arith.constant 0 : index
    %c0_225 = arith.constant 0 : index
    %449 = vector.load %arg4[%c0_223, %c0_224, %c0_225] : memref<5x16x128xf32, #tpu.memory_space<vmem>>, vector<1x16x128xf32>
    %450 = vector.shape_cast %449 : vector<1x16x128xf32> to vector<16x128xf32>
    %c3_226 = arith.constant 3 : index
    %c0_227 = arith.constant 0 : index
    %c0_228 = arith.constant 0 : index
    %451 = vector.load %arg4[%c3_226, %c0_227, %c0_228] : memref<5x16x128xf32, #tpu.memory_space<vmem>>, vector<1x16x128xf32>
    %452 = vector.shape_cast %451 : vector<1x16x128xf32> to vector<16x128xf32>
    %c2_229 = arith.constant 2 : index
    %c0_230 = arith.constant 0 : index
    %c0_231 = arith.constant 0 : index
    %453 = vector.load %arg4[%c2_229, %c0_230, %c0_231] : memref<5x16x128xf32, #tpu.memory_space<vmem>>, vector<1x16x128xf32>
    %454 = vector.shape_cast %453 : vector<1x16x128xf32> to vector<16x128xf32>
    %c4_232 = arith.constant 4 : index
    %c0_233 = arith.constant 0 : index
    %c0_234 = arith.constant 0 : index
    %455 = vector.load %arg4[%c4_232, %c0_233, %c0_234] : memref<5x16x128xf32, #tpu.memory_space<vmem>>, vector<1x16x128xf32>
    %456 = vector.shape_cast %455 : vector<1x16x128xf32> to vector<16x128xf32>
    %457 = tpu.iota {dimensions = array<i32: 1>} : vector<16x128xi32>
    %c1_i32 = arith.constant 1 : i32
    %458 = vector.broadcast %c1_i32 : i32 to vector<16x128xi32>
    %459 = arith.cmpi sge, %457, %458 : vector<16x128xi32>
    %cst_235 = arith.constant 0.000000e+00 : f32
    %cst_236 = arith.constant -1.000000e+30 : f32
    %460 = vector.broadcast %cst_235 : f32 to vector<16x128xf32>
    %461 = vector.broadcast %cst_236 : f32 to vector<16x128xf32>
    %462 = arith.select %459, %460, %461 : vector<16x128xi1>, vector<16x128xf32>
    %c0_237 = arith.constant 0 : index
    %c0_238 = arith.constant 0 : index
    %c0_239 = arith.constant 0 : index
    %463 = vector.load %arg6[%c0_237, %c0_238, %c0_239] : memref<16x16x128xf32, #tpu.memory_space<vmem>>, vector<1x16x128xf32>
    %464 = vector.shape_cast %463 : vector<1x16x128xf32> to vector<16x128xf32>
    %465 = arith.addf %464, %452 : vector<16x128xf32>
    %cst_240 = arith.constant -1.000000e+30 : f32
    %466 = vector.broadcast %cst_240 : f32 to vector<16x128xf32>
    %467 = arith.maximumf %465, %466 : vector<16x128xf32>
    %468 = arith.index_cast %arg0 : i32 to index
    %469 = memref.load %arg1[%468] : memref<1xi32, #tpu.memory_space<smem>>
    %c16_i32 = arith.constant 16 : i32
    %470 = arith.minsi %469, %c16_i32 : i32
    %c1_i32_241 = arith.constant 1 : i32
    %471 = arith.subi %470, %c1_i32_241 : i32
    %472 = arith.addi %c1_i32_241, %471 : i32
    %c1_i32_242 = arith.constant 1 : i32
    %473 = scf.for %arg7 = %c1_i32_241 to %472 step %c1_i32_242 iter_args(%arg8 = %467) -> (vector<16x128xf32>)  : i32 {
      %489 = arith.index_cast %arg7 : i32 to index
      %c0_248 = arith.constant 0 : index
      %c0_249 = arith.constant 0 : index
      %490 = vector.load %arg6[%489, %c0_248, %c0_249] : memref<16x16x128xf32, #tpu.memory_space<vmem>>, vector<1x16x128xf32>
      %491 = vector.shape_cast %490 : vector<1x16x128xf32> to vector<16x128xf32>
      %c1_i32_250 = arith.constant 1 : i32
      %492 = tpu.dynamic_rotate %arg8 by %c1_i32_250 dim 1 : vector<16x128xf32>, i32 -> vector<16x128xf32>
      %493 = arith.addf %492, %462 : vector<16x128xf32>
      %c2_i32 = arith.constant 2 : i32
      %494 = tpu.dynamic_rotate %arg8 by %c2_i32 dim 1 : vector<16x128xf32>, i32 -> vector<16x128xf32>
      %495 = arith.addf %494, %450 : vector<16x128xf32>
      %496 = arith.maximumf %arg8, %493 : vector<16x128xf32>
      %497 = arith.maximumf %496, %495 : vector<16x128xf32>
      %498 = arith.subf %arg8, %497 : vector<16x128xf32>
      %499 = math.exp %498 : vector<16x128xf32>
      %500 = arith.subf %493, %497 : vector<16x128xf32>
      %501 = math.exp %500 : vector<16x128xf32>
      %502 = arith.addf %499, %501 : vector<16x128xf32>
      %503 = arith.subf %495, %497 : vector<16x128xf32>
      %504 = math.exp %503 : vector<16x128xf32>
      %505 = arith.addf %502, %504 : vector<16x128xf32>
      %506 = math.log %505 : vector<16x128xf32>
      %507 = arith.addf %497, %506 : vector<16x128xf32>
      %508 = arith.addf %491, %507 : vector<16x128xf32>
      %cst_251 = arith.constant -1.000000e+30 : f32
      %509 = vector.broadcast %cst_251 : f32 to vector<16x128xf32>
      %510 = arith.maximumf %508, %509 : vector<16x128xf32>
      %511 = arith.sitofp %arg7 : i32 to f32
      %512 = vector.broadcast %511 : f32 to vector<16x128xf32>
      %513 = arith.cmpf olt, %512, %456 : vector<16x128xf32>
      %514 = arith.select %513, %510, %arg8 : vector<16x128xi1>, vector<16x128xf32>
      scf.yield %514 : vector<16x128xf32>
    }
    %474 = arith.addf %473, %454 : vector<16x128xf32>
    %cst_243 = arith.constant dense<0xFF800000> : vector<16xf32>
    %475 = vector.multi_reduction <maximumf>, %474, %cst_243 [1] : vector<16x128xf32> to vector<16xf32>
    %476 = vector.shape_cast %475 : vector<16xf32> to vector<16x1xf32>
    %477 = vector.broadcast %476 : vector<16x1xf32> to vector<16x128xf32>
    %478 = arith.subf %474, %477 : vector<16x128xf32>
    %479 = math.exp %478 : vector<16x128xf32>
    %cst_244 = arith.constant dense<0.000000e+00> : vector<16xf32>
    %480 = vector.multi_reduction <add>, %479, %cst_244 [1] : vector<16x128xf32> to vector<16xf32>
    %481 = vector.shape_cast %480 : vector<16xf32> to vector<16x1xf32>
    %482 = math.log %481 : vector<16x1xf32>
    %483 = arith.addf %476, %482 : vector<16x1xf32>
    %cst_245 = arith.constant 0.000000e+00 : f32
    %484 = vector.broadcast %cst_245 : f32 to vector<16x1xf32>
    %485 = arith.subf %484, %483 : vector<16x1xf32>
    %486 = vector.shape_cast %485 : vector<16x1xf32> to vector<16x1xf32>
    %487 = vector.broadcast %486 : vector<16x1xf32> to vector<16x128xf32>
    %c0_246 = arith.constant 0 : index
    %c0_247 = arith.constant 0 : index
    %488 = vector.load %arg5[%c0_246, %c0_247] : memref<16x128xf32, #tpu.memory_space<vmem>>, vector<16x128xf32>
    tpu.vector_store %arg5[%c0_246, %c0_247], %487 {strides = array<i32>} : memref<16x128xf32, #tpu.memory_space<vmem>>, vector<16x128xf32>,
    return
  }
  func.func @transform_0(%arg0: i32, %arg1: memref<1xi32, #tpu.memory_space<smem>>) -> (i32, i32, i32) {
    %c0_i32 = arith.constant 0 : i32
    %c0_i32_0 = arith.constant 0 : i32
    %c0_i32_1 = arith.constant 0 : i32
    return %c0_i32, %arg0, %c0_i32_0 : i32, i32, i32
  }
  func.func @transform_1(%arg0: i32, %arg1: memref<1xi32, #tpu.memory_space<smem>>) -> (i32, i32) {
    %c0_i32 = arith.constant 0 : i32
    %c0_i32_0 = arith.constant 0 : i32
    return %arg0, %c0_i32 : i32, i32
  }
  func.func @transform_2(%arg0: i32, %arg1: memref<1xi32, #tpu.memory_space<smem>>) -> (i32, i32, i32) {
    %c0_i32 = arith.constant 0 : i32
    %c0_i32_0 = arith.constant 0 : i32
    %c0_i32_1 = arith.constant 0 : i32
    return %c0_i32, %arg0, %c0_i32_0 : i32, i32, i32
  }
  func.func @transform_3(%arg0: i32, %arg1: memref<1xi32, #tpu.memory_space<smem>>) -> (i32, i32) {
    %c0_i32 = arith.constant 0 : i32
    %c0_i32_0 = arith.constant 0 : i32
    return %arg0, %c0_i32 : i32, i32
  }
}

</mosaic_0001>

<bundles_post_ra>
// kernel: tpu_custom_call.1
= control target key start
LH: loop header
LB: loop body
LE: loop exit
PB: predicated region body
PF: predicated region fallthrough
CT: control target
= control target key end

     0   :  { %vm52_vm0 = vcmask 1041409   ;;  %vm55_vm1 = vcmask 1042434   ;;  %vm58_vm2 = vcmask 1043459   ;;  %vm61_vm3 = vcmask 1044484   ;;  %s14656_s0 = inlined_call_operand.<no memory space> [shape: s32[1], index: 0, kind: input, shape index: {}]   ;;  %s14657_s1 = inlined_call_operand.vmem [shape: f32[16,16,8], index: 1, kind: input, shape index: {}]   ;;  %s14658_s2 = inlined_call_operand.vmem [shape: s32[16,128], index: 2, kind: input, shape index: {}]   ;;  %s14659_s3 = inlined_call_operand.vmem [shape: f32[5,16,128], index: 3, kind: input, shape index: {}]   ;;  %s14660_s4 = inlined_call_operand.hbm [shape: f32[16,128], index: 4, kind: output, shape index: {}]  }
   0x1   :  { %v28_v0 = vld [vmem:[%s14657_s1 + $0x90] sm:$0x1]  ;;  %v29_v1 = vld [vmem:[%s14657_s1 + $0xa0] sm:$0x1]  ;;  %vm64_vm4 = vcmask 1045509   ;;  %vm67_vm5 = vcmask 1046534  }
   0x2   :  { %v27_v2 = vld [vmem:[%s14657_s1 + $0x80] sm:$0x1]  ;;  %v30_v3 = vld [vmem:[%s14657_s1 + $0xb0] sm:$0x1]  ;;  %vm70_vm6 = vcmask 1047559   ;;  %v72_v9 = vrot.slane %v28_v0, 7 }
   0x3   :  { %v31_v4 = vld [vmem:[%s14657_s1 + $0xc0] sm:$0x1]  ;;  %v32_v5 = vld [vmem:[%s14657_s1 + $0xd0] sm:$0x1]  ;;  %v74_v10 = vrot.slane %v29_v1, 6  ;;  %v76_v11 = vrot.slane %v30_v3, 5 }
   0x4   :  { %v33_v6 = vld [vmem:[%s14657_s1 + $0xe0] sm:$0x1]  ;;  %v34_v7 = vld [vmem:[%s14657_s1 + $0xf0] sm:$0x1]  ;;  %v78_v13 = vrot.slane %v31_v4, 4  ;;  %v80_v14 = vrot.slane %v32_v5, 3  ;;  %v73_v18 = vsel %vm52_vm0, %v72_v9, %v27_v2 }
   0x5   :  { %v19_v8 = vld [vmem:[%s14657_s1] sm:$0x1]  ;;  %v20_v12 = vld [vmem:[%s14657_s1 + $0x10] sm:$0x1]  ;;  %v82_v15 = vrot.slane %v33_v6, 2  ;;  %v84_v16 = vrot.slane %v34_v7, 1  ;;  %v75_v22 = vsel %vm55_vm1, %v74_v10, %v73_v18 }
   0x6   :  { %v21_v17 = vld [vmem:[%s14657_s1 + $0x20] sm:$0x1]  ;;  %vm88_vm7 = vcmask 64512   ;;  %v22_v19 = vld [vmem:[%s14657_s1 + $0x30] sm:$0x1]  ;;  %v51_v21 = vrot.slane %v20_v12, 7  ;;  %v77_v26 = vsel %vm58_vm2, %v76_v11, %v75_v22 }
   0x7   :  { %v23_v20 = vld [vmem:[%s14657_s1 + $0x40] sm:$0x1]  ;;  %v24_v23 = vld [vmem:[%s14657_s1 + $0x50] sm:$0x1]  ;;  %v54_v28 = vrot.slane %v21_v17, 6  ;;  %v57_v29 = vrot.slane %v22_v19, 5  ;;  %v79_v32 = vsel %vm61_vm3, %v78_v13, %v77_v26 }
   0x8   :  { %v25_v24 = vld [vmem:[%s14657_s1 + $0x60] sm:$0x1]  ;;  %v26_v25 = vld [vmem:[%s14657_s1 + $0x70] sm:$0x1]  ;;  %v53_v27 = vsel %vm52_vm0, %v51_v21, %v19_v8  ;;  %v560_v30 = vld [vmem:[%s14657_s1 + $0x81] sm:$0x1]  ;;  %v81_v37 = vsel %vm64_vm4, %v80_v14, %v79_v32 }
   0x9   :  { %v561_v31 = vld [vmem:[%s14657_s1 + $0x91] sm:$0x1]  ;;  %v60_v33 = vrot.slane %v23_v20, 4  ;;  %v63_v34 = vrot.slane %v24_v23, 3  ;;  %v66_v35 = vrot.slane %v25_v24, 2  ;;  %v56_v38 = vsel %vm55_vm1, %v54_v28, %v53_v27 }
   0xa   :  { %v562_v36 = vld [vmem:[%s14657_s1 + $0xa1] sm:$0x1]  ;;  %v69_v39 = vrot.slane %v26_v25, 1  ;;  %v563_v40 = vld [vmem:[%s14657_s1 + $0xb1] sm:$0x1]  ;;  %v598_v42 = vrot.slane %v561_v31, 7  ;;  %v83_v43 = vsel %vm67_vm5, %v82_v15, %v81_v37  ;;  %v59_v44 = vsel %vm58_vm2, %v57_v29, %v56_v38 }
   0xb   :  { %v564_v41 = vld [vmem:[%s14657_s1 + $0xc1] sm:$0x1]  ;;  %v565_v45 = vld [vmem:[%s14657_s1 + $0xd1] sm:$0x1]  ;;  %v85_v48 = vsel %vm70_vm6, %v84_v16, %v83_v43  ;;  %v62_v49 = vsel %vm61_vm3, %v60_v33, %v59_v44  ;;  %v600_v51 = vrot.slane %v562_v36, 6  ;;  %v602_v56 = vrot.slane %v563_v40, 5 }
   0xc   :  { %v566_v46 = vld [vmem:[%s14657_s1 + $0xe1] sm:$0x1]  ;;  %v567_v47 = vld [vmem:[%s14657_s1 + $0xf1] sm:$0x1]  ;;  %v599_v50 = vsel %vm52_vm0, %v598_v42, %v560_v30  ;;  %v92_v54 = vsel %vm88_vm7, %v85_v48, -inf  ;;  %v65_v55 = vsel %vm64_vm4, %v63_v34, %v62_v49  ;;  %v604_v57 = vrot.slane %v564_v41, 4 }
   0xd   :  { %v552_v52 = vld [vmem:[%s14657_s1 + $0x1] sm:$0x1]  ;;  %v553_v53 = vld [vmem:[%s14657_s1 + $0x11] sm:$0x1]  ;;  %93 = vmax.xlane.f32.xlu1 %v92_v54  ;;  %v68_v59 = vsel %vm67_vm5, %v66_v35, %v65_v55  ;;  %v601_v60 = vsel %vm55_vm1, %v600_v51, %v599_v50  ;;  %v606_v61 = vrot.slane %v565_v45, 3  ;;  %v608_v62 = vrot.slane %v566_v46, 2 }
   0xe   :  { %v554_v58 = vld [vmem:[%s14657_s1 + $0x21] sm:$0x1]  ;;  %v555_v63 = vld [vmem:[%s14657_s1 + $0x31] sm:$0x1]  ;;  %v71_v1 = vsel %vm70_vm6, %v69_v39, %v68_v59  ;;  %v603_v2 = vsel %vm58_vm2, %v602_v56, %v601_v60  ;;  %v610_v3 = vrot.slane %v567_v47, 1  ;;  %v584_v6 = vrot.slane %v553_v53, 7 }
   0xf   :  { %v556_v0 = vld [vmem:[%s14657_s1 + $0x41] sm:$0x1]  ;;  %v557_v4 = vld [vmem:[%s14657_s1 + $0x51] sm:$0x1]  ;;  %v89_v7 = vsel %vm88_vm7, %v71_v1, -inf  ;;  %v605_v8 = vsel %vm61_vm3, %v604_v57, %v603_v2  ;;  %v586_v10 = vrot.slane %v554_v58, 6 }
  0x10   :  { %v558_v5 = vld [vmem:[%s14657_s1 + $0x61] sm:$0x1]  ;;  %v559_v9 = vld [vmem:[%s14657_s1 + $0x71] sm:$0x1]  ;;  %v588_v11 = vrot.slane %v555_v63, 5  ;;  %90 = vmax.xlane.f32.xlu0 %v89_v7  ;;  %v607_v12 = vsel %vm64_vm4, %v606_v61, %v605_v8  ;;  %v585_v13 = vsel %vm52_vm0, %v584_v6, %v552_v52  ;;  %v590_v14 = vrot.slane %v556_v0, 4 }
  0x11   :  { %v592_v15 = vrot.slane %v557_v4, 3  ;;  %v1600_v16 = vld [vmem:[%s14657_s1 + $0x3] sm:$0x1]  ;;  %v1601_v17 = vld [vmem:[%s14657_s1 + $0x13] sm:$0x1]  ;;  %v609_v18 = vsel %vm67_vm5, %v608_v62, %v607_v12  ;;  %v587_v19 = vsel %vm55_vm1, %v586_v10, %v585_v13  ;;  %v594_v20 = vrot.slane %v558_v5, 2 }
  0x12   :  { %v596_v21 = vrot.slane %v559_v9, 1  ;;  %v1602_v22 = vld [vmem:[%s14657_s1 + $0x23] sm:$0x1]  ;;  %v1603_v23 = vld [vmem:[%s14657_s1 + $0x33] sm:$0x1]  ;;  %v611_v24 = vsel %vm70_vm6, %v610_v3, %v609_v18  ;;  %v589_v25 = vsel %vm58_vm2, %v588_v11, %v587_v19  ;;  %v1632_v32 = vrot.slane %v1601_v17, 7 }
  0x13   :  { %v1604_v26 = vld [vmem:[%s14657_s1 + $0x43] sm:$0x1]  ;;  %v1605_v27 = vld [vmem:[%s14657_s1 + $0x53] sm:$0x1]  ;;  %v617_v29 = vsel %vm88_vm7, %v611_v24, -inf  ;;  %v591_v30 = vsel %vm61_vm3, %v590_v14, %v589_v25  ;;  %v1634_v33 = vrot.slane %v1602_v22, 6 }
  0x14   :  { %v1606_v28 = vld [vmem:[%s14657_s1 + $0x63] sm:$0x1]  ;;  %v1607_v31 = vld [vmem:[%s14657_s1 + $0x73] sm:$0x1]  ;;  %618 = vmax.xlane.f32.xlu1 %v617_v29  ;;  %v593_v34 = vsel %vm64_vm4, %v592_v15, %v591_v30  ;;  %v1636_v35 = vrot.slane %v1603_v23, 5  ;;  %v1638_v36 = vrot.slane %v1604_v26, 4  ;;  %v1633_v40 = vsel %vm52_vm0, %v1632_v32, %v1600_v16 }
  0x15   :  { %v1640_v37 = vrot.slane %v1605_v27, 3  ;;  %v1076_v38 = vld [vmem:[%s14657_s1 + $0x2] sm:$0x1]  ;;  %v595_v39 = vsel %vm67_vm5, %v594_v20, %v593_v34  ;;  %v1642_v41 = vrot.slane %v1606_v28, 2  ;;  %v1644_v42 = vrot.slane %v1607_v31, 1 }
  0x16   :  { %v1077_v43 = vld [vmem:[%s14657_s1 + $0x12] sm:$0x1]  ;;  %v1078_v44 = vld [vmem:[%s14657_s1 + $0x22] sm:$0x1]  ;;  %v597_v45 = vsel %vm70_vm6, %v596_v21, %v595_v39  ;;  %v1635_v46 = vsel %vm55_vm1, %v1634_v33, %v1633_v40  ;;  %v1608_v59 = vld [vmem:[%s14657_s1 + $0x83] sm:$0x1] }
  0x17   :  { %v1079_v47 = vld [vmem:[%s14657_s1 + $0x32] sm:$0x1]  ;;  %v1080_v48 = vld [vmem:[%s14657_s1 + $0x42] sm:$0x1]  ;;  %v614_v50 = vsel %vm88_vm7, %v597_v45, -inf  ;;  %v1637_v51 = vsel %vm58_vm2, %v1636_v35, %v1635_v46  ;;  %v1108_v54 = vrot.slane %v1077_v43, 7 }
  0x18   :  { %v1081_v49 = vld [vmem:[%s14657_s1 + $0x52] sm:$0x1]  ;;  %v1082_v52 = vld [vmem:[%s14657_s1 + $0x62] sm:$0x1]  ;;  %615 = vmax.xlane.f32.xlu0 %v614_v50  ;;  %v1639_v55 = vsel %vm61_vm3, %v1638_v36, %v1637_v51  ;;  %v1110_v56 = vrot.slane %v1078_v44, 6  ;;  %v1112_v57 = vrot.slane %v1079_v47, 5 }
  0x19   :  { %v1083_v53 = vld [vmem:[%s14657_s1 + $0x72] sm:$0x1]  ;;  %v1114_v58 = vrot.slane %v1080_v48, 4  ;;  %v1641_v60 = vsel %vm64_vm4, %v1640_v37, %v1639_v55  ;;  %v1109_v61 = vsel %vm52_vm0, %v1108_v54, %v1076_v38  ;;  %v1116_v62 = vrot.slane %v1081_v49, 3  ;;  %v1609_v0 = vld [vmem:[%s14657_s1 + $0x93] sm:$0x1] }
  0x1a   :  { %v1118_v63 = vrot.slane %v1082_v52, 2  ;;  %v1610_v1 = vld [vmem:[%s14657_s1 + $0xa3] sm:$0x1]  ;;  %v1643_v2 = vsel %vm67_vm5, %v1642_v41, %v1641_v60  ;;  %v1111_v3 = vsel %vm55_vm1, %v1110_v56, %v1109_v61  ;;  %v1120_v4 = vrot.slane %v1083_v53, 1  ;;  %v1611_v5 = vld [vmem:[%s14657_s1 + $0xb3] sm:$0x1] }
  0x1b   :  { %v1612_v6 = vld [vmem:[%s14657_s1 + $0xc3] sm:$0x1]  ;;  %v1646_v7 = vrot.slane %v1609_v0, 7  ;;  %v1645_v8 = vsel %vm70_vm6, %v1644_v42, %v1643_v2  ;;  %v1113_v9 = vsel %vm58_vm2, %v1112_v57, %v1111_v3  ;;  %v1613_v10 = vld [vmem:[%s14657_s1 + $0xd3] sm:$0x1]  ;;  %v1648_v16 = vrot.slane %v1610_v1, 6 }
  0x1c   :  { %v1614_v11 = vld [vmem:[%s14657_s1 + $0xe3] sm:$0x1]  ;;  %v1615_v12 = vld [vmem:[%s14657_s1 + $0xf3] sm:$0x1]  ;;  %v1662_v13 = vsel %vm88_vm7, %v1645_v8, -inf  ;;  %v1115_v14 = vsel %vm61_vm3, %v1114_v58, %v1113_v9  ;;  %v1650_v19 = vrot.slane %v1611_v5, 5 }
  0x1d   :  { %v1647_v15 = vsel %vm52_vm0, %v1646_v7, %v1608_v59  ;;  %v1085_v17 = vld [vmem:[%s14657_s1 + $0x92] sm:$0x1]  ;;  %1663 = vmax.xlane.f32.xlu1 %v1662_v13  ;;  %v1117_v18 = vsel %vm64_vm4, %v1116_v62, %v1115_v14  ;;  %v1652_v20 = vrot.slane %v1612_v6, 4  ;;  %v1654_v21 = vrot.slane %v1613_v10, 3  ;;  %v1084_v22 = vld [vmem:[%s14657_s1 + $0x82] sm:$0x1] }
  0x1e   :  { %v1086_v23 = vld [vmem:[%s14657_s1 + $0xa2] sm:$0x1]  ;;  %v1119_v24 = vsel %vm67_vm5, %v1118_v63, %v1117_v18  ;;  %v1649_v25 = vsel %vm55_vm1, %v1648_v16, %v1647_v15  ;;  %v1656_v26 = vrot.slane %v1614_v11, 2  ;;  %v1658_v27 = vrot.slane %v1615_v12, 1  ;;  %v1087_v28 = vld [vmem:[%s14657_s1 + $0xb2] sm:$0x1] }
  0x1f   :  { %v1088_v29 = vld [vmem:[%s14657_s1 + $0xc2] sm:$0x1]  ;;  %v1121_v30 = vsel %vm70_vm6, %v1120_v4, %v1119_v24  ;;  %v1651_v31 = vsel %vm58_vm2, %v1650_v19, %v1649_v25  ;;  %v1089_v32 = vld [vmem:[%s14657_s1 + $0xd2] sm:$0x1]  ;;  %v1122_v37 = vrot.slane %v1085_v17, 7  ;;  %v1124_v38 = vrot.slane %v1086_v23, 6 }
  0x20   :  { %v1090_v33 = vld [vmem:[%s14657_s1 + $0xe2] sm:$0x1]  ;;  %v1091_v34 = vld [vmem:[%s14657_s1 + $0xf2] sm:$0x1]  ;;  %v1138_v35 = vsel %vm88_vm7, %v1121_v30, -inf  ;;  %v1653_v36 = vsel %vm61_vm3, %v1652_v20, %v1651_v31  ;;  %v1126_v40 = vrot.slane %v1087_v28, 5 }
  0x21   :  { %1139 = vmax.xlane.f32.xlu0 %v1138_v35  ;;  %v1655_v39 = vsel %vm64_vm4, %v1654_v21, %v1653_v36  ;;  %v1128_v41 = vrot.slane %v1088_v29, 4  ;;  %v1130_v42 = vrot.slane %v1089_v32, 3  ;;  %v2648_v43 = vld [vmem:[%s14657_s1 + $0x5] sm:$0x1]  ;;  %v2649_v44 = vld [vmem:[%s14657_s1 + $0x15] sm:$0x1]  ;;  %v1123_v46 = vsel %vm52_vm0, %v1122_v37, %v1084_v22 }
  0x22   :  { %v1657_v45 = vsel %vm67_vm5, %v1656_v26, %v1655_v39  ;;  %v1132_v47 = vrot.slane %v1090_v33, 2  ;;  %v1134_v48 = vrot.slane %v1091_v34, 1  ;;  %v2650_v49 = vld [vmem:[%s14657_s1 + $0x25] sm:$0x1]  ;;  %v2651_v50 = vld [vmem:[%s14657_s1 + $0x35] sm:$0x1]  ;;  %v1125_v52 = vsel %vm55_vm1, %v1124_v38, %v1123_v46 }
  0x23   :  { %v1659_v51 = vsel %vm70_vm6, %v1658_v27, %v1657_v45  ;;  %v2652_v53 = vld [vmem:[%s14657_s1 + $0x45] sm:$0x1]  ;;  %v2653_v54 = vld [vmem:[%s14657_s1 + $0x55] sm:$0x1]  ;;  %v1127_v57 = vsel %vm58_vm2, %v1126_v40, %v1125_v52  ;;  %v2680_v59 = vrot.slane %v2649_v44, 7  ;;  %v2682_v60 = vrot.slane %v2650_v49, 6 }
  0x24   :  { %v2654_v55 = vld [vmem:[%s14657_s1 + $0x65] sm:$0x1]  ;;  %v1665_v56 = vsel %vm88_vm7, %v1659_v51, -inf  ;;  %v2655_v58 = vld [vmem:[%s14657_s1 + $0x75] sm:$0x1]  ;;  %v1129_v61 = vsel %vm61_vm3, %v1128_v41, %v1127_v57  ;;  %v2684_v62 = vrot.slane %v2651_v50, 5 }
  0x25   :  { %1666 = vmax.xlane.f32.xlu1 %v1665_v56  ;;  %v2686_v63 = vrot.slane %v2652_v53, 4  ;;  %v2688_v0 = vrot.slane %v2653_v54, 3  ;;  %v2124_v1 = vld [vmem:[%s14657_s1 + $0x4] sm:$0x1]  ;;  %v1131_v2 = vsel %vm64_vm4, %v1130_v42, %v1129_v61  ;;  %v2681_v3 = vsel %vm52_vm0, %v2680_v59, %v2648_v43  ;;  %v2125_v6 = vld [vmem:[%s14657_s1 + $0x14] sm:$0x1] }
  0x26   :  { %v2690_v4 = vrot.slane %v2654_v55, 2  ;;  %v2692_v5 = vrot.slane %v2655_v58, 1  ;;  %v2126_v7 = vld [vmem:[%s14657_s1 + $0x24] sm:$0x1]  ;;  %v1133_v8 = vsel %vm67_vm5, %v1132_v47, %v1131_v2  ;;  %v2683_v9 = vsel %vm55_vm1, %v2682_v60, %v2681_v3  ;;  %v2127_v10 = vld [vmem:[%s14657_s1 + $0x34] sm:$0x1] }
  0x27   :  { %v2128_v11 = vld [vmem:[%s14657_s1 + $0x44] sm:$0x1]  ;;  %v2129_v12 = vld [vmem:[%s14657_s1 + $0x54] sm:$0x1]  ;;  %v1135_v13 = vsel %vm70_vm6, %v1134_v48, %v1133_v8  ;;  %v2685_v14 = vsel %vm58_vm2, %v2684_v62, %v2683_v9  ;;  %v2156_v17 = vrot.slane %v2125_v6, 7  ;;  %v2158_v18 = vrot.slane %v2126_v7, 6 }
  0x28   :  { %v2130_v15 = vld [vmem:[%s14657_s1 + $0x64] sm:$0x1]  ;;  %v2131_v16 = vld [vmem:[%s14657_s1 + $0x74] sm:$0x1]  ;;  %v1141_v19 = vsel %vm88_vm7, %v1135_v13, -inf  ;;  %v2687_v20 = vsel %vm61_vm3, %v2686_v63, %v2685_v14  ;;  %v2160_v21 = vrot.slane %v2127_v10, 5 }
  0x29   :  { %v2162_v22 = vrot.slane %v2128_v11, 4  ;;  %v2656_v23 = vld [vmem:[%s14657_s1 + $0x85] sm:$0x1]  ;;  %1142 = vmax.xlane.f32.xlu0 %v1141_v19  ;;  %v2689_v24 = vsel %vm64_vm4, %v2688_v0, %v2687_v20  ;;  %v2157_v25 = vsel %vm52_vm0, %v2156_v17, %v2124_v1  ;;  %v2164_v26 = vrot.slane %v2129_v12, 3  ;;  %v2657_v28 = vld [vmem:[%s14657_s1 + $0x95] sm:$0x1] }
  0x2a   :  { %v2166_v27 = vrot.slane %v2130_v15, 2  ;;  %v2658_v29 = vld [vmem:[%s14657_s1 + $0xa5] sm:$0x1]  ;;  %v2691_v30 = vsel %vm67_vm5, %v2690_v4, %v2689_v24  ;;  %v2159_v31 = vsel %vm55_vm1, %v2158_v18, %v2157_v25  ;;  %v2168_v32 = vrot.slane %v2131_v16, 1  ;;  %v2659_v33 = vld [vmem:[%s14657_s1 + $0xb5] sm:$0x1] }
  0x2b   :  { %v2660_v34 = vld [vmem:[%s14657_s1 + $0xc5] sm:$0x1]  ;;  %v2694_v35 = vrot.slane %v2657_v28, 7  ;;  %v2693_v36 = vsel %vm70_vm6, %v2692_v5, %v2691_v30  ;;  %v2161_v37 = vsel %vm58_vm2, %v2160_v21, %v2159_v31  ;;  %v2661_v38 = vld [vmem:[%s14657_s1 + $0xd5] sm:$0x1]  ;;  %v2696_v44 = vrot.slane %v2658_v29, 6 }
  0x2c   :  { %v2662_v39 = vld [vmem:[%s14657_s1 + $0xe5] sm:$0x1]  ;;  %v2663_v40 = vld [vmem:[%s14657_s1 + $0xf5] sm:$0x1]  ;;  %v2710_v41 = vsel %vm88_vm7, %v2693_v36, -inf  ;;  %v2163_v42 = vsel %vm61_vm3, %v2162_v22, %v2161_v37  ;;  %v2698_v47 = vrot.slane %v2659_v33, 5 }
  0x2d   :  { %v2695_v43 = vsel %vm52_vm0, %v2694_v35, %v2656_v23  ;;  %v2133_v45 = vld [vmem:[%s14657_s1 + $0x94] sm:$0x1]  ;;  %2711 = vmax.xlane.f32.xlu1 %v2710_v41  ;;  %v2165_v46 = vsel %vm64_vm4, %v2164_v26, %v2163_v42  ;;  %v2700_v48 = vrot.slane %v2660_v34, 4  ;;  %v2702_v49 = vrot.slane %v2661_v38, 3  ;;  %v2132_v50 = vld [vmem:[%s14657_s1 + $0x84] sm:$0x1] }
  0x2e   :  { %v2134_v51 = vld [vmem:[%s14657_s1 + $0xa4] sm:$0x1]  ;;  %v2167_v52 = vsel %vm67_vm5, %v2166_v27, %v2165_v46  ;;  %v2697_v53 = vsel %vm55_vm1, %v2696_v44, %v2695_v43  ;;  %v2704_v54 = vrot.slane %v2662_v39, 2  ;;  %v2706_v55 = vrot.slane %v2663_v40, 1  ;;  %v2135_v56 = vld [vmem:[%s14657_s1 + $0xb4] sm:$0x1] }
  0x2f   :  { %v2136_v57 = vld [vmem:[%s14657_s1 + $0xc4] sm:$0x1]  ;;  %v2169_v58 = vsel %vm70_vm6, %v2168_v32, %v2167_v52  ;;  %v2699_v59 = vsel %vm58_vm2, %v2698_v47, %v2697_v53  ;;  %v2137_v60 = vld [vmem:[%s14657_s1 + $0xd4] sm:$0x1]  ;;  %v2170_v1 = vrot.slane %v2133_v45, 7  ;;  %v2172_v2 = vrot.slane %v2134_v51, 6 }
  0x30   :  { %v2138_v61 = vld [vmem:[%s14657_s1 + $0xe4] sm:$0x1]  ;;  %v2139_v62 = vld [vmem:[%s14657_s1 + $0xf4] sm:$0x1]  ;;  %v2186_v63 = vsel %vm88_vm7, %v2169_v58, -inf  ;;  %v2701_v0 = vsel %vm61_vm3, %v2700_v48, %v2699_v59  ;;  %v2174_v4 = vrot.slane %v2135_v56, 5 }
  0x31   :  { %2187 = vmax.xlane.f32.xlu0 %v2186_v63  ;;  %v2703_v3 = vsel %vm64_vm4, %v2702_v49, %v2701_v0  ;;  %v2176_v5 = vrot.slane %v2136_v57, 4  ;;  %v2178_v6 = vrot.slane %v2137_v60, 3  ;;  %v3696_v7 = vld [vmem:[%s14657_s1 + $0x7] sm:$0x1]  ;;  %v3697_v8 = vld [vmem:[%s14657_s1 + $0x17] sm:$0x1]  ;;  %v2171_v10 = vsel %vm52_vm0, %v2170_v1, %v2132_v50 }
  0x32   :  { %v2705_v9 = vsel %vm67_vm5, %v2704_v54, %v2703_v3  ;;  %v2180_v11 = vrot.slane %v2138_v61, 2  ;;  %v2182_v12 = vrot.slane %v2139_v62, 1  ;;  %v3698_v13 = vld [vmem:[%s14657_s1 + $0x27] sm:$0x1]  ;;  %v3699_v14 = vld [vmem:[%s14657_s1 + $0x37] sm:$0x1]  ;;  %v2173_v16 = vsel %vm55_vm1, %v2172_v2, %v2171_v10 }
  0x33   :  { %v2707_v15 = vsel %vm70_vm6, %v2706_v55, %v2705_v9  ;;  %v3700_v17 = vld [vmem:[%s14657_s1 + $0x47] sm:$0x1]  ;;  %v3701_v18 = vld [vmem:[%s14657_s1 + $0x57] sm:$0x1]  ;;  %v2175_v21 = vsel %vm58_vm2, %v2174_v4, %v2173_v16  ;;  %v3728_v23 = vrot.slane %v3697_v8, 7  ;;  %v3730_v24 = vrot.slane %v3698_v13, 6 }
  0x34   :  { %v3702_v19 = vld [vmem:[%s14657_s1 + $0x67] sm:$0x1]  ;;  %v2713_v20 = vsel %vm88_vm7, %v2707_v15, -inf  ;;  %v3703_v22 = vld [vmem:[%s14657_s1 + $0x77] sm:$0x1]  ;;  %v2177_v25 = vsel %vm61_vm3, %v2176_v5, %v2175_v21  ;;  %v3732_v26 = vrot.slane %v3699_v14, 5 }
  0x35   :  { %2714 = vmax.xlane.f32.xlu1 %v2713_v20  ;;  %v3734_v27 = vrot.slane %v3700_v17, 4  ;;  %v3736_v28 = vrot.slane %v3701_v18, 3  ;;  %v3172_v29 = vld [vmem:[%s14657_s1 + $0x6] sm:$0x1]  ;;  %v2179_v30 = vsel %vm64_vm4, %v2178_v6, %v2177_v25  ;;  %v3729_v31 = vsel %vm52_vm0, %v3728_v23, %v3696_v7  ;;  %v3173_v34 = vld [vmem:[%s14657_s1 + $0x16] sm:$0x1] }
  0x36   :  { %v3738_v32 = vrot.slane %v3702_v19, 2  ;;  %v3740_v33 = vrot.slane %v3703_v22, 1  ;;  %v3174_v35 = vld [vmem:[%s14657_s1 + $0x26] sm:$0x1]  ;;  %v2181_v36 = vsel %vm67_vm5, %v2180_v11, %v2179_v30  ;;  %v3731_v37 = vsel %vm55_vm1, %v3730_v24, %v3729_v31  ;;  %v3175_v38 = vld [vmem:[%s14657_s1 + $0x36] sm:$0x1] }
  0x37   :  { %v3176_v39 = vld [vmem:[%s14657_s1 + $0x46] sm:$0x1]  ;;  %v3177_v40 = vld [vmem:[%s14657_s1 + $0x56] sm:$0x1]  ;;  %v2183_v41 = vsel %vm70_vm6, %v2182_v12, %v2181_v36  ;;  %v3733_v42 = vsel %vm58_vm2, %v3732_v26, %v3731_v37  ;;  %v3204_v45 = vrot.slane %v3173_v34, 7  ;;  %v3206_v46 = vrot.slane %v3174_v35, 6 }
  0x38   :  { %v3178_v43 = vld [vmem:[%s14657_s1 + $0x66] sm:$0x1]  ;;  %v3179_v44 = vld [vmem:[%s14657_s1 + $0x76] sm:$0x1]  ;;  %v2189_v47 = vsel %vm88_vm7, %v2183_v41, -inf  ;;  %v3735_v48 = vsel %vm61_vm3, %v3734_v27, %v3733_v42  ;;  %v3208_v49 = vrot.slane %v3175_v38, 5 }
  0x39   :  { %v3210_v50 = vrot.slane %v3176_v39, 4  ;;  %v3704_v51 = vld [vmem:[%s14657_s1 + $0x87] sm:$0x1]  ;;  %2190 = vmax.xlane.f32.xlu0 %v2189_v47  ;;  %v3737_v52 = vsel %vm64_vm4, %v3736_v28, %v3735_v48  ;;  %v3205_v53 = vsel %vm52_vm0, %v3204_v45, %v3172_v29  ;;  %v3212_v54 = vrot.slane %v3177_v40, 3  ;;  %v3705_v56 = vld [vmem:[%s14657_s1 + $0x97] sm:$0x1] }
  0x3a   :  { %v3214_v55 = vrot.slane %v3178_v43, 2  ;;  %v3706_v57 = vld [vmem:[%s14657_s1 + $0xa7] sm:$0x1]  ;;  %v3739_v58 = vsel %vm67_vm5, %v3738_v32, %v3737_v52  ;;  %v3207_v59 = vsel %vm55_vm1, %v3206_v46, %v3205_v53  ;;  %v3216_v60 = vrot.slane %v3179_v44, 1  ;;  %v3707_v61 = vld [vmem:[%s14657_s1 + $0xb7] sm:$0x1] }
  0x3b   :  { %v3708_v62 = vld [vmem:[%s14657_s1 + $0xc7] sm:$0x1]  ;;  %v3742_v63 = vrot.slane %v3705_v56, 7  ;;  %v3741_v0 = vsel %vm70_vm6, %v3740_v33, %v3739_v58  ;;  %v3209_v1 = vsel %vm58_vm2, %v3208_v49, %v3207_v59  ;;  %v3709_v2 = vld [vmem:[%s14657_s1 + $0xd7] sm:$0x1]  ;;  %v3744_v8 = vrot.slane %v3706_v57, 6 }
  0x3c   :  { %v3710_v3 = vld [vmem:[%s14657_s1 + $0xe7] sm:$0x1]  ;;  %v3711_v4 = vld [vmem:[%s14657_s1 + $0xf7] sm:$0x1]  ;;  %v3758_v5 = vsel %vm88_vm7, %v3741_v0, -inf  ;;  %v3211_v6 = vsel %vm61_vm3, %v3210_v50, %v3209_v1  ;;  %v3746_v11 = vrot.slane %v3707_v61, 5 }
  0x3d   :  { %v3743_v7 = vsel %vm52_vm0, %v3742_v63, %v3704_v51  ;;  %v3181_v9 = vld [vmem:[%s14657_s1 + $0x96] sm:$0x1]  ;;  %3759 = vmax.xlane.f32.xlu1 %v3758_v5  ;;  %v3213_v10 = vsel %vm64_vm4, %v3212_v54, %v3211_v6  ;;  %v3748_v12 = vrot.slane %v3708_v62, 4  ;;  %v3750_v13 = vrot.slane %v3709_v2, 3  ;;  %v3180_v14 = vld [vmem:[%s14657_s1 + $0x86] sm:$0x1] }
  0x3e   :  { %v3182_v15 = vld [vmem:[%s14657_s1 + $0xa6] sm:$0x1]  ;;  %v3215_v16 = vsel %vm67_vm5, %v3214_v55, %v3213_v10  ;;  %v3745_v17 = vsel %vm55_vm1, %v3744_v8, %v3743_v7  ;;  %v3752_v18 = vrot.slane %v3710_v3, 2  ;;  %v3754_v19 = vrot.slane %v3711_v4, 1  ;;  %v3183_v20 = vld [vmem:[%s14657_s1 + $0xb6] sm:$0x1] }
  0x3f   :  { %v3184_v21 = vld [vmem:[%s14657_s1 + $0xc6] sm:$0x1]  ;;  %v3217_v22 = vsel %vm70_vm6, %v3216_v60, %v3215_v16  ;;  %v3747_v23 = vsel %vm58_vm2, %v3746_v11, %v3745_v17  ;;  %v3185_v24 = vld [vmem:[%s14657_s1 + $0xd6] sm:$0x1]  ;;  %v3218_v29 = vrot.slane %v3181_v9, 7  ;;  %v3220_v30 = vrot.slane %v3182_v15, 6 }
  0x40   :  { %v3186_v25 = vld [vmem:[%s14657_s1 + $0xe6] sm:$0x1]  ;;  %v3187_v26 = vld [vmem:[%s14657_s1 + $0xf6] sm:$0x1]  ;;  %v3234_v27 = vsel %vm88_vm7, %v3217_v22, -inf  ;;  %v3749_v28 = vsel %vm61_vm3, %v3748_v12, %v3747_v23  ;;  %v3222_v32 = vrot.slane %v3183_v20, 5 }
  0x41   :  { %3235 = vmax.xlane.f32.xlu0 %v3234_v27  ;;  %v3751_v31 = vsel %vm64_vm4, %v3750_v13, %v3749_v28  ;;  %v3224_v33 = vrot.slane %v3184_v21, 4  ;;  %v3226_v34 = vrot.slane %v3185_v24, 3  ;;  %v4744_v35 = vld [vmem:[%s14657_s1 + $0x9] sm:$0x1]  ;;  %v4745_v36 = vld [vmem:[%s14657_s1 + $0x19] sm:$0x1]  ;;  %v3219_v38 = vsel %vm52_vm0, %v3218_v29, %v3180_v14 }
  0x42   :  { %v3753_v37 = vsel %vm67_vm5, %v3752_v18, %v3751_v31  ;;  %v3228_v39 = vrot.slane %v3186_v25, 2  ;;  %v3230_v40 = vrot.slane %v3187_v26, 1  ;;  %v4746_v41 = vld [vmem:[%s14657_s1 + $0x29] sm:$0x1]  ;;  %v4747_v42 = vld [vmem:[%s14657_s1 + $0x39] sm:$0x1]  ;;  %v3221_v44 = vsel %vm55_vm1, %v3220_v30, %v3219_v38 }
  0x43   :  { %v3755_v43 = vsel %vm70_vm6, %v3754_v19, %v3753_v37  ;;  %v4748_v45 = vld [vmem:[%s14657_s1 + $0x49] sm:$0x1]  ;;  %v4749_v46 = vld [vmem:[%s14657_s1 + $0x59] sm:$0x1]  ;;  %v3223_v49 = vsel %vm58_vm2, %v3222_v32, %v3221_v44  ;;  %v4776_v51 = vrot.slane %v4745_v36, 7  ;;  %v4778_v52 = vrot.slane %v4746_v41, 6 }
  0x44   :  { %v4750_v47 = vld [vmem:[%s14657_s1 + $0x69] sm:$0x1]  ;;  %v3761_v48 = vsel %vm88_vm7, %v3755_v43, -inf  ;;  %v4751_v50 = vld [vmem:[%s14657_s1 + $0x79] sm:$0x1]  ;;  %v3225_v53 = vsel %vm61_vm3, %v3224_v33, %v3223_v49  ;;  %v4780_v54 = vrot.slane %v4747_v42, 5 }
  0x45   :  { %3762 = vmax.xlane.f32.xlu1 %v3761_v48  ;;  %v4782_v55 = vrot.slane %v4748_v45, 4  ;;  %v4784_v56 = vrot.slane %v4749_v46, 3  ;;  %v4220_v57 = vld [vmem:[%s14657_s1 + $0x8] sm:$0x1]  ;;  %v3227_v58 = vsel %vm64_vm4, %v3226_v34, %v3225_v53  ;;  %v4777_v59 = vsel %vm52_vm0, %v4776_v51, %v4744_v35  ;;  %v4221_v62 = vld [vmem:[%s14657_s1 + $0x18] sm:$0x1] }
  0x46   :  { %v4786_v60 = vrot.slane %v4750_v47, 2  ;;  %v4788_v61 = vrot.slane %v4751_v50, 1  ;;  %v4222_v63 = vld [vmem:[%s14657_s1 + $0x28] sm:$0x1]  ;;  %v3229_v0 = vsel %vm67_vm5, %v3228_v39, %v3227_v58  ;;  %v4779_v1 = vsel %vm55_vm1, %v4778_v52, %v4777_v59  ;;  %v4223_v2 = vld [vmem:[%s14657_s1 + $0x38] sm:$0x1] }
  0x47   :  { %v4224_v3 = vld [vmem:[%s14657_s1 + $0x48] sm:$0x1]  ;;  %v4225_v4 = vld [vmem:[%s14657_s1 + $0x58] sm:$0x1]  ;;  %v3231_v5 = vsel %vm70_vm6, %v3230_v40, %v3229_v0  ;;  %v4781_v6 = vsel %vm58_vm2, %v4780_v54, %v4779_v1  ;;  %v4252_v9 = vrot.slane %v4221_v62, 7  ;;  %v4254_v10 = vrot.slane %v4222_v63, 6 }
  0x48   :  { %v4226_v7 = vld [vmem:[%s14657_s1 + $0x68] sm:$0x1]  ;;  %v4227_v8 = vld [vmem:[%s14657_s1 + $0x78] sm:$0x1]  ;;  %v3237_v11 = vsel %vm88_vm7, %v3231_v5, -inf  ;;  %v4783_v12 = vsel %vm61_vm3, %v4782_v55, %v4781_v6  ;;  %v4256_v13 = vrot.slane %v4223_v2, 5 }
  0x49   :  { %v4258_v14 = vrot.slane %v4224_v3, 4  ;;  %v4752_v15 = vld [vmem:[%s14657_s1 + $0x89] sm:$0x1]  ;;  %3238 = vmax.xlane.f32.xlu0 %v3237_v11  ;;  %v4785_v16 = vsel %vm64_vm4, %v4784_v56, %v4783_v12  ;;  %v4253_v17 = vsel %vm52_vm0, %v4252_v9, %v4220_v57  ;;  %v4260_v18 = vrot.slane %v4225_v4, 3  ;;  %v4753_v20 = vld [vmem:[%s14657_s1 + $0x99] sm:$0x1] }
  0x4a   :  { %v4262_v19 = vrot.slane %v4226_v7, 2  ;;  %v4754_v21 = vld [vmem:[%s14657_s1 + $0xa9] sm:$0x1]  ;;  %v4787_v22 = vsel %vm67_vm5, %v4786_v60, %v4785_v16  ;;  %v4255_v23 = vsel %vm55_vm1, %v4254_v10, %v4253_v17  ;;  %v4264_v24 = vrot.slane %v4227_v8, 1  ;;  %v4755_v25 = vld [vmem:[%s14657_s1 + $0xb9] sm:$0x1] }
  0x4b   :  { %v4756_v26 = vld [vmem:[%s14657_s1 + $0xc9] sm:$0x1]  ;;  %v4790_v27 = vrot.slane %v4753_v20, 7  ;;  %v4789_v28 = vsel %vm70_vm6, %v4788_v61, %v4787_v22  ;;  %v4257_v29 = vsel %vm58_vm2, %v4256_v13, %v4255_v23  ;;  %v4757_v30 = vld [vmem:[%s14657_s1 + $0xd9] sm:$0x1]  ;;  %v4792_v36 = vrot.slane %v4754_v21, 6 }
  0x4c   :  { %v4758_v31 = vld [vmem:[%s14657_s1 + $0xe9] sm:$0x1]  ;;  %v4759_v32 = vld [vmem:[%s14657_s1 + $0xf9] sm:$0x1]  ;;  %v4806_v33 = vsel %vm88_vm7, %v4789_v28, -inf  ;;  %v4259_v34 = vsel %vm61_vm3, %v4258_v14, %v4257_v29  ;;  %v4794_v39 = vrot.slane %v4755_v25, 5 }
  0x4d   :  { %v4791_v35 = vsel %vm52_vm0, %v4790_v27, %v4752_v15  ;;  %v4229_v37 = vld [vmem:[%s14657_s1 + $0x98] sm:$0x1]  ;;  %4807 = vmax.xlane.f32.xlu1 %v4806_v33  ;;  %v4261_v38 = vsel %vm64_vm4, %v4260_v18, %v4259_v34  ;;  %v4796_v40 = vrot.slane %v4756_v26, 4  ;;  %v4798_v41 = vrot.slane %v4757_v30, 3  ;;  %v4228_v42 = vld [vmem:[%s14657_s1 + $0x88] sm:$0x1] }
  0x4e   :  { %v4230_v43 = vld [vmem:[%s14657_s1 + $0xa8] sm:$0x1]  ;;  %v4263_v44 = vsel %vm67_vm5, %v4262_v19, %v4261_v38  ;;  %v4793_v45 = vsel %vm55_vm1, %v4792_v36, %v4791_v35  ;;  %v4800_v46 = vrot.slane %v4758_v31, 2  ;;  %v4802_v47 = vrot.slane %v4759_v32, 1  ;;  %v4231_v48 = vld [vmem:[%s14657_s1 + $0xb8] sm:$0x1] }
  0x4f   :  { %v4232_v49 = vld [vmem:[%s14657_s1 + $0xc8] sm:$0x1]  ;;  %v4265_v50 = vsel %vm70_vm6, %v4264_v24, %v4263_v44  ;;  %v4795_v51 = vsel %vm58_vm2, %v4794_v39, %v4793_v45  ;;  %v4233_v52 = vld [vmem:[%s14657_s1 + $0xd8] sm:$0x1]  ;;  %v4266_v57 = vrot.slane %v4229_v37, 7  ;;  %v4268_v58 = vrot.slane %v4230_v43, 6 }
  0x50   :  { %v4234_v53 = vld [vmem:[%s14657_s1 + $0xe8] sm:$0x1]  ;;  %v4235_v54 = vld [vmem:[%s14657_s1 + $0xf8] sm:$0x1]  ;;  %v4282_v55 = vsel %vm88_vm7, %v4265_v50, -inf  ;;  %v4797_v56 = vsel %vm61_vm3, %v4796_v40, %v4795_v51  ;;  %v4270_v60 = vrot.slane %v4231_v48, 5 }
  0x51   :  { %4283 = vmax.xlane.f32.xlu0 %v4282_v55  ;;  %v4799_v59 = vsel %vm64_vm4, %v4798_v41, %v4797_v56  ;;  %v4272_v61 = vrot.slane %v4232_v49, 4  ;;  %v4274_v62 = vrot.slane %v4233_v52, 3  ;;  %v5792_v63 = vld [vmem:[%s14657_s1 + $0xb] sm:$0x1]  ;;  %v5793_v0 = vld [vmem:[%s14657_s1 + $0x1b] sm:$0x1]  ;;  %v4267_v2 = vsel %vm52_vm0, %v4266_v57, %v4228_v42 }
  0x52   :  { %v4801_v1 = vsel %vm67_vm5, %v4800_v46, %v4799_v59  ;;  %v4276_v3 = vrot.slane %v4234_v53, 2  ;;  %v4278_v4 = vrot.slane %v4235_v54, 1  ;;  %v5794_v5 = vld [vmem:[%s14657_s1 + $0x2b] sm:$0x1]  ;;  %v5795_v6 = vld [vmem:[%s14657_s1 + $0x3b] sm:$0x1]  ;;  %v4269_v8 = vsel %vm55_vm1, %v4268_v58, %v4267_v2 }
  0x53   :  { %v4803_v7 = vsel %vm70_vm6, %v4802_v47, %v4801_v1  ;;  %v5796_v9 = vld [vmem:[%s14657_s1 + $0x4b] sm:$0x1]  ;;  %v5797_v10 = vld [vmem:[%s14657_s1 + $0x5b] sm:$0x1]  ;;  %v4271_v13 = vsel %vm58_vm2, %v4270_v60, %v4269_v8  ;;  %v5824_v15 = vrot.slane %v5793_v0, 7  ;;  %v5826_v16 = vrot.slane %v5794_v5, 6 }
  0x54   :  { %v5798_v11 = vld [vmem:[%s14657_s1 + $0x6b] sm:$0x1]  ;;  %v4809_v12 = vsel %vm88_vm7, %v4803_v7, -inf  ;;  %v5799_v14 = vld [vmem:[%s14657_s1 + $0x7b] sm:$0x1]  ;;  %v4273_v17 = vsel %vm61_vm3, %v4272_v61, %v4271_v13  ;;  %v5828_v18 = vrot.slane %v5795_v6, 5 }
  0x55   :  { %4810 = vmax.xlane.f32.xlu1 %v4809_v12  ;;  %v5830_v19 = vrot.slane %v5796_v9, 4  ;;  %v5832_v20 = vrot.slane %v5797_v10, 3  ;;  %v5268_v21 = vld [vmem:[%s14657_s1 + $0xa] sm:$0x1]  ;;  %v4275_v22 = vsel %vm64_vm4, %v4274_v62, %v4273_v17  ;;  %v5825_v23 = vsel %vm52_vm0, %v5824_v15, %v5792_v63  ;;  %v5269_v26 = vld [vmem:[%s14657_s1 + $0x1a] sm:$0x1] }
  0x56   :  { %v5834_v24 = vrot.slane %v5798_v11, 2  ;;  %v5836_v25 = vrot.slane %v5799_v14, 1  ;;  %v5270_v27 = vld [vmem:[%s14657_s1 + $0x2a] sm:$0x1]  ;;  %v4277_v28 = vsel %vm67_vm5, %v4276_v3, %v4275_v22  ;;  %v5827_v29 = vsel %vm55_vm1, %v5826_v16, %v5825_v23  ;;  %v5271_v30 = vld [vmem:[%s14657_s1 + $0x3a] sm:$0x1] }
  0x57   :  { %v5272_v31 = vld [vmem:[%s14657_s1 + $0x4a] sm:$0x1]  ;;  %v5273_v32 = vld [vmem:[%s14657_s1 + $0x5a] sm:$0x1]  ;;  %v4279_v33 = vsel %vm70_vm6, %v4278_v4, %v4277_v28  ;;  %v5829_v34 = vsel %vm58_vm2, %v5828_v18, %v5827_v29  ;;  %v5300_v37 = vrot.slane %v5269_v26, 7  ;;  %v5302_v38 = vrot.slane %v5270_v27, 6 }
  0x58   :  { %v5274_v35 = vld [vmem:[%s14657_s1 + $0x6a] sm:$0x1]  ;;  %v5275_v36 = vld [vmem:[%s14657_s1 + $0x7a] sm:$0x1]  ;;  %v4285_v39 = vsel %vm88_vm7, %v4279_v33, -inf  ;;  %v5831_v40 = vsel %vm61_vm3, %v5830_v19, %v5829_v34  ;;  %v5304_v41 = vrot.slane %v5271_v30, 5 }
  0x59   :  { %v5306_v42 = vrot.slane %v5272_v31, 4  ;;  %v5800_v43 = vld [vmem:[%s14657_s1 + $0x8b] sm:$0x1]  ;;  %4286 = vmax.xlane.f32.xlu0 %v4285_v39  ;;  %v5833_v44 = vsel %vm64_vm4, %v5832_v20, %v5831_v40  ;;  %v5301_v45 = vsel %vm52_vm0, %v5300_v37, %v5268_v21  ;;  %v5308_v46 = vrot.slane %v5273_v32, 3  ;;  %v5801_v48 = vld [vmem:[%s14657_s1 + $0x9b] sm:$0x1] }
  0x5a   :  { %v5310_v47 = vrot.slane %v5274_v35, 2  ;;  %v5802_v49 = vld [vmem:[%s14657_s1 + $0xab] sm:$0x1]  ;;  %v5835_v50 = vsel %vm67_vm5, %v5834_v24, %v5833_v44  ;;  %v5303_v51 = vsel %vm55_vm1, %v5302_v38, %v5301_v45  ;;  %v5312_v52 = vrot.slane %v5275_v36, 1  ;;  %v5803_v53 = vld [vmem:[%s14657_s1 + $0xbb] sm:$0x1] }
  0x5b   :  { %v5804_v54 = vld [vmem:[%s14657_s1 + $0xcb] sm:$0x1]  ;;  %v5838_v55 = vrot.slane %v5801_v48, 7  ;;  %v5837_v56 = vsel %vm70_vm6, %v5836_v25, %v5835_v50  ;;  %v5305_v57 = vsel %vm58_vm2, %v5304_v41, %v5303_v51  ;;  %v5805_v58 = vld [vmem:[%s14657_s1 + $0xdb] sm:$0x1]  ;;  %v5840_v0 = vrot.slane %v5802_v49, 6 }
  0x5c   :  { %v5806_v59 = vld [vmem:[%s14657_s1 + $0xeb] sm:$0x1]  ;;  %v5807_v60 = vld [vmem:[%s14657_s1 + $0xfb] sm:$0x1]  ;;  %v5854_v61 = vsel %vm88_vm7, %v5837_v56, -inf  ;;  %v5307_v62 = vsel %vm61_vm3, %v5306_v42, %v5305_v57  ;;  %v5842_v3 = vrot.slane %v5803_v53, 5 }
  0x5d   :  { %v5839_v63 = vsel %vm52_vm0, %v5838_v55, %v5800_v43  ;;  %v5277_v1 = vld [vmem:[%s14657_s1 + $0x9a] sm:$0x1]  ;;  %5855 = vmax.xlane.f32.xlu1 %v5854_v61  ;;  %v5309_v2 = vsel %vm64_vm4, %v5308_v46, %v5307_v62  ;;  %v5844_v4 = vrot.slane %v5804_v54, 4  ;;  %v5846_v5 = vrot.slane %v5805_v58, 3  ;;  %v5276_v6 = vld [vmem:[%s14657_s1 + $0x8a] sm:$0x1] }
  0x5e   :  { %v5278_v7 = vld [vmem:[%s14657_s1 + $0xaa] sm:$0x1]  ;;  %v5311_v8 = vsel %vm67_vm5, %v5310_v47, %v5309_v2  ;;  %v5841_v9 = vsel %vm55_vm1, %v5840_v0, %v5839_v63  ;;  %v5848_v10 = vrot.slane %v5806_v59, 2  ;;  %v5850_v11 = vrot.slane %v5807_v60, 1  ;;  %v5279_v12 = vld [vmem:[%s14657_s1 + $0xba] sm:$0x1] }
  0x5f   :  { %v5280_v13 = vld [vmem:[%s14657_s1 + $0xca] sm:$0x1]  ;;  %v5313_v14 = vsel %vm70_vm6, %v5312_v52, %v5311_v8  ;;  %v5843_v15 = vsel %vm58_vm2, %v5842_v3, %v5841_v9  ;;  %v5281_v16 = vld [vmem:[%s14657_s1 + $0xda] sm:$0x1]  ;;  %v5314_v21 = vrot.slane %v5277_v1, 7  ;;  %v5316_v22 = vrot.slane %v5278_v7, 6 }
  0x60   :  { %v5282_v17 = vld [vmem:[%s14657_s1 + $0xea] sm:$0x1]  ;;  %v5283_v18 = vld [vmem:[%s14657_s1 + $0xfa] sm:$0x1]  ;;  %v5330_v19 = vsel %vm88_vm7, %v5313_v14, -inf  ;;  %v5845_v20 = vsel %vm61_vm3, %v5844_v4, %v5843_v15  ;;  %v5318_v24 = vrot.slane %v5279_v12, 5 }
  0x61   :  { %5331 = vmax.xlane.f32.xlu0 %v5330_v19  ;;  %v5847_v23 = vsel %vm64_vm4, %v5846_v5, %v5845_v20  ;;  %v5320_v25 = vrot.slane %v5280_v13, 4  ;;  %v5322_v26 = vrot.slane %v5281_v16, 3  ;;  %v6840_v27 = vld [vmem:[%s14657_s1 + $0xd] sm:$0x1]  ;;  %v6841_v28 = vld [vmem:[%s14657_s1 + $0x1d] sm:$0x1]  ;;  %v5315_v30 = vsel %vm52_vm0, %v5314_v21, %v5276_v6 }
  0x62   :  { %v5849_v29 = vsel %vm67_vm5, %v5848_v10, %v5847_v23  ;;  %v5324_v31 = vrot.slane %v5282_v17, 2  ;;  %v5326_v32 = vrot.slane %v5283_v18, 1  ;;  %v6842_v33 = vld [vmem:[%s14657_s1 + $0x2d] sm:$0x1]  ;;  %v6843_v34 = vld [vmem:[%s14657_s1 + $0x3d] sm:$0x1]  ;;  %v5317_v36 = vsel %vm55_vm1, %v5316_v22, %v5315_v30 }
  0x63   :  { %v5851_v35 = vsel %vm70_vm6, %v5850_v11, %v5849_v29  ;;  %v6844_v37 = vld [vmem:[%s14657_s1 + $0x4d] sm:$0x1]  ;;  %v6845_v38 = vld [vmem:[%s14657_s1 + $0x5d] sm:$0x1]  ;;  %v5319_v41 = vsel %vm58_vm2, %v5318_v24, %v5317_v36  ;;  %v6872_v43 = vrot.slane %v6841_v28, 7  ;;  %v6874_v44 = vrot.slane %v6842_v33, 6 }
  0x64   :  { %v6846_v39 = vld [vmem:[%s14657_s1 + $0x6d] sm:$0x1]  ;;  %v5857_v40 = vsel %vm88_vm7, %v5851_v35, -inf  ;;  %v6847_v42 = vld [vmem:[%s14657_s1 + $0x7d] sm:$0x1]  ;;  %v5321_v45 = vsel %vm61_vm3, %v5320_v25, %v5319_v41  ;;  %v6876_v46 = vrot.slane %v6843_v34, 5 }
  0x65   :  { %5858 = vmax.xlane.f32.xlu1 %v5857_v40  ;;  %v6878_v47 = vrot.slane %v6844_v37, 4  ;;  %v6880_v48 = vrot.slane %v6845_v38, 3  ;;  %v6316_v49 = vld [vmem:[%s14657_s1 + $0xc] sm:$0x1]  ;;  %v5323_v50 = vsel %vm64_vm4, %v5322_v26, %v5321_v45  ;;  %v6873_v51 = vsel %vm52_vm0, %v6872_v43, %v6840_v27  ;;  %v6317_v54 = vld [vmem:[%s14657_s1 + $0x1c] sm:$0x1] }
  0x66   :  { %v6882_v52 = vrot.slane %v6846_v39, 2  ;;  %v6884_v53 = vrot.slane %v6847_v42, 1  ;;  %v6318_v55 = vld [vmem:[%s14657_s1 + $0x2c] sm:$0x1]  ;;  %v5325_v56 = vsel %vm67_vm5, %v5324_v31, %v5323_v50  ;;  %v6875_v57 = vsel %vm55_vm1, %v6874_v44, %v6873_v51  ;;  %v6319_v58 = vld [vmem:[%s14657_s1 + $0x3c] sm:$0x1] }
  0x67   :  { %v6320_v59 = vld [vmem:[%s14657_s1 + $0x4c] sm:$0x1]  ;;  %v6321_v60 = vld [vmem:[%s14657_s1 + $0x5c] sm:$0x1]  ;;  %v5327_v61 = vsel %vm70_vm6, %v5326_v32, %v5325_v56  ;;  %v6877_v62 = vsel %vm58_vm2, %v6876_v46, %v6875_v57  ;;  %v6348_v1 = vrot.slane %v6317_v54, 7  ;;  %v6350_v2 = vrot.slane %v6318_v55, 6 }
  0x68   :  { %v6322_v63 = vld [vmem:[%s14657_s1 + $0x6c] sm:$0x1]  ;;  %v6323_v0 = vld [vmem:[%s14657_s1 + $0x7c] sm:$0x1]  ;;  %v5333_v3 = vsel %vm88_vm7, %v5327_v61, -inf  ;;  %v6879_v4 = vsel %vm61_vm3, %v6878_v47, %v6877_v62  ;;  %v6352_v5 = vrot.slane %v6319_v58, 5 }
  0x69   :  { %v6354_v6 = vrot.slane %v6320_v59, 4  ;;  %v6848_v7 = vld [vmem:[%s14657_s1 + $0x8d] sm:$0x1]  ;;  %5334 = vmax.xlane.f32.xlu0 %v5333_v3  ;;  %v6881_v8 = vsel %vm64_vm4, %v6880_v48, %v6879_v4  ;;  %v6349_v9 = vsel %vm52_vm0, %v6348_v1, %v6316_v49  ;;  %v6356_v10 = vrot.slane %v6321_v60, 3  ;;  %v6849_v12 = vld [vmem:[%s14657_s1 + $0x9d] sm:$0x1] }
  0x6a   :  { %v6358_v11 = vrot.slane %v6322_v63, 2  ;;  %v6850_v13 = vld [vmem:[%s14657_s1 + $0xad] sm:$0x1]  ;;  %v6883_v14 = vsel %vm67_vm5, %v6882_v52, %v6881_v8  ;;  %v6351_v15 = vsel %vm55_vm1, %v6350_v2, %v6349_v9  ;;  %v6360_v16 = vrot.slane %v6323_v0, 1  ;;  %v6851_v17 = vld [vmem:[%s14657_s1 + $0xbd] sm:$0x1] }
  0x6b   :  { %v6852_v18 = vld [vmem:[%s14657_s1 + $0xcd] sm:$0x1]  ;;  %v6886_v19 = vrot.slane %v6849_v12, 7  ;;  %v6885_v20 = vsel %vm70_vm6, %v6884_v53, %v6883_v14  ;;  %v6353_v21 = vsel %vm58_vm2, %v6352_v5, %v6351_v15  ;;  %v6853_v22 = vld [vmem:[%s14657_s1 + $0xdd] sm:$0x1]  ;;  %v6888_v28 = vrot.slane %v6850_v13, 6 }
  0x6c   :  { %v6854_v23 = vld [vmem:[%s14657_s1 + $0xed] sm:$0x1]  ;;  %v6855_v24 = vld [vmem:[%s14657_s1 + $0xfd] sm:$0x1]  ;;  %v6902_v25 = vsel %vm88_vm7, %v6885_v20, -inf  ;;  %v6355_v26 = vsel %vm61_vm3, %v6354_v6, %v6353_v21  ;;  %v6890_v31 = vrot.slane %v6851_v17, 5 }
  0x6d   :  { %v6887_v27 = vsel %vm52_vm0, %v6886_v19, %v6848_v7  ;;  %v6325_v29 = vld [vmem:[%s14657_s1 + $0x9c] sm:$0x1]  ;;  %6903 = vmax.xlane.f32.xlu1 %v6902_v25  ;;  %v6357_v30 = vsel %vm64_vm4, %v6356_v10, %v6355_v26  ;;  %v6892_v32 = vrot.slane %v6852_v18, 4  ;;  %v6894_v33 = vrot.slane %v6853_v22, 3  ;;  %v6324_v34 = vld [vmem:[%s14657_s1 + $0x8c] sm:$0x1] }
  0x6e   :  { %v6326_v35 = vld [vmem:[%s14657_s1 + $0xac] sm:$0x1]  ;;  %v6359_v36 = vsel %vm67_vm5, %v6358_v11, %v6357_v30  ;;  %v6889_v37 = vsel %vm55_vm1, %v6888_v28, %v6887_v27  ;;  %v6896_v38 = vrot.slane %v6854_v23, 2  ;;  %v6898_v39 = vrot.slane %v6855_v24, 1  ;;  %v6327_v40 = vld [vmem:[%s14657_s1 + $0xbc] sm:$0x1] }
  0x6f   :  { %v6328_v41 = vld [vmem:[%s14657_s1 + $0xcc] sm:$0x1]  ;;  %v6361_v42 = vsel %vm70_vm6, %v6360_v16, %v6359_v36  ;;  %v6891_v43 = vsel %vm58_vm2, %v6890_v31, %v6889_v37  ;;  %v6329_v44 = vld [vmem:[%s14657_s1 + $0xdc] sm:$0x1]  ;;  %v6362_v49 = vrot.slane %v6325_v29, 7  ;;  %v6364_v50 = vrot.slane %v6326_v35, 6 }
  0x70   :  { %v6330_v45 = vld [vmem:[%s14657_s1 + $0xec] sm:$0x1]  ;;  %v6331_v46 = vld [vmem:[%s14657_s1 + $0xfc] sm:$0x1]  ;;  %v6378_v47 = vsel %vm88_vm7, %v6361_v42, -inf  ;;  %v6893_v48 = vsel %vm61_vm3, %v6892_v32, %v6891_v43  ;;  %v6366_v52 = vrot.slane %v6327_v40, 5 }
  0x71   :  { %6379 = vmax.xlane.f32.xlu0 %v6378_v47  ;;  %v6895_v51 = vsel %vm64_vm4, %v6894_v33, %v6893_v48  ;;  %v6368_v53 = vrot.slane %v6328_v41, 4  ;;  %v6370_v54 = vrot.slane %v6329_v44, 3  ;;  %v7888_v55 = vld [vmem:[%s14657_s1 + $0xf] sm:$0x1]  ;;  %v7889_v56 = vld [vmem:[%s14657_s1 + $0x1f] sm:$0x1]  ;;  %v6363_v58 = vsel %vm52_vm0, %v6362_v49, %v6324_v34 }
  0x72   :  { %v6897_v57 = vsel %vm67_vm5, %v6896_v38, %v6895_v51  ;;  %v6372_v59 = vrot.slane %v6330_v45, 2  ;;  %v6374_v60 = vrot.slane %v6331_v46, 1  ;;  %v7890_v61 = vld [vmem:[%s14657_s1 + $0x2f] sm:$0x1]  ;;  %v7891_v62 = vld [vmem:[%s14657_s1 + $0x3f] sm:$0x1]  ;;  %v6365_v0 = vsel %vm55_vm1, %v6364_v50, %v6363_v58 }
  0x73   :  { %v6899_v63 = vsel %vm70_vm6, %v6898_v39, %v6897_v57  ;;  %v7892_v1 = vld [vmem:[%s14657_s1 + $0x4f] sm:$0x1]  ;;  %v7893_v2 = vld [vmem:[%s14657_s1 + $0x5f] sm:$0x1]  ;;  %v6367_v5 = vsel %vm58_vm2, %v6366_v52, %v6365_v0  ;;  %v7920_v7 = vrot.slane %v7889_v56, 7  ;;  %v7922_v8 = vrot.slane %v7890_v61, 6 }
  0x74   :  { %v7894_v3 = vld [vmem:[%s14657_s1 + $0x6f] sm:$0x1]  ;;  %v6905_v4 = vsel %vm88_vm7, %v6899_v63, -inf  ;;  %v7895_v6 = vld [vmem:[%s14657_s1 + $0x7f] sm:$0x1]  ;;  %v6369_v9 = vsel %vm61_vm3, %v6368_v53, %v6367_v5  ;;  %v7924_v10 = vrot.slane %v7891_v62, 5 }
  0x75   :  { %6906 = vmax.xlane.f32.xlu1 %v6905_v4  ;;  %v7926_v11 = vrot.slane %v7892_v1, 4  ;;  %v7928_v12 = vrot.slane %v7893_v2, 3  ;;  %v7364_v13 = vld [vmem:[%s14657_s1 + $0xe] sm:$0x1]  ;;  %v6371_v14 = vsel %vm64_vm4, %v6370_v54, %v6369_v9  ;;  %v7921_v15 = vsel %vm52_vm0, %v7920_v7, %v7888_v55  ;;  %v7365_v18 = vld [vmem:[%s14657_s1 + $0x1e] sm:$0x1] }
  0x76   :  { %v7930_v16 = vrot.slane %v7894_v3, 2  ;;  %v7932_v17 = vrot.slane %v7895_v6, 1  ;;  %v7366_v19 = vld [vmem:[%s14657_s1 + $0x2e] sm:$0x1]  ;;  %v6373_v20 = vsel %vm67_vm5, %v6372_v59, %v6371_v14  ;;  %v7923_v21 = vsel %vm55_vm1, %v7922_v8, %v7921_v15  ;;  %v7367_v22 = vld [vmem:[%s14657_s1 + $0x3e] sm:$0x1] }
  0x77   :  { %v7368_v23 = vld [vmem:[%s14657_s1 + $0x4e] sm:$0x1]  ;;  %v7369_v24 = vld [vmem:[%s14657_s1 + $0x5e] sm:$0x1]  ;;  %v6375_v25 = vsel %vm70_vm6, %v6374_v60, %v6373_v20  ;;  %v7925_v26 = vsel %vm58_vm2, %v7924_v10, %v7923_v21  ;;  %v7396_v29 = vrot.slane %v7365_v18, 7  ;;  %v7398_v30 = vrot.slane %v7366_v19, 6 }
  0x78   :  { %v7370_v27 = vld [vmem:[%s14657_s1 + $0x6e] sm:$0x1]  ;;  %v7371_v28 = vld [vmem:[%s14657_s1 + $0x7e] sm:$0x1]  ;;  %v6381_v31 = vsel %vm88_vm7, %v6375_v25, -inf  ;;  %v7927_v32 = vsel %vm61_vm3, %v7926_v11, %v7925_v26  ;;  %v7400_v33 = vrot.slane %v7367_v22, 5 }
  0x79   :  { %v7402_v34 = vrot.slane %v7368_v23, 4  ;;  %v7896_v35 = vld [vmem:[%s14657_s1 + $0x8f] sm:$0x1]  ;;  %6382 = vmax.xlane.f32.xlu0 %v6381_v31  ;;  %v7929_v36 = vsel %vm64_vm4, %v7928_v12, %v7927_v32  ;;  %v7397_v37 = vsel %vm52_vm0, %v7396_v29, %v7364_v13  ;;  %v7404_v38 = vrot.slane %v7369_v24, 3  ;;  %v7897_v39 = vld [vmem:[%s14657_s1 + $0x9f] sm:$0x1] }
  0x7a   :  { %v7898_v40 = vld [vmem:[%s14657_s1 + $0xaf] sm:$0x1]  ;;  %v7931_v41 = vsel %vm67_vm5, %v7930_v16, %v7929_v36  ;;  %v7399_v42 = vsel %vm55_vm1, %v7398_v30, %v7397_v37  ;;  %v7406_v43 = vrot.slane %v7370_v27, 2  ;;  %v7899_v44 = vld [vmem:[%s14657_s1 + $0xbf] sm:$0x1]  ;;  %v7934_v46 = vrot.slane %v7897_v39, 7 }
  0x7b   :  { %v7900_v45 = vld [vmem:[%s14657_s1 + $0xcf] sm:$0x1]  ;;  %v7933_v47 = vsel %vm70_vm6, %v7932_v17, %v7931_v41  ;;  %v7401_v48 = vsel %vm58_vm2, %v7400_v33, %v7399_v42  ;;  %v7408_v49 = vrot.slane %v7371_v28, 1  ;;  %v7901_v50 = vld [vmem:[%s14657_s1 + $0xdf] sm:$0x1]  ;;  %v7936_v56 = vrot.slane %v7898_v40, 6 }
  0x7c   :  { %v7902_v51 = vld [vmem:[%s14657_s1 + $0xef] sm:$0x1]  ;;  %v7950_v52 = vsel %vm88_vm7, %v7933_v47, -inf  ;;  %v7403_v53 = vsel %vm61_vm3, %v7402_v34, %v7401_v48  ;;  %v7903_v54 = vld [vmem:[%s14657_s1 + $0xff] sm:$0x1]  ;;  %v7935_v55 = vsel %vm52_vm0, %v7934_v46, %v7896_v35  ;;  %v7938_v59 = vrot.slane %v7899_v44, 5 }
  0x7d   :  { %v7373_v57 = vld [vmem:[%s14657_s1 + $0x9e] sm:$0x1]  ;;  %7951 = vmax.xlane.f32.xlu1 %v7950_v52  ;;  %v7405_v58 = vsel %vm64_vm4, %v7404_v38, %v7403_v53  ;;  %v7940_v60 = vrot.slane %v7900_v45, 4  ;;  %v7942_v61 = vrot.slane %v7901_v50, 3  ;;  %v7372_v62 = vld [vmem:[%s14657_s1 + $0x8e] sm:$0x1]  ;;  %v7937_v1 = vsel %vm55_vm1, %v7936_v56, %v7935_v55 }
  0x7e   :  { %v7374_v63 = vld [vmem:[%s14657_s1 + $0xae] sm:$0x1]  ;;  %v7407_v0 = vsel %vm67_vm5, %v7406_v43, %v7405_v58  ;;  %v7944_v2 = vrot.slane %v7902_v51, 2  ;;  %v7375_v3 = vld [vmem:[%s14657_s1 + $0xbe] sm:$0x1]  ;;  %v7939_v6 = vsel %vm58_vm2, %v7938_v59, %v7937_v1  ;;  %v7946_v7 = vrot.slane %v7903_v54, 1 }
  0x7f   :  { %v7376_v4 = vld [vmem:[%s14657_s1 + $0xce] sm:$0x1]  ;;  %v7409_v5 = vsel %vm70_vm6, %v7408_v49, %v7407_v0  ;;  %v7377_v8 = vld [vmem:[%s14657_s1 + $0xde] sm:$0x1]  ;;  %v7941_v11 = vsel %vm61_vm3, %v7940_v60, %v7939_v6  ;;  %v7410_v12 = vrot.slane %v7373_v57, 7  ;;  %v7412_v13 = vrot.slane %v7374_v63, 6 }
  0x80   :  { %v7378_v9 = vld [vmem:[%s14657_s1 + $0xee] sm:$0x1]  ;;  %v7426_v10 = vsel %vm88_vm7, %v7409_v5, -inf }
  0x81   :  { %10 = vsyncpa [#allocation6], 0  ;;  %7427 = vmax.xlane.f32.xlu0 %v7426_v10  ;;  %v7943_v14 = vsel %vm64_vm4, %v7942_v61, %v7941_v11  ;;  %v7379_v15 = vld [vmem:[%s14657_s1 + $0xfe] sm:$0x1]  ;;  %v7414_v16 = vrot.slane %v7375_v3, 5  ;;  %v7416_v17 = vrot.slane %v7376_v4, 4  ;;  %v7411_v19 = vsel %vm52_vm0, %v7410_v12, %v7372_v62 }
  0x82   :  { %v7945_v18 = vsel %vm67_vm5, %v7944_v2, %v7943_v14  ;;  %v7418_v20 = vrot.slane %v7377_v8, 3  ;;  %v7413_v22 = vsel %vm55_vm1, %v7412_v13, %v7411_v19  ;;  %v7420_v23 = vrot.slane %v7378_v9, 2  ;;  %v9560_v34 = vld [vmem:[%s14657_s1 + $0x80] sm:$0x1]  ;;  %v9561_v44 = vld [vmem:[%s14657_s1 + $0x90] sm:$0x1] }
  0x83   :  { %v7947_v21 = vsel %vm70_vm6, %v7946_v7, %v7945_v18  ;;  %v7415_v25 = vsel %vm58_vm2, %v7414_v16, %v7413_v22  ;;  %v7422_v26 = vrot.slane %v7379_v15, 1  ;;  %v9562_v46 = vld [vmem:[%s14657_s1 + $0xa0] sm:$0x1]  ;;  %v9564_v56 = vld [vmem:[%s14657_s1 + $0xb0] sm:$0x1]  ;;  %p8434_p0 = scmp.lt.s32.totalorder %s14656_s0, 16 }
  0x84   :  { %v7953_v24 = vsel %vm88_vm7, %v7947_v21, -inf  ;;  %v7417_v27 = vsel %vm61_vm3, %v7416_v17, %v7415_v25  ;;  %v9563_v49 = vld [vmem:[%s14657_s1] sm:$0x1]  ;;  %v9565_v60 = vld [vmem:[%s14657_s1 + $0x10] sm:$0x1]  ;;  %p8805_p1 = scmp.le.s32.totalorder %s14656_s0, 1 }
  0x85   :  { %7954 = vmax.xlane.f32.xlu1 %v7953_v24  ;;  %v7419_v28 = vsel %vm64_vm4, %v7418_v20, %v7417_v27  ;;  %v9566_v62 = vld [vmem:[%s14657_s1 + $0x20] sm:$0x1]  ;;  %v9567_v1 = vld [vmem:[%s14657_s1 + $0x30] sm:$0x1]  ;;  %v9571_v10 = vld [vmem:[%s14657_s1 + $0x81] sm:$0x1] }
  0x86   :  { %v7421_v29 = vsel %vm67_vm5, %v7420_v23, %v7419_v28  ;;  %v9568_v3 = vld [vmem:[%s14657_s1 + $0x40] sm:$0x1]  ;;  %v9569_v5 = vld [vmem:[%s14657_s1 + $0x50] sm:$0x1]  ;;  %s14461_s26 = scalar_select %p8434_p0, %s14656_s0, 16 }
  0x87   :  { %v7423_v30 = vsel %vm70_vm6, %v7422_v26, %v7421_v29  ;;  %v9570_v7 = vld [vmem:[%s14657_s1 + $0x60] sm:$0x1]  ;;  %v9572_v12 = vld [vmem:[%s14657_s1 + $0x70] sm:$0x1]  ;;  %v9576_v29 = vld [vmem:[%s14657_s1 + $0x1] sm:$0x1] }
  0x88   :  { %v7429_v31 = vsel %vm88_vm7, %v7423_v30, -inf  ;;  %v9573_v20 = vld [vmem:[%s14657_s1 + $0xc0] sm:$0x1]  ;;  %v9574_v24 = vld [vmem:[%s14657_s1 + $0xd0] sm:$0x1] }
  0x89   :  { %7430 = vmax.xlane.f32.xlu0 %v7429_v31  ;;  %v9575_v26 = vld [vmem:[%s14657_s1 + $0xe0] sm:$0x1] }
  0x96   :  { %v11215_v32 = vpop.xlane.xlu1 %93 }
  0x97   :  { %v104_v33 = vrot.slane %v11215_v32, 1  ;;  %v135_v35 = vsub.f32 %v9560_v34, %v11215_v32  ;;  %v105_v36 = vrot.slane %v11215_v32, 2  ;;  %v106_v37 = vrot.slane %v11215_v32, 3 }
  0x98   :  { %v107_v38 = vrot.slane %v11215_v32, 4  ;;  %v108_v39 = vrot.slane %v11215_v32, 5  ;;  %v109_v40 = vrot.slane %v11215_v32, 6  ;;  %v110_v43 = vrot.slane %v11215_v32, 7 }
  0x99   :  { %v159_v41 = vmul.f32 1.442695, %v135_v35  ;;  %v11227_v42 = vpop.xlane.xlu0 %90  ;;  %v136_v45 = vsub.f32 %v9561_v44, %v104_v33  ;;  %v137_v47 = vsub.f32 %v9562_v46, %v105_v36  ;;  %v138_v57 = vsub.f32 %v9564_v56, %v106_v37  ;;  %v9577_v33 = vld [vmem:[%s14657_s1 + $0xf0] sm:$0x1] }
  0x9a   :  { %v97_v48 = vrot.slane %v11227_v42, 1  ;;  %v127_v50 = vsub.f32 %v9563_v49, %v11227_v42  ;;  %v98_v51 = vrot.slane %v11227_v42, 2  ;;  %v99_v52 = vrot.slane %v11227_v42, 3 }
  0x9b   :  { %v100_v53 = vrot.slane %v11227_v42, 4  ;;  %v101_v54 = vrot.slane %v11227_v42, 5  ;;  %v102_v55 = vrot.slane %v11227_v42, 6  ;;  %v103_v59 = vrot.slane %v11227_v42, 7 }
  0x9c   :  { %v143_v58 = vmul.f32 1.442695, %v127_v50  ;;  %v128_v61 = vsub.f32 %v9565_v60, %v97_v48  ;;  %v129_v63 = vsub.f32 %v9566_v62, %v98_v51  ;;  %v130_v2 = vsub.f32 %v9567_v1, %v99_v52  ;;  %v9582_v60 = vld [vmem:[%s14657_s1 + $0x41] sm:$0x1] }
  0x9d   :  { %v11256_v0 = vpop.xlane.xlu1 %618  ;;  %v131_v4 = vsub.f32 %v9568_v3, %v100_v53  ;;  %v132_v6 = vsub.f32 %v9569_v5, %v101_v54  ;;  %v133_v8 = vsub.f32 %v9570_v7, %v102_v55  ;;  %8984 = vpow2.f32 %v159_v41  ;;  %v9579_v53 = vld [vmem:[%s14657_s1 + $0x11] sm:$0x1]  ;;  %v9580_v55 = vld [vmem:[%s14657_s1 + $0x21] sm:$0x1] }
  0x9e   :  { %v629_v9 = vrot.slane %v11256_v0, 1  ;;  %v660_v11 = vsub.f32 %v9571_v10, %v11256_v0  ;;  %v134_v13 = vsub.f32 %v9572_v12, %v103_v59  ;;  %8986 = vpow2.f32 %v143_v58  ;;  %v9581_v58 = vld [vmem:[%s14657_s1 + $0x31] sm:$0x1]  ;;  %v9586_v10 = vld [vmem:[%s14657_s1 + $0x2] sm:$0x1] }
  0x9f   :  { %v145_v14 = vmul.f32 1.442695, %v128_v61  ;;  %v147_v15 = vmul.f32 1.442695, %v129_v63  ;;  %v149_v16 = vmul.f32 1.442695, %v130_v2  ;;  %v139_v21 = vsub.f32 %v9573_v20, %v107_v38 }
  0xa0   :  { %v684_v17 = vmul.f32 1.442695, %v660_v11  ;;  %v151_v18 = vmul.f32 1.442695, %v131_v4  ;;  %v153_v19 = vmul.f32 1.442695, %v132_v6  ;;  %v140_v25 = vsub.f32 %v9574_v24, %v108_v39 }
  0xa1   :  { %v11281_v22 = vpop.xlane.xlu0 %615  ;;  %8988 = vpow2.f32 %v145_v14  ;;  %v155_v23 = vmul.f32 1.442695, %v133_v8  ;;  %v141_v27 = vsub.f32 %v9575_v26, %v109_v40  ;;  %v157_v31 = vmul.f32 1.442695, %v134_v13  ;;  %v9583_v63 = vld [vmem:[%s14657_s1 + $0x51] sm:$0x1] }
  0xa2   :  { %8990 = vpow2.f32 %v684_v17  ;;  %v622_v28 = vrot.slane %v11281_v22, 1  ;;  %v652_v30 = vsub.f32 %v9576_v29, %v11281_v22  ;;  %v142_v34 = vsub.f32 %v9577_v33, %v110_v43  ;;  %v9584_v2 = vld [vmem:[%s14657_s1 + $0x61] sm:$0x1]  ;;  %v9585_v4 = vld [vmem:[%s14657_s1 + $0x71] sm:$0x1] }
  0xa3   :  { %8992 = vpow2.f32 %v147_v15  ;;  %v161_v35 = vmul.f32 1.442695, %v136_v45  ;;  %v163_v36 = vmul.f32 1.442695, %v137_v47  ;;  %v165_v38 = vmul.f32 1.442695, %v138_v57 }
  0xa4   :  { %v668_v37 = vmul.f32 1.442695, %v652_v30  ;;  %8994 = vpow2.f32 %v149_v16  ;;  %v167_v39 = vmul.f32 1.442695, %v139_v21  ;;  %v169_v40 = vmul.f32 1.442695, %v140_v25 }
  0xa5   :  { %8996 = vpow2.f32 %v151_v18  ;;  %v11297_v41 = vmul.f32 1.442695, %v141_v27  ;;  %v623_v44 = vrot.slane %v11281_v22, 2  ;;  %v624_v48 = vrot.slane %v11281_v22, 3  ;;  %v9578_v45 = vld [vmem:[%s14657_s1 + $0x3] sm:$0x1] }
  0xa6   :  { %8998 = vpow2.f32 %v668_v37  ;;  %v11300_v46 = vpop.xlane.xlu1 %1663  ;;  %v625_v49 = vrot.slane %v11281_v22, 4  ;;  %v626_v43 = vrot.slane %v11281_v22, 5  ;;  %v173_v50 = vmul.f32 1.442695, %v142_v34  ;;  %v9587_v26 = vld [vmem:[%s14657_s1 + $0x83] sm:$0x1] }
  0xa7   :  { %v1700_v47 = vsub.f32 %v9578_v45, %v11300_v46  ;;  %9000 = vpow2.f32 %v153_v19  ;;  %v627_v51 = vrot.slane %v11281_v22, 6  ;;  %v628_v52 = vrot.slane %v11281_v22, 7 }
  0xa8   :  { %9002 = vpow2.f32 %v155_v23  ;;  %v653_v54 = vsub.f32 %v9579_v53, %v622_v28  ;;  %v654_v56 = vsub.f32 %v9580_v55, %v623_v44  ;;  %v655_v59 = vsub.f32 %v9581_v58, %v624_v48  ;;  %v9590_v55 = vld [vmem:[%s14657_s1 + $0xa1] sm:$0x1] }
  0xa9   :  { %v1716_v57 = vmul.f32 1.442695, %v1700_v47  ;;  %9004 = vpow2.f32 %v157_v31  ;;  %v656_v61 = vsub.f32 %v9582_v60, %v625_v49  ;;  %v657_v1 = vsub.f32 %v9583_v63, %v626_v43 }
  0xaa   :  { %v11323_v62 = vpop.xlane.xlu0 %1139  ;;  %9006 = vpow2.f32 %v161_v35  ;;  %v658_v3 = vsub.f32 %v9584_v2, %v627_v51  ;;  %v659_v5 = vsub.f32 %v9585_v4, %v628_v52  ;;  %v11334_v6 = vpop.eup %8984  ;;  %v1670_v7 = vrot.slane %v11300_v46, 1  ;;  %v9588_v51 = vld [vmem:[%s14657_s1 + $0x91] sm:$0x1]  ;;  %v9589_v52 = vld [vmem:[%s14657_s1 + $0x82] sm:$0x1] }
  0xab   :  { %9008 = vpow2.f32 %v1716_v57  ;;  %v1146_v8 = vrot.slane %v11323_v62, 1  ;;  %v1176_v11 = vsub.f32 %v9586_v10, %v11323_v62  ;;  %v8987_v12 = vpop.eup %8986  ;;  %v670_v13 = vmul.f32 1.442695, %v653_v54 }
  0xac   :  { %9010 = vpow2.f32 %v163_v36  ;;  %v672_v14 = vmul.f32 1.442695, %v654_v56  ;;  %v674_v15 = vmul.f32 1.442695, %v655_v59  ;;  %v676_v17 = vmul.f32 1.442695, %v656_v61 }
  0xad   :  { %v1192_v16 = vmul.f32 1.442695, %v1176_v11  ;;  %9012 = vpow2.f32 %v165_v38  ;;  %v11342_v18 = vmul.f32 1.442695, %v657_v1  ;;  %v11346_v21 = vmul.f32 1.442695, %v658_v3 }
  0xae   :  { %v8989_v19 = vpop.eup %8988  ;;  %v11344_v20 = vpop.xlane.xlu1 %1666  ;;  %9014 = vpow2.f32 %v167_v39  ;;  %v11348_v23 = vmul.f32 1.442695, %v659_v5  ;;  %v630_v24 = vrot.slane %v11256_v0, 2  ;;  %v631_v29 = vrot.slane %v11256_v0, 3  ;;  %v9591_v1 = vld [vmem:[%s14657_s1 + $0xb1] sm:$0x1] }
  0xaf   :  { %14672 = vst [vmem:[#allocation8_spill] sm:$0xff] %v11344_v20  ;;  %v11351_v25 = vpop.eup %8990  ;;  %9016 = vpow2.f32 %v1192_v16  ;;  %v1708_v27 = vsub.f32 %v9587_v26, %v11344_v20  ;;  %v191_v28 = vrot.slane %v8989_v19, 7  ;;  %v1677_v31 = vrot.slane %v11344_v20, 1  ;;  %v9592_v11 = vld [vmem:[%s14657_s1 + $0xc1] sm:$0x1] }
  0xb0   :  { %v8993_v30 = vpop.eup %8992  ;;  %9018 = vpow2.f32 %v169_v40  ;;  %v632_v33 = vrot.slane %v11256_v0, 4  ;;  %v633_v34 = vrot.slane %v11256_v0, 5  ;;  %v634_v48 = vrot.slane %v11256_v0, 6 }
  0xb1   :  { %v8995_v35 = vpop.eup %8994  ;;  %v1732_v36 = vmul.f32 1.442695, %v1708_v27  ;;  %v192_v37 = vsel %vm52_vm0, %v191_v28, %v8987_v12  ;;  %v193_v38 = vrot.slane %v8993_v30, 6  ;;  %9020 = vpow2.f32 %v11297_v41 }
  0xb2   :  { %v8997_v39 = vpop.eup %8996  ;;  %v195_v44 = vrot.slane %v8995_v35, 5  ;;  %9022 = vpow2.f32 %v173_v50  ;;  %v635_v49 = vrot.slane %v11256_v0, 7  ;;  %v11367_v40 = vpop.xlane.xlu0 %1142  ;;  %v661_v41 = vsub.f32 %v9588_v51, %v629_v9 }
  0xb3   :  { %v11365_v43 = vpop.eup %8998  ;;  %9024 = vpow2.f32 %v1732_v36  ;;  %v194_v45 = vsel %vm55_vm1, %v193_v38, %v192_v37  ;;  %v197_v47 = vrot.slane %v8997_v39, 4  ;;  %v1184_v53 = vsub.f32 %v9589_v52, %v11367_v40 }
  0xb4   :  { %v9001_v50 = vpop.eup %9000  ;;  %v196_v54 = vsel %vm58_vm2, %v195_v44, %v194_v45  ;;  %9026 = vpow2.f32 %v670_v13  ;;  %v662_v56 = vsub.f32 %v9590_v55, %v630_v24  ;;  %v1153_v58 = vrot.slane %v11367_v40, 1 }
  0xb5   :  { %v9003_v57 = vpop.eup %9002  ;;  %v198_v9 = vsel %vm61_vm3, %v197_v47, %v196_v54  ;;  %v199_v59 = vrot.slane %v9001_v50, 3  ;;  %9028 = vpow2.f32 %v672_v14  ;;  %v1208_v61 = vmul.f32 1.442695, %v1184_v53  ;;  %v9593_v14 = vld [vmem:[%s14657_s1 + $0x5] sm:$0x1] }
  0xb6   :  { %v9005_v60 = vpop.eup %9004  ;;  %v201_v63 = vrot.slane %v9003_v57, 2  ;;  %9030 = vpow2.f32 %v674_v15  ;;  %v663_v2 = vsub.f32 %v9591_v1, %v631_v29  ;;  %v11388_v4 = vpop.xlane.xlu1 %2711  ;;  %v664_v12 = vsub.f32 %v9592_v11, %v632_v33 }
  0xb7   :  { %v9007_v3 = vpop.eup %9006  ;;  %14673 = vst [vmem:[#allocation9_spill] sm:$0xff] %v11388_v4  ;;  %v200_v5 = vsel %vm64_vm4, %v199_v59, %v198_v9  ;;  %v203_v10 = vrot.slane %v9005_v60, 1  ;;  %9032 = vpow2.f32 %v676_v17  ;;  %v2748_v15 = vsub.f32 %v9593_v14, %v11388_v4  ;;  %v9594_v17 = vld [vmem:[%s14657_s1 + $0xd1] sm:$0x1] }
  0xb8   :  { %v11394_v13 = vpop.eup %9008  ;;  %9034 = vpow2.f32 %v1208_v61  ;;  %v202_v16 = vsel %vm67_vm5, %v201_v63, %v200_v5  ;;  %v665_v19 = vsub.f32 %v9594_v17, %v633_v34  ;;  %v2718_v26 = vrot.slane %v11388_v4, 1 }
  0xb9   :  { %v9011_v24 = vpop.eup %9010  ;;  %v204_v27 = vsel %vm70_vm6, %v203_v10, %v202_v16  ;;  %v205_v28 = vrot.slane %v9007_v3, 7  ;;  %9036 = vpow2.f32 %v11342_v18  ;;  %v2764_v30 = vmul.f32 1.442695, %v2748_v15  ;;  %v9595_v18 = vld [vmem:[%s14657_s1 + $0xe1] sm:$0x1] }
  0xba   :  { %v9013_v29 = vpop.eup %9012  ;;  %v221_v33 = vsel %vm88_vm7, %v204_v27, 0.0  ;;  %v207_v35 = vrot.slane %v9011_v24, 6  ;;  %9038 = vpow2.f32 %v11346_v21  ;;  %v11409_v37 = vpop.xlane.xlu0 %2187  ;;  %v666_v39 = vsub.f32 %v9595_v18, %v634_v48  ;;  %v9596_v21 = vld [vmem:[%s14657_s1 + $0x4] sm:$0x1] }
  0xbb   :  { %v9015_v36 = vpop.eup %9014  ;;  %14674 = vst [vmem:[#allocation10_spill] sm:$0xff] %v11409_v37  ;;  %222 = vadd.xlane.f32.xlu0 %v221_v33  ;;  %v206_v34 = vsel %vm52_vm0, %v205_v28, %v11334_v6  ;;  %v209_v38 = vrot.slane %v9013_v29, 5  ;;  %9040 = vpow2.f32 %v11348_v23  ;;  %v2224_v45 = vsub.f32 %v9596_v21, %v11409_v37  ;;  %v9597_v6 = vld [vmem:[%s14657_s1 + $0xf1] sm:$0x1] }
  0xbc   :  { %v11417_v44 = vpop.eup %9016  ;;  %9042 = vpow2.f32 %v2764_v30  ;;  %v208_v47 = vsel %vm55_vm1, %v207_v35, %v206_v34  ;;  %v667_v23 = vsub.f32 %v9597_v6, %v635_v49  ;;  %v211_v50 = vrot.slane %v9015_v36, 4 }
  0xbd   :  { %v9019_v51 = vpop.eup %9018  ;;  %v210_v48 = vsel %vm58_vm2, %v209_v38, %v208_v47  ;;  %v686_v52 = vmul.f32 1.442695, %v661_v41  ;;  %v688_v53 = vmul.f32 1.442695, %v662_v56  ;;  %v2194_v55 = vrot.slane %v11409_v37, 1 }
  0xbe   :  { %v9021_v54 = vpop.eup %9020  ;;  %v2240_v57 = vmul.f32 1.442695, %v2224_v45  ;;  %v213_v9 = vrot.slane %v9019_v51, 3  ;;  %v690_v59 = vmul.f32 1.442695, %v663_v2  ;;  %v11431_v61 = vpop.xlane.xlu1 %2714  ;;  %v212_v63 = vsel %vm61_vm3, %v211_v50, %v210_v48 }
  0xbf   :  { %v9023_v60 = vpop.eup %9022  ;;  %14675 = vst [vmem:[#allocation11_spill] sm:$0xff] %v11431_v61  ;;  %v215_v1 = vrot.slane %v9021_v54, 2  ;;  %9044 = vpow2.f32 %v686_v52  ;;  %v692_v49 = vmul.f32 1.442695, %v664_v12  ;;  %v9598_v41 = vld [vmem:[%s14657_s1 + $0x85] sm:$0x1] }
  0xc0   :  { %v11434_v3 = vpop.eup %9024  ;;  %9046 = vpow2.f32 %v2240_v57  ;;  %v2756_v56 = vsub.f32 %v9598_v41, %v11431_v61  ;;  %v214_v5 = vsel %vm64_vm4, %v213_v9, %v212_v63  ;;  %v1147_v2 = vrot.slane %v11323_v62, 2 }
  0xc1   :  { %v9027_v10 = vpop.eup %9026  ;;  %v216_v14 = vsel %vm67_vm5, %v215_v1, %v214_v5  ;;  %v217_v15 = vrot.slane %v9023_v60, 1  ;;  %9048 = vpow2.f32 %v688_v53  ;;  %v694_v24 = vmul.f32 1.442695, %v665_v19  ;;  %v9599_v19 = vld [vmem:[%s14657_s1 + $0x84] sm:$0x1] }
  0xc2   :  { %v9029_v12 = vpop.eup %9028  ;;  %v2780_v16 = vmul.f32 1.442695, %v2756_v56  ;;  %v716_v17 = vrot.slane %v9027_v10, 7  ;;  %9050 = vpow2.f32 %v690_v59  ;;  %v696_v30 = vmul.f32 1.442695, %v666_v39  ;;  %v11445_v35 = vpop.xlane.xlu0 %2190 }
  0xc3   :  { %v9031_v27 = vpop.eup %9030  ;;  %v218_v28 = vsel %vm70_vm6, %v217_v15, %v216_v14  ;;  %v718_v29 = vrot.slane %v9029_v12, 6  ;;  %9052 = vpow2.f32 %v692_v49  ;;  %14676 = vst [vmem:[#allocation12_spill] sm:$0xff] %v11445_v35  ;;  %v698_v18 = vmul.f32 1.442695, %v667_v23  ;;  %v9600_v49 = vld [vmem:[%s14657_s1 + $0x7] sm:$0x1] }
  0xc4   :  { %v9033_v33 = vpop.eup %9032  ;;  %v224_v36 = vsel %vm88_vm7, %v218_v28, 0.0  ;;  %v717_v34 = vsel %vm52_vm0, %v716_v17, %v11365_v43  ;;  %v720_v38 = vrot.slane %v9031_v27, 5  ;;  %9054 = vpow2.f32 %v2780_v16  ;;  %v9601_v15 = vld [vmem:[%s14657_s1 + $0x12] sm:$0x1] }
  0xc5   :  { %v11450_v21 = vpop.eup %9034  ;;  %v2232_v45 = vsub.f32 %v9599_v19, %v11445_v35  ;;  %225 = vadd.xlane.f32.xlu0 %v224_v36  ;;  %v719_v39 = vsel %vm55_vm1, %v718_v29, %v717_v34  ;;  %v722_v47 = vrot.slane %v9033_v33, 4  ;;  %9056 = vpow2.f32 %v694_v24  ;;  %v9602_v24 = vld [vmem:[%s14657_s1 + $0x22] sm:$0x1]  ;;  %v9603_v28 = vld [vmem:[%s14657_s1 + $0x32] sm:$0x1] }
  0xc6   :  { %v9037_v6 = vpop.eup %9036  ;;  %v721_v51 = vsel %vm58_vm2, %v720_v38, %v719_v39  ;;  %v1148_v43 = vrot.slane %v11323_v62, 3  ;;  %v1149_v23 = vrot.slane %v11323_v62, 4  ;;  %9058 = vpow2.f32 %v696_v30  ;;  %v11461_v57 = vpop.xlane.xlu1 %3759  ;;  %v9605_v38 = vld [vmem:[%s14657_s1 + $0x52] sm:$0x1]  ;;  %v9607_v39 = vld [vmem:[%s14657_s1 + $0x6] sm:$0x1] }
  0xc7   :  { %v9039_v48 = vpop.eup %9038  ;;  %v2256_v50 = vmul.f32 1.442695, %v2232_v45  ;;  %v723_v52 = vsel %vm61_vm3, %v722_v47, %v721_v51  ;;  %v724_v53 = vrot.slane %v9037_v6, 3  ;;  %14677 = vst [vmem:[#allocation13_spill] sm:$0xff] %v11461_v57  ;;  %9060 = vpow2.f32 %v698_v18  ;;  %v9606_v18 = vld [vmem:[%s14657_s1 + $0x62] sm:$0x1] }
  0xc8   :  { %v9041_v54 = vpop.eup %9040  ;;  %v726_v9 = vrot.slane %v9039_v48, 2  ;;  %v1150_v59 = vrot.slane %v11323_v62, 5  ;;  %v1151_v60 = vrot.slane %v11323_v62, 6  ;;  %v3796_v41 = vsub.f32 %v9600_v49, %v11461_v57  ;;  %v9608_v51 = vld [vmem:[%s14657_s1 + $0x72] sm:$0x1] }
  0xc9   :  { %v11465_v63 = vpop.eup %9042  ;;  %9062 = vpow2.f32 %v2256_v50  ;;  %v725_v56 = vsel %vm64_vm4, %v724_v53, %v723_v52  ;;  %v728_v10 = vrot.slane %v9041_v54, 1  ;;  %v1152_v14 = vrot.slane %v11323_v62, 7 }
  0xca   :  { %v727_v5 = vsel %vm67_vm5, %v726_v9, %v725_v56  ;;  %v1177_v12 = vsub.f32 %v9601_v15, %v1146_v8  ;;  %v3812_v17 = vmul.f32 1.442695, %v3796_v41  ;;  %v1178_v27 = vsub.f32 %v9602_v24, %v1147_v2  ;;  %v11487_v33 = vpop.xlane.xlu0 %3235  ;;  %v9604_v8 = vld [vmem:[%s14657_s1 + $0x42] sm:$0x1]  ;;  %v9609_v15 = vld [vmem:[%s14657_s1 + $0x87] sm:$0x1] }
  0xcb   :  { %v1179_v29 = vsub.f32 %v9603_v28, %v1148_v43  ;;  %14678 = vst [vmem:[#allocation14_spill] sm:$0xff] %v11487_v33  ;;  %v729_v36 = vsel %vm70_vm6, %v728_v10, %v727_v5  ;;  %v1180_v34 = vsub.f32 %v9604_v8, %v1149_v23  ;;  %v1181_v2 = vsub.f32 %v9605_v38, %v1150_v59 }
  0xcc   :  { %v9045_v30 = vpop.eup %9044  ;;  %v1182_v19 = vsub.f32 %v9606_v18, %v1151_v60  ;;  %9064 = vpow2.f32 %v3812_v17  ;;  %v3272_v47 = vsub.f32 %v9607_v39, %v11487_v33  ;;  %v746_v6 = vsel %vm88_vm7, %v729_v36, 0.0 }
  0xcd   :  { %v11499_v45 = vpop.eup %9046  ;;  %v1183_v43 = vsub.f32 %v9608_v51, %v1152_v14  ;;  %747 = vadd.xlane.f32.xlu1 %v746_v6  ;;  %v730_v50 = vrot.slane %v9045_v30, 7  ;;  %v1194_v52 = vmul.f32 1.442695, %v1177_v12  ;;  %v1196_v53 = vmul.f32 1.442695, %v1178_v27 }
  0xce   :  { %v9049_v23 = vpop.eup %9048  ;;  %v3288_v9 = vmul.f32 1.442695, %v3272_v47  ;;  %v1198_v60 = vmul.f32 1.442695, %v1179_v29  ;;  %v1671_v49 = vrot.slane %v11300_v46, 2  ;;  %v11511_v56 = vpop.xlane.xlu1 %3762  ;;  %v1672_v24 = vrot.slane %v11300_v46, 3 }
  0xcf   :  { %v9051_v54 = vpop.eup %9050  ;;  %v732_v59 = vrot.slane %v9049_v23, 6  ;;  %14679 = vst [vmem:[#allocation15_spill] sm:$0xff] %v11511_v56  ;;  %v731_v5 = vsel %vm52_vm0, %v730_v50, %v11351_v25  ;;  %9066 = vpow2.f32 %v1194_v52  ;;  %v1200_v14 = vmul.f32 1.442695, %v1180_v34 }
  0xd0   :  { %v9053_v41 = vpop.eup %9052  ;;  %v734_v10 = vrot.slane %v9051_v54, 5  ;;  %9068 = vpow2.f32 %v3288_v9  ;;  %v3804_v12 = vsub.f32 %v9609_v15, %v11511_v56  ;;  %v1202_v8 = vmul.f32 1.442695, %v1181_v2  ;;  %v9610_v2 = vld [vmem:[%s14657_s1 + $0x86] sm:$0x1] }
  0xd1   :  { %v733_v17 = vsel %vm55_vm1, %v732_v59, %v731_v5  ;;  %v11521_v27 = vpop.eup %9054  ;;  %v736_v29 = vrot.slane %v9053_v41, 4  ;;  %9070 = vpow2.f32 %v1196_v53  ;;  %v1204_v34 = vmul.f32 1.442695, %v1182_v19  ;;  %v9611_v41 = vld [vmem:[%s14657_s1 + $0x13] sm:$0x1] }
  0xd2   :  { %v735_v25 = vsel %vm58_vm2, %v734_v10, %v733_v17  ;;  %v9057_v30 = vpop.eup %9056  ;;  %v3828_v36 = vmul.f32 1.442695, %v3804_v12  ;;  %9072 = vpow2.f32 %v1198_v60  ;;  %v1206_v47 = vmul.f32 1.442695, %v1183_v43  ;;  %v11526_v51 = vpop.xlane.xlu0 %3238  ;;  %v9612_v15 = vld [vmem:[%s14657_s1 + $0x23] sm:$0x1] }
  0xd3   :  { %v9059_v38 = vpop.eup %9058  ;;  %v737_v18 = vsel %vm61_vm3, %v736_v29, %v735_v25  ;;  %v738_v39 = vrot.slane %v9057_v30, 3  ;;  %9074 = vpow2.f32 %v1200_v14  ;;  %14680 = vst [vmem:[#allocation16_spill] sm:$0xff] %v11526_v51  ;;  %v1673_v50 = vrot.slane %v11300_v46, 4  ;;  %v9613_v29 = vld [vmem:[%s14657_s1 + $0x33] sm:$0x1] }
  0xd4   :  { %v9061_v6 = vpop.eup %9060  ;;  %9076 = vpow2.f32 %v3828_v36  ;;  %v740_v23 = vrot.slane %v9059_v38, 2  ;;  %v1674_v52 = vrot.slane %v11300_v46, 5  ;;  %v3280_v19 = vsub.f32 %v9610_v2, %v11526_v51  ;;  %v9615_v38 = vld [vmem:[%s14657_s1 + $0x9] sm:$0x1] }
  0xd5   :  { %v739_v54 = vsel %vm64_vm4, %v738_v39, %v737_v18  ;;  %v742_v43 = vrot.slane %v9061_v6, 1  ;;  %v1675_v9 = vrot.slane %v11300_v46, 6  ;;  %9078 = vpow2.f32 %v1202_v8 }
  0xd6   :  { %v11530_v53 = vpop.eup %9062  ;;  %v741_v59 = vsel %vm67_vm5, %v740_v23, %v739_v54  ;;  %v1676_v60 = vrot.slane %v11300_v46, 7  ;;  %v1701_v5 = vsub.f32 %v9611_v41, %v1670_v7  ;;  %v3304_v10 = vmul.f32 1.442695, %v3280_v19  ;;  %v11549_v17 = vpop.xlane.xlu1 %4807  ;;  %v9614_v7 = vld [vmem:[%s14657_s1 + $0x43] sm:$0x1] }
  0xd7   :  { %v743_v14 = vsel %vm70_vm6, %v742_v43, %v741_v59  ;;  %9080 = vpow2.f32 %v1204_v34  ;;  %v1702_v12 = vsub.f32 %v9612_v15, %v1671_v49  ;;  %14681 = vst [vmem:[#allocation17_spill] sm:$0xff] %v11549_v17  ;;  %v1703_v30 = vsub.f32 %v9613_v29, %v1672_v24  ;;  %v9616_v24 = vld [vmem:[%s14657_s1 + $0x53] sm:$0x1] }
  0xd8   :  { %v749_v25 = vsel %vm88_vm7, %v743_v14, 0.0  ;;  %9082 = vpow2.f32 %v1206_v47  ;;  %v1704_v36 = vsub.f32 %v9614_v7, %v1673_v50  ;;  %v4844_v18 = vsub.f32 %v9615_v38, %v11549_v17  ;;  %v9617_v47 = vld [vmem:[%s14657_s1 + $0x63] sm:$0x1]  ;;  %v9618_v23 = vld [vmem:[%s14657_s1 + $0x73] sm:$0x1] }
  0xd9   :  { %v11558_v8 = vpop.eup %9064  ;;  %750 = vadd.xlane.f32.xlu1 %v749_v25  ;;  %v1705_v39 = vsub.f32 %v9616_v24, %v1674_v52  ;;  %v1706_v6 = vsub.f32 %v9617_v47, %v1675_v9  ;;  %v1707_v50 = vsub.f32 %v9618_v23, %v1676_v60  ;;  %v1718_v2 = vmul.f32 1.442695, %v1701_v5  ;;  %v9619_v9 = vld [vmem:[%s14657_s1 + $0x92] sm:$0x1]  ;;  %v9620_v5 = vld [vmem:[%s14657_s1 + $0x8] sm:$0x1] }
  0xda   :  { %v1720_v19 = vmul.f32 1.442695, %v1702_v12  ;;  %9084 = vpow2.f32 %v3304_v10  ;;  %v4860_v54 = vmul.f32 1.442695, %v4844_v18  ;;  %v1722_v43 = vmul.f32 1.442695, %v1703_v30  ;;  %v11575_v14 = vpop.xlane.xlu0 %4283 }
  0xdb   :  { %v1724_v59 = vmul.f32 1.442695, %v1704_v36  ;;  %14682 = vst [vmem:[#allocation18_spill] sm:$0xff] %v11575_v14  ;;  %9086 = vpow2.f32 %v1718_v2  ;;  %v1726_v52 = vmul.f32 1.442695, %v1705_v39  ;;  %v1185_v25 = vsub.f32 %v9619_v9, %v1153_v58 }
  0xdc   :  { %v9067_v41 = vpop.eup %9066  ;;  %v1728_v15 = vmul.f32 1.442695, %v1706_v6  ;;  %9088 = vpow2.f32 %v4860_v54  ;;  %v4320_v10 = vsub.f32 %v9620_v5, %v11575_v14  ;;  %v1730_v29 = vmul.f32 1.442695, %v1707_v50  ;;  %v9621_v54 = vld [vmem:[%s14657_s1 + $0x89] sm:$0x1] }
  0xdd   :  { %v11582_v60 = vpop.eup %9068  ;;  %v1240_v12 = vrot.slane %v9067_v41, 7  ;;  %9090 = vpow2.f32 %v1720_v19  ;;  %v1154_v36 = vrot.slane %v11367_v40, 2  ;;  %v1155_v38 = vrot.slane %v11367_v40, 3 }
  0xde   :  { %v9071_v30 = vpop.eup %9070  ;;  %v4336_v18 = vmul.f32 1.442695, %v4320_v10  ;;  %9092 = vpow2.f32 %v1722_v43  ;;  %v11593_v6 = vpop.xlane.xlu1 %4810  ;;  %v1156_v50 = vrot.slane %v11367_v40, 4  ;;  %v1157_v2 = vrot.slane %v11367_v40, 5 }
  0xdf   :  { %v9073_v58 = vpop.eup %9072  ;;  %v1241_v24 = vsel %vm52_vm0, %v1240_v12, %v11417_v44  ;;  %v1242_v39 = vrot.slane %v9071_v30, 6  ;;  %9094 = vpow2.f32 %v1724_v59  ;;  %v4852_v44 = vsub.f32 %v9621_v54, %v11593_v6 }
  0xe0   :  { %v9075_v47 = vpop.eup %9074  ;;  %v1244_v23 = vrot.slane %v9073_v58, 5  ;;  %9096 = vpow2.f32 %v4336_v18  ;;  %v1158_v41 = vrot.slane %v11367_v40, 6  ;;  %v1159_v30 = vrot.slane %v11367_v40, 7  ;;  %v9622_v58 = vld [vmem:[%s14657_s1 + $0xa2] sm:$0x1] }
  0xe1   :  { %v11597_v19 = vpop.eup %9076  ;;  %v1243_v43 = vsel %vm55_vm1, %v1242_v39, %v1241_v24  ;;  %v1246_v5 = vrot.slane %v9075_v47, 4  ;;  %9098 = vpow2.f32 %v1726_v52  ;;  %v4876_v12 = vmul.f32 1.442695, %v4852_v44  ;;  %v9623_v47 = vld [vmem:[%s14657_s1 + $0xb2] sm:$0x1] }
  0xe2   :  { %v1245_v59 = vsel %vm58_vm2, %v1244_v23, %v1243_v43  ;;  %v9079_v10 = vpop.eup %9078  ;;  %9100 = vpow2.f32 %v1728_v15  ;;  %v1186_v18 = vsub.f32 %v9622_v58, %v1154_v36  ;;  %v1187_v52 = vsub.f32 %v9623_v47, %v1155_v38  ;;  %v11615_v15 = vpop.xlane.xlu0 %4286  ;;  %v9624_v43 = vld [vmem:[%s14657_s1 + $0xc2] sm:$0x1] }
  0xe3   :  { %v1247_v24 = vsel %vm61_vm3, %v1246_v5, %v1245_v59  ;;  %v1248_v39 = vrot.slane %v9079_v10, 3  ;;  %9102 = vpow2.f32 %v1730_v29  ;;  %v1188_v36 = vsub.f32 %v9624_v43, %v1156_v50  ;;  %v9625_v59 = vld [vmem:[%s14657_s1 + $0xd2] sm:$0x1]  ;;  %v9626_v5 = vld [vmem:[%s14657_s1 + $0x88] sm:$0x1] }
  0xe4   :  { %v9081_v54 = vpop.eup %9080  ;;  %9104 = vpow2.f32 %v4876_v12  ;;  %v1189_v29 = vsub.f32 %v9625_v59, %v1157_v2  ;;  %v4328_v38 = vsub.f32 %v9626_v5, %v11615_v15  ;;  %v9627_v58 = vld [vmem:[%s14657_s1 + $0xe2] sm:$0x1]  ;;  %v9628_v2 = vld [vmem:[%s14657_s1 + $0xf2] sm:$0x1]  ;;  %v1210_v43 = vmul.f32 1.442695, %v1185_v25 }
  0xe5   :  { %v9083_v23 = vpop.eup %9082  ;;  %v1250_v44 = vrot.slane %v9081_v54, 2  ;;  %v1249_v10 = vsel %vm64_vm4, %v1248_v39, %v1247_v24  ;;  %v1190_v54 = vsub.f32 %v9627_v58, %v1158_v41  ;;  %v1191_v47 = vsub.f32 %v9628_v2, %v1159_v30  ;;  %v9629_v25 = vld [vmem:[%s14657_s1 + $0xb] sm:$0x1] }
  0xe6   :  { %v1252_v12 = vrot.slane %v9083_v23, 1  ;;  %v1212_v59 = vmul.f32 1.442695, %v1186_v18  ;;  %v4352_v24 = vmul.f32 1.442695, %v4328_v38  ;;  %v11640_v58 = vpop.xlane.xlu1 %5855  ;;  %9106 = vpow2.f32 %v1210_v43 }
  0xe7   :  { %v1251_v50 = vsel %vm67_vm5, %v1250_v44, %v1249_v10  ;;  %v11635_v9 = vpop.eup %9084  ;;  %v1214_v23 = vmul.f32 1.442695, %v1187_v52  ;;  %v1216_v44 = vmul.f32 1.442695, %v1188_v36  ;;  %v1218_v10 = vmul.f32 1.442695, %v1189_v29 }
  0xe8   :  { %v1253_v39 = vsel %vm70_vm6, %v1252_v12, %v1251_v50  ;;  %v9087_v49 = vpop.eup %9086  ;;  %9108 = vpow2.f32 %v4352_v24  ;;  %v5892_v30 = vsub.f32 %v9629_v25, %v11640_v58  ;;  %v1220_v52 = vmul.f32 1.442695, %v1190_v54 }
  0xe9   :  { %v1270_v41 = vsel %vm88_vm7, %v1253_v39, 0.0  ;;  %v11642_v7 = vpop.eup %9088  ;;  %v1764_v18 = vrot.slane %v9087_v49, 7  ;;  %9110 = vpow2.f32 %v1212_v59  ;;  %v1222_v50 = vmul.f32 1.442695, %v1191_v47  ;;  %v9630_v47 = vld [vmem:[%s14657_s1 + $0xa] sm:$0x1] }
  0xea   :  { %1271 = vadd.xlane.f32.xlu0 %v1270_v41  ;;  %v9091_v38 = vpop.eup %9090  ;;  %v1678_v36 = vrot.slane %v11344_v20, 2  ;;  %v5908_v2 = vmul.f32 1.442695, %v5892_v30  ;;  %9112 = vpow2.f32 %v1214_v23  ;;  %v11652_v41 = vpop.xlane.xlu0 %5331  ;;  %v1679_v49 = vrot.slane %v11344_v20, 3 }
  0xeb   :  { %v9093_v29 = vpop.eup %9092  ;;  %v1765_v43 = vsel %vm52_vm0, %v1764_v18, %v11394_v13  ;;  %v1766_v24 = vrot.slane %v9091_v38, 6  ;;  %9114 = vpow2.f32 %v1216_v44  ;;  %v1680_v54 = vrot.slane %v11344_v20, 4 }
  0xec   :  { %v9095_v39 = vpop.eup %9094  ;;  %v1768_v25 = vrot.slane %v9093_v29, 5  ;;  %9116 = vpow2.f32 %v5908_v2  ;;  %v5368_v13 = vsub.f32 %v9630_v47, %v11652_v41  ;;  %v1681_v30 = vrot.slane %v11344_v20, 5 }
  0xed   :  { %v11656_v59 = vpop.eup %9096  ;;  %v1767_v23 = vsel %vm55_vm1, %v1766_v24, %v1765_v43  ;;  %v1770_v29 = vrot.slane %v9095_v39, 4  ;;  %9118 = vpow2.f32 %v1218_v10  ;;  %v1682_v2 = vrot.slane %v11344_v20, 6 }
  0xee   :  { %v9099_v18 = vpop.eup %9098  ;;  %v1769_v38 = vsel %vm58_vm2, %v1768_v25, %v1767_v23  ;;  %9120 = vpow2.f32 %v1220_v52  ;;  %v1683_v28 = vrot.slane %v11344_v20, 7  ;;  %v11669_v24 = vpop.xlane.xlu1 %5858  ;;  %v9631_v25 = vld [vmem:[%s14657_s1 + $0x93] sm:$0x1]  ;;  %v5384_v52 = vmul.f32 1.442695, %v5368_v13 }
  0xef   :  { %v9101_v12 = vpop.eup %9100  ;;  %v1772_v5 = vrot.slane %v9099_v18, 3  ;;  %v1771_v47 = vsel %vm61_vm3, %v1770_v29, %v1769_v38  ;;  %9122 = vpow2.f32 %v1222_v50  ;;  %v1709_v10 = vsub.f32 %v9631_v25, %v1677_v31  ;;  %v9632_v50 = vld [vmem:[%s14657_s1 + $0x8b] sm:$0x1]  ;;  %v9633_v31 = vld [vmem:[%s14657_s1 + $0xa3] sm:$0x1] }
  0xf0   :  { %v9103_v34 = vpop.eup %9102  ;;  %v1774_v43 = vrot.slane %v9101_v12, 2  ;;  %v5900_v38 = vsub.f32 %v9632_v50, %v11669_v24  ;;  %v1710_v29 = vsub.f32 %v9633_v31, %v1678_v36  ;;  %v9636_v25 = vld [vmem:[%s14657_s1 + $0xd3] sm:$0x1]  ;;  %v9637_v36 = vld [vmem:[%s14657_s1 + $0xe3] sm:$0x1]  ;;  %9124 = vpow2.f32 %v5384_v52 }
  0xf1   :  { %v11676_v39 = vpop.eup %9104  ;;  %v1773_v23 = vsel %vm64_vm4, %v1772_v5, %v1771_v47  ;;  %v1776_v18 = vrot.slane %v9103_v34, 1  ;;  %v9634_v5 = vld [vmem:[%s14657_s1 + $0xb3] sm:$0x1]  ;;  %v9635_v47 = vld [vmem:[%s14657_s1 + $0xc3] sm:$0x1]  ;;  %v1714_v50 = vsub.f32 %v9637_v36, %v1682_v2  ;;  %v2195_v48 = vrot.slane %v11409_v37, 2 }
  0xf2   :  { %v1775_v12 = vsel %vm67_vm5, %v1774_v43, %v1773_v23  ;;  %v1711_v34 = vsub.f32 %v9634_v5, %v1679_v49  ;;  %v1712_v43 = vsub.f32 %v9635_v47, %v1680_v54  ;;  %v1713_v23 = vsub.f32 %v9636_v25, %v1681_v30  ;;  %v11705_v47 = vpop.xlane.xlu0 %5334 }
  0xf3   :  { %v1777_v13 = vsel %vm70_vm6, %v1776_v18, %v1775_v12  ;;  %v5924_v49 = vmul.f32 1.442695, %v5900_v38  ;;  %v9638_v18 = vld [vmem:[%s14657_s1 + $0xf3] sm:$0x1]  ;;  %v1734_v5 = vmul.f32 1.442695, %v1709_v10  ;;  %v9107_v54 = vpop.eup %9106 }
  0xf4   :  { %v1794_v31 = vsel %vm88_vm7, %v1777_v13, 0.0  ;;  %v1715_v12 = vsub.f32 %v9638_v18, %v1683_v28  ;;  %v1736_v30 = vmul.f32 1.442695, %v1710_v29  ;;  %v1738_v25 = vmul.f32 1.442695, %v1711_v34 }
  0xf5   :  { %1795 = vadd.xlane.f32.xlu1 %v1794_v31  ;;  %v1740_v44 = vmul.f32 1.442695, %v1712_v43  ;;  %v11707_v16 = vpop.eup %9108  ;;  %v1254_v2 = vrot.slane %v9107_v54, 7  ;;  %9126 = vpow2.f32 %v5924_v49  ;;  %v9639_v38 = vld [vmem:[%s14657_s1 + $0x8a] sm:$0x1]  ;;  %v2197_v29 = vrot.slane %v11409_v37, 4 }
  0xf6   :  { %v5376_v13 = vsub.f32 %v9639_v38, %v11705_v47  ;;  %v9640_v28 = vld [vmem:[%s14657_s1 + $0x14] sm:$0x1]  ;;  %v9111_v52 = vpop.eup %9110  ;;  %9128 = vpow2.f32 %v1734_v5  ;;  %v1742_v34 = vmul.f32 1.442695, %v1713_v23  ;;  %v1744_v43 = vmul.f32 1.442695, %v1714_v50 }
  0xf7   :  { %v2225_v10 = vsub.f32 %v9640_v28, %v2194_v55  ;;  %v9113_v36 = vpop.eup %9112  ;;  %v1255_v31 = vsel %vm52_vm0, %v1254_v2, %v11450_v21  ;;  %v1256_v49 = vrot.slane %v9111_v52, 6  ;;  %9130 = vpow2.f32 %v1736_v30 }
  0xf8   :  { %v1746_v18 = vmul.f32 1.442695, %v1715_v12  ;;  %v9115_v54 = vpop.eup %9114  ;;  %v1258_v38 = vrot.slane %v9113_v36, 5  ;;  %9132 = vpow2.f32 %v1738_v25  ;;  %v2196_v55 = vrot.slane %v11409_v37, 3 }
  0xf9   :  { %v11723_v28 = vpop.eup %9116  ;;  %v1257_v5 = vsel %vm55_vm1, %v1256_v49, %v1255_v31  ;;  %v1260_v23 = vrot.slane %v9115_v54, 4  ;;  %v5400_v50 = vmul.f32 1.442695, %v5376_v13  ;;  %9134 = vpow2.f32 %v1740_v44  ;;  %v9641_v13 = vld [vmem:[%s14657_s1 + $0x24] sm:$0x1] }
  0xfa   :  { %v9119_v11 = vpop.eup %9118  ;;  %v1259_v21 = vsel %vm58_vm2, %v1258_v38, %v1257_v5  ;;  %v2198_v12 = vrot.slane %v11409_v37, 5  ;;  %v2199_v30 = vrot.slane %v11409_v37, 6  ;;  %9136 = vpow2.f32 %v1742_v34  ;;  %v9642_v44 = vld [vmem:[%s14657_s1 + $0x34] sm:$0x1] }
  0xfb   :  { %v9121_v25 = vpop.eup %9120  ;;  %v1261_v2 = vsel %vm61_vm3, %v1260_v23, %v1259_v21  ;;  %v1262_v52 = vrot.slane %v9119_v11, 3  ;;  %v2200_v36 = vrot.slane %v11409_v37, 7  ;;  %9138 = vpow2.f32 %v1744_v43  ;;  %v9643_v11 = vld [vmem:[%s14657_s1 + $0x44] sm:$0x1] }
  0xfc   :  { %v9123_v31 = vpop.eup %9122  ;;  %v1264_v49 = vrot.slane %v9121_v25, 2  ;;  %v2226_v54 = vsub.f32 %v9641_v13, %v2195_v48  ;;  %v2227_v38 = vsub.f32 %v9642_v44, %v2196_v55  ;;  %9140 = vpow2.f32 %v1746_v18  ;;  %v9644_v48 = vld [vmem:[%s14657_s1 + $0x54] sm:$0x1]  ;;  %v9645_v55 = vld [vmem:[%s14657_s1 + $0x64] sm:$0x1] }
  0xfd   :  { %v1263_v5 = vsel %vm64_vm4, %v1262_v52, %v1261_v2  ;;  %v1266_v23 = vrot.slane %v9123_v31, 1  ;;  %v2228_v34 = vsub.f32 %v9643_v11, %v2197_v29  ;;  %v2229_v21 = vsub.f32 %v9644_v48, %v2198_v12  ;;  %v9646_v18 = vld [vmem:[%s14657_s1 + $0x74] sm:$0x1]  ;;  %v11752_v52 = vpop.xlane.xlu1 %6903  ;;  %v11756_v11 = vpop.eup %9124 }
  0xfe   :  { %v1265_v43 = vsel %vm67_vm5, %v1264_v49, %v1263_v5  ;;  %v2230_v25 = vsub.f32 %v9645_v55, %v2199_v30  ;;  %v2231_v2 = vsub.f32 %v9646_v18, %v2200_v36  ;;  %v2242_v31 = vmul.f32 1.442695, %v2225_v10  ;;  %v9647_v36 = vld [vmem:[%s14657_s1 + $0xd] sm:$0x1] }
  0xff   :  { %v1267_v29 = vsel %vm70_vm6, %v1266_v23, %v1265_v43  ;;  %v2244_v49 = vmul.f32 1.442695, %v2226_v54  ;;  %v2246_v13 = vmul.f32 1.442695, %v2227_v38  ;;  %9142 = vpow2.f32 %v5400_v50  ;;  %v11763_v54 = vpop.xlane.xlu0 %6379  ;;  %v9648_v23 = vld [vmem:[%s14657_s1 + $0xc] sm:$0x1] }
 0x100   :  { %v1273_v44 = vsel %vm88_vm7, %v1267_v29, 0.0  ;;  %v2248_v12 = vmul.f32 1.442695, %v2228_v34  ;;  %v2250_v5 = vmul.f32 1.442695, %v2229_v21  ;;  %9144 = vpow2.f32 %v2242_v31 }
 0x101   :  { %1274 = vadd.xlane.f32.xlu0 %v1273_v44  ;;  %v2252_v30 = vmul.f32 1.442695, %v2230_v25  ;;  %v6940_v10 = vsub.f32 %v9647_v36, %v11752_v52  ;;  %9146 = vpow2.f32 %v2244_v49  ;;  %v2254_v50 = vmul.f32 1.442695, %v2231_v2 }
 0x102   :  { %v11765_v38 = vpop.eup %9126  ;;  %v6416_v34 = vsub.f32 %v9648_v23, %v11763_v54  ;;  %v2719_v43 = vrot.slane %v11388_v4, 2  ;;  %9148 = vpow2.f32 %v2246_v13  ;;  %v2720_v25 = vrot.slane %v11388_v4, 3 }
 0x103   :  { %v9129_v21 = vpop.eup %9128  ;;  %v6956_v55 = vmul.f32 1.442695, %v6940_v10  ;;  %v2721_v18 = vrot.slane %v11388_v4, 4  ;;  %9150 = vpow2.f32 %v2248_v12  ;;  %v2722_v2 = vrot.slane %v11388_v4, 5 }
 0x104   :  { %v9131_v29 = vpop.eup %9130  ;;  %v1778_v31 = vrot.slane %v9129_v21, 7  ;;  %v6432_v49 = vmul.f32 1.442695, %v6416_v34  ;;  %9152 = vpow2.f32 %v2250_v5  ;;  %v2723_v23 = vrot.slane %v11388_v4, 6  ;;  %v9649_v21 = vld [vmem:[%s14657_s1 + $0x15] sm:$0x1] }
 0x105   :  { %v9133_v44 = vpop.eup %9132  ;;  %v1780_v36 = vrot.slane %v9131_v29, 6  ;;  %v2724_v48 = vrot.slane %v11388_v4, 7  ;;  %9154 = vpow2.f32 %v2252_v30  ;;  %v2749_v12 = vsub.f32 %v9649_v21, %v2718_v26  ;;  %v9650_v5 = vld [vmem:[%s14657_s1 + $0x25] sm:$0x1] }
 0x106   :  { %v1779_v13 = vsel %vm52_vm0, %v1778_v31, %v11434_v3  ;;  %v1782_v10 = vrot.slane %v9133_v44, 5  ;;  %v9135_v34 = vpop.eup %9134  ;;  %9156 = vpow2.f32 %v2254_v50  ;;  %v2750_v1 = vsub.f32 %v9650_v5, %v2719_v43  ;;  %v9651_v3 = vld [vmem:[%s14657_s1 + $0x35] sm:$0x1]  ;;  %v9652_v26 = vld [vmem:[%s14657_s1 + $0x45] sm:$0x1] }
 0x107   :  { %v1781_v29 = vsel %vm55_vm1, %v1780_v36, %v1779_v13  ;;  %v2751_v30 = vsub.f32 %v9651_v3, %v2720_v25  ;;  %v9137_v31 = vpop.eup %9136  ;;  %v1784_v37 = vrot.slane %v9135_v34, 4  ;;  %9158 = vpow2.f32 %v6956_v55  ;;  %v9653_v43 = vld [vmem:[%s14657_s1 + $0x55] sm:$0x1]  ;;  %v9654_v25 = vld [vmem:[%s14657_s1 + $0x65] sm:$0x1] }
 0x108   :  { %v1783_v44 = vsel %vm58_vm2, %v1782_v10, %v1781_v29  ;;  %v2752_v50 = vsub.f32 %v9652_v26, %v2721_v18  ;;  %v9139_v36 = vpop.eup %9138  ;;  %v1786_v13 = vrot.slane %v9137_v31, 3  ;;  %9160 = vpow2.f32 %v6432_v49  ;;  %v9655_v18 = vld [vmem:[%s14657_s1 + $0x75] sm:$0x1] }
 0x109   :  { %v2753_v21 = vsub.f32 %v9653_v43, %v2722_v2  ;;  %v2754_v10 = vsub.f32 %v9654_v25, %v2723_v23  ;;  %v9141_v34 = vpop.eup %9140  ;;  %v1785_v55 = vsel %vm61_vm3, %v1784_v37, %v1783_v44  ;;  %v1788_v29 = vrot.slane %v9139_v36, 2 }
 0x10a   :  { %v2755_v5 = vsub.f32 %v9655_v18, %v2724_v48  ;;  %v2766_v49 = vmul.f32 1.442695, %v2749_v12  ;;  %v1787_v3 = vsel %vm64_vm4, %v1786_v13, %v1785_v55  ;;  %v1790_v31 = vrot.slane %v9141_v34, 1 }
 0x10b   :  { %v2768_v26 = vmul.f32 1.442695, %v2750_v1  ;;  %v2770_v2 = vmul.f32 1.442695, %v2751_v30  ;;  %v1789_v43 = vsel %vm67_vm5, %v1788_v29, %v1787_v3  ;;  %v2772_v4 = vmul.f32 1.442695, %v2752_v50 }
 0x10c   :  { %9162 = vpow2.f32 %v2766_v49  ;;  %v2774_v23 = vmul.f32 1.442695, %v2753_v21  ;;  %v11807_v25 = vpop.eup %9142  ;;  %v1791_v37 = vsel %vm70_vm6, %v1790_v31, %v1789_v43  ;;  %v2776_v44 = vmul.f32 1.442695, %v2754_v10  ;;  %v9657_v43 = vld [vmem:[%s14657_s1 + $0xa4] sm:$0x1] }
 0x10d   :  { %9164 = vpow2.f32 %v2768_v26  ;;  %v2778_v36 = vmul.f32 1.442695, %v2755_v5  ;;  %v9145_v20 = vpop.eup %9144  ;;  %v1797_v48 = vsel %vm88_vm7, %v1791_v37, 0.0  ;;  %v2202_v12 = vrot.slane %v11445_v35, 2 }
 0x10e   :  { %9166 = vpow2.f32 %v2770_v2  ;;  %v2203_v1 = vrot.slane %v11445_v35, 3  ;;  %v9147_v30 = vpop.eup %9146  ;;  %1798 = vadd.xlane.f32.xlu1 %v1797_v48  ;;  %v2288_v13 = vrot.slane %v9145_v20, 7  ;;  %v2204_v50 = vrot.slane %v11445_v35, 4  ;;  %v9656_v20 = vld [vmem:[%s14657_s1 + $0x94] sm:$0x1] }
 0x10f   :  { %9168 = vpow2.f32 %v2772_v4  ;;  %v2205_v21 = vrot.slane %v11445_v35, 5  ;;  %v9149_v34 = vpop.eup %9148  ;;  %v2290_v55 = vrot.slane %v9147_v30, 6  ;;  %v2206_v10 = vrot.slane %v11445_v35, 6  ;;  %v9658_v48 = vld [vmem:[%s14657_s1 + $0xb4] sm:$0x1] }
 0x110   :  { %9170 = vpow2.f32 %v2774_v23  ;;  %v2207_v29 = vrot.slane %v11445_v35, 7  ;;  %v9151_v18 = vpop.eup %9150  ;;  %v2289_v5 = vsel %vm52_vm0, %v2288_v13, %v11499_v45  ;;  %v2292_v49 = vrot.slane %v9149_v34, 5  ;;  %v9659_v13 = vld [vmem:[%s14657_s1 + $0xc4] sm:$0x1] }
 0x111   :  { %9172 = vpow2.f32 %v2776_v44  ;;  %v14683_v4 = vrot.slane %v11445_v35, 1  ;;  %v9153_v31 = vpop.eup %9152  ;;  %v2291_v26 = vsel %vm55_vm1, %v2290_v55, %v2289_v5  ;;  %v2294_v2 = vrot.slane %v9151_v18, 4 }
 0x112   :  { %9174 = vpow2.f32 %v2778_v36  ;;  %v2234_v23 = vsub.f32 %v9657_v43, %v2202_v12  ;;  %v9155_v45 = vpop.eup %9154  ;;  %v2293_v37 = vsel %vm58_vm2, %v2292_v49, %v2291_v26  ;;  %v2296_v44 = vrot.slane %v9153_v31, 3  ;;  %v9660_v12 = vld [vmem:[%s14657_s1 + $0xd4] sm:$0x1]  ;;  %v9661_v49 = vld [vmem:[%s14657_s1 + $0xe4] sm:$0x1] }
 0x113   :  { %v2233_v3 = vsub.f32 %v9656_v20, %v14683_v4  ;;  %v2235_v30 = vsub.f32 %v9658_v48, %v2203_v1  ;;  %v2236_v34 = vsub.f32 %v9659_v13, %v2204_v50  ;;  %v9157_v36 = vpop.eup %9156  ;;  %v2295_v55 = vsel %vm61_vm3, %v2294_v2, %v2293_v37  ;;  %v9662_v50 = vld [vmem:[%s14657_s1 + $0xf4] sm:$0x1]  ;;  %v11851_v13 = vpop.xlane.xlu1 %6906 }
 0x114   :  { %v2298_v18 = vrot.slane %v9155_v45, 2  ;;  %v2237_v5 = vsub.f32 %v9660_v12, %v2205_v21  ;;  %v2238_v20 = vsub.f32 %v9661_v49, %v2206_v10  ;;  %v11842_v1 = vpop.eup %9158  ;;  %v2297_v4 = vsel %vm64_vm4, %v2296_v44, %v2295_v55  ;;  %v11853_v10 = vpop.xlane.xlu0 %6382 }
 0x115   :  { %v2300_v31 = vrot.slane %v9157_v36, 1  ;;  %v2239_v26 = vsub.f32 %v9662_v50, %v2207_v29  ;;  %v2258_v2 = vmul.f32 1.442695, %v2233_v3  ;;  %v11848_v43 = vpop.eup %9160  ;;  %v2260_v45 = vmul.f32 1.442695, %v2234_v23 }
 0x116   :  { %v2299_v21 = vsel %vm67_vm5, %v2298_v18, %v2297_v4  ;;  %v2262_v37 = vmul.f32 1.442695, %v2235_v30  ;;  %v2264_v48 = vmul.f32 1.442695, %v2236_v34  ;;  %v2266_v55 = vmul.f32 1.442695, %v2237_v5 }
 0x117   :  { %v2301_v44 = vsel %vm70_vm6, %v2300_v31, %v2299_v21  ;;  %9176 = vpow2.f32 %v2258_v2  ;;  %v2268_v3 = vmul.f32 1.442695, %v2238_v20  ;;  %v2270_v12 = vmul.f32 1.442695, %v2239_v26  ;;  %v9663_v30 = vld [vmem:[%s14657_s1 + $0x8d] sm:$0x1] }
 0x118   :  { %v2318_v29 = vsel %vm88_vm7, %v2301_v44, 0.0  ;;  %9178 = vpow2.f32 %v2260_v45  ;;  %v6948_v34 = vsub.f32 %v9663_v30, %v11851_v13  ;;  %v9664_v20 = vld [vmem:[%s14657_s1 + $0x8c] sm:$0x1]  ;;  %v2726_v50 = vrot.slane %v11431_v61, 2 }
 0x119   :  { %v9163_v49 = vpop.eup %9162  ;;  %2319 = vadd.xlane.f32.xlu0 %v2318_v29  ;;  %9180 = vpow2.f32 %v2262_v37  ;;  %v6424_v31 = vsub.f32 %v9664_v20, %v11853_v10  ;;  %v2727_v45 = vrot.slane %v11431_v61, 3  ;;  %v2729_v23 = vrot.slane %v11431_v61, 5 }
 0x11a   :  { %v9165_v4 = vpop.eup %9164  ;;  %v2812_v5 = vrot.slane %v9163_v49, 7  ;;  %9182 = vpow2.f32 %v2264_v48  ;;  %v6972_v21 = vmul.f32 1.442695, %v6948_v34  ;;  %v2728_v48 = vrot.slane %v11431_v61, 4 }
 0x11b   :  { %v9167_v26 = vpop.eup %9166  ;;  %v2814_v2 = vrot.slane %v9165_v4, 6  ;;  %9184 = vpow2.f32 %v2266_v55  ;;  %v11876_v18 = vmul.f32 1.442695, %v6424_v31  ;;  %v2730_v36 = vrot.slane %v11431_v61, 6 }
 0x11c   :  { %v9169_v37 = vpop.eup %9168  ;;  %v2813_v44 = vsel %vm52_vm0, %v2812_v5, %v11465_v63  ;;  %v2816_v29 = vrot.slane %v9167_v26, 5  ;;  %9186 = vpow2.f32 %v2268_v3  ;;  %v2731_v26 = vrot.slane %v11431_v61, 7 }
 0x11d   :  { %v9171_v49 = vpop.eup %9170  ;;  %v2815_v30 = vsel %vm55_vm1, %v2814_v2, %v2813_v44  ;;  %v2818_v20 = vrot.slane %v9169_v37, 4  ;;  %9188 = vpow2.f32 %v2270_v12  ;;  %v9665_v37 = vld [vmem:[%s14657_s1 + $0x95] sm:$0x1]  ;;  %v14684_v44 = vrot.slane %v11431_v61, 1 }
 0x11e   :  { %v9173_v4 = vpop.eup %9172  ;;  %v2817_v55 = vsel %vm58_vm2, %v2816_v29, %v2815_v30  ;;  %v2820_v34 = vrot.slane %v9171_v49, 3  ;;  %9190 = vpow2.f32 %v6972_v21  ;;  %v9666_v29 = vld [vmem:[%s14657_s1 + $0xa5] sm:$0x1]  ;;  %v9667_v21 = vld [vmem:[%s14657_s1 + $0xb5] sm:$0x1]  ;;  %v3244_v61 = vrot.slane %v11487_v33, 3 }
 0x11f   :  { %v9175_v63 = vpop.eup %9174  ;;  %v2819_v3 = vsel %vm61_vm3, %v2818_v20, %v2817_v55  ;;  %v2822_v5 = vrot.slane %v9173_v4, 2  ;;  %v2757_v31 = vsub.f32 %v9665_v37, %v14684_v44  ;;  %v2758_v49 = vsub.f32 %v9666_v29, %v2726_v50  ;;  %v9668_v4 = vld [vmem:[%s14657_s1 + $0xc5] sm:$0x1] }
 0x120   :  { %v2821_v2 = vsel %vm64_vm4, %v2820_v34, %v2819_v3  ;;  %v2824_v12 = vrot.slane %v9175_v63, 1  ;;  %v2759_v20 = vsub.f32 %v9667_v21, %v2727_v45  ;;  %v2760_v55 = vsub.f32 %v9668_v4, %v2728_v48  ;;  %v9669_v34 = vld [vmem:[%s14657_s1 + $0xd5] sm:$0x1]  ;;  %v9670_v50 = vld [vmem:[%s14657_s1 + $0xe5] sm:$0x1] }
 0x121   :  { %v2823_v30 = vsel %vm67_vm5, %v2822_v5, %v2821_v2  ;;  %v2761_v63 = vsub.f32 %v9669_v34, %v2729_v23  ;;  %v2762_v5 = vsub.f32 %v9670_v50, %v2730_v36  ;;  %v9671_v45 = vld [vmem:[%s14657_s1 + $0xf5] sm:$0x1]  ;;  %v2782_v37 = vmul.f32 1.442695, %v2757_v31 }
 0x122   :  { %v2825_v3 = vsel %vm70_vm6, %v2824_v12, %v2823_v30  ;;  %v2763_v2 = vsub.f32 %v9671_v45, %v2731_v26  ;;  %v2784_v44 = vmul.f32 1.442695, %v2758_v49  ;;  %v2786_v29 = vmul.f32 1.442695, %v2759_v20 }
 0x123   :  { %v2842_v48 = vsel %vm88_vm7, %v2825_v3, 0.0  ;;  %v3243_v21 = vrot.slane %v11487_v33, 2  ;;  %9192 = vpow2.f32 %v2782_v37  ;;  %v2788_v12 = vmul.f32 1.442695, %v2760_v55 }
 0x124   :  { %v9177_v23 = vpop.eup %9176  ;;  %2843 = vadd.xlane.f32.xlu1 %v2842_v48  ;;  %v2790_v30 = vmul.f32 1.442695, %v2761_v63  ;;  %v2792_v4 = vmul.f32 1.442695, %v2762_v5  ;;  %9194 = vpow2.f32 %v2784_v44  ;;  %v2794_v50 = vmul.f32 1.442695, %v2763_v2 }
 0x125   :  { %v9179_v34 = vpop.eup %9178  ;;  %v2302_v36 = vrot.slane %v9177_v23, 7  ;;  %9196 = vpow2.f32 %v2786_v29  ;;  %v3245_v49 = vrot.slane %v11487_v33, 4  ;;  %v3246_v20 = vrot.slane %v11487_v33, 5 }
 0x126   :  { %v9181_v26 = vpop.eup %9180  ;;  %v2304_v31 = vrot.slane %v9179_v34, 6  ;;  %9198 = vpow2.f32 %v2788_v12  ;;  %v3247_v63 = vrot.slane %v11487_v33, 6  ;;  %v3248_v48 = vrot.slane %v11487_v33, 7 }
 0x127   :  { %v9183_v3 = vpop.eup %9182  ;;  %v2303_v45 = vsel %vm52_vm0, %v2302_v36, %v11530_v53  ;;  %v2306_v55 = vrot.slane %v9181_v26, 5  ;;  %9200 = vpow2.f32 %v2790_v30  ;;  %v9672_v53 = vld [vmem:[%s14657_s1 + $0x16] sm:$0x1]  ;;  %v14685_v12 = vrot.slane %v11487_v33, 1  ;;  %v9673_v30 = vld [vmem:[%s14657_s1 + $0x26] sm:$0x1] }
 0x128   :  { %v9185_v5 = vpop.eup %9184  ;;  %v2305_v2 = vsel %vm55_vm1, %v2304_v31, %v2303_v45  ;;  %v2308_v37 = vrot.slane %v9183_v3, 4  ;;  %9202 = vpow2.f32 %v2792_v4  ;;  %v3274_v3 = vsub.f32 %v9673_v30, %v3243_v21  ;;  %v9676_v21 = vld [vmem:[%s14657_s1 + $0x56] sm:$0x1]  ;;  %v9682_v33 = vld [vmem:[%s14657_s1 + $0x27] sm:$0x1] }
 0x129   :  { %v9187_v44 = vpop.eup %9186  ;;  %v2307_v29 = vsel %vm58_vm2, %v2306_v55, %v2305_v2  ;;  %v2310_v23 = vrot.slane %v9185_v5, 3  ;;  %v3273_v34 = vsub.f32 %v9672_v53, %v14685_v12  ;;  %9204 = vpow2.f32 %v2794_v50  ;;  %v9674_v55 = vld [vmem:[%s14657_s1 + $0x36] sm:$0x1]  ;;  %v9675_v2 = vld [vmem:[%s14657_s1 + $0x46] sm:$0x1] }
 0x12a   :  { %v9189_v36 = vpop.eup %9188  ;;  %v2309_v26 = vsel %vm61_vm3, %v2308_v37, %v2307_v29  ;;  %v2312_v31 = vrot.slane %v9187_v44, 2  ;;  %v3275_v5 = vsub.f32 %v9674_v55, %v3244_v61  ;;  %v3276_v37 = vsub.f32 %v9675_v2, %v3245_v49  ;;  %v9678_v61 = vld [vmem:[%s14657_s1 + $0x76] sm:$0x1]  ;;  %v11946_v49 = vpop.xlane.xlu1 %7951 }
 0x12b   :  { %v2311_v45 = vsel %vm64_vm4, %v2310_v23, %v2309_v26  ;;  %v2314_v4 = vrot.slane %v9189_v36, 1  ;;  %v11934_v44 = vpop.eup %9190  ;;  %v3277_v29 = vsub.f32 %v9676_v21, %v3246_v20  ;;  %v9677_v23 = vld [vmem:[%s14657_s1 + $0x66] sm:$0x1]  ;;  %v3279_v12 = vsub.f32 %v9678_v61, %v3248_v48  ;;  %v9679_v48 = vld [vmem:[%s14657_s1 + $0xf] sm:$0x1] }
 0x12c   :  { %v2313_v50 = vsel %vm67_vm5, %v2312_v31, %v2311_v45  ;;  %v3278_v53 = vsub.f32 %v9677_v23, %v3247_v63  ;;  %v3290_v26 = vmul.f32 1.442695, %v3273_v34  ;;  %v3292_v31 = vmul.f32 1.442695, %v3274_v3  ;;  %v11956_v34 = vpop.xlane.xlu0 %7427 }
 0x12d   :  { %v2315_v36 = vsel %vm70_vm6, %v2314_v4, %v2313_v50  ;;  %v3294_v30 = vmul.f32 1.442695, %v3275_v5  ;;  %9206 = vpow2.f32 %v11876_v18  ;;  %v3296_v20 = vmul.f32 1.442695, %v3276_v37  ;;  %v9680_v18 = vld [vmem:[%s14657_s1 + $0xe] sm:$0x1] }
 0x12e   :  { %v2321_v45 = vsel %vm88_vm7, %v2315_v36, 0.0  ;;  %v3298_v55 = vmul.f32 1.442695, %v3277_v29  ;;  %9208 = vpow2.f32 %v3290_v26  ;;  %v3300_v63 = vmul.f32 1.442695, %v3278_v53 }
 0x12f   :  { %2322 = vadd.xlane.f32.xlu0 %v2321_v45  ;;  %v7988_v4 = vsub.f32 %v9679_v48, %v11946_v49  ;;  %9210 = vpow2.f32 %v3292_v31  ;;  %v3302_v3 = vmul.f32 1.442695, %v3279_v12  ;;  %v7464_v5 = vsub.f32 %v9680_v18, %v11956_v34 }
 0x130   :  { %v3767_v37 = vrot.slane %v11461_v57, 2  ;;  %v9193_v50 = vpop.eup %9192  ;;  %9212 = vpow2.f32 %v3294_v30  ;;  %v3768_v29 = vrot.slane %v11461_v57, 3  ;;  %v3769_v23 = vrot.slane %v11461_v57, 4 }
 0x131   :  { %v8004_v21 = vmul.f32 1.442695, %v7988_v4  ;;  %v9195_v53 = vpop.eup %9194  ;;  %v2826_v61 = vrot.slane %v9193_v50, 7  ;;  %9214 = vpow2.f32 %v3296_v20  ;;  %v7480_v36 = vmul.f32 1.442695, %v7464_v5 }
 0x132   :  { %v3770_v12 = vrot.slane %v11461_v57, 5  ;;  %v9197_v26 = vpop.eup %9196  ;;  %v2828_v31 = vrot.slane %v9195_v53, 6  ;;  %9216 = vpow2.f32 %v3298_v55  ;;  %v3771_v45 = vrot.slane %v11461_v57, 6  ;;  %v9681_v20 = vld [vmem:[%s14657_s1 + $0x17] sm:$0x1] }
 0x133   :  { %v3772_v48 = vrot.slane %v11461_v57, 7  ;;  %v9199_v18 = vpop.eup %9198  ;;  %v2827_v30 = vsel %vm52_vm0, %v2826_v61, %v11521_v27  ;;  %v2830_v4 = vrot.slane %v9197_v26, 5  ;;  %9218 = vpow2.f32 %v3300_v63  ;;  %v9683_v26 = vld [vmem:[%s14657_s1 + $0x37] sm:$0x1] }
 0x134   :  { %v14686_v5 = vrot.slane %v11461_v57, 1  ;;  %v9201_v2 = vpop.eup %9200  ;;  %v2829_v55 = vsel %vm55_vm1, %v2828_v31, %v2827_v30  ;;  %v2832_v53 = vrot.slane %v9199_v18, 4  ;;  %9220 = vpow2.f32 %v3302_v3  ;;  %v9684_v3 = vld [vmem:[%s14657_s1 + $0x47] sm:$0x1]  ;;  %v9699_v57 = vld [vmem:[%s14657_s1 + $0xb7] sm:$0x1] }
 0x135   :  { %v3798_v35 = vsub.f32 %v9682_v33, %v3767_v37  ;;  %v9203_v27 = vpop.eup %9202  ;;  %v2831_v63 = vsel %vm58_vm2, %v2830_v4, %v2829_v55  ;;  %v2834_v61 = vrot.slane %v9201_v2, 3  ;;  %9222 = vpow2.f32 %v8004_v21  ;;  %v9685_v2 = vld [vmem:[%s14657_s1 + $0x57] sm:$0x1] }
 0x136   :  { %v3797_v50 = vsub.f32 %v9681_v20, %v14686_v5  ;;  %v3799_v20 = vsub.f32 %v9683_v26, %v3768_v29  ;;  %v9205_v5 = vpop.eup %9204  ;;  %v2833_v31 = vsel %vm61_vm3, %v2832_v53, %v2831_v63  ;;  %v2836_v18 = vrot.slane %v9203_v27, 2  ;;  %v9686_v29 = vld [vmem:[%s14657_s1 + $0x67] sm:$0x1]  ;;  %v9687_v55 = vld [vmem:[%s14657_s1 + $0x77] sm:$0x1] }
 0x137   :  { %9224 = vpow2.f32 %v7480_v36  ;;  %v3800_v33 = vsub.f32 %v9684_v3, %v3769_v23  ;;  %v2835_v37 = vsel %vm64_vm4, %v2834_v61, %v2833_v31  ;;  %v2838_v30 = vrot.slane %v9205_v5, 1 }
 0x138   :  { %v3801_v21 = vsub.f32 %v9685_v2, %v3770_v12  ;;  %v3802_v4 = vsub.f32 %v9686_v29, %v3771_v45  ;;  %v2837_v36 = vsel %vm67_vm5, %v2836_v18, %v2835_v37  ;;  %v3803_v23 = vsub.f32 %v9687_v55, %v3772_v48 }
 0x139   :  { %v3814_v53 = vmul.f32 1.442695, %v3797_v50  ;;  %v3816_v27 = vmul.f32 1.442695, %v3798_v35  ;;  %v2839_v63 = vsel %vm70_vm6, %v2838_v30, %v2837_v36  ;;  %v3818_v61 = vmul.f32 1.442695, %v3799_v20 }
 0x13a   :  { %v3820_v26 = vmul.f32 1.442695, %v3800_v33  ;;  %v3822_v5 = vmul.f32 1.442695, %v3801_v21  ;;  %v11999_v12 = vpop.eup %9206  ;;  %v2845_v31 = vsel %vm88_vm7, %v2839_v63, 0.0  ;;  %v3250_v37 = vrot.slane %v11526_v51, 2 }
 0x13b   :  { %9226 = vpow2.f32 %v3814_v53  ;;  %v3824_v45 = vmul.f32 1.442695, %v3802_v4  ;;  %v3826_v3 = vmul.f32 1.442695, %v3803_v23  ;;  %v9209_v18 = vpop.eup %9208  ;;  %2846 = vadd.xlane.f32.xlu1 %v2845_v31  ;;  %v3251_v48 = vrot.slane %v11526_v51, 3 }
 0x13c   :  { %9228 = vpow2.f32 %v3816_v27  ;;  %v3252_v35 = vrot.slane %v11526_v51, 4  ;;  %v9211_v50 = vpop.eup %9210  ;;  %v3336_v20 = vrot.slane %v9209_v18, 7  ;;  %v3253_v33 = vrot.slane %v11526_v51, 5  ;;  %v9688_v4 = vld [vmem:[%s14657_s1 + $0x96] sm:$0x1] }
 0x13d   :  { %9230 = vpow2.f32 %v3818_v61  ;;  %v3254_v30 = vrot.slane %v11526_v51, 6  ;;  %v9213_v2 = vpop.eup %9212  ;;  %v3338_v21 = vrot.slane %v9211_v50, 6  ;;  %v3255_v29 = vrot.slane %v11526_v51, 7  ;;  %v9689_v63 = vld [vmem:[%s14657_s1 + $0xa6] sm:$0x1] }
 0x13e   :  { %9232 = vpow2.f32 %v3820_v26  ;;  %v14687_v36 = vrot.slane %v11526_v51, 1  ;;  %v9215_v23 = vpop.eup %9214  ;;  %v3337_v53 = vsel %vm52_vm0, %v3336_v20, %v11582_v60  ;;  %v3340_v27 = vrot.slane %v9213_v2, 5  ;;  %v9690_v50 = vld [vmem:[%s14657_s1 + $0xb6] sm:$0x1] }
 0x13f   :  { %9234 = vpow2.f32 %v3822_v5  ;;  %v3282_v61 = vsub.f32 %v9689_v63, %v3250_v37  ;;  %v9217_v26 = vpop.eup %9216  ;;  %v3339_v31 = vsel %vm55_vm1, %v3338_v21, %v3337_v53  ;;  %v3342_v18 = vrot.slane %v9215_v23, 4  ;;  %v9691_v5 = vld [vmem:[%s14657_s1 + $0xc6] sm:$0x1] }
 0x140   :  { %v3281_v55 = vsub.f32 %v9688_v4, %v14687_v36  ;;  %9236 = vpow2.f32 %v3824_v45  ;;  %v3283_v4 = vsub.f32 %v9690_v50, %v3251_v48  ;;  %v9219_v36 = vpop.eup %9218  ;;  %v3341_v60 = vsel %vm58_vm2, %v3340_v27, %v3339_v31  ;;  %v9692_v45 = vld [vmem:[%s14657_s1 + $0xd6] sm:$0x1]  ;;  %v9693_v48 = vld [vmem:[%s14657_s1 + $0xe6] sm:$0x1] }
 0x141   :  { %v3344_v20 = vrot.slane %v9217_v26, 3  ;;  %9238 = vpow2.f32 %v3826_v3  ;;  %v3284_v37 = vsub.f32 %v9691_v5, %v3252_v35  ;;  %v9221_v2 = vpop.eup %9220  ;;  %v3343_v21 = vsel %vm61_vm3, %v3342_v18, %v3341_v60  ;;  %v9694_v35 = vld [vmem:[%s14657_s1 + $0xf6] sm:$0x1] }
 0x142   :  { %v3346_v23 = vrot.slane %v9219_v36, 2  ;;  %v3285_v53 = vsub.f32 %v9692_v45, %v3253_v33  ;;  %v3286_v27 = vsub.f32 %v9693_v48, %v3254_v30  ;;  %v12033_v3 = vpop.eup %9222  ;;  %v3348_v26 = vrot.slane %v9221_v2, 1  ;;  %v12042_v45 = vpop.xlane.xlu1 %7954 }
 0x143   :  { %v3345_v63 = vsel %vm64_vm4, %v3344_v20, %v3343_v21  ;;  %v3287_v31 = vsub.f32 %v9694_v35, %v3255_v29  ;;  %v3306_v18 = vmul.f32 1.442695, %v3281_v55  ;;  %v3308_v36 = vmul.f32 1.442695, %v3282_v61  ;;  %v12046_v21 = vpop.xlane.xlu0 %7430 }
 0x144   :  { %v12039_v50 = vpop.eup %9224  ;;  %v3347_v33 = vsel %vm67_vm5, %v3346_v23, %v3345_v63  ;;  %v3310_v60 = vmul.f32 1.442695, %v3283_v4  ;;  %v3312_v5 = vmul.f32 1.442695, %v3284_v37  ;;  %v3314_v2 = vmul.f32 1.442695, %v3285_v53 }
 0x145   :  { %v3349_v30 = vsel %vm70_vm6, %v3348_v26, %v3347_v33  ;;  %9240 = vpow2.f32 %v3306_v18  ;;  %v3316_v55 = vmul.f32 1.442695, %v3286_v27  ;;  %v3318_v48 = vmul.f32 1.442695, %v3287_v31  ;;  %v9695_v4 = vld [vmem:[%s14657_s1 + $0x8f] sm:$0x1] }
 0x146   :  { %v3366_v29 = vsel %vm88_vm7, %v3349_v30, 0.0  ;;  %9242 = vpow2.f32 %v3308_v36  ;;  %v7996_v37 = vsub.f32 %v9695_v4, %v12042_v45  ;;  %v9696_v23 = vld [vmem:[%s14657_s1 + $0x8e] sm:$0x1]  ;;  %v3774_v26 = vrot.slane %v11511_v56, 2 }
 0x147   :  { %3367 = vadd.xlane.f32.xlu0 %v3366_v29  ;;  %9244 = vpow2.f32 %v3310_v60  ;;  %v7472_v53 = vsub.f32 %v9696_v23, %v12046_v21  ;;  %v3775_v35 = vrot.slane %v11511_v56, 3  ;;  %v3776_v36 = vrot.slane %v11511_v56, 4 }
 0x148   :  { %v9227_v63 = vpop.eup %9226  ;;  %9246 = vpow2.f32 %v3312_v5  ;;  %v12062_v29 = vmul.f32 1.442695, %v7996_v37  ;;  %v3777_v4 = vrot.slane %v11511_v56, 5  ;;  %v3778_v27 = vrot.slane %v11511_v56, 6 }
 0x149   :  { %v9229_v31 = vpop.eup %9228  ;;  %v3860_v18 = vrot.slane %v9227_v63, 7  ;;  %9248 = vpow2.f32 %v3314_v2  ;;  %v7496_v33 = vmul.f32 1.442695, %v7472_v53  ;;  %v3779_v20 = vrot.slane %v11511_v56, 7 }
 0x14a   :  { %v9231_v60 = vpop.eup %9230  ;;  %v3862_v30 = vrot.slane %v9229_v31, 6  ;;  %9250 = vpow2.f32 %v3316_v55  ;;  %v9697_v55 = vld [vmem:[%s14657_s1 + $0x97] sm:$0x1]  ;;  %v14688_v37 = vrot.slane %v11511_v56, 1  ;;  %v3807_v56 = vsub.f32 %v9699_v57, %v3775_v35 }
 0x14b   :  { %v9233_v5 = vpop.eup %9232  ;;  %v3861_v23 = vsel %vm52_vm0, %v3860_v18, %v11558_v8  ;;  %v3864_v61 = vrot.slane %v9231_v60, 5  ;;  %9252 = vpow2.f32 %v3318_v48  ;;  %v9698_v48 = vld [vmem:[%s14657_s1 + $0xa7] sm:$0x1]  ;;  %v9703_v35 = vld [vmem:[%s14657_s1 + $0xf7] sm:$0x1] }
 0x14c   :  { %v9235_v63 = vpop.eup %9234  ;;  %v3863_v2 = vsel %vm55_vm1, %v3862_v30, %v3861_v23  ;;  %v3866_v53 = vrot.slane %v9233_v5, 4  ;;  %v3805_v31 = vsub.f32 %v9697_v55, %v14688_v37  ;;  %9254 = vpow2.f32 %v7496_v33 }
 0x14d   :  { %v9237_v51 = vpop.eup %9236  ;;  %v3865_v8 = vsel %vm58_vm2, %v3864_v61, %v3863_v2  ;;  %v3868_v18 = vrot.slane %v9235_v63, 3  ;;  %v3806_v60 = vsub.f32 %v9698_v48, %v3774_v26  ;;  %v9700_v61 = vld [vmem:[%s14657_s1 + $0xc7] sm:$0x1]  ;;  %v9701_v26 = vld [vmem:[%s14657_s1 + $0xd7] sm:$0x1] }
 0x14e   :  { %v9239_v30 = vpop.eup %9238  ;;  %v3867_v5 = vsel %vm61_vm3, %v3866_v53, %v3865_v8  ;;  %v3870_v23 = vrot.slane %v9237_v51, 2  ;;  %v3808_v63 = vsub.f32 %v9700_v61, %v3776_v36  ;;  %v3809_v55 = vsub.f32 %v9701_v26, %v3777_v4  ;;  %v9702_v51 = vld [vmem:[%s14657_s1 + $0xe7] sm:$0x1] }
 0x14f   :  { %v3869_v33 = vsel %vm64_vm4, %v3868_v18, %v3867_v5  ;;  %v3872_v2 = vrot.slane %v9239_v30, 1  ;;  %v3810_v53 = vsub.f32 %v9702_v51, %v3778_v27  ;;  %v3811_v36 = vsub.f32 %v9703_v35, %v3779_v20 }
 0x150   :  { %v3871_v57 = vsel %vm67_vm5, %v3870_v23, %v3869_v33  ;;  %v3830_v37 = vmul.f32 1.442695, %v3805_v31  ;;  %v3832_v8 = vmul.f32 1.442695, %v3806_v60  ;;  %v3834_v48 = vmul.f32 1.442695, %v3807_v56 }
 0x151   :  { %v3873_v18 = vsel %vm70_vm6, %v3872_v2, %v3871_v57  ;;  %v3836_v30 = vmul.f32 1.442695, %v3808_v63  ;;  %v3838_v5 = vmul.f32 1.442695, %v3809_v55  ;;  %v3840_v26 = vmul.f32 1.442695, %v3810_v53 }
 0x152   :  { %v9241_v4 = vpop.eup %9240  ;;  %v3890_v61 = vsel %vm88_vm7, %v3873_v18, 0.0  ;;  %9256 = vpow2.f32 %v3830_v37  ;;  %v3842_v27 = vmul.f32 1.442695, %v3811_v36  ;;  %v4291_v33 = vrot.slane %v11575_v14, 2 }
 0x153   :  { %v9243_v51 = vpop.eup %9242  ;;  %3891 = vadd.xlane.f32.xlu1 %v3890_v61  ;;  %v3350_v23 = vrot.slane %v9241_v4, 7  ;;  %9258 = vpow2.f32 %v3832_v8  ;;  %v4292_v20 = vrot.slane %v11575_v14, 3  ;;  %v4293_v56 = vrot.slane %v11575_v14, 4 }
 0x154   :  { %v9245_v31 = vpop.eup %9244  ;;  %v3352_v60 = vrot.slane %v9243_v51, 6  ;;  %9260 = vpow2.f32 %v3834_v48  ;;  %v4294_v63 = vrot.slane %v11575_v14, 5  ;;  %v4295_v57 = vrot.slane %v11575_v14, 6 }
 0x155   :  { %v9247_v2 = vpop.eup %9246  ;;  %v3351_v55 = vsel %vm52_vm0, %v3350_v23, %v11635_v9  ;;  %v3354_v53 = vrot.slane %v9245_v31, 5  ;;  %9262 = vpow2.f32 %v3836_v30  ;;  %v4296_v8 = vrot.slane %v11575_v14, 7  ;;  %v9704_v9 = vld [vmem:[%s14657_s1 + $0x18] sm:$0x1] }
 0x156   :  { %v9249_v35 = vpop.eup %9248  ;;  %v3353_v36 = vsel %vm55_vm1, %v3352_v60, %v3351_v55  ;;  %v3356_v37 = vrot.slane %v9247_v2, 4  ;;  %9264 = vpow2.f32 %v3838_v5  ;;  %v14689_v30 = vrot.slane %v11575_v14, 1  ;;  %v9705_v5 = vld [vmem:[%s14657_s1 + $0x28] sm:$0x1]  ;;  %v9706_v55 = vld [vmem:[%s14657_s1 + $0x38] sm:$0x1] }
 0x157   :  { %v9251_v18 = vpop.eup %9250  ;;  %v3355_v48 = vsel %vm58_vm2, %v3354_v53, %v3353_v36  ;;  %v3358_v4 = vrot.slane %v9249_v35, 3  ;;  %9266 = vpow2.f32 %v3840_v26  ;;  %v4322_v60 = vsub.f32 %v9705_v5, %v4291_v33  ;;  %v9707_v35 = vld [vmem:[%s14657_s1 + $0x48] sm:$0x1]  ;;  %v9708_v33 = vld [vmem:[%s14657_s1 + $0x58] sm:$0x1] }
 0x158   :  { %v4321_v61 = vsub.f32 %v9704_v9, %v14689_v30  ;;  %v9253_v51 = vpop.eup %9252  ;;  %v3357_v23 = vsel %vm61_vm3, %v3356_v37, %v3355_v48  ;;  %v3360_v31 = vrot.slane %v9251_v18, 2  ;;  %9268 = vpow2.f32 %v3842_v27  ;;  %v9709_v48 = vld [vmem:[%s14657_s1 + $0x68] sm:$0x1] }
 0x159   :  { %v3359_v2 = vsel %vm64_vm4, %v3358_v4, %v3357_v23  ;;  %v3362_v26 = vrot.slane %v9253_v51, 1  ;;  %v4323_v53 = vsub.f32 %v9706_v55, %v4292_v20  ;;  %v4324_v36 = vsub.f32 %v9707_v35, %v4293_v56  ;;  %v12125_v37 = vpop.eup %9254  ;;  %v9710_v20 = vld [vmem:[%s14657_s1 + $0x78] sm:$0x1] }
 0x15a   :  { %v3361_v27 = vsel %vm67_vm5, %v3360_v31, %v3359_v2  ;;  %v4325_v18 = vsub.f32 %v9708_v33, %v4294_v63  ;;  %v4326_v4 = vsub.f32 %v9709_v48, %v4295_v57  ;;  %v4327_v9 = vsub.f32 %v9710_v20, %v4296_v8 }
 0x15b   :  { %v3363_v56 = vsel %vm70_vm6, %v3362_v26, %v3361_v27  ;;  %v4338_v30 = vmul.f32 1.442695, %v4321_v61  ;;  %v4340_v51 = vmul.f32 1.442695, %v4322_v60  ;;  %v4342_v23 = vmul.f32 1.442695, %v4323_v53 }
 0x15c   :  { %v3369_v31 = vsel %vm88_vm7, %v3363_v56, 0.0  ;;  %v4344_v5 = vmul.f32 1.442695, %v4324_v36  ;;  %v4346_v2 = vmul.f32 1.442695, %v4325_v18  ;;  %v4815_v63 = vrot.slane %v11549_v17, 2 }
 0x15d   :  { %3370 = vadd.xlane.f32.xlu0 %v3369_v31  ;;  %9270 = vpow2.f32 %v4338_v30  ;;  %v4348_v55 = vmul.f32 1.442695, %v4326_v4  ;;  %v4350_v57 = vmul.f32 1.442695, %v4327_v9  ;;  %v4816_v35 = vrot.slane %v11549_v17, 3 }
 0x15e   :  { %9272 = vpow2.f32 %v4340_v51  ;;  %v4817_v8 = vrot.slane %v11549_v17, 4  ;;  %v4818_v26 = vrot.slane %v11549_v17, 5  ;;  %v4819_v61 = vrot.slane %v11549_v17, 6  ;;  %v9711_v36 = vld [vmem:[%s14657_s1 + $0x19] sm:$0x1] }
 0x15f   :  { %v9257_v60 = vpop.eup %9256  ;;  %9274 = vpow2.f32 %v4342_v23  ;;  %v4820_v53 = vrot.slane %v11549_v17, 7  ;;  %v14690_v27 = vrot.slane %v11549_v17, 1  ;;  %v9712_v18 = vld [vmem:[%s14657_s1 + $0x29] sm:$0x1]  ;;  %v9713_v9 = vld [vmem:[%s14657_s1 + $0x39] sm:$0x1] }
 0x160   :  { %v4846_v48 = vsub.f32 %v9712_v18, %v4815_v63  ;;  %v9259_v4 = vpop.eup %9258  ;;  %v3874_v20 = vrot.slane %v9257_v60, 7  ;;  %9276 = vpow2.f32 %v4344_v5  ;;  %v4847_v56 = vsub.f32 %v9713_v9, %v4816_v35  ;;  %v9714_v30 = vld [vmem:[%s14657_s1 + $0x49] sm:$0x1]  ;;  %v9715_v63 = vld [vmem:[%s14657_s1 + $0x59] sm:$0x1] }
 0x161   :  { %v4845_v33 = vsub.f32 %v9711_v36, %v14690_v27  ;;  %v4848_v51 = vsub.f32 %v9714_v30, %v4817_v8  ;;  %v9261_v23 = vpop.eup %9260  ;;  %v3876_v31 = vrot.slane %v9259_v4, 6  ;;  %9278 = vpow2.f32 %v4346_v2  ;;  %v9716_v5 = vld [vmem:[%s14657_s1 + $0x69] sm:$0x1]  ;;  %v9717_v2 = vld [vmem:[%s14657_s1 + $0x79] sm:$0x1] }
 0x162   :  { %v4849_v36 = vsub.f32 %v9715_v63, %v4818_v26  ;;  %v4850_v60 = vsub.f32 %v9716_v5, %v4819_v61  ;;  %v9263_v27 = vpop.eup %9262  ;;  %v3875_v35 = vsel %vm52_vm0, %v3874_v20, %v11597_v19  ;;  %v3878_v18 = vrot.slane %v9261_v23, 5 }
 0x163   :  { %9280 = vpow2.f32 %v4348_v55  ;;  %v4851_v8 = vsub.f32 %v9717_v2, %v4820_v53  ;;  %v9265_v4 = vpop.eup %9264  ;;  %v3877_v9 = vsel %vm55_vm1, %v3876_v31, %v3875_v35  ;;  %v3880_v26 = vrot.slane %v9263_v27, 4 }
 0x164   :  { %9282 = vpow2.f32 %v4350_v57  ;;  %v4862_v30 = vmul.f32 1.442695, %v4845_v33  ;;  %v9267_v63 = vpop.eup %9266  ;;  %v3879_v61 = vsel %vm58_vm2, %v3878_v18, %v3877_v9  ;;  %v3882_v5 = vrot.slane %v9265_v4, 3 }
 0x165   :  { %v4864_v17 = vmul.f32 1.442695, %v4846_v48  ;;  %v4866_v14 = vmul.f32 1.442695, %v4847_v56  ;;  %v9269_v19 = vpop.eup %9268  ;;  %v3881_v55 = vsel %vm61_vm3, %v3880_v26, %v3879_v61  ;;  %v3884_v20 = vrot.slane %v9267_v63, 2 }
 0x166   :  { %9284 = vpow2.f32 %v4862_v30  ;;  %v4868_v23 = vmul.f32 1.442695, %v4848_v51  ;;  %v3883_v53 = vsel %vm64_vm4, %v3882_v5, %v3881_v55  ;;  %v3886_v2 = vrot.slane %v9269_v19, 1  ;;  %v9719_v63 = vld [vmem:[%s14657_s1 + $0xa8] sm:$0x1] }
 0x167   :  { %9286 = vpow2.f32 %v4864_v17  ;;  %v4870_v31 = vmul.f32 1.442695, %v4849_v36  ;;  %v3885_v57 = vsel %vm67_vm5, %v3884_v20, %v3883_v53  ;;  %v4872_v33 = vmul.f32 1.442695, %v4850_v60  ;;  %v9720_v5 = vld [vmem:[%s14657_s1 + $0xb8] sm:$0x1] }
 0x168   :  { %9288 = vpow2.f32 %v4866_v14  ;;  %v4874_v27 = vmul.f32 1.442695, %v4851_v8  ;;  %v3887_v35 = vsel %vm70_vm6, %v3886_v2, %v3885_v57  ;;  %v4298_v48 = vrot.slane %v11615_v15, 2  ;;  %v9718_v8 = vld [vmem:[%s14657_s1 + $0x98] sm:$0x1] }
 0x169   :  { %9290 = vpow2.f32 %v4868_v23  ;;  %v4299_v56 = vrot.slane %v11615_v15, 3  ;;  %v3893_v18 = vsel %vm88_vm7, %v3887_v35, 0.0  ;;  %v4300_v51 = vrot.slane %v11615_v15, 4  ;;  %v9721_v23 = vld [vmem:[%s14657_s1 + $0xc8] sm:$0x1] }
 0x16a   :  { %9292 = vpow2.f32 %v4870_v31  ;;  %v4301_v17 = vrot.slane %v11615_v15, 5  ;;  %v9271_v36 = vpop.eup %9270  ;;  %3894 = vadd.xlane.f32.xlu1 %v3893_v18  ;;  %v4302_v14 = vrot.slane %v11615_v15, 6  ;;  %v4303_v60 = vrot.slane %v11615_v15, 7  ;;  %v9722_v2 = vld [vmem:[%s14657_s1 + $0xd8] sm:$0x1] }
 0x16b   :  { %9294 = vpow2.f32 %v4872_v33  ;;  %v14691_v4 = vrot.slane %v11615_v15, 1  ;;  %v9273_v26 = vpop.eup %9272  ;;  %v4384_v30 = vrot.slane %v9271_v36, 7  ;;  %v4330_v61 = vsub.f32 %v9719_v63, %v4298_v48  ;;  %v9723_v57 = vld [vmem:[%s14657_s1 + $0xe8] sm:$0x1] }
 0x16c   :  { %9296 = vpow2.f32 %v4874_v27  ;;  %v4331_v19 = vsub.f32 %v9720_v5, %v4299_v56  ;;  %v9275_v55 = vpop.eup %9274  ;;  %v4386_v20 = vrot.slane %v9273_v26, 6  ;;  %v4332_v53 = vsub.f32 %v9721_v23, %v4300_v51  ;;  %v9724_v56 = vld [vmem:[%s14657_s1 + $0xf8] sm:$0x1] }
 0x16d   :  { %v4329_v9 = vsub.f32 %v9718_v8, %v14691_v4  ;;  %v4333_v31 = vsub.f32 %v9722_v2, %v4301_v17  ;;  %v4334_v33 = vsub.f32 %v9723_v57, %v4302_v14  ;;  %v9277_v27 = vpop.eup %9276  ;;  %v4385_v35 = vsel %vm52_vm0, %v4384_v30, %v11656_v59 }
 0x16e   :  { %v4388_v48 = vrot.slane %v9275_v55, 5  ;;  %v4335_v18 = vsub.f32 %v9724_v56, %v4303_v60  ;;  %v9279_v36 = vpop.eup %9278  ;;  %v4387_v8 = vsel %vm55_vm1, %v4386_v20, %v4385_v35  ;;  %v4390_v17 = vrot.slane %v9277_v27, 4 }
 0x16f   :  { %v4354_v51 = vmul.f32 1.442695, %v4329_v9  ;;  %v4356_v4 = vmul.f32 1.442695, %v4330_v61  ;;  %v4358_v26 = vmul.f32 1.442695, %v4331_v19 }
 0x170   :  { %v9281_v63 = vpop.eup %9280  ;;  %v4389_v14 = vsel %vm58_vm2, %v4388_v48, %v4387_v8  ;;  %v4392_v5 = vrot.slane %v9279_v36, 3  ;;  %v4360_v23 = vmul.f32 1.442695, %v4332_v53  ;;  %v4362_v2 = vmul.f32 1.442695, %v4333_v31 }
 0x171   :  { %9298 = vpow2.f32 %v4354_v51  ;;  %v9283_v59 = vpop.eup %9282  ;;  %v4391_v30 = vsel %vm61_vm3, %v4390_v17, %v4389_v14  ;;  %v4394_v55 = vrot.slane %v9281_v63, 2  ;;  %v4364_v20 = vmul.f32 1.442695, %v4334_v33 }
 0x172   :  { %9300 = vpow2.f32 %v4356_v4  ;;  %v4393_v60 = vsel %vm64_vm4, %v4392_v5, %v4391_v30  ;;  %v4396_v9 = vrot.slane %v9283_v59, 1  ;;  %v4366_v19 = vmul.f32 1.442695, %v4335_v18 }
 0x173   :  { %9302 = vpow2.f32 %v4358_v26  ;;  %v9285_v57 = vpop.eup %9284  ;;  %v4395_v61 = vsel %vm67_vm5, %v4394_v55, %v4393_v60  ;;  %v4822_v27 = vrot.slane %v11593_v6, 2  ;;  %v4823_v56 = vrot.slane %v11593_v6, 3 }
 0x174   :  { %9304 = vpow2.f32 %v4360_v23  ;;  %v9287_v35 = vpop.eup %9286  ;;  %v4397_v53 = vsel %vm70_vm6, %v4396_v9, %v4395_v61  ;;  %v4908_v48 = vrot.slane %v9285_v57, 7  ;;  %v4824_v33 = vrot.slane %v11593_v6, 4  ;;  %v9726_v9 = vld [vmem:[%s14657_s1 + $0xa9] sm:$0x1] }
 0x175   :  { %9306 = vpow2.f32 %v4362_v2  ;;  %v9289_v31 = vpop.eup %9288  ;;  %v4414_v51 = vsel %vm88_vm7, %v4397_v53, 0.0  ;;  %v4910_v36 = vrot.slane %v9287_v35, 6  ;;  %v4825_v4 = vrot.slane %v11593_v6, 5  ;;  %v9727_v35 = vld [vmem:[%s14657_s1 + $0xb9] sm:$0x1] }
 0x176   :  { %9308 = vpow2.f32 %v4364_v20  ;;  %v9291_v8 = vpop.eup %9290  ;;  %4415 = vadd.xlane.f32.xlu0 %v4414_v51  ;;  %v4909_v18 = vsel %vm52_vm0, %v4908_v48, %v11642_v7  ;;  %v4912_v17 = vrot.slane %v9289_v31, 5  ;;  %v4826_v5 = vrot.slane %v11593_v6, 6  ;;  %v9725_v7 = vld [vmem:[%s14657_s1 + $0x99] sm:$0x1]  ;;  %v9728_v48 = vld [vmem:[%s14657_s1 + $0xc9] sm:$0x1] }
 0x177   :  { %9310 = vpow2.f32 %v4366_v19  ;;  %v9293_v26 = vpop.eup %9292  ;;  %v4911_v63 = vsel %vm55_vm1, %v4910_v36, %v4909_v18  ;;  %v4914_v14 = vrot.slane %v9291_v8, 4  ;;  %v4827_v23 = vrot.slane %v11593_v6, 7  ;;  %v9730_v18 = vld [vmem:[%s14657_s1 + $0xe9] sm:$0x1] }
 0x178   :  { %v9295_v59 = vpop.eup %9294  ;;  %v4913_v30 = vsel %vm58_vm2, %v4912_v17, %v4911_v63  ;;  %v4916_v55 = vrot.slane %v9293_v26, 3  ;;  %v14692_v2 = vrot.slane %v11593_v6, 1  ;;  %v4854_v20 = vsub.f32 %v9726_v9, %v4822_v27  ;;  %v9729_v27 = vld [vmem:[%s14657_s1 + $0xd9] sm:$0x1] }
 0x179   :  { %v9297_v57 = vpop.eup %9296  ;;  %v4915_v61 = vsel %vm61_vm3, %v4914_v14, %v4913_v30  ;;  %v4918_v19 = vrot.slane %v9295_v59, 2  ;;  %v4855_v53 = vsub.f32 %v9727_v35, %v4823_v56  ;;  %v4856_v31 = vsub.f32 %v9728_v48, %v4824_v33  ;;  %v9731_v26 = vld [vmem:[%s14657_s1 + $0xf9] sm:$0x1] }
 0x17a   :  { %v4853_v60 = vsub.f32 %v9725_v7, %v14692_v2  ;;  %v4917_v51 = vsel %vm64_vm4, %v4916_v55, %v4915_v61  ;;  %v4920_v36 = vrot.slane %v9297_v57, 1  ;;  %v4857_v8 = vsub.f32 %v9729_v27, %v4825_v4 }
 0x17b   :  { %v4858_v17 = vsub.f32 %v9730_v18, %v4826_v5  ;;  %v4919_v56 = vsel %vm67_vm5, %v4918_v19, %v4917_v51  ;;  %v4859_v33 = vsub.f32 %v9731_v26, %v4827_v23  ;;  %v4880_v14 = vmul.f32 1.442695, %v4854_v20 }
 0x17c   :  { %v4878_v63 = vmul.f32 1.442695, %v4853_v60  ;;  %v4921_v59 = vsel %vm70_vm6, %v4920_v36, %v4919_v56  ;;  %v4882_v30 = vmul.f32 1.442695, %v4855_v53  ;;  %v4884_v55 = vmul.f32 1.442695, %v4856_v31 }
 0x17d   :  { %v4886_v7 = vmul.f32 1.442695, %v4857_v8  ;;  %v4938_v2 = vsel %vm88_vm7, %v4921_v59, 0.0  ;;  %v4888_v9 = vmul.f32 1.442695, %v4858_v17  ;;  %v5339_v19 = vrot.slane %v11652_v41, 2 }
 0x17e   :  { %v9299_v4 = vpop.eup %9298  ;;  %9312 = vpow2.f32 %v4878_v63  ;;  %v4890_v5 = vmul.f32 1.442695, %v4859_v33  ;;  %4939 = vadd.xlane.f32.xlu1 %v4938_v2  ;;  %v5340_v23 = vrot.slane %v11652_v41, 3  ;;  %v5341_v35 = vrot.slane %v11652_v41, 4 }
 0x17f   :  { %v9301_v57 = vpop.eup %9300  ;;  %v4398_v61 = vrot.slane %v9299_v4, 7  ;;  %9314 = vpow2.f32 %v4880_v14  ;;  %v5342_v53 = vrot.slane %v11652_v41, 5  ;;  %v5343_v36 = vrot.slane %v11652_v41, 6 }
 0x180   :  { %v9303_v60 = vpop.eup %9302  ;;  %v4400_v20 = vrot.slane %v9301_v57, 6  ;;  %9316 = vpow2.f32 %v4882_v30  ;;  %v5344_v17 = vrot.slane %v11652_v41, 7  ;;  %v14693_v63 = vrot.slane %v11652_v41, 1  ;;  %v9734_v57 = vld [vmem:[%s14657_s1 + $0x3a] sm:$0x1] }
 0x181   :  { %v9305_v48 = vpop.eup %9304  ;;  %v4399_v31 = vsel %vm52_vm0, %v4398_v61, %v11707_v16  ;;  %v4402_v51 = vrot.slane %v9303_v60, 5  ;;  %9318 = vpow2.f32 %v4884_v55  ;;  %v9732_v16 = vld [vmem:[%s14657_s1 + $0x1a] sm:$0x1]  ;;  %v5371_v61 = vsub.f32 %v9734_v57, %v5340_v23  ;;  %v9735_v60 = vld [vmem:[%s14657_s1 + $0x4a] sm:$0x1] }
 0x182   :  { %v9307_v27 = vpop.eup %9306  ;;  %v4401_v8 = vsel %vm55_vm1, %v4400_v20, %v4399_v31  ;;  %v4404_v18 = vrot.slane %v9305_v48, 4  ;;  %9320 = vpow2.f32 %v4886_v7  ;;  %v5369_v14 = vsub.f32 %v9732_v16, %v14693_v63  ;;  %v9733_v7 = vld [vmem:[%s14657_s1 + $0x2a] sm:$0x1]  ;;  %v9736_v48 = vld [vmem:[%s14657_s1 + $0x5a] sm:$0x1] }
 0x183   :  { %v9309_v56 = vpop.eup %9308  ;;  %v4403_v26 = vsel %vm58_vm2, %v4402_v51, %v4401_v8  ;;  %v4406_v33 = vrot.slane %v9307_v27, 3  ;;  %9322 = vpow2.f32 %v4888_v9  ;;  %v5370_v4 = vsub.f32 %v9733_v7, %v5339_v19  ;;  %v9737_v31 = vld [vmem:[%s14657_s1 + $0x6a] sm:$0x1]  ;;  %v9738_v23 = vld [vmem:[%s14657_s1 + $0x7a] sm:$0x1] }
 0x184   :  { %v9311_v59 = vpop.eup %9310  ;;  %v4405_v30 = vsel %vm61_vm3, %v4404_v18, %v4403_v26  ;;  %v4408_v55 = vrot.slane %v9309_v56, 2  ;;  %9324 = vpow2.f32 %v4890_v5  ;;  %v5372_v20 = vsub.f32 %v9735_v60, %v5341_v35  ;;  %v9740_v57 = vld [vmem:[%s14657_s1 + $0x2b] sm:$0x1] }
 0x185   :  { %v4407_v2 = vsel %vm64_vm4, %v4406_v33, %v4405_v30  ;;  %v4410_v9 = vrot.slane %v9311_v59, 1  ;;  %v5373_v19 = vsub.f32 %v9736_v48, %v5342_v53  ;;  %v5374_v51 = vsub.f32 %v9737_v31, %v5343_v36 }
 0x186   :  { %v4409_v5 = vsel %vm67_vm5, %v4408_v55, %v4407_v2  ;;  %v5375_v27 = vsub.f32 %v9738_v23, %v5344_v17  ;;  %v5386_v35 = vmul.f32 1.442695, %v5369_v14  ;;  %v5388_v18 = vmul.f32 1.442695, %v5370_v4  ;;  %v9739_v4 = vld [vmem:[%s14657_s1 + $0x1b] sm:$0x1] }
 0x187   :  { %v4411_v8 = vsel %vm70_vm6, %v4410_v9, %v4409_v5  ;;  %v5390_v56 = vmul.f32 1.442695, %v5371_v61  ;;  %v5392_v33 = vmul.f32 1.442695, %v5372_v20  ;;  %v5394_v16 = vmul.f32 1.442695, %v5373_v19 }
 0x188   :  { %v4417_v26 = vsel %vm88_vm7, %v4411_v8, 0.0  ;;  %v5863_v53 = vrot.slane %v11640_v58, 2  ;;  %9326 = vpow2.f32 %v5386_v35  ;;  %v5396_v63 = vmul.f32 1.442695, %v5374_v51  ;;  %v9741_v5 = vld [vmem:[%s14657_s1 + $0x3b] sm:$0x1] }
 0x189   :  { %4418 = vadd.xlane.f32.xlu0 %v4417_v26  ;;  %v5398_v36 = vmul.f32 1.442695, %v5375_v27  ;;  %v5864_v59 = vrot.slane %v11640_v58, 3  ;;  %9328 = vpow2.f32 %v5388_v18  ;;  %v5865_v17 = vrot.slane %v11640_v58, 4  ;;  %v9742_v19 = vld [vmem:[%s14657_s1 + $0x4b] sm:$0x1] }
 0x18a   :  { %v5866_v30 = vrot.slane %v11640_v58, 5  ;;  %v5867_v14 = vrot.slane %v11640_v58, 6  ;;  %9330 = vpow2.f32 %v5390_v56  ;;  %v5868_v7 = vrot.slane %v11640_v58, 7  ;;  %v9743_v27 = vld [vmem:[%s14657_s1 + $0x5b] sm:$0x1] }
 0x18b   :  { %v9313_v55 = vpop.eup %9312  ;;  %v14694_v2 = vrot.slane %v11640_v58, 1  ;;  %v5894_v61 = vsub.f32 %v9740_v57, %v5863_v53  ;;  %9332 = vpow2.f32 %v5392_v33  ;;  %v5895_v48 = vsub.f32 %v9741_v5, %v5864_v59  ;;  %v9744_v35 = vld [vmem:[%s14657_s1 + $0x6b] sm:$0x1] }
 0x18c   :  { %v9315_v60 = vpop.eup %9314  ;;  %v4922_v20 = vrot.slane %v9313_v55, 7  ;;  %v5896_v31 = vsub.f32 %v9742_v19, %v5865_v17  ;;  %9334 = vpow2.f32 %v5394_v16  ;;  %v5897_v8 = vsub.f32 %v9743_v27, %v5866_v30  ;;  %v9745_v16 = vld [vmem:[%s14657_s1 + $0x7b] sm:$0x1] }
 0x18d   :  { %v5893_v9 = vsub.f32 %v9739_v4, %v14694_v2  ;;  %v9317_v51 = vpop.eup %9316  ;;  %v4924_v23 = vrot.slane %v9315_v60, 6  ;;  %v5898_v18 = vsub.f32 %v9744_v35, %v5867_v14  ;;  %9336 = vpow2.f32 %v5396_v63 }
 0x18e   :  { %v9319_v56 = vpop.eup %9318  ;;  %v4923_v26 = vsel %vm52_vm0, %v4922_v20, %v11676_v39  ;;  %v4926_v33 = vrot.slane %v9317_v51, 5  ;;  %v5899_v53 = vsub.f32 %v9745_v16, %v5868_v7  ;;  %9338 = vpow2.f32 %v5398_v36 }
 0x18f   :  { %v9321_v59 = vpop.eup %9320  ;;  %v4925_v17 = vsel %vm55_vm1, %v4924_v23, %v4923_v26  ;;  %v4928_v30 = vrot.slane %v9319_v56, 4  ;;  %v5910_v55 = vmul.f32 1.442695, %v5893_v9  ;;  %v5912_v57 = vmul.f32 1.442695, %v5894_v61 }
 0x190   :  { %v9323_v4 = vpop.eup %9322  ;;  %v4927_v14 = vsel %vm58_vm2, %v4926_v33, %v4925_v17  ;;  %v4930_v2 = vrot.slane %v9321_v59, 3  ;;  %v5914_v60 = vmul.f32 1.442695, %v5895_v48  ;;  %v5916_v5 = vmul.f32 1.442695, %v5896_v31 }
 0x191   :  { %v9325_v39 = vpop.eup %9324  ;;  %v4929_v63 = vsel %vm61_vm3, %v4928_v30, %v4927_v14  ;;  %v4932_v20 = vrot.slane %v9323_v4, 2  ;;  %9340 = vpow2.f32 %v5910_v55  ;;  %v5918_v51 = vmul.f32 1.442695, %v5897_v8  ;;  %v9746_v33 = vld [vmem:[%s14657_s1 + $0x9a] sm:$0x1] }
 0x192   :  { %v4931_v7 = vsel %vm64_vm4, %v4930_v2, %v4929_v63  ;;  %v4934_v19 = vrot.slane %v9325_v39, 1  ;;  %9342 = vpow2.f32 %v5912_v57  ;;  %v5920_v9 = vmul.f32 1.442695, %v5898_v18  ;;  %v9747_v30 = vld [vmem:[%s14657_s1 + $0xaa] sm:$0x1] }
 0x193   :  { %v4933_v36 = vsel %vm67_vm5, %v4932_v20, %v4931_v7  ;;  %9344 = vpow2.f32 %v5914_v60  ;;  %v5922_v23 = vmul.f32 1.442695, %v5899_v53  ;;  %v5346_v61 = vrot.slane %v11705_v47, 2  ;;  %v9748_v4 = vld [vmem:[%s14657_s1 + $0xba] sm:$0x1] }
 0x194   :  { %v4935_v27 = vsel %vm70_vm6, %v4934_v19, %v4933_v36  ;;  %9346 = vpow2.f32 %v5916_v5  ;;  %v5347_v48 = vrot.slane %v11705_v47, 3  ;;  %v5348_v31 = vrot.slane %v11705_v47, 4  ;;  %v9749_v60 = vld [vmem:[%s14657_s1 + $0xca] sm:$0x1]  ;;  %v9750_v63 = vld [vmem:[%s14657_s1 + $0xda] sm:$0x1] }
 0x195   :  { %v4941_v35 = vsel %vm88_vm7, %v4935_v27, 0.0  ;;  %9348 = vpow2.f32 %v5918_v51  ;;  %v5349_v56 = vrot.slane %v11705_v47, 5  ;;  %v9327_v8 = vpop.eup %9326  ;;  %v5350_v18 = vrot.slane %v11705_v47, 6  ;;  %v9751_v5 = vld [vmem:[%s14657_s1 + $0xea] sm:$0x1] }
 0x196   :  { %4942 = vadd.xlane.f32.xlu1 %v4941_v35  ;;  %9350 = vpow2.f32 %v5920_v9  ;;  %v5351_v26 = vrot.slane %v11705_v47, 7  ;;  %v14695_v16 = vrot.slane %v11705_v47, 1  ;;  %v9329_v59 = vpop.eup %9328  ;;  %v5432_v17 = vrot.slane %v9327_v8, 7  ;;  %v9752_v9 = vld [vmem:[%s14657_s1 + $0xfa] sm:$0x1] }
 0x197   :  { %9352 = vpow2.f32 %v5922_v23  ;;  %v5378_v55 = vsub.f32 %v9747_v30, %v5346_v61  ;;  %v5379_v14 = vsub.f32 %v9748_v4, %v5347_v48  ;;  %v9331_v2 = vpop.eup %9330  ;;  %v5434_v57 = vrot.slane %v9329_v59, 6 }
 0x198   :  { %v5377_v53 = vsub.f32 %v9746_v33, %v14695_v16  ;;  %v5380_v39 = vsub.f32 %v9749_v60, %v5348_v31  ;;  %v5381_v20 = vsub.f32 %v9750_v63, %v5349_v56  ;;  %v5382_v7 = vsub.f32 %v9751_v5, %v5350_v18  ;;  %v9333_v19 = vpop.eup %9332 }
 0x199   :  { %v5433_v51 = vsel %vm52_vm0, %v5432_v17, %v11756_v11  ;;  %v5436_v36 = vrot.slane %v9331_v2, 5  ;;  %v5383_v23 = vsub.f32 %v9752_v9, %v5351_v26  ;;  %v9335_v61 = vpop.eup %9334  ;;  %v5438_v35 = vrot.slane %v9333_v19, 4 }
 0x19a   :  { %v5402_v27 = vmul.f32 1.442695, %v5377_v53  ;;  %v5435_v48 = vsel %vm55_vm1, %v5434_v57, %v5433_v51  ;;  %v5404_v31 = vmul.f32 1.442695, %v5378_v55  ;;  %v5406_v56 = vmul.f32 1.442695, %v5379_v14  ;;  %v9337_v8 = vpop.eup %9336 }
 0x19b   :  { %v5437_v18 = vsel %vm58_vm2, %v5436_v36, %v5435_v48  ;;  %v5440_v33 = vrot.slane %v9335_v61, 3  ;;  %v5408_v16 = vmul.f32 1.442695, %v5380_v39  ;;  %v9339_v11 = vpop.eup %9338  ;;  %v5442_v17 = vrot.slane %v9337_v8, 2 }
 0x19c   :  { %9354 = vpow2.f32 %v5402_v27  ;;  %v5439_v59 = vsel %vm61_vm3, %v5438_v35, %v5437_v18  ;;  %v5410_v30 = vmul.f32 1.442695, %v5381_v20  ;;  %v5444_v53 = vrot.slane %v9339_v11, 1 }
 0x19d   :  { %9356 = vpow2.f32 %v5404_v31  ;;  %v5441_v26 = vsel %vm64_vm4, %v5440_v33, %v5439_v59  ;;  %v5412_v4 = vmul.f32 1.442695, %v5382_v7  ;;  %v5414_v14 = vmul.f32 1.442695, %v5383_v23  ;;  %v9754_v59 = vld [vmem:[%s14657_s1 + $0xab] sm:$0x1] }
 0x19e   :  { %9358 = vpow2.f32 %v5406_v56  ;;  %v9341_v2 = vpop.eup %9340  ;;  %v5443_v55 = vsel %vm67_vm5, %v5442_v17, %v5441_v26  ;;  %v5870_v57 = vrot.slane %v11669_v24, 2  ;;  %v5871_v5 = vrot.slane %v11669_v24, 3 }
 0x19f   :  { %9360 = vpow2.f32 %v5408_v16  ;;  %v9343_v60 = vpop.eup %9342  ;;  %v5445_v39 = vsel %vm70_vm6, %v5444_v53, %v5443_v55  ;;  %v5956_v63 = vrot.slane %v9341_v2, 7  ;;  %v5872_v7 = vrot.slane %v11669_v24, 4  ;;  %v9756_v55 = vld [vmem:[%s14657_s1 + $0xcb] sm:$0x1] }
 0x1a0   :  { %9362 = vpow2.f32 %v5410_v30  ;;  %v9345_v20 = vpop.eup %9344  ;;  %v5462_v19 = vsel %vm88_vm7, %v5445_v39, 0.0  ;;  %v5958_v51 = vrot.slane %v9343_v60, 6  ;;  %v5873_v27 = vrot.slane %v11669_v24, 5 }
 0x1a1   :  { %9364 = vpow2.f32 %v5412_v4  ;;  %v9347_v36 = vpop.eup %9346  ;;  %5463 = vadd.xlane.f32.xlu0 %v5462_v19  ;;  %v5957_v9 = vsel %vm52_vm0, %v5956_v63, %v11723_v28  ;;  %v5960_v23 = vrot.slane %v9345_v20, 5  ;;  %v5874_v31 = vrot.slane %v11669_v24, 6  ;;  %v9753_v28 = vld [vmem:[%s14657_s1 + $0x9b] sm:$0x1]  ;;  %v9758_v20 = vld [vmem:[%s14657_s1 + $0xeb] sm:$0x1] }
 0x1a2   :  { %9366 = vpow2.f32 %v5414_v14  ;;  %v9349_v61 = vpop.eup %9348  ;;  %v5959_v48 = vsel %vm55_vm1, %v5958_v51, %v5957_v9  ;;  %v5962_v35 = vrot.slane %v9347_v36, 4  ;;  %v5875_v56 = vrot.slane %v11669_v24, 7  ;;  %v9755_v4 = vld [vmem:[%s14657_s1 + $0xbb] sm:$0x1] }
 0x1a3   :  { %v9351_v8 = vpop.eup %9350  ;;  %v5961_v18 = vsel %vm58_vm2, %v5960_v23, %v5959_v48  ;;  %v5964_v33 = vrot.slane %v9349_v61, 3  ;;  %v14696_v16 = vrot.slane %v11669_v24, 1  ;;  %v5902_v17 = vsub.f32 %v9754_v59, %v5870_v57  ;;  %v9757_v57 = vld [vmem:[%s14657_s1 + $0xdb] sm:$0x1] }
 0x1a4   :  { %v9353_v30 = vpop.eup %9352  ;;  %v5963_v26 = vsel %vm61_vm3, %v5962_v35, %v5961_v18  ;;  %v5966_v53 = vrot.slane %v9351_v8, 2  ;;  %v5903_v2 = vsub.f32 %v9755_v4, %v5871_v5  ;;  %v5904_v14 = vsub.f32 %v9756_v55, %v5872_v7  ;;  %v9759_v51 = vld [vmem:[%s14657_s1 + $0xfb] sm:$0x1] }
 0x1a5   :  { %v5901_v11 = vsub.f32 %v9753_v28, %v14696_v16  ;;  %v5965_v60 = vsel %vm64_vm4, %v5964_v33, %v5963_v26  ;;  %v5968_v39 = vrot.slane %v9353_v30, 1  ;;  %v5905_v63 = vsub.f32 %v9757_v57, %v5873_v27 }
 0x1a6   :  { %v5906_v19 = vsub.f32 %v9758_v20, %v5874_v31  ;;  %v5967_v5 = vsel %vm67_vm5, %v5966_v53, %v5965_v60  ;;  %v5907_v7 = vsub.f32 %v9759_v51, %v5875_v56  ;;  %v5928_v9 = vmul.f32 1.442695, %v5902_v17 }
 0x1a7   :  { %v5926_v36 = vmul.f32 1.442695, %v5901_v11  ;;  %v5969_v23 = vsel %vm70_vm6, %v5968_v39, %v5967_v5  ;;  %v5930_v61 = vmul.f32 1.442695, %v5903_v2  ;;  %v5932_v48 = vmul.f32 1.442695, %v5904_v14 }
 0x1a8   :  { %v5934_v35 = vmul.f32 1.442695, %v5905_v63  ;;  %v5986_v8 = vsel %vm88_vm7, %v5969_v23, 0.0  ;;  %v5936_v18 = vmul.f32 1.442695, %v5906_v19  ;;  %v6387_v16 = vrot.slane %v11763_v54, 2 }
 0x1a9   :  { %v9355_v27 = vpop.eup %9354  ;;  %9368 = vpow2.f32 %v5926_v36  ;;  %v5938_v31 = vmul.f32 1.442695, %v5907_v7  ;;  %5987 = vadd.xlane.f32.xlu1 %v5986_v8  ;;  %v6388_v56 = vrot.slane %v11763_v54, 3  ;;  %v6389_v17 = vrot.slane %v11763_v54, 4  ;;  %v9763_v8 = vld [vmem:[%s14657_s1 + $0x4c] sm:$0x1] }
 0x1aa   :  { %v9357_v33 = vpop.eup %9356  ;;  %v5446_v28 = vrot.slane %v9355_v27, 7  ;;  %9370 = vpow2.f32 %v5928_v9  ;;  %v6390_v30 = vrot.slane %v11763_v54, 5  ;;  %v6391_v2 = vrot.slane %v11763_v54, 6  ;;  %v9761_v9 = vld [vmem:[%s14657_s1 + $0x2c] sm:$0x1] }
 0x1ab   :  { %v9359_v11 = vpop.eup %9358  ;;  %v5448_v59 = vrot.slane %v9357_v33, 6  ;;  %9372 = vpow2.f32 %v5930_v61  ;;  %v6392_v39 = vrot.slane %v11763_v54, 7  ;;  %v14697_v19 = vrot.slane %v11763_v54, 1  ;;  %v9764_v33 = vld [vmem:[%s14657_s1 + $0x5c] sm:$0x1] }
 0x1ac   :  { %v9361_v26 = vpop.eup %9360  ;;  %v5447_v53 = vsel %vm52_vm0, %v5446_v28, %v11807_v25  ;;  %v5450_v4 = vrot.slane %v9359_v11, 5  ;;  %9374 = vpow2.f32 %v5932_v48  ;;  %v9760_v25 = vld [vmem:[%s14657_s1 + $0x1c] sm:$0x1]  ;;  %v6418_v23 = vsub.f32 %v9761_v9, %v6387_v16  ;;  %v9765_v16 = vld [vmem:[%s14657_s1 + $0x6c] sm:$0x1] }
 0x1ad   :  { %v9363_v55 = vpop.eup %9362  ;;  %v5449_v14 = vsel %vm55_vm1, %v5448_v59, %v5447_v53  ;;  %v5452_v60 = vrot.slane %v9361_v26, 4  ;;  %9376 = vpow2.f32 %v5934_v35  ;;  %v6417_v5 = vsub.f32 %v9760_v25, %v14697_v19  ;;  %v9762_v35 = vld [vmem:[%s14657_s1 + $0x3c] sm:$0x1]  ;;  %v9768_v9 = vld [vmem:[%s14657_s1 + $0x2d] sm:$0x1] }
 0x1ae   :  { %v9365_v57 = vpop.eup %9364  ;;  %v5451_v63 = vsel %vm58_vm2, %v5450_v4, %v5449_v14  ;;  %v5454_v20 = vrot.slane %v9363_v55, 3  ;;  %9378 = vpow2.f32 %v5936_v18  ;;  %v6419_v27 = vsub.f32 %v9762_v35, %v6388_v56  ;;  %v9766_v56 = vld [vmem:[%s14657_s1 + $0x7c] sm:$0x1]  ;;  %v9769_v35 = vld [vmem:[%s14657_s1 + $0x3d] sm:$0x1] }
 0x1af   :  { %v9367_v51 = vpop.eup %9366  ;;  %v5453_v7 = vsel %vm61_vm3, %v5452_v60, %v5451_v63  ;;  %v5456_v36 = vrot.slane %v9365_v57, 2  ;;  %9380 = vpow2.f32 %v5938_v31  ;;  %v6420_v18 = vsub.f32 %v9763_v8, %v6389_v17  ;;  %v9770_v8 = vld [vmem:[%s14657_s1 + $0x4d] sm:$0x1] }
 0x1b0   :  { %v5455_v61 = vsel %vm64_vm4, %v5454_v20, %v5453_v7  ;;  %v5458_v48 = vrot.slane %v9367_v51, 1  ;;  %v6421_v28 = vsub.f32 %v9764_v33, %v6390_v30  ;;  %v6422_v11 = vsub.f32 %v9765_v16, %v6391_v2  ;;  %v9767_v51 = vld [vmem:[%s14657_s1 + $0x1d] sm:$0x1] }
 0x1b1   :  { %v5457_v31 = vsel %vm67_vm5, %v5456_v36, %v5455_v61  ;;  %v6423_v59 = vsub.f32 %v9766_v56, %v6392_v39  ;;  %v6434_v17 = vmul.f32 1.442695, %v6417_v5  ;;  %v6436_v53 = vmul.f32 1.442695, %v6418_v23 }
 0x1b2   :  { %v5459_v26 = vsel %vm70_vm6, %v5458_v48, %v5457_v31  ;;  %v6438_v4 = vmul.f32 1.442695, %v6419_v27  ;;  %v6440_v14 = vmul.f32 1.442695, %v6420_v18  ;;  %v6442_v60 = vmul.f32 1.442695, %v6421_v28 }
 0x1b3   :  { %v5465_v55 = vsel %vm88_vm7, %v5459_v26, 0.0  ;;  %v6911_v30 = vrot.slane %v11752_v52, 2  ;;  %9382 = vpow2.f32 %v6434_v17  ;;  %v6444_v57 = vmul.f32 1.442695, %v6422_v11  ;;  %v9771_v28 = vld [vmem:[%s14657_s1 + $0x5d] sm:$0x1] }
 0x1b4   :  { %5466 = vadd.xlane.f32.xlu0 %v5465_v55  ;;  %v6446_v2 = vmul.f32 1.442695, %v6423_v59  ;;  %v6912_v63 = vrot.slane %v11752_v52, 3  ;;  %9384 = vpow2.f32 %v6436_v53  ;;  %v6913_v39 = vrot.slane %v11752_v52, 4  ;;  %v9772_v11 = vld [vmem:[%s14657_s1 + $0x6d] sm:$0x1] }
 0x1b5   :  { %v6914_v20 = vrot.slane %v11752_v52, 5  ;;  %v6915_v25 = vrot.slane %v11752_v52, 6  ;;  %9386 = vpow2.f32 %v6438_v4  ;;  %v6916_v5 = vrot.slane %v11752_v52, 7  ;;  %v9773_v53 = vld [vmem:[%s14657_s1 + $0x7d] sm:$0x1] }
 0x1b6   :  { %v9369_v19 = vpop.eup %9368  ;;  %v14698_v7 = vrot.slane %v11752_v52, 1  ;;  %v6942_v23 = vsub.f32 %v9768_v9, %v6911_v30  ;;  %9388 = vpow2.f32 %v6440_v14  ;;  %v6943_v27 = vsub.f32 %v9769_v35, %v6912_v63 }
 0x1b7   :  { %v9371_v61 = vpop.eup %9370  ;;  %v5970_v48 = vrot.slane %v9369_v19, 7  ;;  %v6944_v18 = vsub.f32 %v9770_v8, %v6913_v39  ;;  %9390 = vpow2.f32 %v6442_v60  ;;  %v6945_v16 = vsub.f32 %v9771_v28, %v6914_v20 }
 0x1b8   :  { %v6941_v36 = vsub.f32 %v9767_v51, %v14698_v7  ;;  %v9373_v31 = vpop.eup %9372  ;;  %v5972_v33 = vrot.slane %v9371_v61, 6  ;;  %v6946_v56 = vsub.f32 %v9772_v11, %v6915_v25  ;;  %9392 = vpow2.f32 %v6444_v57  ;;  %v9774_v11 = vld [vmem:[%s14657_s1 + $0x9c] sm:$0x1] }
 0x1b9   :  { %v9375_v59 = vpop.eup %9374  ;;  %v5971_v26 = vsel %vm52_vm0, %v5970_v48, %v11765_v38  ;;  %v5974_v17 = vrot.slane %v9373_v31, 5  ;;  %v6947_v4 = vsub.f32 %v9773_v53, %v6916_v5  ;;  %9394 = vpow2.f32 %v6446_v2  ;;  %v9775_v53 = vld [vmem:[%s14657_s1 + $0xac] sm:$0x1] }
 0x1ba   :  { %v9377_v55 = vpop.eup %9376  ;;  %v5973_v14 = vsel %vm55_vm1, %v5972_v33, %v5971_v26  ;;  %v5976_v60 = vrot.slane %v9375_v59, 4  ;;  %v6958_v30 = vmul.f32 1.442695, %v6941_v36  ;;  %v6960_v25 = vmul.f32 1.442695, %v6942_v23 }
 0x1bb   :  { %v9379_v63 = vpop.eup %9378  ;;  %v5975_v39 = vsel %vm58_vm2, %v5974_v17, %v5973_v14  ;;  %v5978_v20 = vrot.slane %v9377_v55, 3  ;;  %v6962_v19 = vmul.f32 1.442695, %v6943_v27  ;;  %v6964_v7 = vmul.f32 1.442695, %v6944_v18 }
 0x1bc   :  { %v9381_v38 = vpop.eup %9380  ;;  %v5977_v57 = vsel %vm61_vm3, %v5976_v60, %v5975_v39  ;;  %v5980_v51 = vrot.slane %v9379_v63, 2  ;;  %9396 = vpow2.f32 %v6958_v30  ;;  %v6966_v61 = vmul.f32 1.442695, %v6945_v16  ;;  %v9776_v55 = vld [vmem:[%s14657_s1 + $0xbc] sm:$0x1] }
 0x1bd   :  { %v5979_v5 = vsel %vm64_vm4, %v5978_v20, %v5977_v57  ;;  %v5982_v9 = vrot.slane %v9381_v38, 1  ;;  %9398 = vpow2.f32 %v6960_v25  ;;  %v6968_v36 = vmul.f32 1.442695, %v6946_v56  ;;  %v9777_v63 = vld [vmem:[%s14657_s1 + $0xcc] sm:$0x1] }
 0x1be   :  { %v5981_v2 = vsel %vm67_vm5, %v5980_v51, %v5979_v5  ;;  %9400 = vpow2.f32 %v6962_v19  ;;  %v6970_v48 = vmul.f32 1.442695, %v6947_v4  ;;  %v6394_v23 = vrot.slane %v11853_v10, 2  ;;  %v9778_v20 = vld [vmem:[%s14657_s1 + $0xdc] sm:$0x1] }
 0x1bf   :  { %v5983_v35 = vsel %vm70_vm6, %v5982_v9, %v5981_v2  ;;  %9402 = vpow2.f32 %v6964_v7  ;;  %v6395_v27 = vrot.slane %v11853_v10, 3  ;;  %v6396_v18 = vrot.slane %v11853_v10, 4  ;;  %v9779_v19 = vld [vmem:[%s14657_s1 + $0xec] sm:$0x1]  ;;  %v9780_v5 = vld [vmem:[%s14657_s1 + $0xfc] sm:$0x1] }
 0x1c0   :  { %v5989_v8 = vsel %vm88_vm7, %v5983_v35, 0.0  ;;  %9404 = vpow2.f32 %v6966_v61  ;;  %v6397_v31 = vrot.slane %v11853_v10, 5  ;;  %v9383_v33 = vpop.eup %9382  ;;  %v6398_v28 = vrot.slane %v11853_v10, 6 }
 0x1c1   :  { %5990 = vadd.xlane.f32.xlu1 %v5989_v8  ;;  %9406 = vpow2.f32 %v6968_v36  ;;  %v6399_v16 = vrot.slane %v11853_v10, 7  ;;  %v14699_v56 = vrot.slane %v11853_v10, 1  ;;  %v9385_v26 = vpop.eup %9384  ;;  %v6480_v17 = vrot.slane %v9383_v33, 7 }
 0x1c2   :  { %9408 = vpow2.f32 %v6970_v48  ;;  %v6426_v4 = vsub.f32 %v9775_v53, %v6394_v23  ;;  %v6427_v14 = vsub.f32 %v9776_v55, %v6395_v27  ;;  %v9387_v60 = vpop.eup %9386  ;;  %v6482_v30 = vrot.slane %v9385_v26, 6 }
 0x1c3   :  { %v6425_v59 = vsub.f32 %v9774_v11, %v14699_v56  ;;  %v6428_v39 = vsub.f32 %v9777_v63, %v6396_v18  ;;  %v6429_v25 = vsub.f32 %v9778_v20, %v6397_v31  ;;  %v6430_v38 = vsub.f32 %v9779_v19, %v6398_v28  ;;  %v9389_v57 = vpop.eup %9388 }
 0x1c4   :  { %v6481_v51 = vsel %vm52_vm0, %v6480_v17, %v11848_v43  ;;  %v6484_v7 = vrot.slane %v9387_v60, 5  ;;  %v6431_v9 = vsub.f32 %v9780_v5, %v6399_v16  ;;  %v9391_v2 = vpop.eup %9390  ;;  %v6486_v48 = vrot.slane %v9389_v57, 4 }
 0x1c5   :  { %v6450_v61 = vmul.f32 1.442695, %v6425_v59  ;;  %v6483_v36 = vsel %vm55_vm1, %v6482_v30, %v6481_v51  ;;  %v6452_v35 = vmul.f32 1.442695, %v6426_v4  ;;  %v6454_v23 = vmul.f32 1.442695, %v6427_v14  ;;  %v9393_v27 = vpop.eup %9392 }
 0x1c6   :  { %v6485_v8 = vsel %vm58_vm2, %v6484_v7, %v6483_v36  ;;  %v6488_v18 = vrot.slane %v9391_v2, 3  ;;  %v6456_v31 = vmul.f32 1.442695, %v6428_v39  ;;  %v9395_v43 = vpop.eup %9394  ;;  %v6490_v28 = vrot.slane %v9393_v27, 2 }
 0x1c7   :  { %9410 = vpow2.f32 %v6450_v61  ;;  %v6487_v33 = vsel %vm61_vm3, %v6486_v48, %v6485_v8  ;;  %v6458_v11 = vmul.f32 1.442695, %v6429_v25  ;;  %v6492_v56 = vrot.slane %v9395_v43, 1  ;;  %v9782_v8 = vld [vmem:[%s14657_s1 + $0xad] sm:$0x1] }
 0x1c8   :  { %9412 = vpow2.f32 %v6452_v35  ;;  %v6489_v16 = vsel %vm64_vm4, %v6488_v18, %v6487_v33  ;;  %v6460_v59 = vmul.f32 1.442695, %v6430_v38  ;;  %v6462_v53 = vmul.f32 1.442695, %v6431_v9 }
 0x1c9   :  { %9414 = vpow2.f32 %v6454_v23  ;;  %v9397_v26 = vpop.eup %9396  ;;  %v6491_v17 = vsel %vm67_vm5, %v6490_v28, %v6489_v16  ;;  %v6918_v4 = vrot.slane %v11851_v13, 2  ;;  %v6919_v30 = vrot.slane %v11851_v13, 3  ;;  %v9783_v28 = vld [vmem:[%s14657_s1 + $0xbd] sm:$0x1]  ;;  %v9784_v16 = vld [vmem:[%s14657_s1 + $0xcd] sm:$0x1] }
 0x1ca   :  { %9416 = vpow2.f32 %v6456_v31  ;;  %v9399_v55 = vpop.eup %9398  ;;  %v6493_v14 = vsel %vm70_vm6, %v6492_v56, %v6491_v17  ;;  %v7004_v60 = vrot.slane %v9397_v26, 7  ;;  %v6920_v25 = vrot.slane %v11851_v13, 4  ;;  %v9785_v17 = vld [vmem:[%s14657_s1 + $0xdd] sm:$0x1] }
 0x1cb   :  { %9418 = vpow2.f32 %v6458_v11  ;;  %v9401_v63 = vpop.eup %9400  ;;  %v6510_v39 = vsel %vm88_vm7, %v6493_v14, 0.0  ;;  %v7006_v20 = vrot.slane %v9399_v55, 6  ;;  %v6921_v51 = vrot.slane %v11851_v13, 5 }
 0x1cc   :  { %9420 = vpow2.f32 %v6460_v59  ;;  %v9403_v19 = vpop.eup %9402  ;;  %6511 = vadd.xlane.f32.xlu0 %v6510_v39  ;;  %v7005_v38 = vsel %vm52_vm0, %v7004_v60, %v11842_v1  ;;  %v7008_v57 = vrot.slane %v9401_v63, 5  ;;  %v6922_v61 = vrot.slane %v11851_v13, 6  ;;  %v9781_v1 = vld [vmem:[%s14657_s1 + $0x9d] sm:$0x1] }
 0x1cd   :  { %9422 = vpow2.f32 %v6462_v53  ;;  %v9405_v7 = vpop.eup %9404  ;;  %v7007_v5 = vsel %vm55_vm1, %v7006_v20, %v7005_v38  ;;  %v7010_v9 = vrot.slane %v9403_v19, 4  ;;  %v6923_v2 = vrot.slane %v11851_v13, 7  ;;  %v9787_v60 = vld [vmem:[%s14657_s1 + $0xfd] sm:$0x1] }
 0x1ce   :  { %v9407_v36 = vpop.eup %9406  ;;  %v7009_v48 = vsel %vm58_vm2, %v7008_v57, %v7007_v5  ;;  %v7012_v35 = vrot.slane %v9405_v7, 3  ;;  %v14700_v23 = vrot.slane %v11851_v13, 1  ;;  %v6950_v18 = vsub.f32 %v9782_v8, %v6918_v4  ;;  %v9786_v4 = vld [vmem:[%s14657_s1 + $0xed] sm:$0x1] }
 0x1cf   :  { %v9409_v31 = vpop.eup %9408  ;;  %v7011_v43 = vsel %vm61_vm3, %v7010_v9, %v7009_v48  ;;  %v7014_v33 = vrot.slane %v9407_v36, 2  ;;  %v6951_v11 = vsub.f32 %v9783_v28, %v6919_v30  ;;  %v6952_v56 = vsub.f32 %v9784_v16, %v6920_v25 }
 0x1d0   :  { %v6949_v27 = vsub.f32 %v9781_v1, %v14700_v23  ;;  %v7013_v59 = vsel %vm64_vm4, %v7012_v35, %v7011_v43  ;;  %v7016_v26 = vrot.slane %v9409_v31, 1  ;;  %v6953_v53 = vsub.f32 %v9785_v17, %v6921_v51 }
 0x1d1   :  { %v6954_v55 = vsub.f32 %v9786_v4, %v6922_v61  ;;  %v7015_v14 = vsel %vm67_vm5, %v7014_v33, %v7013_v59  ;;  %v6955_v30 = vsub.f32 %v9787_v60, %v6923_v2  ;;  %v6976_v39 = vmul.f32 1.442695, %v6950_v18 }
 0x1d2   :  { %v6974_v63 = vmul.f32 1.442695, %v6949_v27  ;;  %v7017_v20 = vsel %vm70_vm6, %v7016_v26, %v7015_v14  ;;  %v6978_v25 = vmul.f32 1.442695, %v6951_v11  ;;  %v6980_v19 = vmul.f32 1.442695, %v6952_v56 }
 0x1d3   :  { %v6982_v38 = vmul.f32 1.442695, %v6953_v53  ;;  %v7034_v51 = vsel %vm88_vm7, %v7017_v20, 0.0  ;;  %v6984_v7 = vmul.f32 1.442695, %v6954_v55  ;;  %v7435_v36 = vrot.slane %v11956_v34, 2 }
 0x1d4   :  { %v9411_v57 = vpop.eup %9410  ;;  %9424 = vpow2.f32 %v6974_v63  ;;  %v6986_v5 = vmul.f32 1.442695, %v6955_v30  ;;  %7035 = vadd.xlane.f32.xlu1 %v7034_v51  ;;  %v7436_v2 = vrot.slane %v11956_v34, 3  ;;  %v7437_v1 = vrot.slane %v11956_v34, 4  ;;  %v9789_v14 = vld [vmem:[%s14657_s1 + $0x2e] sm:$0x1] }
 0x1d5   :  { %v9413_v9 = vpop.eup %9412  ;;  %v6494_v61 = vrot.slane %v9411_v57, 7  ;;  %9426 = vpow2.f32 %v6976_v39  ;;  %v7438_v23 = vrot.slane %v11956_v34, 5  ;;  %v7439_v31 = vrot.slane %v11956_v34, 6  ;;  %v9790_v39 = vld [vmem:[%s14657_s1 + $0x3e] sm:$0x1] }
 0x1d6   :  { %v9415_v48 = vpop.eup %9414  ;;  %v6496_v35 = vrot.slane %v9413_v9, 6  ;;  %9428 = vpow2.f32 %v6978_v25  ;;  %v7440_v11 = vrot.slane %v11956_v34, 7  ;;  %v14701_v26 = vrot.slane %v11956_v34, 1  ;;  %v9791_v25 = vld [vmem:[%s14657_s1 + $0x4e] sm:$0x1] }
 0x1d7   :  { %v9417_v27 = vpop.eup %9416  ;;  %v6495_v8 = vsel %vm52_vm0, %v6494_v61, %v11999_v12  ;;  %v6498_v18 = vrot.slane %v9415_v48, 5  ;;  %9430 = vpow2.f32 %v6980_v19  ;;  %v9788_v12 = vld [vmem:[%s14657_s1 + $0x1e] sm:$0x1]  ;;  %v7466_v60 = vsub.f32 %v9789_v14, %v7435_v36  ;;  %v9797_v14 = vld [vmem:[%s14657_s1 + $0x3f] sm:$0x1] }
 0x1d8   :  { %v9419_v43 = vpop.eup %9418  ;;  %v6497_v33 = vsel %vm55_vm1, %v6496_v35, %v6495_v8  ;;  %v6500_v28 = vrot.slane %v9417_v27, 4  ;;  %9432 = vpow2.f32 %v6982_v38  ;;  %v7465_v17 = vsub.f32 %v9788_v12, %v14701_v26  ;;  %v9792_v57 = vld [vmem:[%s14657_s1 + $0x5e] sm:$0x1] }
 0x1d9   :  { %v9421_v16 = vpop.eup %9420  ;;  %v6499_v56 = vsel %vm58_vm2, %v6498_v18, %v6497_v33  ;;  %v6502_v59 = vrot.slane %v9419_v43, 3  ;;  %9434 = vpow2.f32 %v6984_v7  ;;  %v7467_v20 = vsub.f32 %v9790_v39, %v7436_v2  ;;  %v9793_v7 = vld [vmem:[%s14657_s1 + $0x6e] sm:$0x1]  ;;  %v9794_v9 = vld [vmem:[%s14657_s1 + $0x7e] sm:$0x1]  ;;  %v12615_v39 = vpop.xlane.xlu0 %222 }
 0x1da   :  { %v9423_v53 = vpop.eup %9422  ;;  %v6501_v4 = vsel %vm61_vm3, %v6500_v28, %v6499_v56  ;;  %v6504_v55 = vrot.slane %v9421_v16, 2  ;;  %9436 = vpow2.f32 %v6986_v5  ;;  %v7468_v19 = vsub.f32 %v9791_v25, %v7437_v1 }
 0x1db   :  { %v6503_v30 = vsel %vm64_vm4, %v6502_v59, %v6501_v4  ;;  %v6506_v63 = vrot.slane %v9423_v53, 1  ;;  %v7469_v51 = vsub.f32 %v9792_v57, %v7438_v23  ;;  %v7470_v5 = vsub.f32 %v9793_v7, %v7439_v31  ;;  %v9795_v59 = vld [vmem:[%s14657_s1 + $0x1f] sm:$0x1]  ;;  %v9800_v57 = vld [vmem:[%s14657_s1 + $0x6f] sm:$0x1]  ;;  %v12623_v7 = vpop.xlane.xlu1 %747 }
 0x1dc   :  { %v6505_v38 = vsel %vm67_vm5, %v6504_v55, %v6503_v30  ;;  %v7471_v61 = vsub.f32 %v9794_v9, %v7440_v11  ;;  %v7482_v2 = vmul.f32 1.442695, %v7465_v17  ;;  %v7484_v48 = vmul.f32 1.442695, %v7466_v60  ;;  %v9796_v17 = vld [vmem:[%s14657_s1 + $0x2f] sm:$0x1] }
 0x1dd   :  { %v6507_v36 = vsel %vm70_vm6, %v6506_v63, %v6505_v38  ;;  %v7486_v35 = vmul.f32 1.442695, %v7467_v20  ;;  %v7488_v27 = vmul.f32 1.442695, %v7468_v19  ;;  %v7490_v8 = vmul.f32 1.442695, %v7469_v51 }
 0x1de   :  { %v6513_v1 = vsel %vm88_vm7, %v6507_v36, 0.0  ;;  %v7959_v23 = vrot.slane %v11946_v49, 2  ;;  %9438 = vpow2.f32 %v7482_v2  ;;  %v7492_v18 = vmul.f32 1.442695, %v7470_v5  ;;  %v9798_v30 = vld [vmem:[%s14657_s1 + $0x4f] sm:$0x1] }
 0x1df   :  { %6514 = vadd.xlane.f32.xlu0 %v6513_v1  ;;  %v7494_v31 = vmul.f32 1.442695, %v7471_v61  ;;  %v7960_v43 = vrot.slane %v11946_v49, 3  ;;  %9440 = vpow2.f32 %v7484_v48  ;;  %v7961_v33 = vrot.slane %v11946_v49, 4  ;;  %v9799_v19 = vld [vmem:[%s14657_s1 + $0x5f] sm:$0x1] }
 0x1e0   :  { %v7962_v28 = vrot.slane %v11946_v49, 5  ;;  %v7963_v11 = vrot.slane %v11946_v49, 6  ;;  %9442 = vpow2.f32 %v7486_v35  ;;  %v7964_v56 = vrot.slane %v11946_v49, 7  ;;  %v9801_v36 = vld [vmem:[%s14657_s1 + $0x7f] sm:$0x1] }
 0x1e1   :  { %v9425_v16 = vpop.eup %9424  ;;  %v14702_v12 = vrot.slane %v11946_v49, 1  ;;  %v7990_v53 = vsub.f32 %v9796_v17, %v7959_v23  ;;  %9444 = vpow2.f32 %v7488_v27  ;;  %v7991_v60 = vsub.f32 %v9797_v14, %v7960_v43  ;;  %v12634_v17 = vpop.xlane.xlu0 %225 }
 0x1e2   :  { %v9427_v4 = vpop.eup %9426  ;;  %v7018_v55 = vrot.slane %v9425_v16, 7  ;;  %v7992_v63 = vsub.f32 %v9798_v30, %v7961_v33  ;;  %9446 = vpow2.f32 %v7490_v8  ;;  %v7993_v38 = vsub.f32 %v9799_v19, %v7962_v28 }
 0x1e3   :  { %v7989_v26 = vsub.f32 %v9795_v59, %v14702_v12  ;;  %v9429_v20 = vpop.eup %9428  ;;  %v7020_v25 = vrot.slane %v9427_v4, 6  ;;  %v7994_v51 = vsub.f32 %v9800_v57, %v7963_v11  ;;  %9448 = vpow2.f32 %v7492_v18  ;;  %v9802_v57 = vld [vmem:[%s14657_s1 + $0x9e] sm:$0x1] }
 0x1e4   :  { %v9431_v5 = vpop.eup %9430  ;;  %v7019_v9 = vsel %vm52_vm0, %v7018_v55, %v11934_v44  ;;  %v7022_v61 = vrot.slane %v9429_v20, 5  ;;  %v7995_v2 = vsub.f32 %v9801_v36, %v7964_v56  ;;  %9450 = vpow2.f32 %v7494_v31  ;;  %v9803_v36 = vld [vmem:[%s14657_s1 + $0xae] sm:$0x1] }
 0x1e5   :  { %v9433_v48 = vpop.eup %9432  ;;  %v7021_v35 = vsel %vm55_vm1, %v7020_v25, %v7019_v9  ;;  %v7024_v1 = vrot.slane %v9431_v5, 4  ;;  %v8006_v27 = vmul.f32 1.442695, %v7989_v26  ;;  %v8008_v33 = vmul.f32 1.442695, %v7990_v53  ;;  %v12637_v53 = vpop.xlane.xlu1 %750 }
 0x1e6   :  { %v9435_v8 = vpop.eup %9434  ;;  %v7023_v23 = vsel %vm58_vm2, %v7022_v61, %v7021_v35  ;;  %v7026_v43 = vrot.slane %v9433_v48, 3  ;;  %v8010_v28 = vmul.f32 1.442695, %v7991_v60  ;;  %v8012_v16 = vmul.f32 1.442695, %v7992_v63 }
 0x1e7   :  { %v9437_v44 = vpop.eup %9436  ;;  %v7025_v18 = vsel %vm61_vm3, %v7024_v1, %v7023_v23  ;;  %v7028_v11 = vrot.slane %v9435_v8, 2  ;;  %9452 = vpow2.f32 %v8006_v27  ;;  %v8014_v12 = vmul.f32 1.442695, %v7993_v38  ;;  %v9804_v48 = vld [vmem:[%s14657_s1 + $0xbe] sm:$0x1] }
 0x1e8   :  { %v7027_v56 = vsel %vm64_vm4, %v7026_v43, %v7025_v18  ;;  %v7030_v59 = vrot.slane %v9437_v44, 1  ;;  %9454 = vpow2.f32 %v8008_v33  ;;  %v8016_v26 = vmul.f32 1.442695, %v7994_v51  ;;  %v9805_v8 = vld [vmem:[%s14657_s1 + $0xce] sm:$0x1]  ;;  %v12667_v18 = vpop.xlane.xlu0 %1271 }
 0x1e9   :  { %v7029_v31 = vsel %vm67_vm5, %v7028_v11, %v7027_v56  ;;  %9456 = vpow2.f32 %v8010_v28  ;;  %v8018_v4 = vmul.f32 1.442695, %v7995_v2  ;;  %v7442_v14 = vrot.slane %v12046_v21, 2  ;;  %v9806_v43 = vld [vmem:[%s14657_s1 + $0xde] sm:$0x1] }
 0x1ea   :  { %v7031_v55 = vsel %vm70_vm6, %v7030_v59, %v7029_v31  ;;  %9458 = vpow2.f32 %v8012_v16  ;;  %v7443_v60 = vrot.slane %v12046_v21, 3  ;;  %v7444_v63 = vrot.slane %v12046_v21, 4  ;;  %v9807_v28 = vld [vmem:[%s14657_s1 + $0xee] sm:$0x1]  ;;  %v9808_v59 = vld [vmem:[%s14657_s1 + $0xfe] sm:$0x1] }
 0x1eb   :  { %v7037_v30 = vsel %vm88_vm7, %v7031_v55, 0.0  ;;  %9460 = vpow2.f32 %v8014_v12  ;;  %v7445_v20 = vrot.slane %v12046_v21, 5  ;;  %v9439_v25 = vpop.eup %9438  ;;  %v7446_v19 = vrot.slane %v12046_v21, 6 }
 0x1ec   :  { %7038 = vadd.xlane.f32.xlu1 %v7037_v30  ;;  %9462 = vpow2.f32 %v8016_v26  ;;  %v7447_v38 = vrot.slane %v12046_v21, 7  ;;  %v14703_v51 = vrot.slane %v12046_v21, 1  ;;  %v9441_v9 = vpop.eup %9440  ;;  %v7528_v61 = vrot.slane %v9439_v25, 7  ;;  %v12674_v26 = vpop.xlane.xlu1 %1795 }
 0x1ed   :  { %9464 = vpow2.f32 %v8018_v4  ;;  %v7474_v2 = vsub.f32 %v9803_v36, %v7442_v14  ;;  %v7475_v35 = vsub.f32 %v9804_v48, %v7443_v60  ;;  %v9443_v1 = vpop.eup %9442  ;;  %v7530_v27 = vrot.slane %v9441_v9, 6 }
 0x1ee   :  { %v7473_v5 = vsub.f32 %v9802_v57, %v14703_v51  ;;  %v7476_v23 = vsub.f32 %v9805_v8, %v7444_v63  ;;  %v7477_v33 = vsub.f32 %v9806_v43, %v7445_v20  ;;  %v7478_v44 = vsub.f32 %v9807_v28, %v7446_v19  ;;  %v9445_v11 = vpop.eup %9444 }
 0x1ef   :  { %v7529_v16 = vsel %vm52_vm0, %v7528_v61, %v12039_v50  ;;  %v7532_v56 = vrot.slane %v9443_v1, 5  ;;  %v7479_v12 = vsub.f32 %v9808_v59, %v7447_v38  ;;  %v9447_v4 = vpop.eup %9446  ;;  %v7534_v14 = vrot.slane %v9445_v11, 4  ;;  %v12682_v1 = vpop.xlane.xlu0 %1274 }
 0x1f0   :  { %v7498_v31 = vmul.f32 1.442695, %v7473_v5  ;;  %v7531_v55 = vsel %vm55_vm1, %v7530_v27, %v7529_v16  ;;  %v7500_v60 = vmul.f32 1.442695, %v7474_v2  ;;  %v7502_v30 = vmul.f32 1.442695, %v7475_v35  ;;  %v9449_v63 = vpop.eup %9448 }
 0x1f1   :  { %v7533_v20 = vsel %vm58_vm2, %v7532_v56, %v7531_v55  ;;  %v7536_v25 = vrot.slane %v9447_v4, 3  ;;  %v7504_v50 = vmul.f32 1.442695, %v7476_v23  ;;  %v9451_v19 = vpop.eup %9450  ;;  %v7538_v51 = vrot.slane %v9449_v63, 2 }
 0x1f2   :  { %9466 = vpow2.f32 %v7498_v31  ;;  %v7535_v57 = vsel %vm61_vm3, %v7534_v14, %v7533_v20  ;;  %v7506_v38 = vmul.f32 1.442695, %v7477_v33  ;;  %v7540_v9 = vrot.slane %v9451_v19, 1  ;;  %v12686_v33 = vpop.xlane.xlu1 %1798 }
 0x1f3   :  { %9468 = vpow2.f32 %v7500_v60  ;;  %v7537_v5 = vsel %vm64_vm4, %v7536_v25, %v7535_v57  ;;  %v7508_v61 = vmul.f32 1.442695, %v7478_v44  ;;  %v7510_v48 = vmul.f32 1.442695, %v7479_v12  ;;  %v9810_v57 = vld [vmem:[%s14657_s1 + $0xaf] sm:$0x1] }
 0x1f4   :  { %9470 = vpow2.f32 %v7502_v30  ;;  %v9453_v36 = vpop.eup %9452  ;;  %v7539_v2 = vsel %vm67_vm5, %v7538_v51, %v7537_v5  ;;  %v7966_v35 = vrot.slane %v12042_v45, 2  ;;  %v7967_v43 = vrot.slane %v12042_v45, 3 }
 0x1f5   :  { %9472 = vpow2.f32 %v7504_v50  ;;  %v9455_v27 = vpop.eup %9454  ;;  %v7541_v8 = vsel %vm70_vm6, %v7540_v9, %v7539_v2  ;;  %v8052_v23 = vrot.slane %v9453_v36, 7  ;;  %v7968_v16 = vrot.slane %v12042_v45, 4  ;;  %v9812_v2 = vld [vmem:[%s14657_s1 + $0xcf] sm:$0x1] }
 0x1f6   :  { %9474 = vpow2.f32 %v7506_v38  ;;  %v9457_v28 = vpop.eup %9456  ;;  %v7558_v44 = vsel %vm88_vm7, %v7541_v8, 0.0  ;;  %v8054_v11 = vrot.slane %v9455_v27, 6  ;;  %v7969_v31 = vrot.slane %v12042_v45, 5  ;;  %v12712_v27 = vpop.xlane.xlu0 %2319 }
 0x1f7   :  { %9476 = vpow2.f32 %v7508_v61  ;;  %v9459_v56 = vpop.eup %9458  ;;  %7559 = vadd.xlane.f32.xlu0 %v7558_v44  ;;  %v8053_v59 = vsel %vm52_vm0, %v8052_v23, %v12033_v3  ;;  %v8056_v12 = vrot.slane %v9457_v28, 5  ;;  %v7970_v60 = vrot.slane %v12042_v45, 6  ;;  %v9809_v3 = vld [vmem:[%s14657_s1 + $0x9f] sm:$0x1]  ;;  %v9814_v44 = vld [vmem:[%s14657_s1 + $0xef] sm:$0x1] }
 0x1f8   :  { %9478 = vpow2.f32 %v7510_v48  ;;  %v9461_v4 = vpop.eup %9460  ;;  %v8055_v55 = vsel %vm55_vm1, %v8054_v11, %v8053_v59  ;;  %v8058_v14 = vrot.slane %v9459_v56, 4  ;;  %v7971_v30 = vrot.slane %v12042_v45, 7  ;;  %v9811_v61 = vld [vmem:[%s14657_s1 + $0xbf] sm:$0x1]  ;;  %v12721_v11 = vpop.xlane.xlu1 %2843 }
 0x1f9   :  { %v9463_v63 = vpop.eup %9462  ;;  %v8057_v20 = vsel %vm58_vm2, %v8056_v12, %v8055_v55  ;;  %v8060_v25 = vrot.slane %v9461_v4, 3  ;;  %v14704_v50 = vrot.slane %v12042_v45, 1  ;;  %v7998_v51 = vsub.f32 %v9810_v57, %v7966_v35  ;;  %v9813_v35 = vld [vmem:[%s14657_s1 + $0xdf] sm:$0x1] }
 0x1fa   :  { %v9465_v38 = vpop.eup %9464  ;;  %v8059_v5 = vsel %vm61_vm3, %v8058_v14, %v8057_v20  ;;  %v8062_v9 = vrot.slane %v9463_v63, 2  ;;  %v7999_v36 = vsub.f32 %v9811_v61, %v7967_v43  ;;  %v8000_v48 = vsub.f32 %v9812_v2, %v7968_v16  ;;  %v9815_v16 = vld [vmem:[%s14657_s1 + $0xff] sm:$0x1] }
 0x1fb   :  { %v7997_v19 = vsub.f32 %v9809_v3, %v14704_v50  ;;  %v8061_v8 = vsel %vm64_vm4, %v8060_v25, %v8059_v5  ;;  %v8064_v23 = vrot.slane %v9465_v38, 1  ;;  %v8001_v28 = vsub.f32 %v9813_v35, %v7969_v31  ;;  %v8557_v38 = vld [vmem:[%s14658_s2] ss:$0 sm:$0xff] }
 0x1fc   :  { %v8002_v43 = vsub.f32 %v9814_v44, %v7970_v60  ;;  %v8063_v56 = vsel %vm67_vm5, %v8062_v9, %v8061_v8  ;;  %v8003_v59 = vsub.f32 %v9815_v16, %v7971_v30  ;;  %v8024_v4 = vmul.f32 1.442695, %v7998_v51 }
 0x1fd   :  { %v8022_v12 = vmul.f32 1.442695, %v7997_v19  ;;  %9480 = vpow2.f32 %v12062_v29  ;;  %v8065_v31 = vsel %vm70_vm6, %v8064_v23, %v8063_v56  ;;  %v8026_v55 = vmul.f32 1.442695, %v7999_v36  ;;  %v12730_v29 = vpop.xlane.xlu0 %2322  ;;  %v12737_v36 = vpop.xlane.xlu1 %2846  ;;  %v12750_v56 = vld [vmem:[%s14658_s2 + $0x2] ss:$0 sm:$0xff] }
 0x1fe   :  { %v8028_v14 = vmul.f32 1.442695, %v8000_v48  ;;  %v8082_v60 = vsel %vm88_vm7, %v8065_v31, 0.0  ;;  %v8030_v20 = vmul.f32 1.442695, %v8001_v28  ;;  %v17_v30 = vlaneseq }
 0x1ff   :  { %v9467_v63 = vpop.eup %9466  ;;  %9482 = vpow2.f32 %v8022_v12  ;;  %v8032_v25 = vmul.f32 1.442695, %v8002_v43  ;;  %8083 = vadd.xlane.f32.xlu1 %v8082_v60  ;;  %v8034_v57 = vmul.f32 1.442695, %v8003_v59  ;;  %v12759_v31 = vld [vmem:[%s14658_s2 + $0x3] ss:$0 sm:$0xff] }
 0x200   :  { %v9469_v3 = vpop.eup %9468  ;;  %v7542_v50 = vrot.slane %v9467_v63, 7  ;;  %9484 = vpow2.f32 %v8024_v4  ;;  %v12739_v2 = vshrl.u32 %v17_v30, 7  ;;  %v8424_v35 = vand.u32 127, %v17_v30 }
 0x201   :  { %v9471_v19 = vpop.eup %9470  ;;  %v7544_v51 = vrot.slane %v9469_v3, 6  ;;  %9486 = vpow2.f32 %v8026_v55  ;;  %v10158_v4 = vmov 1.0   ;;  %v10159_v63 = vmov -1e+30  }
 0x202   :  { %v9473_v5 = vpop.eup %9472  ;;  %v7543_v9 = vsel %vm52_vm0, %v7542_v50, %v12125_v37  ;;  %v7546_v61 = vrot.slane %v9471_v19, 5  ;;  %9488 = vpow2.f32 %v8028_v14  ;;  %vm286_vm8 = vcmp.eq.s32.totalorder %v12739_v2, %v8557_v38  ;;  %v8572_v37 = vld [vmem:[%s14658_s2 + $0x1] ss:$0 sm:$0xff] }
 0x203   :  { %v9475_v48 = vpop.eup %9474  ;;  %v7545_v8 = vsel %vm55_vm1, %v7544_v51, %v7543_v9  ;;  %v7548_v23 = vrot.slane %v9473_v5, 4  ;;  %9490 = vpow2.f32 %v8030_v20  ;;  %8856 = vmatprep.subr.msk.mxu0 %vm286_vm8, %v10158_v4  ;;  %vm8425_vm9 = vcmp.ge.s32.totalorder %v8424_v35, 1 }
 0x204   :  { %v9477_v28 = vpop.eup %9476  ;;  %v7547_v44 = vsel %vm58_vm2, %v7546_v61, %v7545_v8  ;;  %v7550_v43 = vrot.slane %v9475_v48, 3  ;;  %9492 = vpow2.f32 %v8032_v25  ;;  %v12763_v60 = vsel %vm8425_vm9, 0.0, %v10159_v63  ;;  %8857 = vmatpush3.msk.msra.mxu0 %vm286_vm8, %v10158_v4  ;;  %v3368_v25 = vpop.xlane.xlu0 %3367 }
 0x205   :  { %v9479_v16 = vpop.eup %9478  ;;  %v7549_v59 = vsel %vm61_vm3, %v7548_v23, %v7547_v44  ;;  %v7552_v12 = vrot.slane %v9477_v28, 2  ;;  %9494 = vpow2.f32 %v8034_v57  ;;  %vm811_vm10 = vcmp.eq.s32.totalorder %v12739_v2, %v8572_v37 }
 0x206   :  { %v7551_v55 = vsel %vm64_vm4, %v7550_v43, %v7549_v59  ;;  %v7554_v14 = vrot.slane %v9479_v16, 1  ;;  %9496 = vlog2.f32 %v12615_v39  ;;  %vm1335_vm11 = vcmp.eq.s32.totalorder %v12739_v2, %v12750_v56  ;;  %v3892_v39 = vpop.xlane.xlu1 %3891  ;;  %8861 = vmatprep.subr.msk.mxu1 %vm811_vm10, %v10158_v4 }
 0x207   :  { %v7553_v20 = vsel %vm67_vm5, %v7552_v12, %v7551_v55  ;;  %9498 = vlog2.f32 %v12623_v7  ;;  %8866 = vmatprep.subr.msk.mxu0 %vm1335_vm11, %v10158_v4  ;;  %vm1859_vm12 = vcmp.eq.s32.totalorder %v12739_v2, %v12759_v31  ;;  %8862 = vmatpush3.msk.msra.mxu1 %vm811_vm10, %v10158_v4 }
 0x208   :  { %v7555_v3 = vsel %vm70_vm6, %v7554_v14, %v7553_v20  ;;  %9500 = vlog2.f32 %v12634_v17  ;;  %8871 = vmatprep.subr.msk.mxu1 %vm1859_vm12, %v10158_v4 }
 0x209   :  { %v7561_v7 = vsel %vm88_vm7, %v7555_v3, 0.0  ;;  %9502 = vlog2.f32 %v12637_v53  ;;  %v3371_v53 = vpop.xlane.xlu0 %3370 }
 0x20a   :  { %7562 = vadd.xlane.f32.xlu0 %v7561_v7  ;;  %9504 = vlog2.f32 %v12667_v18  ;;  %v9481_v17 = vpop.eup %9480  ;;  %v3895_v18 = vpop.xlane.xlu1 %3894 }
 0x20b   :  { %9506 = vlog2.f32 %v12674_v26 }
 0x20c   :  { %v9483_v50 = vpop.eup %9482  ;;  %9508 = vlog2.f32 %v12682_v1 }
 0x20d   :  { %v9485_v57 = vpop.eup %9484  ;;  %v8066_v30 = vrot.slane %v9483_v50, 7  ;;  %9510 = vlog2.f32 %v12686_v33  ;;  %v4416_v43 = vpop.xlane.xlu0 %4415 }
 0x20e   :  { %v9487_v19 = vpop.eup %9486  ;;  %v8068_v51 = vrot.slane %v9485_v57, 6  ;;  %9512 = vlog2.f32 %v12712_v27  ;;  %v4940_v59 = vpop.xlane.xlu1 %4939 }
 0x20f   :  { %v9489_v38 = vpop.eup %9488  ;;  %v8067_v5 = vsel %vm52_vm0, %v8066_v30, %v9481_v17  ;;  %v8070_v9 = vrot.slane %v9487_v19, 5  ;;  %9514 = vlog2.f32 %v12721_v11 }
 0x210   :  { %v9491_v26 = vpop.eup %9490  ;;  %v8069_v61 = vsel %vm55_vm1, %v8068_v51, %v8067_v5  ;;  %v8072_v1 = vrot.slane %v9489_v38, 4  ;;  %9516 = vlog2.f32 %v12730_v29 }
 0x211   :  { %v9493_v48 = vpop.eup %9492  ;;  %v8071_v33 = vsel %vm58_vm2, %v8070_v9, %v8069_v61  ;;  %v8074_v8 = vrot.slane %v9491_v26, 3  ;;  %9518 = vlog2.f32 %v12737_v36 }
 0x212   :  { %v9495_v27 = vpop.eup %9494  ;;  %v8073_v23 = vsel %vm61_vm3, %v8072_v1, %v8071_v33  ;;  %v8076_v35 = vrot.slane %v9493_v48, 2  ;;  %9520 = vlog2.f32 %v3368_v25  ;;  %v9816_v33 = vld [vmem:[%s14657_s1] sm:$0x1] }
 0x213   :  { %v9497_v28 = vpop.eup %9496  ;;  %v8075_v11 = vsel %vm64_vm4, %v8074_v8, %v8073_v23  ;;  %v8078_v44 = vrot.slane %v9495_v27, 1  ;;  %9522 = vlog2.f32 %v3892_v39 }
 0x214   :  { %v9499_v37 = vpop.eup %9498  ;;  %v8077_v29 = vsel %vm67_vm5, %v8076_v35, %v8075_v11  ;;  %v228_v16 = vmul.f32 0.6931472, %v9497_v28  ;;  %9524 = vlog2.f32 %v3371_v53  ;;  %v9817_v35 = vld [vmem:[%s14657_s1 + $0x10] sm:$0x1]  ;;  %v9818_v28 = vld [vmem:[%s14657_s1 + $0x20] sm:$0x1] }
 0x215   :  { %v9501_v12 = vpop.eup %9500  ;;  %v8079_v36 = vsel %vm70_vm6, %v8078_v44, %v8077_v29  ;;  %v753_v55 = vmul.f32 0.6931472, %v9499_v37  ;;  %9526 = vlog2.f32 %v3895_v18 }
 0x216   :  { %v9503_v14 = vpop.eup %9502  ;;  %v8085_v63 = vsel %vm88_vm7, %v8079_v36, 0.0  ;;  %v12806_v20 = vadd.f32 %v228_v16, %v11227_v42  ;;  %v230_v25 = vmul.f32 0.6931472, %v9501_v12  ;;  %9528 = vlog2.f32 %v4416_v43  ;;  %v14705_v43 = vld [vmem:[#allocation8_spill] sm:$0xff] }
 0x217   :  { %v9505_v3 = vpop.eup %9504  ;;  %8086 = vadd.xlane.f32.xlu1 %v8085_v63  ;;  %v12809_v39 = vadd.f32 %v753_v55, %v11281_v22  ;;  %v755_v7 = vmul.f32 0.6931472, %v9503_v14  ;;  %9530 = vlog2.f32 %v4940_v59  ;;  %v9820_v59 = vld [vmem:[%s14657_s1 + $0x40] sm:$0x1] }
 0x218   :  { %v9507_v17 = vpop.eup %9506  ;;  %v12812_v50 = vadd.f32 %v230_v25, %v11215_v32  ;;  %v1277_v57 = vmul.f32 0.6931472, %v9505_v3  ;;  %v235_v30 = vrot.slane %v12806_v20, 1  ;;  %v236_v53 = vrot.slane %v12806_v20, 2  ;;  %v14706_v55 = vld [vmem:[#allocation10_spill] sm:$0xff] }
 0x219   :  { %v9509_v42 = vpop.eup %9508  ;;  %v12817_v19 = vadd.f32 %v755_v7, %v11256_v0  ;;  %v1801_v51 = vmul.f32 0.6931472, %v9507_v17  ;;  %v237_v18 = vrot.slane %v12806_v20, 3  ;;  %v238_v22 = vrot.slane %v12806_v20, 4  ;;  %v9822_v3 = vld [vmem:[%s14657_s1 + $0x60] sm:$0x1] }
 0x21a   :  { %v9511_v38 = vpop.eup %9510  ;;  %v12822_v5 = vadd.f32 %v1277_v57, %v11323_v62  ;;  %v1279_v32 = vmul.f32 0.6931472, %v9509_v42  ;;  %v239_v9 = vrot.slane %v12806_v20, 5  ;;  %v240_v26 = vrot.slane %v12806_v20, 6  ;;  %v14707_v57 = vld [vmem:[#allocation9_spill] sm:$0xff] }
 0x21b   :  { %v9513_v61 = vpop.eup %9512  ;;  %v12827_v1 = vadd.f32 %v1801_v51, %v11300_v46  ;;  %v1803_v0 = vmul.f32 0.6931472, %v9511_v38  ;;  %v241_v48 = vrot.slane %v12806_v20, 7  ;;  %v265_v8 = vsub.f32 %v9816_v33, %v12806_v20  ;;  %v9821_v20 = vld [vmem:[%s14657_s1 + $0x50] sm:$0x1] }
 0x21c   :  { %v9515_v62 = vpop.eup %9514  ;;  %v12835_v27 = vadd.f32 %v1279_v32, %v11367_v40  ;;  %v2325_v23 = vmul.f32 0.6931472, %v9513_v61  ;;  %v266_v46 = vsub.f32 %v9817_v35, %v235_v30  ;;  %v267_v11 = vsub.f32 %v9818_v28, %v236_v53  ;;  %v9819_v40 = vld [vmem:[%s14657_s1 + $0x30] sm:$0x1] }
 0x21d   :  { %v9517_v44 = vpop.eup %9516  ;;  %v12844_v37 = vadd.f32 %v1803_v0, %v14705_v43  ;;  %v2849_v29 = vmul.f32 0.6931472, %v9515_v62  ;;  %v268_v16 = vsub.f32 %v9819_v40, %v237_v18  ;;  %v269_v12 = vsub.f32 %v9820_v59, %v238_v22  ;;  %v9823_v42 = vld [vmem:[%s14657_s1 + $0x70] sm:$0x1]  ;;  %v14710_v43 = vld [vmem:[#allocation14_spill] sm:$0xff] }
 0x21e   :  { %v9519_v36 = vpop.eup %9518  ;;  %v12853_v14 = vadd.f32 %v2325_v23, %v14706_v55  ;;  %v2327_v63 = vmul.f32 0.6931472, %v9517_v44  ;;  %v270_v25 = vsub.f32 %v9821_v20, %v239_v9  ;;  %v271_v7 = vsub.f32 %v9822_v3, %v240_v26  ;;  %v14708_v38 = vld [vmem:[#allocation12_spill] sm:$0xff]  ;;  %v14709_v26 = vld [vmem:[#allocation11_spill] sm:$0xff] }
 0x21f   :  { %v9521_v17 = vpop.eup %9520  ;;  %v12862_v30 = vadd.f32 %v2849_v29, %v14707_v57  ;;  %v2851_v53 = vmul.f32 0.6931472, %v9519_v36  ;;  %v272_v51 = vsub.f32 %v9823_v42, %v241_v48  ;;  %v311_v18 = vrot.slane %v266_v46, 7  ;;  %v14711_v36 = vld [vmem:[#allocation13_spill] sm:$0xff]  ;;  %v14712_v3 = vld [vmem:[#allocation16_spill] sm:$0xff] }
 0x220   :  { %v9523_v22 = vpop.eup %9522  ;;  %v12868_v32 = vadd.f32 %v2327_v63, %v14708_v38  ;;  %v3373_v9 = vmul.f32 0.6931472, %v9521_v17  ;;  %v313_v61 = vrot.slane %v267_v11, 6  ;;  %v315_v0 = vrot.slane %v268_v16, 5 }
 0x221   :  { %v9525_v33 = vpop.eup %9524  ;;  %v12871_v62 = vadd.f32 %v2851_v53, %v14709_v26  ;;  %v3897_v23 = vmul.f32 0.6931472, %v9523_v22  ;;  %v312_v35 = vsel %vm52_vm0, %v311_v18, %v265_v8  ;;  %v317_v28 = vrot.slane %v269_v12, 4  ;;  %v14713_v53 = vld [vmem:[#allocation15_spill] sm:$0xff] }
 0x222   :  { %v9527_v44 = vpop.eup %9526  ;;  %v12875_v29 = vadd.f32 %v3373_v9, %v14710_v43  ;;  %v3375_v48 = vmul.f32 0.6931472, %v9525_v33  ;;  %v314_v46 = vsel %vm55_vm1, %v313_v61, %v312_v35  ;;  %v319_v40 = vrot.slane %v270_v25, 3  ;;  %v9824_v35 = vld [vmem:[%s14657_s1 + $0x1] sm:$0x1] }
 0x223   :  { %v9529_v59 = vpop.eup %9528  ;;  %v12879_v11 = vadd.f32 %v3897_v23, %v14711_v36  ;;  %v3899_v16 = vmul.f32 0.6931472, %v9527_v44  ;;  %v316_v55 = vsel %vm58_vm2, %v315_v0, %v314_v46  ;;  %v321_v63 = vrot.slane %v271_v7, 2  ;;  %v14714_v7 = vld [vmem:[#allocation18_spill] sm:$0xff]  ;;  %v9825_v44 = vld [vmem:[%s14657_s1 + $0x11] sm:$0x1] }
 0x224   :  { %v9531_v20 = vpop.eup %9530  ;;  %v12883_v8 = vadd.f32 %v3375_v48, %v14712_v3  ;;  %v318_v12 = vsel %vm61_vm3, %v317_v28, %v316_v55  ;;  %v323_v17 = vrot.slane %v272_v51, 1  ;;  %v4421_v57 = vmul.f32 0.6931472, %v9529_v59  ;;  %v9826_v48 = vld [vmem:[%s14657_s1 + $0x21] sm:$0x1] }
 0x225   :  { %v12887_v42 = vadd.f32 %v3899_v16, %v14713_v53  ;;  %v320_v25 = vsel %vm64_vm4, %v319_v40, %v318_v12  ;;  %v760_v18 = vrot.slane %v12809_v39, 1  ;;  %v761_v22 = vrot.slane %v12809_v39, 2  ;;  %v9827_v40 = vld [vmem:[%s14657_s1 + $0x31] sm:$0x1]  ;;  %v9828_v36 = vld [vmem:[%s14657_s1 + $0x41] sm:$0x1] }
 0x226   :  { %v322_v38 = vsel %vm67_vm5, %v321_v63, %v320_v25  ;;  %v12894_v9 = vadd.f32 %v4421_v57, %v14714_v7  ;;  %v762_v61 = vrot.slane %v12809_v39, 3  ;;  %v763_v0 = vrot.slane %v12809_v39, 4  ;;  %v9829_v16 = vld [vmem:[%s14657_s1 + $0x51] sm:$0x1]  ;;  %v9830_v63 = vld [vmem:[%s14657_s1 + $0x61] sm:$0x1]  ;;  %v4419_v57 = vpop.xlane.xlu0 %4418 }
 0x227   :  { %v324_v51 = vsel %vm70_vm6, %v323_v17, %v322_v38  ;;  %v764_v33 = vrot.slane %v12809_v39, 5  ;;  %v765_v26 = vrot.slane %v12809_v39, 6  ;;  %v766_v23 = vrot.slane %v12809_v39, 7  ;;  %v9831_v12 = vld [vmem:[%s14657_s1 + $0x71] sm:$0x1] }
 0x228   :  { %8858 = vmatprep.mubr.msk.f32.mxu0 %vm88_vm7, %v324_v51  ;;  %v790_v28 = vsub.f32 %v9824_v35, %v12809_v39  ;;  %v791_v43 = vsub.f32 %v9825_v44, %v760_v18  ;;  %v792_v46 = vsub.f32 %v9826_v48, %v761_v22  ;;  %v793_v59 = vsub.f32 %v9827_v40, %v762_v61 }
 0x229   :  { %v794_v39 = vsub.f32 %v9828_v36, %v763_v0  ;;  %v795_v55 = vsub.f32 %v9829_v16, %v764_v33  ;;  %v796_v3 = vsub.f32 %v9830_v63, %v765_v26  ;;  %v797_v17 = vsub.f32 %v9831_v12, %v766_v23  ;;  %v14715_v33 = vld [vmem:[#allocation17_spill] sm:$0xff] }
 0x22a   :  { %v835_v53 = vrot.slane %v791_v43, 7  ;;  %v837_v25 = vrot.slane %v792_v46, 6  ;;  %v839_v18 = vrot.slane %v793_v59, 5  ;;  %v4945_v22 = vmul.f32 0.6931472, %v9531_v20 }
 0x22b   :  { %v841_v38 = vrot.slane %v794_v39, 4  ;;  %v843_v7 = vrot.slane %v795_v55, 3  ;;  %v845_v61 = vrot.slane %v796_v3, 2  ;;  %v847_v0 = vrot.slane %v797_v17, 1  ;;  %v12944_v59 = vld [vmem:[%s14658_s2 + $0x4] ss:$0 sm:$0xff] }
 0x22c   :  { %v836_v51 = vsel %vm52_vm0, %v835_v53, %v790_v28  ;;  %v12930_v35 = vadd.f32 %v4945_v22, %v14715_v33  ;;  %9532 = vlog2.f32 %v4419_v57  ;;  %v242_v26 = vrot.slane %v12812_v50, 1  ;;  %v9832_v39 = vld [vmem:[%s14657_s1 + $0x80] sm:$0x1]  ;;  %v9833_v55 = vld [vmem:[%s14657_s1 + $0x90] sm:$0x1] }
 0x22d   :  { %v838_v44 = vsel %vm55_vm1, %v837_v25, %v836_v51  ;;  %v243_v23 = vrot.slane %v12812_v50, 2  ;;  %v244_v43 = vrot.slane %v12812_v50, 3  ;;  %v245_v20 = vrot.slane %v12812_v50, 4  ;;  %v9834_v3 = vld [vmem:[%s14657_s1 + $0xa0] sm:$0x1] }
 0x22e   :  { %v840_v48 = vsel %vm58_vm2, %v839_v18, %v838_v44  ;;  %v246_v46 = vrot.slane %v12812_v50, 5  ;;  %v247_v28 = vrot.slane %v12812_v50, 6  ;;  %v248_v40 = vrot.slane %v12812_v50, 7  ;;  %v9835_v57 = vld [vmem:[%s14657_s1 + $0xb0] sm:$0x1] }
 0x22f   :  { %v842_v36 = vsel %vm61_vm3, %v841_v38, %v840_v48  ;;  %v273_v16 = vsub.f32 %v9832_v39, %v12812_v50  ;;  %v274_v63 = vsub.f32 %v9833_v55, %v242_v26  ;;  %v275_v12 = vsub.f32 %v9834_v3, %v243_v23  ;;  %v9836_v50 = vld [vmem:[%s14657_s1 + $0xc0] sm:$0x1]  ;;  %v9837_v18 = vld [vmem:[%s14657_s1 + $0xd0] sm:$0x1]  ;;  %v4943_v23 = vpop.xlane.xlu1 %4942 }
 0x230   :  { %v844_v17 = vsel %vm64_vm4, %v843_v7, %v842_v36  ;;  %v276_v53 = vsub.f32 %v9835_v57, %v244_v43  ;;  %v277_v25 = vsub.f32 %v9836_v50, %v245_v20  ;;  %v278_v22 = vsub.f32 %v9837_v18, %v246_v46  ;;  %v9838_v7 = vld [vmem:[%s14657_s1 + $0xe0] sm:$0x1]  ;;  %v9839_v33 = vld [vmem:[%s14657_s1 + $0xf0] sm:$0x1]  ;;  %v5464_v46 = vpop.xlane.xlu0 %5463 }
 0x231   :  { %v846_v38 = vsel %vm67_vm5, %v845_v61, %v844_v17  ;;  %v279_v51 = vsub.f32 %v9838_v7, %v247_v28  ;;  %v280_v26 = vsub.f32 %v9839_v33, %v248_v40  ;;  %v325_v44 = vrot.slane %v274_v63, 7  ;;  %v9841_v7 = vld [vmem:[%s14657_s1 + $0x91] sm:$0x1]  ;;  %v9842_v33 = vld [vmem:[%s14657_s1 + $0xa1] sm:$0x1] }
 0x232   :  { %vm2383_vm13 = vcmp.eq.s32.totalorder %v12739_v2, %v12944_v59  ;;  %v848_v43 = vsel %vm70_vm6, %v847_v0, %v846_v38  ;;  %v327_v20 = vrot.slane %v275_v12, 6  ;;  %v329_v48 = vrot.slane %v276_v53, 5 }
 0x233   :  { %v331_v61 = vrot.slane %v277_v25, 4  ;;  %8863 = vmatprep.mubr.msk.f32.mxu1 %vm88_vm7, %v848_v43  ;;  %v326_v28 = vsel %vm52_vm0, %v325_v44, %v273_v16  ;;  %v333_v36 = vrot.slane %v278_v22, 3  ;;  %v335_v39 = vrot.slane %v279_v51, 2  ;;  %v12992_v25 = vld [vmem:[%s14658_s2 + $0x5] ss:$0 sm:$0xff] }
 0x234   :  { %v337_v55 = vrot.slane %v280_v26, 1  ;;  %v328_v40 = vsel %vm55_vm1, %v327_v20, %v326_v28  ;;  %9534 = vlog2.f32 %v4943_v23  ;;  %v767_v63 = vrot.slane %v12817_v19, 1  ;;  %v9840_v22 = vld [vmem:[%s14657_s1 + $0x81] sm:$0x1]  ;;  %v9843_v23 = vld [vmem:[%s14657_s1 + $0xb1] sm:$0x1] }
 0x235   :  { %v768_v3 = vrot.slane %v12817_v19, 2  ;;  %v330_v0 = vsel %vm58_vm2, %v329_v48, %v328_v40  ;;  %9536 = vlog2.f32 %v5464_v46  ;;  %v769_v12 = vrot.slane %v12817_v19, 3  ;;  %v9845_v48 = vld [vmem:[%s14657_s1 + $0xd1] sm:$0x1] }
 0x236   :  { %v770_v17 = vrot.slane %v12817_v19, 4  ;;  %v332_v57 = vsel %vm61_vm3, %v331_v61, %v330_v0  ;;  %v771_v16 = vrot.slane %v12817_v19, 5  ;;  %v772_v53 = vrot.slane %v12817_v19, 6  ;;  %v9847_v40 = vld [vmem:[%s14657_s1 + $0xf1] sm:$0x1] }
 0x237   :  { %v773_v50 = vrot.slane %v12817_v19, 7  ;;  %v334_v18 = vsel %vm64_vm4, %v333_v36, %v332_v57  ;;  %v798_v38 = vsub.f32 %v9840_v22, %v12817_v19  ;;  %v799_v51 = vsub.f32 %v9841_v7, %v767_v63  ;;  %v9844_v19 = vld [vmem:[%s14657_s1 + $0xc1] sm:$0x1] }
 0x238   :  { %v800_v26 = vsub.f32 %v9842_v33, %v768_v3  ;;  %v336_v44 = vsel %vm67_vm5, %v335_v39, %v334_v18  ;;  %v801_v43 = vsub.f32 %v9843_v23, %v769_v12  ;;  %v802_v20 = vsub.f32 %v9844_v19, %v770_v17  ;;  %v9846_v36 = vld [vmem:[%s14657_s1 + $0xe1] sm:$0x1] }
 0x239   :  { %v803_v61 = vsub.f32 %v9845_v48, %v771_v16  ;;  %v9533_v46 = vpop.eup %9532  ;;  %v338_v28 = vsel %vm70_vm6, %v337_v55, %v336_v44  ;;  %v804_v39 = vsub.f32 %v9846_v36, %v772_v53  ;;  %v805_v63 = vsub.f32 %v9847_v40, %v773_v50  ;;  %v9849_v48 = vld [vmem:[%s14657_s1 + $0x12] sm:$0x1] }
 0x23a   :  { %v849_v3 = vrot.slane %v799_v51, 7  ;;  %vm2907_vm14 = vcmp.eq.s32.totalorder %v12739_v2, %v12992_v25  ;;  %v4423_v0 = vmul.f32 0.6931472, %v9533_v46  ;;  %8859 = vmatmul.mubr.msk.f32.vlgmr.msra.gmra.mxu0 %vm88_vm7, %v338_v28  ;;  %v851_v12 = vrot.slane %v800_v26, 6  ;;  %v9850_v46 = vld [vmem:[%s14657_s1 + $0x22] sm:$0x1] }
 0x23b   :  { %v853_v17 = vrot.slane %v801_v43, 5  ;;  %v855_v55 = vrot.slane %v802_v20, 4  ;;  %v857_v16 = vrot.slane %v803_v61, 3  ;;  %v859_v18 = vrot.slane %v804_v39, 2  ;;  %8867 = vmatpush3.msk.msra.mxu0 %vm1335_vm11, %v10158_v4  ;;  %v9848_v43 = vld [vmem:[%s14657_s1 + $0x2] sm:$0x1] }
 0x23c   :  { %v850_v57 = vsel %vm52_vm0, %v849_v3, %v798_v38  ;;  %v861_v53 = vrot.slane %v805_v63, 1  ;;  %v13031_v50 = vadd.f32 %v4423_v0, %v11615_v15  ;;  %v1284_v7 = vrot.slane %v12822_v5, 1  ;;  %8876 = vmatprep.subr.msk.mxu0 %vm2383_vm13, %v10158_v4  ;;  %v9851_v36 = vld [vmem:[%s14657_s1 + $0x32] sm:$0x1]  ;;  %v9888_v25 = vld [vmem:[%s14657_s1 + $0x84] sm:$0x1] }
 0x23d   :  { %v852_v22 = vsel %vm55_vm1, %v851_v12, %v850_v57  ;;  %v1285_v51 = vrot.slane %v12822_v5, 2  ;;  %v1286_v33 = vrot.slane %v12822_v5, 3  ;;  %v1287_v56 = vrot.slane %v12822_v5, 4  ;;  %v9853_v3 = vld [vmem:[%s14657_s1 + $0x52] sm:$0x1] }
 0x23e   :  { %v854_v38 = vsel %vm58_vm2, %v853_v17, %v852_v22  ;;  %v1288_v15 = vrot.slane %v12822_v5, 5  ;;  %v1289_v44 = vrot.slane %v12822_v5, 6  ;;  %v1290_v23 = vrot.slane %v12822_v5, 7  ;;  %v9854_v12 = vld [vmem:[%s14657_s1 + $0x62] sm:$0x1] }
 0x23f   :  { %v856_v26 = vsel %vm61_vm3, %v855_v55, %v854_v38  ;;  %v1314_v19 = vsub.f32 %v9848_v43, %v12822_v5  ;;  %v1315_v61 = vsub.f32 %v9849_v48, %v1284_v7  ;;  %v1316_v28 = vsub.f32 %v9850_v46, %v1285_v51  ;;  %v9852_v5 = vld [vmem:[%s14657_s1 + $0x42] sm:$0x1]  ;;  %v5988_v51 = vpop.xlane.xlu1 %5987  ;;  %v5467_v43 = vpop.xlane.xlu0 %5466 }
 0x240   :  { %v858_v20 = vsel %vm64_vm4, %v857_v16, %v856_v26  ;;  %v1317_v39 = vsub.f32 %v9851_v36, %v1286_v33  ;;  %v1318_v63 = vsub.f32 %v9852_v5, %v1287_v56  ;;  %v1319_v0 = vsub.f32 %v9853_v3, %v1288_v15  ;;  %v9855_v16 = vld [vmem:[%s14657_s1 + $0x72] sm:$0x1]  ;;  %v9856_v3 = vld [vmem:[%s14657_s1 + $0x82] sm:$0x1] }
 0x241   :  { %v860_v40 = vsel %vm67_vm5, %v859_v18, %v858_v20  ;;  %v1320_v17 = vsub.f32 %v9854_v12, %v1289_v44  ;;  %v9535_v55 = vpop.eup %9534  ;;  %v1321_v18 = vsub.f32 %v9855_v16, %v1290_v23  ;;  %v1359_v22 = vrot.slane %v1315_v61, 7  ;;  %v13109_v12 = vld [vmem:[%s14658_s2 + $0x6] ss:$0 sm:$0xff]  ;;  %v9858_v16 = vld [vmem:[%s14657_s1 + $0xa2] sm:$0x1] }
 0x242   :  { %v862_v57 = vsel %vm70_vm6, %v861_v53, %v860_v40  ;;  %v1361_v7 = vrot.slane %v1316_v28, 6  ;;  %v9537_v38 = vpop.eup %9536  ;;  %v4947_v33 = vmul.f32 0.6931472, %v9535_v55  ;;  %v1363_v56 = vrot.slane %v1317_v39, 5  ;;  %v9857_v55 = vld [vmem:[%s14657_s1 + $0x92] sm:$0x1] }
 0x243   :  { %8864 = vmatmul.mubr.msk.f32.vlgmr.msra.gmra.mxu1 %vm88_vm7, %v862_v57  ;;  %v1365_v15 = vrot.slane %v1318_v63, 4  ;;  %v1367_v26 = vrot.slane %v1319_v0, 3  ;;  %v5469_v44 = vmul.f32 0.6931472, %v9537_v38  ;;  %v1360_v20 = vsel %vm52_vm0, %v1359_v22, %v1314_v19 }
 0x244   :  { %v1369_v53 = vrot.slane %v1320_v17, 2  ;;  %v1371_v48 = vrot.slane %v1321_v18, 1  ;;  %8872 = vmatpush3.msk.msra.mxu1 %vm1859_vm12, %v10158_v4  ;;  %v13082_v23 = vadd.f32 %v4947_v33, %v11593_v6  ;;  %v1362_v61 = vsel %vm55_vm1, %v1361_v7, %v1360_v20  ;;  %v9861_v33 = vld [vmem:[%s14657_s1 + $0xd2] sm:$0x1] }
 0x245   :  { %9538 = vlog2.f32 %v5988_v51  ;;  %v1291_v46 = vrot.slane %v12835_v27, 1  ;;  %8881 = vmatprep.subr.msk.mxu1 %vm2907_vm14, %v10158_v4  ;;  %v13091_v19 = vadd.f32 %v5469_v44, %v11652_v41  ;;  %v1364_v28 = vsel %vm58_vm2, %v1363_v56, %v1362_v61  ;;  %v9860_v51 = vld [vmem:[%s14657_s1 + $0xc2] sm:$0x1] }
 0x246   :  { %9540 = vlog2.f32 %v5467_v43  ;;  %v1292_v31 = vrot.slane %v12835_v27, 2  ;;  %v1366_v6 = vsel %vm61_vm3, %v1365_v15, %v1364_v28  ;;  %v1293_v36 = vrot.slane %v12835_v27, 3  ;;  %v9862_v15 = vld [vmem:[%s14657_s1 + $0xe2] sm:$0x1]  ;;  %v9863_v43 = vld [vmem:[%s14657_s1 + $0xf2] sm:$0x1] }
 0x247   :  { %v1294_v39 = vrot.slane %v12835_v27, 4  ;;  %v1295_v40 = vrot.slane %v12835_v27, 5  ;;  %v1368_v5 = vsel %vm64_vm4, %v1367_v26, %v1366_v6  ;;  %v1296_v63 = vrot.slane %v12835_v27, 6 }
 0x248   :  { %v1297_v41 = vrot.slane %v12835_v27, 7  ;;  %v1322_v0 = vsub.f32 %v9856_v3, %v12835_v27  ;;  %v1370_v17 = vsel %vm67_vm5, %v1369_v53, %v1368_v5  ;;  %v1323_v57 = vsub.f32 %v9857_v55, %v1291_v46  ;;  %v9859_v27 = vld [vmem:[%s14657_s1 + $0xb2] sm:$0x1] }
 0x249   :  { %v1324_v18 = vsub.f32 %v9858_v16, %v1292_v31  ;;  %v1325_v22 = vsub.f32 %v9859_v27, %v1293_v36  ;;  %v1372_v7 = vsel %vm70_vm6, %v1371_v48, %v1370_v17  ;;  %v1326_v38 = vsub.f32 %v9860_v51, %v1294_v39  ;;  %v9865_v16 = vld [vmem:[%s14657_s1 + $0x13] sm:$0x1] }
 0x24a   :  { %v1327_v56 = vsub.f32 %v9861_v33, %v1295_v40  ;;  %v1328_v26 = vsub.f32 %v9862_v15, %v1296_v63  ;;  %8868 = vmatprep.mubr.msk.f32.mxu0 %vm88_vm7, %v1372_v7  ;;  %v1329_v44 = vsub.f32 %v9863_v43, %v1297_v41  ;;  %v1373_v20 = vrot.slane %v1323_v57, 7  ;;  %v9867_v51 = vld [vmem:[%s14657_s1 + $0x33] sm:$0x1]  ;;  %v9870_v43 = vld [vmem:[%s14657_s1 + $0x63] sm:$0x1] }
 0x24b   :  { %v1375_v53 = vrot.slane %v1324_v18, 6  ;;  %v1377_v48 = vrot.slane %v1325_v22, 5  ;;  %vm3431_vm15 = vcmp.eq.s32.totalorder %v12739_v2, %v13109_v12  ;;  %v1379_v61 = vrot.slane %v1326_v38, 4  ;;  %v9866_v22 = vld [vmem:[%s14657_s1 + $0x23] sm:$0x1] }
 0x24c   :  { %v1381_v46 = vrot.slane %v1327_v56, 3  ;;  %v1383_v28 = vrot.slane %v1328_v26, 2  ;;  %v1808_v31 = vrot.slane %v12827_v1, 1  ;;  %v1374_v6 = vsel %vm52_vm0, %v1373_v20, %v1322_v0  ;;  %v9864_v0 = vld [vmem:[%s14657_s1 + $0x3] sm:$0x1] }
 0x24d   :  { %v1385_v36 = vrot.slane %v1329_v44, 1  ;;  %v1809_v39 = vrot.slane %v12827_v1, 2  ;;  %v1810_v40 = vrot.slane %v12827_v1, 3  ;;  %v1376_v5 = vsel %vm55_vm1, %v1375_v53, %v1374_v6  ;;  %v9869_v15 = vld [vmem:[%s14657_s1 + $0x53] sm:$0x1] }
 0x24e   :  { %v1811_v63 = vrot.slane %v12827_v1, 4  ;;  %v1812_v41 = vrot.slane %v12827_v1, 5  ;;  %v1813_v3 = vrot.slane %v12827_v1, 6  ;;  %v1378_v17 = vsel %vm58_vm2, %v1377_v48, %v1376_v5  ;;  %v9871_v20 = vld [vmem:[%s14657_s1 + $0x73] sm:$0x1] }
 0x24f   :  { %v1814_v55 = vrot.slane %v12827_v1, 7  ;;  %v1838_v57 = vsub.f32 %v9864_v0, %v12827_v1  ;;  %v1839_v18 = vsub.f32 %v9865_v16, %v1808_v31  ;;  %v1380_v27 = vsel %vm61_vm3, %v1379_v61, %v1378_v17  ;;  %v9868_v1 = vld [vmem:[%s14657_s1 + $0x43] sm:$0x1] }
 0x250   :  { %v1840_v7 = vsub.f32 %v9866_v22, %v1809_v39  ;;  %v1841_v38 = vsub.f32 %v9867_v51, %v1810_v40  ;;  %v1842_v33 = vsub.f32 %v9868_v1, %v1811_v63  ;;  %v1382_v56 = vsel %vm64_vm4, %v1381_v46, %v1380_v27  ;;  %v5991_v39 = vpop.xlane.xlu1 %5990 }
 0x251   :  { %v1843_v26 = vsub.f32 %v9869_v15, %v1812_v41  ;;  %v1844_v44 = vsub.f32 %v9870_v43, %v1813_v3  ;;  %v1845_v53 = vsub.f32 %v9871_v20, %v1814_v55  ;;  %v1384_v61 = vsel %vm67_vm5, %v1383_v28, %v1382_v56  ;;  %v9872_v56 = vld [vmem:[%s14657_s1 + $0x83] sm:$0x1] }
 0x252   :  { %v9539_v48 = vpop.eup %9538  ;;  %v1883_v31 = vrot.slane %v1839_v18, 7  ;;  %v1885_v46 = vrot.slane %v1840_v7, 6  ;;  %v1887_v6 = vrot.slane %v1841_v38, 5  ;;  %v1386_v63 = vsel %vm70_vm6, %v1385_v36, %v1384_v61  ;;  %v9874_v20 = vld [vmem:[%s14657_s1 + $0xa3] sm:$0x1] }
 0x253   :  { %v9541_v40 = vpop.eup %9540  ;;  %v5993_v5 = vmul.f32 0.6931472, %v9539_v48  ;;  %v1889_v41 = vrot.slane %v1842_v33, 4  ;;  %v1891_v17 = vrot.slane %v1843_v26, 3  ;;  %8869 = vmatmul.mubr.msk.f32.vlgmr.msra.gmra.mxu0 %vm88_vm7, %v1386_v63  ;;  %v1893_v16 = vrot.slane %v1844_v44, 2 }
 0x254   :  { %v5471_v0 = vmul.f32 0.6931472, %v9541_v40  ;;  %v1884_v3 = vsel %vm52_vm0, %v1883_v31, %v1838_v57  ;;  %v1895_v55 = vrot.slane %v1845_v53, 1  ;;  %9542 = vlog2.f32 %v5991_v39  ;;  %8877 = vmatpush3.msk.msra.mxu0 %vm2383_vm13, %v10158_v4  ;;  %v9873_v26 = vld [vmem:[%s14657_s1 + $0x93] sm:$0x1] }
 0x255   :  { %v13179_v27 = vadd.f32 %v5993_v5, %v11640_v58  ;;  %v1886_v28 = vsel %vm55_vm1, %v1885_v46, %v1884_v3  ;;  %v1815_v18 = vrot.slane %v12844_v37, 1  ;;  %v1816_v22 = vrot.slane %v12844_v37, 2  ;;  %8886 = vmatprep.subr.msk.mxu0 %vm3431_vm15, %v10158_v4  ;;  %v6512_v1 = vpop.xlane.xlu0 %6511  ;;  %v9875_v48 = vld [vmem:[%s14657_s1 + $0xb3] sm:$0x1]  ;;  %v9876_v31 = vld [vmem:[%s14657_s1 + $0xc3] sm:$0x1] }
 0x256   :  { %v13188_v36 = vadd.f32 %v5471_v0, %v11705_v47  ;;  %v1888_v57 = vsel %vm58_vm2, %v1887_v6, %v1886_v28  ;;  %v1817_v58 = vrot.slane %v12844_v37, 3  ;;  %v1818_v51 = vrot.slane %v12844_v37, 4  ;;  %v9877_v6 = vld [vmem:[%s14657_s1 + $0xd3] sm:$0x1]  ;;  %v9878_v40 = vld [vmem:[%s14657_s1 + $0xe3] sm:$0x1] }
 0x257   :  { %v1890_v7 = vsel %vm61_vm3, %v1889_v41, %v1888_v57  ;;  %v1819_v59 = vrot.slane %v12844_v37, 5  ;;  %v1820_v47 = vrot.slane %v12844_v37, 6  ;;  %v1821_v33 = vrot.slane %v12844_v37, 7  ;;  %v9879_v63 = vld [vmem:[%s14657_s1 + $0xf3] sm:$0x1] }
 0x258   :  { %v1892_v38 = vsel %vm64_vm4, %v1891_v17, %v1890_v7  ;;  %v1846_v15 = vsub.f32 %v9872_v56, %v12844_v37  ;;  %v1847_v43 = vsub.f32 %v9873_v26, %v1815_v18  ;;  %9544 = vlog2.f32 %v6512_v1  ;;  %v9880_v56 = vld [vmem:[%s14657_s1 + $0x4] sm:$0x1]  ;;  %v9881_v26 = vld [vmem:[%s14657_s1 + $0x14] sm:$0x1] }
 0x259   :  { %v1894_v44 = vsel %vm67_vm5, %v1893_v16, %v1892_v38  ;;  %v1848_v53 = vsub.f32 %v9874_v20, %v1816_v22  ;;  %v1849_v61 = vsub.f32 %v9875_v48, %v1817_v58  ;;  %v1850_v46 = vsub.f32 %v9876_v31, %v1818_v51  ;;  %v9882_v20 = vld [vmem:[%s14657_s1 + $0x24] sm:$0x1]  ;;  %v9883_v48 = vld [vmem:[%s14657_s1 + $0x34] sm:$0x1] }
 0x25a   :  { %v1896_v37 = vsel %vm70_vm6, %v1895_v55, %v1894_v44  ;;  %v1851_v39 = vsub.f32 %v9877_v6, %v1819_v59  ;;  %v1852_v5 = vsub.f32 %v9878_v40, %v1820_v47  ;;  %v1853_v41 = vsub.f32 %v9879_v63, %v1821_v33 }
 0x25b   :  { %8873 = vmatprep.mubr.msk.f32.mxu1 %vm88_vm7, %v1896_v37  ;;  %v1897_v17 = vrot.slane %v1847_v43, 7  ;;  %v1899_v0 = vrot.slane %v1848_v53, 6  ;;  %v1901_v3 = vrot.slane %v1849_v61, 5  ;;  %v1903_v16 = vrot.slane %v1850_v46, 4  ;;  %v9885_v46 = vld [vmem:[%s14657_s1 + $0x54] sm:$0x1] }
 0x25c   :  { %v1905_v55 = vrot.slane %v1851_v39, 3  ;;  %v1907_v28 = vrot.slane %v1852_v5, 2  ;;  %v2332_v18 = vrot.slane %v12853_v14, 1  ;;  %v1909_v22 = vrot.slane %v1853_v41, 1  ;;  %v9886_v39 = vld [vmem:[%s14657_s1 + $0x64] sm:$0x1] }
 0x25d   :  { %v1898_v57 = vsel %vm52_vm0, %v1897_v17, %v1846_v15  ;;  %v2333_v58 = vrot.slane %v12853_v14, 2  ;;  %v2334_v7 = vrot.slane %v12853_v14, 3  ;;  %v2335_v59 = vrot.slane %v12853_v14, 4  ;;  %v9887_v5 = vld [vmem:[%s14657_s1 + $0x74] sm:$0x1]  ;;  %v7036_v41 = vpop.xlane.xlu1 %7035 }
 0x25e   :  { %v1900_v51 = vsel %vm55_vm1, %v1899_v0, %v1898_v57  ;;  %v2336_v47 = vrot.slane %v12853_v14, 5  ;;  %v2337_v38 = vrot.slane %v12853_v14, 6  ;;  %v2338_v33 = vrot.slane %v12853_v14, 7 }
 0x25f   :  { %v1902_v1 = vsel %vm58_vm2, %v1901_v3, %v1900_v51  ;;  %v2362_v15 = vsub.f32 %v9880_v56, %v12853_v14  ;;  %v2363_v43 = vsub.f32 %v9881_v26, %v2332_v18  ;;  %v2364_v53 = vsub.f32 %v9882_v20, %v2333_v58  ;;  %v9884_v14 = vld [vmem:[%s14657_s1 + $0x44] sm:$0x1] }
 0x260   :  { %v1904_v44 = vsel %vm61_vm3, %v1903_v16, %v1902_v1  ;;  %v2365_v61 = vsub.f32 %v9883_v48, %v2334_v7  ;;  %v2366_v37 = vsub.f32 %v9884_v14, %v2335_v59  ;;  %v2367_v6 = vsub.f32 %v9885_v46, %v2336_v47  ;;  %v9889_v14 = vld [vmem:[%s14657_s1 + $0x94] sm:$0x1] }
 0x261   :  { %v1906_v31 = vsel %vm64_vm4, %v1905_v55, %v1904_v44  ;;  %v2368_v40 = vsub.f32 %v9886_v39, %v2337_v38  ;;  %v2369_v63 = vsub.f32 %v9887_v5, %v2338_v33  ;;  %v9543_v17 = vpop.eup %9542  ;;  %v2407_v3 = vrot.slane %v2363_v43, 7  ;;  %v9892_v5 = vld [vmem:[%s14657_s1 + $0xc4] sm:$0x1] }
 0x262   :  { %v1908_v0 = vsel %vm67_vm5, %v1907_v28, %v1906_v31  ;;  %v2409_v16 = vrot.slane %v2364_v53, 6  ;;  %v2411_v55 = vrot.slane %v2365_v61, 5  ;;  %v5995_v18 = vmul.f32 0.6931472, %v9543_v17  ;;  %v9890_v31 = vld [vmem:[%s14657_s1 + $0xa4] sm:$0x1] }
 0x263   :  { %v1910_v57 = vsel %vm70_vm6, %v1909_v22, %v1908_v0  ;;  %v2413_v58 = vrot.slane %v2366_v37, 4  ;;  %v2415_v7 = vrot.slane %v2367_v6, 3  ;;  %v2408_v51 = vsel %vm52_vm0, %v2407_v3, %v2362_v15  ;;  %v9894_v3 = vld [vmem:[%s14657_s1 + $0xe4] sm:$0x1] }
 0x264   :  { %8874 = vmatmul.mubr.msk.f32.vlgmr.msra.gmra.mxu1 %vm88_vm7, %v1910_v57  ;;  %v2417_v59 = vrot.slane %v2368_v40, 2  ;;  %v2419_v47 = vrot.slane %v2369_v63, 1  ;;  %9546 = vlog2.f32 %v7036_v41  ;;  %v13273_v38 = vadd.f32 %v5995_v18, %v11669_v24  ;;  %v9891_v40 = vld [vmem:[%s14657_s1 + $0xb4] sm:$0x1] }
 0x265   :  { %v2410_v28 = vsel %vm55_vm1, %v2409_v16, %v2408_v51  ;;  %v2339_v1 = vrot.slane %v12868_v32, 1  ;;  %v2340_v33 = vrot.slane %v12868_v32, 2  ;;  %8882 = vmatpush3.msk.msra.mxu1 %vm2907_vm14, %v10158_v4  ;;  %v9545_v22 = vpop.eup %9544  ;;  %v2341_v15 = vrot.slane %v12868_v32, 3 }
 0x266   :  { %v2412_v56 = vsel %vm58_vm2, %v2411_v55, %v2410_v28  ;;  %v2342_v26 = vrot.slane %v12868_v32, 4  ;;  %v2343_v24 = vrot.slane %v12868_v32, 5  ;;  %v6517_v43 = vmul.f32 0.6931472, %v9545_v22  ;;  %v9895_v55 = vld [vmem:[%s14657_s1 + $0xf4] sm:$0x1] }
 0x267   :  { %v2414_v44 = vsel %vm61_vm3, %v2413_v58, %v2412_v56  ;;  %v2344_v20 = vrot.slane %v12868_v32, 6  ;;  %v2345_v53 = vrot.slane %v12868_v32, 7  ;;  %v2370_v61 = vsub.f32 %v9888_v25, %v12868_v32  ;;  %v9897_v25 = vld [vmem:[%s14657_s1 + $0x15] sm:$0x1] }
 0x268   :  { %v2416_v48 = vsel %vm64_vm4, %v2415_v7, %v2414_v44  ;;  %v2371_v37 = vsub.f32 %v9889_v14, %v2339_v1  ;;  %v2372_v46 = vsub.f32 %v9890_v31, %v2340_v33  ;;  %v13301_v6 = vadd.f32 %v6517_v43, %v11763_v54  ;;  %v6515_v17 = vpop.xlane.xlu0 %6514  ;;  %v9893_v54 = vld [vmem:[%s14657_s1 + $0xd4] sm:$0x1] }
 0x269   :  { %v2418_v39 = vsel %vm67_vm5, %v2417_v59, %v2416_v48  ;;  %v2373_v32 = vsub.f32 %v9891_v40, %v2341_v15  ;;  %v2374_v63 = vsub.f32 %v9892_v5, %v2342_v26  ;;  %v2375_v0 = vsub.f32 %v9893_v54, %v2343_v24 }
 0x26a   :  { %v2420_v41 = vsel %vm70_vm6, %v2419_v47, %v2418_v39  ;;  %v2376_v16 = vsub.f32 %v9894_v3, %v2344_v20  ;;  %v2377_v18 = vsub.f32 %v9895_v55, %v2345_v53  ;;  %9548 = vlog2.f32 %v6515_v17  ;;  %v9896_v53 = vld [vmem:[%s14657_s1 + $0x5] sm:$0x1] }
 0x26b   :  { %8878 = vmatprep.mubr.msk.f32.mxu0 %vm88_vm7, %v2420_v41  ;;  %v2421_v57 = vrot.slane %v2371_v37, 7  ;;  %v2423_v58 = vrot.slane %v2372_v46, 6  ;;  %v2425_v7 = vrot.slane %v2373_v32, 5  ;;  %v2427_v51 = vrot.slane %v2374_v63, 4  ;;  %v9898_v37 = vld [vmem:[%s14657_s1 + $0x25] sm:$0x1] }
 0x26c   :  { %v2429_v59 = vrot.slane %v2375_v0, 3  ;;  %v2431_v47 = vrot.slane %v2376_v16, 2  ;;  %v2433_v28 = vrot.slane %v2377_v18, 1  ;;  %v2856_v33 = vrot.slane %v12862_v30, 1  ;;  %v9899_v46 = vld [vmem:[%s14657_s1 + $0x35] sm:$0x1] }
 0x26d   :  { %v2422_v1 = vsel %vm52_vm0, %v2421_v57, %v2370_v61  ;;  %v2857_v22 = vrot.slane %v12862_v30, 2  ;;  %v2858_v56 = vrot.slane %v12862_v30, 3  ;;  %v2859_v26 = vrot.slane %v12862_v30, 4  ;;  %v9901_v63 = vld [vmem:[%s14657_s1 + $0x55] sm:$0x1] }
 0x26e   :  { %v2424_v15 = vsel %vm55_vm1, %v2423_v58, %v2422_v1  ;;  %v2860_v24 = vrot.slane %v12862_v30, 5  ;;  %v2861_v43 = vrot.slane %v12862_v30, 6  ;;  %v2862_v20 = vrot.slane %v12862_v30, 7  ;;  %v9902_v17 = vld [vmem:[%s14657_s1 + $0x65] sm:$0x1] }
 0x26f   :  { %v2426_v44 = vsel %vm58_vm2, %v2425_v7, %v2424_v15  ;;  %v2886_v48 = vsub.f32 %v9896_v53, %v12862_v30  ;;  %v2887_v61 = vsub.f32 %v9897_v25, %v2856_v33  ;;  %v2888_v31 = vsub.f32 %v9898_v37, %v2857_v22  ;;  %v9900_v30 = vld [vmem:[%s14657_s1 + $0x45] sm:$0x1]  ;;  %v9903_v0 = vld [vmem:[%s14657_s1 + $0x75] sm:$0x1] }
 0x270   :  { %v2428_v14 = vsel %vm61_vm3, %v2427_v51, %v2426_v44  ;;  %v2889_v39 = vsub.f32 %v9899_v46, %v2858_v56  ;;  %v2890_v40 = vsub.f32 %v9900_v30, %v2859_v26  ;;  %v2891_v41 = vsub.f32 %v9901_v63, %v2860_v24  ;;  %v9904_v25 = vld [vmem:[%s14657_s1 + $0x85] sm:$0x1]  ;;  %v9907_v30 = vld [vmem:[%s14657_s1 + $0xb5] sm:$0x1] }
 0x271   :  { %v9547_v32 = vpop.eup %9546  ;;  %v2430_v5 = vsel %vm64_vm4, %v2429_v59, %v2428_v14  ;;  %v2892_v54 = vsub.f32 %v9902_v17, %v2861_v43  ;;  %v2893_v3 = vsub.f32 %v9903_v0, %v2862_v20  ;;  %v2931_v18 = vrot.slane %v2887_v61, 7  ;;  %v9905_v61 = vld [vmem:[%s14657_s1 + $0x95] sm:$0x1]  ;;  %v9906_v46 = vld [vmem:[%s14657_s1 + $0xa5] sm:$0x1] }
 0x272   :  { %v7041_v16 = vmul.f32 0.6931472, %v9547_v32  ;;  %v2432_v55 = vsel %vm67_vm5, %v2431_v47, %v2430_v5  ;;  %v2933_v57 = vrot.slane %v2888_v31, 6  ;;  %v2935_v7 = vrot.slane %v2889_v39, 5  ;;  %v9908_v5 = vld [vmem:[%s14657_s1 + $0xc5] sm:$0x1] }
 0x273   :  { %v2434_v58 = vsel %vm70_vm6, %v2433_v28, %v2432_v55  ;;  %v2937_v51 = vrot.slane %v2890_v40, 4  ;;  %v2939_v59 = vrot.slane %v2891_v41, 3  ;;  %v2932_v33 = vsel %vm52_vm0, %v2931_v18, %v2886_v48  ;;  %v9909_v41 = vld [vmem:[%s14657_s1 + $0xd5] sm:$0x1]  ;;  %v9910_v0 = vld [vmem:[%s14657_s1 + $0xe5] sm:$0x1] }
 0x274   :  { %v13361_v1 = vadd.f32 %v7041_v16, %v11752_v52  ;;  %8879 = vmatmul.mubr.msk.f32.vlgmr.msra.gmra.mxu0 %vm88_vm7, %v2434_v58  ;;  %v2941_v22 = vrot.slane %v2892_v54, 2  ;;  %v2943_v56 = vrot.slane %v2893_v3, 1  ;;  %v2934_v15 = vsel %vm55_vm1, %v2933_v57, %v2932_v33  ;;  %v9911_v16 = vld [vmem:[%s14657_s1 + $0xf5] sm:$0x1] }
 0x275   :  { %v2863_v47 = vrot.slane %v12871_v62, 1  ;;  %v2864_v26 = vrot.slane %v12871_v62, 2  ;;  %v2865_v28 = vrot.slane %v12871_v62, 3  ;;  %8887 = vmatpush3.msk.msra.mxu0 %vm3431_vm15, %v10158_v4  ;;  %v2936_v52 = vsel %vm58_vm2, %v2935_v7, %v2934_v15  ;;  %v7039_v53 = vpop.xlane.xlu1 %7038 }
 0x276   :  { %v2866_v24 = vrot.slane %v12871_v62, 4  ;;  %v2867_v43 = vrot.slane %v12871_v62, 5  ;;  %v2868_v44 = vrot.slane %v12871_v62, 6  ;;  %v2938_v20 = vsel %vm61_vm3, %v2937_v51, %v2936_v52 }
 0x277   :  { %v2869_v48 = vrot.slane %v12871_v62, 7  ;;  %v2894_v12 = vsub.f32 %v9904_v25, %v12871_v62  ;;  %v2895_v14 = vsub.f32 %v9905_v61, %v2863_v47  ;;  %v9549_v37 = vpop.eup %9548  ;;  %v2940_v31 = vsel %vm64_vm4, %v2939_v59, %v2938_v20  ;;  %v9913_v25 = vld [vmem:[%s14657_s1 + $0x16] sm:$0x1] }
 0x278   :  { %9550 = vlog2.f32 %v7039_v53  ;;  %v2896_v39 = vsub.f32 %v9906_v46, %v2864_v26  ;;  %v2897_v40 = vsub.f32 %v9907_v30, %v2865_v28  ;;  %v6519_v62 = vmul.f32 0.6931472, %v9549_v37  ;;  %v9912_v53 = vld [vmem:[%s14657_s1 + $0x6] sm:$0x1] }
 0x279   :  { %v2942_v32 = vsel %vm67_vm5, %v2941_v22, %v2940_v31  ;;  %v2898_v63 = vsub.f32 %v9908_v5, %v2866_v24  ;;  %v2899_v17 = vsub.f32 %v9909_v41, %v2867_v43  ;;  %v2900_v3 = vsub.f32 %v9910_v0, %v2868_v44  ;;  %v9915_v31 = vld [vmem:[%s14657_s1 + $0x36] sm:$0x1] }
 0x27a   :  { %v2944_v54 = vsel %vm70_vm6, %v2943_v56, %v2942_v32  ;;  %v2901_v55 = vsub.f32 %v9911_v16, %v2869_v48  ;;  %v2945_v18 = vrot.slane %v2895_v14, 7  ;;  %v13408_v57 = vadd.f32 %v6519_v62, %v11853_v10  ;;  %v9914_v14 = vld [vmem:[%s14657_s1 + $0x26] sm:$0x1] }
 0x27b   :  { %8883 = vmatprep.mubr.msk.f32.mxu1 %vm88_vm7, %v2944_v54  ;;  %v2947_v58 = vrot.slane %v2896_v39, 6  ;;  %v2949_v7 = vrot.slane %v2897_v40, 5  ;;  %v2951_v51 = vrot.slane %v2898_v63, 4  ;;  %v2953_v33 = vrot.slane %v2899_v17, 3  ;;  %v9917_v40 = vld [vmem:[%s14657_s1 + $0x56] sm:$0x1] }
 0x27c   :  { %v2946_v59 = vsel %vm52_vm0, %v2945_v18, %v2894_v12  ;;  %v2955_v22 = vrot.slane %v2900_v3, 2  ;;  %v2957_v56 = vrot.slane %v2901_v55, 1  ;;  %v3380_v47 = vrot.slane %v12875_v29, 1  ;;  %v9918_v32 = vld [vmem:[%s14657_s1 + $0x66] sm:$0x1] }
 0x27d   :  { %v2948_v15 = vsel %vm55_vm1, %v2947_v58, %v2946_v59  ;;  %v3381_v26 = vrot.slane %v12875_v29, 2  ;;  %v3382_v28 = vrot.slane %v12875_v29, 3  ;;  %v3383_v52 = vrot.slane %v12875_v29, 4  ;;  %v9919_v63 = vld [vmem:[%s14657_s1 + $0x76] sm:$0x1] }
 0x27e   :  { %v2950_v10 = vsel %vm58_vm2, %v2949_v7, %v2948_v15  ;;  %v3384_v24 = vrot.slane %v12875_v29, 5  ;;  %v3385_v43 = vrot.slane %v12875_v29, 6  ;;  %v3386_v20 = vrot.slane %v12875_v29, 7 }
 0x27f   :  { %v2952_v44 = vsel %vm61_vm3, %v2951_v51, %v2950_v10  ;;  %v3410_v48 = vsub.f32 %v9912_v53, %v12875_v29  ;;  %v3411_v12 = vsub.f32 %v9913_v25, %v3380_v47  ;;  %v3412_v37 = vsub.f32 %v9914_v14, %v3381_v26  ;;  %v9916_v29 = vld [vmem:[%s14657_s1 + $0x46] sm:$0x1]  ;;  %v9921_v53 = vld [vmem:[%s14657_s1 + $0x96] sm:$0x1] }
 0x280   :  { %v2954_v61 = vsel %vm64_vm4, %v2953_v33, %v2952_v44  ;;  %v3413_v46 = vsub.f32 %v9915_v31, %v3382_v28  ;;  %v3414_v39 = vsub.f32 %v9916_v29, %v3383_v52  ;;  %v3415_v62 = vsub.f32 %v9917_v40, %v3384_v24  ;;  %v7560_v17 = vpop.xlane.xlu0 %7559  ;;  %v9920_v44 = vld [vmem:[%s14657_s1 + $0x86] sm:$0x1] }
 0x281   :  { %v2956_v30 = vsel %vm67_vm5, %v2955_v22, %v2954_v61  ;;  %v3416_v5 = vsub.f32 %v9918_v32, %v3385_v43  ;;  %v3417_v41 = vsub.f32 %v9919_v63, %v3386_v20  ;;  %v3455_v0 = vrot.slane %v3411_v12, 7  ;;  %v9922_v25 = vld [vmem:[%s14657_s1 + $0xa6] sm:$0x1] }
 0x282   :  { %v2958_v54 = vsel %vm70_vm6, %v2957_v56, %v2956_v30  ;;  %v3457_v3 = vrot.slane %v3412_v37, 6  ;;  %v3459_v16 = vrot.slane %v3413_v46, 5  ;;  %9552 = vlog2.f32 %v7560_v17  ;;  %v9923_v37 = vld [vmem:[%s14657_s1 + $0xb6] sm:$0x1]  ;;  %v9924_v31 = vld [vmem:[%s14657_s1 + $0xc6] sm:$0x1] }
 0x283   :  { %8884 = vmatmul.mubr.msk.f32.vlgmr.msra.gmra.mxu1 %vm88_vm7, %v2958_v54  ;;  %v3461_v55 = vrot.slane %v3414_v39, 4  ;;  %v3463_v18 = vrot.slane %v3415_v62, 3  ;;  %v3465_v58 = vrot.slane %v3416_v5, 2  ;;  %v3456_v7 = vsel %vm52_vm0, %v3455_v0, %v3410_v48  ;;  %v9925_v39 = vld [vmem:[%s14657_s1 + $0xd6] sm:$0x1] }
 0x284   :  { %v3467_v51 = vrot.slane %v3417_v41, 1  ;;  %v3387_v59 = vrot.slane %v12883_v8, 1  ;;  %v3388_v33 = vrot.slane %v12883_v8, 2  ;;  %v3458_v15 = vsel %vm55_vm1, %v3457_v3, %v3456_v7  ;;  %v9926_v30 = vld [vmem:[%s14657_s1 + $0xe6] sm:$0x1] }
 0x285   :  { %v9551_v22 = vpop.eup %9550  ;;  %v3389_v56 = vrot.slane %v12883_v8, 3  ;;  %v3390_v47 = vrot.slane %v12883_v8, 4  ;;  %v3391_v26 = vrot.slane %v12883_v8, 5  ;;  %v3460_v10 = vsel %vm58_vm2, %v3459_v16, %v3458_v15  ;;  %v9927_v62 = vld [vmem:[%s14657_s1 + $0xf6] sm:$0x1] }
 0x286   :  { %v7043_v28 = vmul.f32 0.6931472, %v9551_v22  ;;  %v3392_v52 = vrot.slane %v12883_v8, 6  ;;  %v3393_v24 = vrot.slane %v12883_v8, 7  ;;  %v3462_v43 = vsel %vm61_vm3, %v3461_v55, %v3460_v10 }
 0x287   :  { %v3418_v20 = vsub.f32 %v9920_v44, %v12883_v8  ;;  %v3419_v48 = vsub.f32 %v9921_v53, %v3387_v59  ;;  %v3420_v12 = vsub.f32 %v9922_v25, %v3388_v33  ;;  %v3464_v14 = vsel %vm64_vm4, %v3463_v18, %v3462_v43  ;;  %v9930_v43 = vld [vmem:[%s14657_s1 + $0x27] sm:$0x1] }
 0x288   :  { %v13473_v61 = vadd.f32 %v7043_v28, %v11851_v13  ;;  %v3421_v8 = vsub.f32 %v9923_v37, %v3389_v56  ;;  %v3422_v46 = vsub.f32 %v9924_v31, %v3390_v47  ;;  %v3466_v29 = vsel %vm67_vm5, %v3465_v58, %v3464_v14  ;;  %v8084_v63 = vpop.xlane.xlu1 %8083  ;;  %v9932_v25 = vld [vmem:[%s14657_s1 + $0x47] sm:$0x1]  ;;  %v9933_v14 = vld [vmem:[%s14657_s1 + $0x57] sm:$0x1] }
 0x289   :  { %v3423_v13 = vsub.f32 %v9925_v39, %v3391_v26  ;;  %v3424_v40 = vsub.f32 %v9926_v30, %v3392_v52  ;;  %v3425_v32 = vsub.f32 %v9927_v62, %v3393_v24  ;;  %v3468_v5 = vsel %vm70_vm6, %v3467_v51, %v3466_v29  ;;  %v9928_v26 = vld [vmem:[%s14657_s1 + $0x7] sm:$0x1]  ;;  %v9929_v52 = vld [vmem:[%s14657_s1 + $0x17] sm:$0x1] }
 0x28a   :  { %v3469_v41 = vrot.slane %v3419_v48, 7  ;;  %v3471_v17 = vrot.slane %v3420_v12, 6  ;;  %v3473_v54 = vrot.slane %v3421_v8, 5  ;;  %8888 = vmatprep.mubr.msk.f32.mxu0 %vm88_vm7, %v3468_v5  ;;  %9554 = vlog2.f32 %v8084_v63  ;;  %v9934_v8 = vld [vmem:[%s14657_s1 + $0x67] sm:$0x1] }
 0x28b   :  { %v3475_v0 = vrot.slane %v3422_v46, 4  ;;  %v3477_v3 = vrot.slane %v3423_v13, 3  ;;  %v3479_v16 = vrot.slane %v3424_v40, 2  ;;  %v3481_v18 = vrot.slane %v3425_v32, 1  ;;  %v9935_v39 = vld [vmem:[%s14657_s1 + $0x77] sm:$0x1] }
 0x28c   :  { %v3470_v55 = vsel %vm52_vm0, %v3469_v41, %v3418_v20  ;;  %v3904_v58 = vrot.slane %v12879_v11, 1  ;;  %v3905_v7 = vrot.slane %v12879_v11, 2  ;;  %v3906_v51 = vrot.slane %v12879_v11, 3  ;;  %v9931_v20 = vld [vmem:[%s14657_s1 + $0x37] sm:$0x1] }
 0x28d   :  { %v3472_v59 = vsel %vm55_vm1, %v3471_v17, %v3470_v55  ;;  %v3907_v33 = vrot.slane %v12879_v11, 4  ;;  %v3908_v22 = vrot.slane %v12879_v11, 5  ;;  %v3909_v56 = vrot.slane %v12879_v11, 6  ;;  %v8662_v40 = vld [vmem:[%s14658_s2 + $0x7] ss:$0 sm:$0xff] }
 0x28e   :  { %v3474_v15 = vsel %vm58_vm2, %v3473_v54, %v3472_v59  ;;  %v3910_v47 = vrot.slane %v12879_v11, 7  ;;  %v3934_v28 = vsub.f32 %v9928_v26, %v12879_v11  ;;  %v3935_v24 = vsub.f32 %v9929_v52, %v3904_v58 }
 0x28f   :  { %v3476_v10 = vsel %vm61_vm3, %v3475_v0, %v3474_v15  ;;  %v3936_v44 = vsub.f32 %v9930_v43, %v3905_v7  ;;  %v3937_v53 = vsub.f32 %v9931_v20, %v3906_v51  ;;  %v9553_v48 = vpop.eup %9552  ;;  %v3938_v12 = vsub.f32 %v9932_v25, %v3907_v33  ;;  %v9938_v43 = vld [vmem:[%s14657_s1 + $0xa7] sm:$0x1]  ;;  %v9939_v20 = vld [vmem:[%s14657_s1 + $0xb7] sm:$0x1] }
 0x290   :  { %v3478_v11 = vsel %vm64_vm4, %v3477_v3, %v3476_v10  ;;  %v3939_v37 = vsub.f32 %v9933_v14, %v3908_v22  ;;  %v3940_v31 = vsub.f32 %v9934_v8, %v3909_v56  ;;  %v7565_v46 = vmul.f32 0.6931472, %v9553_v48 }
 0x291   :  { %v3480_v29 = vsel %vm67_vm5, %v3479_v16, %v3478_v11  ;;  %v3941_v13 = vsub.f32 %v9935_v39, %v3910_v47  ;;  %v3979_v30 = vrot.slane %v3935_v24, 7  ;;  %v3981_v32 = vrot.slane %v3936_v44, 6  ;;  %v9936_v47 = vld [vmem:[%s14657_s1 + $0x87] sm:$0x1] }
 0x292   :  { %v3482_v62 = vsel %vm70_vm6, %v3481_v18, %v3480_v29  ;;  %v3983_v5 = vrot.slane %v3937_v53, 5  ;;  %v3985_v63 = vrot.slane %v3938_v12, 4  ;;  %v13537_v41 = vadd.f32 %v7565_v46, %v11956_v34  ;;  %v9941_v12 = vld [vmem:[%s14657_s1 + $0xd7] sm:$0x1] }
 0x293   :  { %8889 = vmatmul.mubr.msk.f32.vlgmr.msra.gmra.mxu0 %vm88_vm7, %v3482_v62  ;;  %v3980_v17 = vsel %vm52_vm0, %v3979_v30, %v3934_v28  ;;  %v3987_v54 = vrot.slane %v3939_v37, 3  ;;  %v3989_v0 = vrot.slane %v3940_v31, 2  ;;  %v7563_v3 = vpop.xlane.xlu0 %7562  ;;  %v3991_v55 = vrot.slane %v3941_v13, 1  ;;  %v9937_v28 = vld [vmem:[%s14657_s1 + $0x97] sm:$0x1] }
 0x294   :  { %v3982_v16 = vsel %vm55_vm1, %v3981_v32, %v3980_v17  ;;  %vm3955_vm8 = vcmp.eq.s32.totalorder %v12739_v2, %v8662_v40  ;;  %v3911_v18 = vrot.slane %v12887_v42, 1  ;;  %9556 = vlog2.f32 %v7563_v3  ;;  %v9942_v37 = vld [vmem:[%s14657_s1 + $0xe7] sm:$0x1]  ;;  %v9943_v31 = vld [vmem:[%s14657_s1 + $0xf7] sm:$0x1] }
 0x295   :  { %v3984_v58 = vsel %vm58_vm2, %v3983_v5, %v3982_v16  ;;  %8891 = vmatprep.subr.msk.mxu1 %vm3955_vm8, %v10158_v4  ;;  %v3912_v34 = vrot.slane %v12887_v42, 2  ;;  %v3913_v7 = vrot.slane %v12887_v42, 3  ;;  %v3914_v51 = vrot.slane %v12887_v42, 4 }
 0x296   :  { %v3986_v59 = vsel %vm61_vm3, %v3985_v63, %v3984_v58  ;;  %8892 = vmatpush3.msk.msra.mxu1 %vm3955_vm8, %v10158_v4  ;;  %v3915_v33 = vrot.slane %v12887_v42, 5  ;;  %v3916_v22 = vrot.slane %v12887_v42, 6  ;;  %v3917_v56 = vrot.slane %v12887_v42, 7 }
 0x297   :  { %v3988_v15 = vsel %vm64_vm4, %v3987_v54, %v3986_v59  ;;  %v3942_v26 = vsub.f32 %v9936_v47, %v12887_v42  ;;  %v3943_v10 = vsub.f32 %v9937_v28, %v3911_v18  ;;  %v9555_v52 = vpop.eup %9554  ;;  %v3944_v44 = vsub.f32 %v9938_v43, %v3912_v34  ;;  %v9940_v42 = vld [vmem:[%s14657_s1 + $0xc7] sm:$0x1]  ;;  %v9944_v34 = vld [vmem:[%s14657_s1 + $0x8] sm:$0x1] }
 0x298   :  { %v3990_v24 = vsel %vm67_vm5, %v3989_v0, %v3988_v15  ;;  %v3945_v53 = vsub.f32 %v9939_v20, %v3913_v7  ;;  %v3946_v48 = vsub.f32 %v9940_v42, %v3914_v51  ;;  %v8089_v11 = vmul.f32 0.6931472, %v9555_v52  ;;  %v9945_v51 = vld [vmem:[%s14657_s1 + $0x18] sm:$0x1] }
 0x299   :  { %v3992_v25 = vsel %vm70_vm6, %v3991_v55, %v3990_v24  ;;  %v3947_v14 = vsub.f32 %v9941_v12, %v3915_v33  ;;  %v3948_v8 = vsub.f32 %v9942_v37, %v3916_v22  ;;  %v3949_v46 = vsub.f32 %v9943_v31, %v3917_v56  ;;  %v9946_v22 = vld [vmem:[%s14657_s1 + $0x28] sm:$0x1]  ;;  %v9947_v56 = vld [vmem:[%s14657_s1 + $0x38] sm:$0x1] }
 0x29a   :  { %8893 = vmatprep.mubr.msk.f32.mxu1 %vm88_vm7, %v3992_v25  ;;  %v3993_v29 = vrot.slane %v3943_v10, 7  ;;  %v3995_v39 = vrot.slane %v3944_v44, 6  ;;  %v3997_v13 = vrot.slane %v3945_v53, 5  ;;  %v13584_v30 = vadd.f32 %v8089_v11, %v11946_v49  ;;  %v9949_v10 = vld [vmem:[%s14657_s1 + $0x58] sm:$0x1] }
 0x29b   :  { %v3999_v40 = vrot.slane %v3946_v48, 4  ;;  %v4001_v62 = vrot.slane %v3947_v14, 3  ;;  %v4003_v32 = vrot.slane %v3948_v8, 2  ;;  %v4005_v63 = vrot.slane %v3949_v46, 1  ;;  %v9950_v24 = vld [vmem:[%s14657_s1 + $0x68] sm:$0x1] }
 0x29c   :  { %v3994_v5 = vsel %vm52_vm0, %v3993_v29, %v3942_v26  ;;  %v4428_v17 = vrot.slane %v12894_v9, 1  ;;  %v4429_v54 = vrot.slane %v12894_v9, 2  ;;  %v4430_v3 = vrot.slane %v12894_v9, 3  ;;  %v9951_v53 = vld [vmem:[%s14657_s1 + $0x78] sm:$0x1] }
 0x29d   :  { %v3996_v0 = vsel %vm55_vm1, %v3995_v39, %v3994_v5  ;;  %v4431_v16 = vrot.slane %v12894_v9, 4  ;;  %v4432_v55 = vrot.slane %v12894_v9, 5  ;;  %v4433_v18 = vrot.slane %v12894_v9, 6  ;;  %v8677_v25 = vld [vmem:[%s14658_s2 + $0x8] ss:$0 sm:$0xff] }
 0x29e   :  { %v3998_v49 = vsel %vm58_vm2, %v3997_v13, %v3996_v0  ;;  %v4434_v58 = vrot.slane %v12894_v9, 7  ;;  %v4458_v7 = vsub.f32 %v9944_v34, %v12894_v9  ;;  %v4459_v33 = vsub.f32 %v9945_v51, %v4428_v17  ;;  %v9948_v9 = vld [vmem:[%s14657_s1 + $0x48] sm:$0x1] }
 0x29f   :  { %v4000_v59 = vsel %vm61_vm3, %v3999_v40, %v3998_v49  ;;  %v4460_v15 = vsub.f32 %v9946_v22, %v4429_v54  ;;  %v4461_v47 = vsub.f32 %v9947_v56, %v4430_v3  ;;  %v4462_v28 = vsub.f32 %v9948_v9, %v4431_v16  ;;  %v9952_v49 = vld [vmem:[%s14657_s1 + $0x88] sm:$0x1] }
 0x2a0   :  { %v4002_v26 = vsel %vm64_vm4, %v4001_v62, %v4000_v59  ;;  %v4463_v52 = vsub.f32 %v9949_v10, %v4432_v55  ;;  %v4464_v43 = vsub.f32 %v9950_v24, %v4433_v18  ;;  %v8087_v44 = vpop.xlane.xlu1 %8086  ;;  %v4465_v42 = vsub.f32 %v9951_v53, %v4434_v58  ;;  %v9953_v58 = vld [vmem:[%s14657_s1 + $0x98] sm:$0x1]  ;;  %v9954_v59 = vld [vmem:[%s14657_s1 + $0xa8] sm:$0x1] }
 0x2a1   :  { %v4004_v20 = vsel %vm67_vm5, %v4003_v32, %v4002_v26  ;;  %v4503_v48 = vrot.slane %v4459_v33, 7  ;;  %v4505_v11 = vrot.slane %v4460_v15, 6  ;;  %v9557_v12 = vpop.eup %9556  ;;  %9558 = vlog2.f32 %v8087_v44  ;;  %v9955_v33 = vld [vmem:[%s14657_s1 + $0xb8] sm:$0x1]  ;;  %v9958_v9 = vld [vmem:[%s14657_s1 + $0xe8] sm:$0x1] }
 0x2a2   :  { %v4006_v14 = vsel %vm70_vm6, %v4005_v63, %v4004_v20  ;;  %v4507_v37 = vrot.slane %v4461_v47, 5  ;;  %v4509_v8 = vrot.slane %v4462_v28, 4  ;;  %v7567_v31 = vmul.f32 0.6931472, %v9557_v12  ;;  %v9957_v47 = vld [vmem:[%s14657_s1 + $0xd8] sm:$0x1] }
 0x2a3   :  { %8894 = vmatmul.mubr.msk.f32.vlgmr.msra.gmra.mxu1 %vm88_vm7, %v4006_v14  ;;  %v4504_v46 = vsel %vm52_vm0, %v4503_v48, %v4458_v7  ;;  %v4511_v29 = vrot.slane %v4463_v52, 3  ;;  %v4513_v39 = vrot.slane %v4464_v43, 2  ;;  %v4515_v40 = vrot.slane %v4465_v42, 1  ;;  %v9959_v10 = vld [vmem:[%s14657_s1 + $0xf8] sm:$0x1] }
 0x2a4   :  { %v4506_v13 = vsel %vm55_vm1, %v4505_v11, %v4504_v46  ;;  %vm4479_vm9 = vcmp.eq.s32.totalorder %v12739_v2, %v8677_v25  ;;  %v4435_v62 = vrot.slane %v13031_v50, 1  ;;  %v13634_v32 = vadd.f32 %v7567_v31, %v12046_v21 }
 0x2a5   :  { %v4508_v5 = vsel %vm58_vm2, %v4507_v37, %v4506_v13  ;;  %8896 = vmatprep.subr.msk.mxu0 %vm4479_vm9, %v10158_v4  ;;  %v4436_v63 = vrot.slane %v13031_v50, 2  ;;  %v4437_v17 = vrot.slane %v13031_v50, 3  ;;  %v4438_v0 = vrot.slane %v13031_v50, 4  ;;  %v9960_v13 = vld [vmem:[%s14657_s1 + $0x9] sm:$0x1] }
 0x2a6   :  { %v4510_v54 = vsel %vm61_vm3, %v4509_v8, %v4508_v5  ;;  %8897 = vmatpush3.msk.msra.mxu0 %vm4479_vm9, %v10158_v4  ;;  %v4439_v3 = vrot.slane %v13031_v50, 5  ;;  %v4440_v16 = vrot.slane %v13031_v50, 6  ;;  %v4441_v55 = vrot.slane %v13031_v50, 7 }
 0x2a7   :  { %v4512_v21 = vsel %vm64_vm4, %v4511_v29, %v4510_v54  ;;  %v4466_v18 = vsub.f32 %v9952_v49, %v13031_v50  ;;  %v4467_v34 = vsub.f32 %v9953_v58, %v4435_v62  ;;  %v4468_v51 = vsub.f32 %v9954_v59, %v4436_v63  ;;  %v9956_v50 = vld [vmem:[%s14657_s1 + $0xc8] sm:$0x1]  ;;  %v9961_v62 = vld [vmem:[%s14657_s1 + $0x19] sm:$0x1]  ;;  %v9962_v63 = vld [vmem:[%s14657_s1 + $0x29] sm:$0x1] }
 0x2a8   :  { %v4514_v7 = vsel %vm67_vm5, %v4513_v39, %v4512_v21  ;;  %v4469_v22 = vsub.f32 %v9955_v33, %v4437_v17  ;;  %v4470_v15 = vsub.f32 %v9956_v50, %v4438_v0  ;;  %v4471_v26 = vsub.f32 %v9957_v47, %v4439_v3  ;;  %v9963_v3 = vld [vmem:[%s14657_s1 + $0x39] sm:$0x1]  ;;  %v8692_v33 = vld [vmem:[%s14658_s2 + $0x9] ss:$0 sm:$0xff] }
 0x2a9   :  { %v4516_v56 = vsel %vm70_vm6, %v4515_v40, %v4514_v7  ;;  %v4472_v28 = vsub.f32 %v9958_v9, %v4440_v16  ;;  %v4473_v52 = vsub.f32 %v9959_v10, %v4441_v55  ;;  %v4517_v24 = vrot.slane %v4467_v34, 7  ;;  %v9965_v55 = vld [vmem:[%s14657_s1 + $0x59] sm:$0x1]  ;;  %v9966_v34 = vld [vmem:[%s14657_s1 + $0x69] sm:$0x1] }
 0x2aa   :  { %8898 = vmatprep.mubr.msk.f32.mxu0 %vm88_vm7, %v4516_v56  ;;  %v4519_v43 = vrot.slane %v4468_v51, 6  ;;  %v4521_v44 = vrot.slane %v4469_v22, 5  ;;  %v4523_v20 = vrot.slane %v4470_v15, 4  ;;  %v4525_v53 = vrot.slane %v4471_v26, 3  ;;  %v9967_v59 = vld [vmem:[%s14657_s1 + $0x79] sm:$0x1] }
 0x2ab   :  { %v4527_v42 = vrot.slane %v4472_v28, 2  ;;  %v4529_v48 = vrot.slane %v4473_v52, 1  ;;  %v4952_v11 = vrot.slane %v12930_v35, 1  ;;  %v4518_v25 = vsel %vm52_vm0, %v4517_v24, %v4466_v18 }
 0x2ac   :  { %v4953_v12 = vrot.slane %v12930_v35, 2  ;;  %v4954_v14 = vrot.slane %v12930_v35, 3  ;;  %v4955_v37 = vrot.slane %v12930_v35, 4  ;;  %v4520_v8 = vsel %vm55_vm1, %v4519_v43, %v4518_v25 }
 0x2ad   :  { %v4956_v31 = vrot.slane %v12930_v35, 5  ;;  %v4957_v46 = vrot.slane %v12930_v35, 6  ;;  %v4958_v29 = vrot.slane %v12930_v35, 7  ;;  %v4522_v39 = vsel %vm58_vm2, %v4521_v44, %v4520_v8  ;;  %v9969_v8 = vld [vmem:[%s14657_s1 + $0x99] sm:$0x1] }
 0x2ae   :  { %v4982_v40 = vsub.f32 %v9960_v13, %v12930_v35  ;;  %v4983_v5 = vsub.f32 %v9961_v62, %v4952_v11  ;;  %v4984_v17 = vsub.f32 %v9962_v63, %v4953_v12  ;;  %v9559_v54 = vpop.eup %9558  ;;  %v4524_v0 = vsel %vm61_vm3, %v4523_v20, %v4522_v39  ;;  %v9964_v35 = vld [vmem:[%s14657_s1 + $0x49] sm:$0x1]  ;;  %v9971_v13 = vld [vmem:[%s14657_s1 + $0xb9] sm:$0x1] }
 0x2af   :  { %v4985_v16 = vsub.f32 %v9963_v3, %v4954_v14  ;;  %v4986_v21 = vsub.f32 %v9964_v35, %v4955_v37  ;;  %v4987_v49 = vsub.f32 %v9965_v55, %v4956_v31  ;;  %v8091_v18 = vmul.f32 0.6931472, %v9559_v54  ;;  %v9968_v14 = vld [vmem:[%s14657_s1 + $0x89] sm:$0x1]  ;;  %v9973_v63 = vld [vmem:[%s14657_s1 + $0xd9] sm:$0x1] }
 0x2b0   :  { %v4526_v58 = vsel %vm64_vm4, %v4525_v53, %v4524_v0  ;;  %v4988_v7 = vsub.f32 %v9966_v34, %v4957_v46  ;;  %v4989_v51 = vsub.f32 %v9967_v59, %v4958_v29  ;;  %v5027_v50 = vrot.slane %v4983_v5, 7  ;;  %v9970_v29 = vld [vmem:[%s14657_s1 + $0xa9] sm:$0x1]  ;;  %v9975_v3 = vld [vmem:[%s14657_s1 + $0xf9] sm:$0x1] }
 0x2b1   :  { %v4528_v22 = vsel %vm67_vm5, %v4527_v42, %v4526_v58  ;;  %v5029_v15 = vrot.slane %v4984_v17, 6  ;;  %v5031_v56 = vrot.slane %v4985_v16, 5  ;;  %v13717_v47 = vadd.f32 %v8091_v18, %v12042_v45  ;;  %v9974_v54 = vld [vmem:[%s14657_s1 + $0xe9] sm:$0x1] }
 0x2b2   :  { %v4530_v26 = vsel %vm70_vm6, %v4529_v48, %v4528_v22  ;;  %v5033_v9 = vrot.slane %v4986_v21, 4  ;;  %v5035_v28 = vrot.slane %v4987_v49, 3  ;;  %v5028_v10 = vsel %vm52_vm0, %v5027_v50, %v4982_v40 }
 0x2b3   :  { %8899 = vmatmul.mubr.msk.f32.vlgmr.msra.gmra.mxu0 %vm88_vm7, %v4530_v26  ;;  %v5037_v52 = vrot.slane %v4988_v7, 2  ;;  %v5039_v24 = vrot.slane %v4989_v51, 1  ;;  %vm5003_vm10 = vcmp.eq.s32.totalorder %v12739_v2, %v8692_v33  ;;  %v5030_v43 = vsel %vm55_vm1, %v5029_v15, %v5028_v10  ;;  %v9976_v10 = vld [vmem:[%s14657_s1 + $0xa] sm:$0x1] }
 0x2b4   :  { %8901 = vmatprep.subr.msk.mxu1 %vm5003_vm10, %v10158_v4  ;;  %v4959_v44 = vrot.slane %v13082_v23, 1  ;;  %v4960_v45 = vrot.slane %v13082_v23, 2  ;;  %v4961_v20 = vrot.slane %v13082_v23, 3  ;;  %v5032_v53 = vsel %vm58_vm2, %v5031_v56, %v5030_v43 }
 0x2b5   :  { %8902 = vmatpush3.msk.msra.mxu1 %vm5003_vm10, %v10158_v4  ;;  %v4962_v42 = vrot.slane %v13082_v23, 4  ;;  %v4963_v48 = vrot.slane %v13082_v23, 5  ;;  %v4964_v11 = vrot.slane %v13082_v23, 6  ;;  %v5034_v25 = vsel %vm61_vm3, %v5033_v9, %v5032_v53  ;;  %v9979_v53 = vld [vmem:[%s14657_s1 + $0x3a] sm:$0x1] }
 0x2b6   :  { %v4965_v12 = vrot.slane %v13082_v23, 7  ;;  %v4990_v37 = vsub.f32 %v9968_v14, %v13082_v23  ;;  %v4991_v31 = vsub.f32 %v9969_v8, %v4959_v44  ;;  %v5036_v46 = vsel %vm64_vm4, %v5035_v28, %v5034_v25  ;;  %v9972_v23 = vld [vmem:[%s14657_s1 + $0xc9] sm:$0x1]  ;;  %v9981_v25 = vld [vmem:[%s14657_s1 + $0x5a] sm:$0x1] }
 0x2b7   :  { %v4992_v39 = vsub.f32 %v9970_v29, %v4960_v45  ;;  %v4993_v40 = vsub.f32 %v9971_v13, %v4961_v20  ;;  %v4994_v62 = vsub.f32 %v9972_v23, %v4962_v42  ;;  %v5038_v5 = vsel %vm67_vm5, %v5037_v52, %v5036_v46  ;;  %v9978_v45 = vld [vmem:[%s14657_s1 + $0x2a] sm:$0x1]  ;;  %v9983_v8 = vld [vmem:[%s14657_s1 + $0x7a] sm:$0x1] }
 0x2b8   :  { %v4995_v17 = vsub.f32 %v9973_v63, %v4963_v48  ;;  %v4996_v0 = vsub.f32 %v9974_v54, %v4964_v11  ;;  %v4997_v16 = vsub.f32 %v9975_v3, %v4965_v12  ;;  %v5040_v35 = vsel %vm70_vm6, %v5039_v24, %v5038_v5  ;;  %v9977_v24 = vld [vmem:[%s14657_s1 + $0x1a] sm:$0x1]  ;;  %v9982_v14 = vld [vmem:[%s14657_s1 + $0x6a] sm:$0x1] }
 0x2b9   :  { %v5041_v21 = vrot.slane %v4991_v31, 7  ;;  %v5043_v55 = vrot.slane %v4992_v39, 6  ;;  %v5045_v49 = vrot.slane %v4993_v40, 5  ;;  %8903 = vmatprep.mubr.msk.f32.mxu1 %vm88_vm7, %v5040_v35  ;;  %v5047_v18 = vrot.slane %v4994_v62, 4  ;;  %v8707_v46 = vld [vmem:[%s14658_s2 + $0xa] ss:$0 sm:$0xff] }
 0x2ba   :  { %v5049_v58 = vrot.slane %v4995_v17, 3  ;;  %v5051_v34 = vrot.slane %v4996_v0, 2  ;;  %v5053_v7 = vrot.slane %v4997_v16, 1  ;;  %v5476_v51 = vrot.slane %v13091_v19, 1 }
 0x2bb   :  { %v5042_v59 = vsel %vm52_vm0, %v5041_v21, %v4990_v37  ;;  %v5477_v33 = vrot.slane %v13091_v19, 2  ;;  %v5478_v22 = vrot.slane %v13091_v19, 3  ;;  %v5479_v15 = vrot.slane %v13091_v19, 4 }
 0x2bc   :  { %v5044_v50 = vsel %vm55_vm1, %v5043_v55, %v5042_v59  ;;  %v5480_v56 = vrot.slane %v13091_v19, 5  ;;  %v5481_v26 = vrot.slane %v13091_v19, 6  ;;  %v5482_v28 = vrot.slane %v13091_v19, 7 }
 0x2bd   :  { %v5046_v9 = vsel %vm58_vm2, %v5045_v49, %v5044_v50  ;;  %v5506_v52 = vsub.f32 %v9976_v10, %v13091_v19  ;;  %v5507_v43 = vsub.f32 %v9977_v24, %v5476_v51  ;;  %v5508_v20 = vsub.f32 %v9978_v45, %v5477_v33  ;;  %v9980_v19 = vld [vmem:[%s14657_s1 + $0x4a] sm:$0x1]  ;;  %v9985_v51 = vld [vmem:[%s14657_s1 + $0x9a] sm:$0x1] }
 0x2be   :  { %v5048_v44 = vsel %vm61_vm3, %v5047_v18, %v5046_v9  ;;  %v5509_v42 = vsub.f32 %v9979_v53, %v5478_v22  ;;  %v5510_v48 = vsub.f32 %v9980_v19, %v5479_v15  ;;  %v5511_v12 = vsub.f32 %v9981_v25, %v5480_v56  ;;  %v9986_v22 = vld [vmem:[%s14657_s1 + $0xaa] sm:$0x1]  ;;  %v9987_v56 = vld [vmem:[%s14657_s1 + $0xba] sm:$0x1] }
 0x2bf   :  { %v5050_v11 = vsel %vm64_vm4, %v5049_v58, %v5048_v44  ;;  %v5512_v37 = vsub.f32 %v9982_v14, %v5481_v26  ;;  %v5513_v31 = vsub.f32 %v9983_v8, %v5482_v28  ;;  %v5551_v39 = vrot.slane %v5507_v43, 7  ;;  %v9989_v28 = vld [vmem:[%s14657_s1 + $0xda] sm:$0x1]  ;;  %v9990_v24 = vld [vmem:[%s14657_s1 + $0xea] sm:$0x1] }
 0x2c0   :  { %v5052_v29 = vsel %vm67_vm5, %v5051_v34, %v5050_v11  ;;  %v5553_v13 = vrot.slane %v5508_v20, 6  ;;  %v5555_v40 = vrot.slane %v5509_v42, 5  ;;  %v5557_v62 = vrot.slane %v5510_v48, 4  ;;  %v9991_v44 = vld [vmem:[%s14657_s1 + $0xfa] sm:$0x1] }
 0x2c1   :  { %v5054_v23 = vsel %vm70_vm6, %v5053_v7, %v5052_v29  ;;  %v5559_v5 = vrot.slane %v5511_v12, 3  ;;  %v5561_v63 = vrot.slane %v5512_v37, 2  ;;  %v5552_v17 = vsel %vm52_vm0, %v5551_v39, %v5506_v52  ;;  %v9984_v7 = vld [vmem:[%s14657_s1 + $0x8a] sm:$0x1] }
 0x2c2   :  { %8904 = vmatmul.mubr.msk.f32.vlgmr.msra.gmra.mxu1 %vm88_vm7, %v5054_v23  ;;  %v5563_v54 = vrot.slane %v5513_v31, 1  ;;  %vm5527_vm11 = vcmp.eq.s32.totalorder %v12739_v2, %v8707_v46  ;;  %v5483_v0 = vrot.slane %v13188_v36, 1  ;;  %v5554_v3 = vsel %vm55_vm1, %v5553_v13, %v5552_v17  ;;  %v9993_v17 = vld [vmem:[%s14657_s1 + $0x1b] sm:$0x1] }
 0x2c3   :  { %8906 = vmatprep.subr.msk.mxu0 %vm5527_vm11, %v10158_v4  ;;  %v5484_v16 = vrot.slane %v13188_v36, 2  ;;  %v5485_v35 = vrot.slane %v13188_v36, 3  ;;  %v5486_v21 = vrot.slane %v13188_v36, 4  ;;  %v5556_v55 = vsel %vm58_vm2, %v5555_v40, %v5554_v3  ;;  %v9994_v3 = vld [vmem:[%s14657_s1 + $0x2b] sm:$0x1] }
 0x2c4   :  { %8907 = vmatpush3.msk.msra.mxu0 %vm5527_vm11, %v10158_v4  ;;  %v5487_v49 = vrot.slane %v13188_v36, 5  ;;  %v5488_v18 = vrot.slane %v13188_v36, 6  ;;  %v5489_v58 = vrot.slane %v13188_v36, 7  ;;  %v5558_v34 = vsel %vm61_vm3, %v5557_v62, %v5556_v55 }
 0x2c5   :  { %v5514_v59 = vsub.f32 %v9984_v7, %v13188_v36  ;;  %v5515_v33 = vsub.f32 %v9985_v51, %v5483_v0  ;;  %v5516_v50 = vsub.f32 %v9986_v22, %v5484_v16  ;;  %v5560_v15 = vsel %vm64_vm4, %v5559_v5, %v5558_v34  ;;  %v9988_v36 = vld [vmem:[%s14657_s1 + $0xca] sm:$0x1]  ;;  %v9992_v5 = vld [vmem:[%s14657_s1 + $0xb] sm:$0x1] }
 0x2c6   :  { %v5517_v26 = vsub.f32 %v9987_v56, %v5485_v35  ;;  %v5518_v9 = vsub.f32 %v9988_v36, %v5486_v21  ;;  %v5519_v10 = vsub.f32 %v9989_v28, %v5487_v49  ;;  %v5562_v52 = vsel %vm67_vm5, %v5561_v63, %v5560_v15  ;;  %v9995_v35 = vld [vmem:[%s14657_s1 + $0x3b] sm:$0x1]  ;;  %v9998_v34 = vld [vmem:[%s14657_s1 + $0x6b] sm:$0x1] }
 0x2c7   :  { %v5520_v43 = vsub.f32 %v9990_v24, %v5488_v18  ;;  %v5521_v45 = vsub.f32 %v9991_v44, %v5489_v58  ;;  %v5565_v20 = vrot.slane %v5515_v33, 7  ;;  %v5564_v53 = vsel %vm70_vm6, %v5563_v54, %v5562_v52  ;;  %v9997_v18 = vld [vmem:[%s14657_s1 + $0x5b] sm:$0x1]  ;;  %v8722_v33 = vld [vmem:[%s14658_s2 + $0xb] ss:$0 sm:$0xff] }
 0x2c8   :  { %v5567_v42 = vrot.slane %v5516_v50, 6  ;;  %v5569_v19 = vrot.slane %v5517_v26, 5  ;;  %v5571_v48 = vrot.slane %v5518_v9, 4  ;;  %8908 = vmatprep.mubr.msk.f32.mxu0 %vm88_vm7, %v5564_v53  ;;  %v5573_v25 = vrot.slane %v5519_v10, 3 }
 0x2c9   :  { %v5566_v11 = vsel %vm52_vm0, %v5565_v20, %v5514_v59  ;;  %v5575_v12 = vrot.slane %v5520_v43, 2  ;;  %v5577_v14 = vrot.slane %v5521_v45, 1  ;;  %v6000_v8 = vrot.slane %v13179_v27, 1  ;;  %v9999_v59 = vld [vmem:[%s14657_s1 + $0x7b] sm:$0x1] }
 0x2ca   :  { %v5568_v37 = vsel %vm55_vm1, %v5567_v42, %v5566_v11  ;;  %v6001_v31 = vrot.slane %v13179_v27, 2  ;;  %v6002_v46 = vrot.slane %v13179_v27, 3  ;;  %v6003_v39 = vrot.slane %v13179_v27, 4 }
 0x2cb   :  { %v5570_v29 = vsel %vm58_vm2, %v5569_v19, %v5568_v37  ;;  %v6004_v13 = vrot.slane %v13179_v27, 5  ;;  %v6005_v40 = vrot.slane %v13179_v27, 6  ;;  %v6006_v62 = vrot.slane %v13179_v27, 7  ;;  %v10002_v37 = vld [vmem:[%s14657_s1 + $0xab] sm:$0x1] }
 0x2cc   :  { %v5572_v23 = vsel %vm61_vm3, %v5571_v48, %v5570_v29  ;;  %v6030_v63 = vsub.f32 %v9992_v5, %v13179_v27  ;;  %v6031_v54 = vsub.f32 %v9993_v17, %v6000_v8  ;;  %v6032_v16 = vsub.f32 %v9994_v3, %v6001_v31  ;;  %v9996_v27 = vld [vmem:[%s14657_s1 + $0x4b] sm:$0x1]  ;;  %v10003_v31 = vld [vmem:[%s14657_s1 + $0xbb] sm:$0x1] }
 0x2cd   :  { %v5574_v0 = vsel %vm64_vm4, %v5573_v25, %v5572_v23  ;;  %v6033_v21 = vsub.f32 %v9995_v35, %v6002_v46  ;;  %v6034_v55 = vsub.f32 %v9996_v27, %v6003_v39  ;;  %v6035_v58 = vsub.f32 %v9997_v18, %v6004_v13  ;;  %v10000_v48 = vld [vmem:[%s14657_s1 + $0x8b] sm:$0x1]  ;;  %v10005_v13 = vld [vmem:[%s14657_s1 + $0xdb] sm:$0x1] }
 0x2ce   :  { %v5576_v49 = vsel %vm67_vm5, %v5575_v12, %v5574_v0  ;;  %v6036_v7 = vsub.f32 %v9998_v34, %v6005_v40  ;;  %v6037_v51 = vsub.f32 %v9999_v59, %v6006_v62  ;;  %v6075_v50 = vrot.slane %v6031_v54, 7  ;;  %v10001_v12 = vld [vmem:[%s14657_s1 + $0x9b] sm:$0x1]  ;;  %v10006_v23 = vld [vmem:[%s14657_s1 + $0xeb] sm:$0x1] }
 0x2cf   :  { %v5578_v22 = vsel %vm70_vm6, %v5577_v14, %v5576_v49  ;;  %v6077_v15 = vrot.slane %v6032_v16, 6  ;;  %v6079_v56 = vrot.slane %v6033_v21, 5  ;;  %v6081_v26 = vrot.slane %v6034_v55, 4 }
 0x2d0   :  { %8909 = vmatmul.mubr.msk.f32.vlgmr.msra.gmra.mxu0 %vm88_vm7, %v5578_v22  ;;  %v6083_v36 = vrot.slane %v6035_v58, 3  ;;  %v6085_v9 = vrot.slane %v6036_v7, 2  ;;  %v6087_v28 = vrot.slane %v6037_v51, 1  ;;  %v6076_v10 = vsel %vm52_vm0, %v6075_v50, %v6030_v63  ;;  %v10007_v63 = vld [vmem:[%s14657_s1 + $0xfb] sm:$0x1] }
 0x2d1   :  { %vm6051_vm12 = vcmp.eq.s32.totalorder %v12739_v2, %v8722_v33  ;;  %v6007_v52 = vrot.slane %v13273_v38, 1  ;;  %v6008_v24 = vrot.slane %v13273_v38, 2  ;;  %v6078_v43 = vsel %vm55_vm1, %v6077_v15, %v6076_v10 }
 0x2d2   :  { %8911 = vmatprep.subr.msk.mxu1 %vm6051_vm12, %v10158_v4  ;;  %v6009_v44 = vrot.slane %v13273_v38, 3  ;;  %v6010_v45 = vrot.slane %v13273_v38, 4  ;;  %v6011_v20 = vrot.slane %v13273_v38, 5  ;;  %v6080_v53 = vsel %vm58_vm2, %v6079_v56, %v6078_v43  ;;  %v10008_v56 = vld [vmem:[%s14657_s1 + $0xc] sm:$0x1] }
 0x2d3   :  { %8912 = vmatpush3.msk.msra.mxu1 %vm6051_vm12, %v10158_v4  ;;  %v6012_v42 = vrot.slane %v13273_v38, 6  ;;  %v6013_v19 = vrot.slane %v13273_v38, 7  ;;  %v6038_v11 = vsub.f32 %v10000_v48, %v13273_v38  ;;  %v6082_v25 = vsel %vm61_vm3, %v6081_v26, %v6080_v53  ;;  %v10004_v38 = vld [vmem:[%s14657_s1 + $0xcb] sm:$0x1]  ;;  %v10015_v48 = vld [vmem:[%s14657_s1 + $0x7c] sm:$0x1] }
 0x2d4   :  { %v6039_v14 = vsub.f32 %v10001_v12, %v6007_v52  ;;  %v6040_v8 = vsub.f32 %v10002_v37, %v6008_v24  ;;  %v6041_v46 = vsub.f32 %v10003_v31, %v6009_v44  ;;  %v6084_v29 = vsel %vm64_vm4, %v6083_v36, %v6082_v25  ;;  %v10009_v36 = vld [vmem:[%s14657_s1 + $0x1c] sm:$0x1]  ;;  %v8737_v12 = vld [vmem:[%s14658_s2 + $0xc] ss:$0 sm:$0xff] }
 0x2d5   :  { %v6042_v39 = vsub.f32 %v10004_v38, %v6010_v45  ;;  %v6043_v40 = vsub.f32 %v10005_v13, %v6011_v20  ;;  %v6044_v62 = vsub.f32 %v10006_v23, %v6012_v42  ;;  %v6086_v5 = vsel %vm67_vm5, %v6085_v9, %v6084_v29  ;;  %v10011_v24 = vld [vmem:[%s14657_s1 + $0x3c] sm:$0x1]  ;;  %v10014_v42 = vld [vmem:[%s14657_s1 + $0x6c] sm:$0x1] }
 0x2d6   :  { %v6045_v17 = vsub.f32 %v10007_v63, %v6013_v19  ;;  %v6089_v54 = vrot.slane %v6039_v14, 7  ;;  %v6091_v0 = vrot.slane %v6040_v8, 6  ;;  %v6088_v3 = vsel %vm70_vm6, %v6087_v28, %v6086_v5  ;;  %v10010_v28 = vld [vmem:[%s14657_s1 + $0x2c] sm:$0x1]  ;;  %v10013_v45 = vld [vmem:[%s14657_s1 + $0x5c] sm:$0x1] }
 0x2d7   :  { %v6093_v16 = vrot.slane %v6041_v46, 5  ;;  %v6095_v35 = vrot.slane %v6042_v39, 4  ;;  %v6097_v21 = vrot.slane %v6043_v40, 3  ;;  %8913 = vmatprep.mubr.msk.f32.mxu1 %vm88_vm7, %v6088_v3  ;;  %v6099_v55 = vrot.slane %v6044_v62, 2 }
 0x2d8   :  { %v6090_v27 = vsel %vm52_vm0, %v6089_v54, %v6038_v11  ;;  %v6101_v49 = vrot.slane %v6045_v17, 1  ;;  %v6524_v18 = vrot.slane %v13301_v6, 1  ;;  %v6525_v34 = vrot.slane %v13301_v6, 2 }
 0x2d9   :  { %v6092_v58 = vsel %vm55_vm1, %v6091_v0, %v6090_v27  ;;  %v6526_v7 = vrot.slane %v13301_v6, 3  ;;  %v6527_v59 = vrot.slane %v13301_v6, 4  ;;  %v6528_v33 = vrot.slane %v13301_v6, 5  ;;  %v10017_v27 = vld [vmem:[%s14657_s1 + $0x9c] sm:$0x1] }
 0x2da   :  { %v6094_v51 = vsel %vm58_vm2, %v6093_v16, %v6092_v58  ;;  %v6529_v22 = vrot.slane %v13301_v6, 6  ;;  %v6530_v50 = vrot.slane %v13301_v6, 7  ;;  %v6554_v26 = vsub.f32 %v10008_v56, %v13301_v6  ;;  %v10012_v6 = vld [vmem:[%s14657_s1 + $0x4c] sm:$0x1]  ;;  %v10019_v58 = vld [vmem:[%s14657_s1 + $0xbc] sm:$0x1] }
 0x2db   :  { %v6096_v15 = vsel %vm61_vm3, %v6095_v35, %v6094_v51  ;;  %v6555_v9 = vsub.f32 %v10009_v36, %v6524_v18  ;;  %v6556_v10 = vsub.f32 %v10010_v28, %v6525_v34  ;;  %v6557_v43 = vsub.f32 %v10011_v24, %v6526_v7  ;;  %v10016_v16 = vld [vmem:[%s14657_s1 + $0x8c] sm:$0x1]  ;;  %v10021_v51 = vld [vmem:[%s14657_s1 + $0xdc] sm:$0x1] }
 0x2dc   :  { %v6098_v52 = vsel %vm64_vm4, %v6097_v21, %v6096_v15  ;;  %v6558_v44 = vsub.f32 %v10012_v6, %v6527_v59  ;;  %v6559_v20 = vsub.f32 %v10013_v45, %v6528_v33  ;;  %v6560_v19 = vsub.f32 %v10014_v42, %v6529_v22  ;;  %v10022_v22 = vld [vmem:[%s14657_s1 + $0xec] sm:$0x1]  ;;  %v10023_v56 = vld [vmem:[%s14657_s1 + $0xfc] sm:$0x1] }
 0x2dd   :  { %v6100_v53 = vsel %vm67_vm5, %v6099_v55, %v6098_v52  ;;  %v6561_v11 = vsub.f32 %v10015_v48, %v6530_v50  ;;  %v6599_v25 = vrot.slane %v6555_v9, 7  ;;  %v6601_v37 = vrot.slane %v6556_v10, 6 }
 0x2de   :  { %v6102_v14 = vsel %vm70_vm6, %v6101_v49, %v6100_v53  ;;  %v6603_v8 = vrot.slane %v6557_v43, 5  ;;  %v6605_v31 = vrot.slane %v6558_v44, 4  ;;  %v6607_v29 = vrot.slane %v6559_v20, 3  ;;  %v10018_v49 = vld [vmem:[%s14657_s1 + $0xac] sm:$0x1] }
 0x2df   :  { %8914 = vmatmul.mubr.msk.f32.vlgmr.msra.gmra.mxu1 %vm88_vm7, %v6102_v14  ;;  %v6600_v46 = vsel %vm52_vm0, %v6599_v25, %v6554_v26  ;;  %v6609_v38 = vrot.slane %v6560_v19, 2  ;;  %v6611_v39 = vrot.slane %v6561_v11, 1  ;;  %vm6575_vm13 = vcmp.eq.s32.totalorder %v12739_v2, %v8737_v12  ;;  %v10024_v12 = vld [vmem:[%s14657_s1 + $0xd] sm:$0x1] }
 0x2e0   :  { %v6602_v13 = vsel %vm55_vm1, %v6601_v37, %v6600_v46  ;;  %v6531_v40 = vrot.slane %v13408_v57, 1  ;;  %v6532_v23 = vrot.slane %v13408_v57, 2  ;;  %8916 = vmatprep.subr.msk.mxu0 %vm6575_vm13, %v10158_v4  ;;  %v6533_v5 = vrot.slane %v13408_v57, 3  ;;  %v10026_v46 = vld [vmem:[%s14657_s1 + $0x2d] sm:$0x1] }
 0x2e1   :  { %v6604_v62 = vsel %vm58_vm2, %v6603_v8, %v6602_v13  ;;  %v6534_v63 = vrot.slane %v13408_v57, 4  ;;  %v6535_v17 = vrot.slane %v13408_v57, 5  ;;  %8917 = vmatpush3.msk.msra.mxu0 %vm6575_vm13, %v10158_v4  ;;  %v6536_v0 = vrot.slane %v13408_v57, 6  ;;  %v10025_v8 = vld [vmem:[%s14657_s1 + $0x1d] sm:$0x1] }
 0x2e2   :  { %v6606_v54 = vsel %vm61_vm3, %v6605_v31, %v6604_v62  ;;  %v6537_v3 = vrot.slane %v13408_v57, 7  ;;  %v6562_v35 = vsub.f32 %v10016_v16, %v13408_v57  ;;  %v6563_v55 = vsub.f32 %v10017_v27, %v6531_v40  ;;  %v10020_v57 = vld [vmem:[%s14657_s1 + $0xcc] sm:$0x1] }
 0x2e3   :  { %v6608_v21 = vsel %vm64_vm4, %v6607_v29, %v6606_v54  ;;  %v6564_v18 = vsub.f32 %v10018_v49, %v6532_v23  ;;  %v6565_v34 = vsub.f32 %v10019_v58, %v6533_v5  ;;  %v6566_v59 = vsub.f32 %v10020_v57, %v6534_v63  ;;  %v10029_v23 = vld [vmem:[%s14657_s1 + $0x5d] sm:$0x1]  ;;  %v10030_v5 = vld [vmem:[%s14657_s1 + $0x6d] sm:$0x1] }
 0x2e4   :  { %v6610_v7 = vsel %vm67_vm5, %v6609_v38, %v6608_v21  ;;  %v6567_v33 = vsub.f32 %v10021_v51, %v6535_v17  ;;  %v6568_v50 = vsub.f32 %v10022_v22, %v6536_v0  ;;  %v6569_v26 = vsub.f32 %v10023_v56, %v6537_v3  ;;  %v10027_v38 = vld [vmem:[%s14657_s1 + $0x3d] sm:$0x1]  ;;  %v8752_v17 = vld [vmem:[%s14658_s2 + $0xd] ss:$0 sm:$0xff] }
 0x2e5   :  { %v6612_v15 = vsel %vm70_vm6, %v6611_v39, %v6610_v7  ;;  %v6613_v36 = vrot.slane %v6563_v55, 7  ;;  %v6615_v9 = vrot.slane %v6564_v18, 6  ;;  %v6617_v28 = vrot.slane %v6565_v34, 5  ;;  %v10031_v0 = vld [vmem:[%s14657_s1 + $0x7d] sm:$0x1] }
 0x2e6   :  { %8918 = vmatprep.mubr.msk.f32.mxu0 %vm88_vm7, %v6612_v15  ;;  %v6619_v10 = vrot.slane %v6566_v59, 4  ;;  %v6621_v52 = vrot.slane %v6567_v33, 3  ;;  %v6623_v24 = vrot.slane %v6568_v50, 2  ;;  %v6625_v6 = vrot.slane %v6569_v26, 1 }
 0x2e7   :  { %v6614_v43 = vsel %vm52_vm0, %v6613_v36, %v6562_v35  ;;  %v7048_v44 = vrot.slane %v13361_v1, 1  ;;  %v7049_v45 = vrot.slane %v13361_v1, 2  ;;  %v7050_v53 = vrot.slane %v13361_v1, 3  ;;  %v10032_v36 = vld [vmem:[%s14657_s1 + $0x8d] sm:$0x1] }
 0x2e8   :  { %v6616_v20 = vsel %vm55_vm1, %v6615_v9, %v6614_v43  ;;  %v7051_v42 = vrot.slane %v13361_v1, 4  ;;  %v7052_v19 = vrot.slane %v13361_v1, 5  ;;  %v7053_v11 = vrot.slane %v13361_v1, 6 }
 0x2e9   :  { %v6618_v48 = vsel %vm58_vm2, %v6617_v28, %v6616_v20  ;;  %v7054_v25 = vrot.slane %v13361_v1, 7  ;;  %v7078_v14 = vsub.f32 %v10024_v12, %v13361_v1  ;;  %v7079_v31 = vsub.f32 %v10025_v8, %v7048_v44  ;;  %v10028_v1 = vld [vmem:[%s14657_s1 + $0x4d] sm:$0x1]  ;;  %v10033_v28 = vld [vmem:[%s14657_s1 + $0x9d] sm:$0x1] }
 0x2ea   :  { %v6620_v37 = vsel %vm61_vm3, %v6619_v10, %v6618_v48  ;;  %v7080_v29 = vsub.f32 %v10026_v46, %v7049_v45  ;;  %v7081_v39 = vsub.f32 %v10027_v38, %v7050_v53  ;;  %v7082_v40 = vsub.f32 %v10028_v1, %v7051_v42  ;;  %v10037_v53 = vld [vmem:[%s14657_s1 + $0xdd] sm:$0x1] }
 0x2eb   :  { %v6622_v13 = vsel %vm64_vm4, %v6621_v52, %v6620_v37  ;;  %v7083_v62 = vsub.f32 %v10029_v23, %v7052_v19  ;;  %v7084_v63 = vsub.f32 %v10030_v5, %v7053_v11  ;;  %v7085_v3 = vsub.f32 %v10031_v0, %v7054_v25  ;;  %v10038_v19 = vld [vmem:[%s14657_s1 + $0xed] sm:$0x1]  ;;  %v10039_v11 = vld [vmem:[%s14657_s1 + $0xfd] sm:$0x1]  ;;  %v10040_v0 = vld [vmem:[%s14657_s1 + $0xe] sm:$0x1] }
 0x2ec   :  { %v6624_v54 = vsel %vm67_vm5, %v6623_v24, %v6622_v13  ;;  %v7123_v16 = vrot.slane %v7079_v31, 7  ;;  %v7125_v35 = vrot.slane %v7080_v29, 6  ;;  %v7127_v27 = vrot.slane %v7081_v39, 5  ;;  %v10034_v24 = vld [vmem:[%s14657_s1 + $0xad] sm:$0x1] }
 0x2ed   :  { %v6626_v21 = vsel %vm70_vm6, %v6625_v6, %v6624_v54  ;;  %v7129_v55 = vrot.slane %v7082_v40, 4  ;;  %v7131_v49 = vrot.slane %v7083_v62, 3  ;;  %v7133_v58 = vrot.slane %v7084_v63, 2  ;;  %v10035_v6 = vld [vmem:[%s14657_s1 + $0xbd] sm:$0x1] }
 0x2ee   :  { %8919 = vmatmul.mubr.msk.f32.vlgmr.msra.gmra.mxu0 %vm88_vm7, %v6626_v21  ;;  %v7124_v18 = vsel %vm52_vm0, %v7123_v16, %v7078_v14  ;;  %v7135_v34 = vrot.slane %v7085_v3, 1  ;;  %vm7099_vm14 = vcmp.eq.s32.totalorder %v12739_v2, %v8752_v17  ;;  %v7055_v57 = vrot.slane %v13473_v61, 1  ;;  %v10041_v16 = vld [vmem:[%s14657_s1 + $0x1e] sm:$0x1] }
 0x2ef   :  { %v7126_v7 = vsel %vm55_vm1, %v7125_v35, %v7124_v18  ;;  %8921 = vmatprep.subr.msk.mxu1 %vm7099_vm14, %v10158_v4  ;;  %v7056_v59 = vrot.slane %v13473_v61, 2  ;;  %v7057_v51 = vrot.slane %v13473_v61, 3  ;;  %v7058_v22 = vrot.slane %v13473_v61, 4 }
 0x2f0   :  { %v7128_v33 = vsel %vm58_vm2, %v7127_v27, %v7126_v7  ;;  %8922 = vmatpush3.msk.msra.mxu1 %vm7099_vm14, %v10158_v4  ;;  %v7059_v50 = vrot.slane %v13473_v61, 5  ;;  %v7060_v15 = vrot.slane %v13473_v61, 6  ;;  %v7061_v26 = vrot.slane %v13473_v61, 7  ;;  %v10042_v27 = vld [vmem:[%s14657_s1 + $0x2e] sm:$0x1] }
 0x2f1   :  { %v7130_v56 = vsel %vm61_vm3, %v7129_v55, %v7128_v33  ;;  %v7086_v9 = vsub.f32 %v10032_v36, %v13473_v61  ;;  %v7087_v10 = vsub.f32 %v10033_v28, %v7055_v57  ;;  %v7088_v43 = vsub.f32 %v10034_v24, %v7056_v59  ;;  %v10036_v61 = vld [vmem:[%s14657_s1 + $0xcd] sm:$0x1]  ;;  %v10045_v7 = vld [vmem:[%s14657_s1 + $0x5e] sm:$0x1]  ;;  %v10046_v59 = vld [vmem:[%s14657_s1 + $0x6e] sm:$0x1] }
 0x2f2   :  { %v7132_v52 = vsel %vm64_vm4, %v7131_v49, %v7130_v56  ;;  %v7089_v44 = vsub.f32 %v10035_v6, %v7057_v51  ;;  %v7090_v45 = vsub.f32 %v10036_v61, %v7058_v22  ;;  %v7091_v42 = vsub.f32 %v10037_v53, %v7059_v50  ;;  %v10043_v49 = vld [vmem:[%s14657_s1 + $0x3e] sm:$0x1]  ;;  %v8767_v50 = vld [vmem:[%s14658_s2 + $0xe] ss:$0 sm:$0xff] }
 0x2f3   :  { %v7134_v20 = vsel %vm67_vm5, %v7133_v58, %v7132_v52  ;;  %v7092_v48 = vsub.f32 %v10038_v19, %v7060_v15  ;;  %v7093_v25 = vsub.f32 %v10039_v11, %v7061_v26  ;;  %v7137_v14 = vrot.slane %v7087_v10, 7  ;;  %v10047_v33 = vld [vmem:[%s14657_s1 + $0x7e] sm:$0x1]  ;;  %v8782_v15 = vld [vmem:[%s14658_s2 + $0xf] ss:$0 sm:$0xff] }
 0x2f4   :  { %v7136_v12 = vsel %vm70_vm6, %v7135_v34, %v7134_v20  ;;  %v7139_v37 = vrot.slane %v7088_v43, 6  ;;  %v7141_v8 = vrot.slane %v7089_v44, 5  ;;  %v7143_v31 = vrot.slane %v7090_v45, 4 }
 0x2f5   :  { %8923 = vmatprep.mubr.msk.f32.mxu1 %vm88_vm7, %v7136_v12  ;;  %v7145_v46 = vrot.slane %v7091_v42, 3  ;;  %v7147_v29 = vrot.slane %v7092_v48, 2  ;;  %v7149_v38 = vrot.slane %v7093_v25, 1  ;;  %v7138_v39 = vsel %vm52_vm0, %v7137_v14, %v7086_v9  ;;  %v10048_v12 = vld [vmem:[%s14657_s1 + $0x8e] sm:$0x1] }
 0x2f6   :  { %v7572_v13 = vrot.slane %v13537_v41, 1  ;;  %v7573_v1 = vrot.slane %v13537_v41, 2  ;;  %v7574_v40 = vrot.slane %v13537_v41, 3  ;;  %v7140_v23 = vsel %vm55_vm1, %v7139_v37, %v7138_v39  ;;  %v10049_v37 = vld [vmem:[%s14657_s1 + $0x9e] sm:$0x1] }
 0x2f7   :  { %v7575_v62 = vrot.slane %v13537_v41, 4  ;;  %v7576_v5 = vrot.slane %v13537_v41, 5  ;;  %v7577_v63 = vrot.slane %v13537_v41, 6  ;;  %v7142_v17 = vsel %vm58_vm2, %v7141_v8, %v7140_v23  ;;  %v10054_v23 = vld [vmem:[%s14657_s1 + $0xee] sm:$0x1] }
 0x2f8   :  { %v7578_v54 = vrot.slane %v13537_v41, 7  ;;  %v7602_v3 = vsub.f32 %v10040_v0, %v13537_v41  ;;  %v7603_v35 = vsub.f32 %v10041_v16, %v7572_v13  ;;  %v7144_v21 = vsel %vm61_vm3, %v7143_v31, %v7142_v17  ;;  %v10044_v41 = vld [vmem:[%s14657_s1 + $0x4e] sm:$0x1] }
 0x2f9   :  { %v7604_v55 = vsub.f32 %v10042_v27, %v7573_v1  ;;  %v7605_v18 = vsub.f32 %v10043_v49, %v7574_v40  ;;  %v7606_v58 = vsub.f32 %v10044_v41, %v7575_v62  ;;  %v7146_v34 = vsel %vm64_vm4, %v7145_v46, %v7144_v21  ;;  %v10053_v1 = vld [vmem:[%s14657_s1 + $0xde] sm:$0x1] }
 0x2fa   :  { %v7607_v57 = vsub.f32 %v10045_v7, %v7576_v5  ;;  %v7608_v51 = vsub.f32 %v10046_v59, %v7577_v63  ;;  %v7609_v22 = vsub.f32 %v10047_v33, %v7578_v54  ;;  %v7148_v56 = vsel %vm67_vm5, %v7147_v29, %v7146_v34  ;;  %v10051_v29 = vld [vmem:[%s14657_s1 + $0xbe] sm:$0x1]  ;;  %v10056_v33 = vld [vmem:[%s14657_s1 + $0xf] sm:$0x1] }
 0x2fb   :  { %v7647_v26 = vrot.slane %v7603_v35, 7  ;;  %v7649_v36 = vrot.slane %v7604_v55, 6  ;;  %v7651_v9 = vrot.slane %v7605_v18, 5  ;;  %v7150_v28 = vsel %vm70_vm6, %v7149_v38, %v7148_v56  ;;  %v10055_v5 = vld [vmem:[%s14657_s1 + $0xfe] sm:$0x1] }
 0x2fc   :  { %v7653_v10 = vrot.slane %v7606_v58, 4  ;;  %v7655_v52 = vrot.slane %v7607_v57, 3  ;;  %v7657_v24 = vrot.slane %v7608_v51, 2  ;;  %8924 = vmatmul.mubr.msk.f32.vlgmr.msra.gmra.mxu1 %vm88_vm7, %v7150_v28  ;;  %v7659_v6 = vrot.slane %v7609_v22, 1 }
 0x2fd   :  { %v7648_v43 = vsel %vm52_vm0, %v7647_v26, %v7602_v3  ;;  %vm7623_vm15 = vcmp.eq.s32.totalorder %v12739_v2, %v8767_v50  ;;  %vm8147_vm8 = vcmp.eq.s32.totalorder %v12739_v2, %v8782_v15  ;;  %v7579_v61 = vrot.slane %v13634_v32, 1  ;;  %v10057_v50 = vld [vmem:[%s14657_s1 + $0x1f] sm:$0x1]  ;;  %v10058_v26 = vld [vmem:[%s14657_s1 + $0x2f] sm:$0x1] }
 0x2fe   :  { %v7650_v44 = vsel %vm55_vm1, %v7649_v36, %v7648_v43  ;;  %8926 = vmatprep.subr.msk.mxu0 %vm7623_vm15, %v10158_v4  ;;  %8931 = vmatprep.subr.msk.mxu1 %vm8147_vm8, %v10158_v4  ;;  %v7580_v45 = vrot.slane %v13634_v32, 2  ;;  %v7581_v20 = vrot.slane %v13634_v32, 3  ;;  %v7582_v42 = vrot.slane %v13634_v32, 4 }
 0x2ff   :  { %v7652_v53 = vsel %vm58_vm2, %v7651_v9, %v7650_v44  ;;  %8927 = vmatpush3.msk.msra.mxu0 %vm7623_vm15, %v10158_v4  ;;  %v7583_v19 = vrot.slane %v13634_v32, 5  ;;  %v7584_v48 = vrot.slane %v13634_v32, 6  ;;  %8932 = vmatpush3.msk.msra.mxu1 %vm8147_vm8, %v10158_v4  ;;  %v7585_v25 = vrot.slane %v13634_v32, 7  ;;  %v10050_v4 = vld [vmem:[%s14657_s1 + $0xae] sm:$0x1] }
 0x300   :  { %v7654_v11 = vsel %vm61_vm3, %v7653_v10, %v7652_v53  ;;  %v7610_v14 = vsub.f32 %v10048_v12, %v13634_v32  ;;  %v7611_v8 = vsub.f32 %v10049_v37, %v7579_v61  ;;  %v7612_v46 = vsub.f32 %v10050_v4, %v7580_v45  ;;  %v10052_v32 = vld [vmem:[%s14657_s1 + $0xce] sm:$0x1]  ;;  %v10059_v9 = vld [vmem:[%s14657_s1 + $0x3f] sm:$0x1] }
 0x301   :  { %v7656_v31 = vsel %vm64_vm4, %v7655_v52, %v7654_v11  ;;  %v7613_v38 = vsub.f32 %v10051_v29, %v7581_v20  ;;  %v7614_v39 = vsub.f32 %v10052_v32, %v7582_v42  ;;  %v7615_v40 = vsub.f32 %v10053_v1, %v7583_v19  ;;  %v10063_v61 = vld [vmem:[%s14657_s1 + $0x7f] sm:$0x1]  ;;  %v8860_v32 = vpop.f32.mrf.mxu0 }
 0x302   :  { %v7658_v13 = vsel %vm67_vm5, %v7657_v24, %v7656_v31  ;;  %v7616_v62 = vsub.f32 %v10054_v23, %v7584_v48  ;;  %v7617_v63 = vsub.f32 %v10055_v5, %v7585_v25  ;;  %v7661_v54 = vrot.slane %v7611_v8, 7  ;;  %v10061_v24 = vld [vmem:[%s14657_s1 + $0x5f] sm:$0x1] }
 0x303   :  { %v7660_v17 = vsel %vm70_vm6, %v7659_v6, %v7658_v13  ;;  %v7663_v0 = vrot.slane %v7612_v46, 6  ;;  %v7665_v3 = vrot.slane %v7613_v38, 5  ;;  %v7667_v16 = vrot.slane %v7614_v39, 4  ;;  %v10062_v6 = vld [vmem:[%s14657_s1 + $0x6f] sm:$0x1] }
 0x304   :  { %8928 = vmatprep.mubr.msk.f32.mxu0 %vm88_vm7, %v7660_v17  ;;  %v7669_v35 = vrot.slane %v7615_v40, 3  ;;  %v7671_v21 = vrot.slane %v7616_v62, 2  ;;  %v7673_v27 = vrot.slane %v7617_v63, 1  ;;  %v7662_v55 = vsel %vm52_vm0, %v7661_v54, %v7610_v14  ;;  %v10064_v40 = vld [vmem:[%s14657_s1 + $0x8f] sm:$0x1]  ;;  %v8865_v62 = vpop.f32.mrf.mxu1 }
 0x305   :  { %v8096_v49 = vrot.slane %v13584_v30, 1  ;;  %v8097_v18 = vrot.slane %v13584_v30, 2  ;;  %v8098_v41 = vrot.slane %v13584_v30, 3  ;;  %v7664_v58 = vsel %vm55_vm1, %v7663_v0, %v7662_v55  ;;  %v10065_v63 = vld [vmem:[%s14657_s1 + $0x9f] sm:$0x1] }
 0x306   :  { %v8099_v34 = vrot.slane %v13584_v30, 4  ;;  %v8100_v7 = vrot.slane %v13584_v30, 5  ;;  %v8101_v57 = vrot.slane %v13584_v30, 6  ;;  %v7666_v59 = vsel %vm58_vm2, %v7665_v3, %v7664_v58  ;;  %v10066_v54 = vld [vmem:[%s14657_s1 + $0xaf] sm:$0x1] }
 0x307   :  { %v8102_v51 = vrot.slane %v13584_v30, 7  ;;  %v8126_v22 = vsub.f32 %v10056_v33, %v13584_v30  ;;  %v8127_v15 = vsub.f32 %v10057_v50, %v8096_v49  ;;  %v7668_v56 = vsel %vm61_vm3, %v7667_v16, %v7666_v59  ;;  %v10060_v30 = vld [vmem:[%s14657_s1 + $0x4f] sm:$0x1]  ;;  %v10067_v3 = vld [vmem:[%s14657_s1 + $0xbf] sm:$0x1] }
 0x308   :  { %v8128_v36 = vsub.f32 %v10058_v26, %v8097_v18  ;;  %v8129_v28 = vsub.f32 %v10059_v9, %v8098_v41  ;;  %v8130_v10 = vsub.f32 %v10060_v30, %v8099_v34  ;;  %v7670_v52 = vsel %vm64_vm4, %v7669_v35, %v7668_v56  ;;  %v10068_v35 = vld [vmem:[%s14657_s1 + $0xcf] sm:$0x1]  ;;  %v8560_v41 = vld [vmem:[%s14659_s3 + $0x10] ss:$0 sm:$0xff]  ;;  %v10071_v34 = vld [vmem:[%s14657_s1 + $0xff] sm:$0x1]  ;;  %v933_v26 = vpop.f32.mrf.mxu1 }
 0x309   :  { %v8131_v43 = vsub.f32 %v10061_v24, %v8100_v7  ;;  %v8132_v44 = vsub.f32 %v10062_v6, %v8101_v57  ;;  %v8133_v45 = vsub.f32 %v10063_v61, %v8102_v51  ;;  %v7672_v20 = vsel %vm67_vm5, %v7671_v21, %v7670_v52  ;;  %v10070_v49 = vld [vmem:[%s14657_s1 + $0xef] sm:$0x1]  ;;  %v409_v51 = vpop.f32.mrf.mxu0  ;;  %v8575_v33 = vld [vmem:[%s14659_s3 + $0x11] ss:$0 sm:$0xff] }
 0x30a   :  { %v8171_v53 = vrot.slane %v8127_v15, 7  ;;  %v8173_v42 = vrot.slane %v8128_v36, 6  ;;  %v8175_v19 = vrot.slane %v8129_v28, 5  ;;  %v7674_v48 = vsel %vm70_vm6, %v7673_v27, %v7672_v20  ;;  %v10069_v27 = vld [vmem:[%s14657_s1 + $0xdf] sm:$0x1] }
 0x30b   :  { %v8177_v11 = vrot.slane %v8130_v10, 4  ;;  %v8179_v25 = vrot.slane %v8131_v43, 3  ;;  %v8181_v12 = vrot.slane %v8132_v44, 2  ;;  %8929 = vmatmul.mubr.msk.f32.vlgmr.msra.gmra.mxu0 %vm88_vm7, %v7674_v48  ;;  %v8183_v37 = vrot.slane %v8133_v45, 1  ;;  %v8590_v10 = vld [vmem:[%s14659_s3 + $0x12] ss:$0 sm:$0xff] }
 0x30c   :  { %v8172_v14 = vsel %vm52_vm0, %v8171_v53, %v8126_v22  ;;  %v8103_v8 = vrot.slane %v13717_v47, 1  ;;  %v8104_v31 = vrot.slane %v13717_v47, 2  ;;  %v8105_v46 = vrot.slane %v13717_v47, 3 }
 0x30d   :  { %v8174_v4 = vsel %vm55_vm1, %v8173_v42, %v8172_v14  ;;  %v8106_v29 = vrot.slane %v13717_v47, 4  ;;  %v8107_v38 = vrot.slane %v13717_v47, 5  ;;  %v8108_v13 = vrot.slane %v13717_v47, 6 }
 0x30e   :  { %v8176_v39 = vsel %vm58_vm2, %v8175_v19, %v8174_v4  ;;  %v8109_v1 = vrot.slane %v13717_v47, 7  ;;  %v8134_v23 = vsub.f32 %v10064_v40, %v13717_v47  ;;  %v8135_v17 = vsub.f32 %v10065_v63, %v8103_v8 }
 0x30f   :  { %v8178_v5 = vsel %vm61_vm3, %v8177_v11, %v8176_v39  ;;  %v8136_v0 = vsub.f32 %v10066_v54, %v8104_v31  ;;  %v8137_v16 = vsub.f32 %v10067_v3, %v8105_v46  ;;  %v8138_v21 = vsub.f32 %v10068_v35, %v8106_v29 }
 0x310   :  { %v8180_v47 = vsel %vm64_vm4, %v8179_v25, %v8178_v5  ;;  %v8139_v55 = vsub.f32 %v10069_v27, %v8107_v38  ;;  %v8140_v18 = vsub.f32 %v10070_v49, %v8108_v13  ;;  %v8141_v7 = vsub.f32 %v10071_v34, %v8109_v1 }
 0x311   :  { %v8182_v58 = vsel %vm67_vm5, %v8181_v12, %v8180_v47  ;;  %v8185_v57 = vrot.slane %v8135_v17, 7  ;;  %v8187_v59 = vrot.slane %v8136_v0, 6  ;;  %v8189_v50 = vrot.slane %v8137_v16, 5 }
 0x312   :  { %v8184_v22 = vsel %vm70_vm6, %v8183_v37, %v8182_v58  ;;  %v8191_v15 = vrot.slane %v8138_v21, 4  ;;  %v8193_v56 = vrot.slane %v8139_v55, 3  ;;  %v8195_v9 = vrot.slane %v8140_v18, 2 }
 0x313   :  { %8933 = vmatprep.mubr.msk.f32.mxu1 %vm88_vm7, %v8184_v22  ;;  %v8186_v36 = vsel %vm52_vm0, %v8185_v57, %v8134_v23  ;;  %v8197_v28 = vrot.slane %v8141_v7, 1  ;;  %v415_v30 = vadd.f32 %v8860_v32, %v8560_v41  ;;  %v410_v24 = vadd.f32 %v8560_v41, %v409_v51  ;;  %v8870_v6 = vpop.f32.mrf.mxu0 }
 0x314   :  { %v8188_v52 = vsel %vm55_vm1, %v8187_v59, %v8186_v36  ;;  %v939_v43 = vadd.f32 %v8865_v62, %v8575_v33  ;;  %v10160_v45 = vmov 1966171168   ;;  %v934_v53 = vadd.f32 %v8575_v33, %v933_v26 }
 0x315   :  { %v8190_v44 = vsel %vm58_vm2, %v8189_v50, %v8188_v52  ;;  %v419_v61 = vmax.f32 %v415_v30, -1e+30  ;;  %v424_v20 = vunpack.c.l.s4 %v10160_v45  ;;  %v418_v19 = vmax.f32 %v410_v24, -1e+30  ;;  %v1457_v8 = vpop.f32.mrf.mxu0 }
 0x316   :  { %v8192_v42 = vsel %vm61_vm3, %v8191_v15, %v8190_v44  ;;  %v943_v48 = vmax.f32 %v939_v43, -1e+30  ;;  %v1463_v11 = vadd.f32 %v8870_v6, %v8590_v10  ;;  %v942_v37 = vmax.f32 %v934_v53, -1e+30 }
 0x317   :  { %v8194_v25 = vsel %vm64_vm4, %v8193_v56, %v8192_v42  ;;  %v425_v12 = vunpack.c.0.s8 %v424_v20  ;;  %v471_v14 = vcombine.high %v419_v61, %v419_v61  ;;  %v422_v4 = vcombine.high %v418_v19, %v418_v19 }
 0x318   :  { %v8196_v31 = vsel %vm67_vm5, %v8195_v9, %v8194_v25  ;;  %v995_v46 = vcombine.high %v943_v48, %v943_v48  ;;  %v14295_v29 = vmax.f32 %v1463_v11, -1e+30  ;;  %v946_v39 = vcombine.high %v942_v37, %v942_v37 }
 0x319   :  { %v8198_v38 = vsel %vm70_vm6, %v8197_v28, %v8196_v31  ;;  %v14299_v32 = vsub.s32 %v425_v12, %v12739_v2  ;;  %v14304_v1 = vadd.f32 %v8590_v10, %v1457_v8 }
 0x31a   :  { %8934 = vmatmul.mubr.msk.f32.vlgmr.msra.gmra.mxu1 %vm88_vm7, %v8198_v38  ;;  %v1519_v13 = vcombine.high %v14295_v29, %v14295_v29 }
 0x31b   :  { %v478_v40 = vrot.slane %v419_v61, %v14299_v32  ;;  %v485_v23 = vrot.slane %v471_v14, %v14299_v32  ;;  %v429_v62 = vrot.slane %v418_v19, %v14299_v32  ;;  %v436_v5 = vrot.slane %v422_v4, %v14299_v32  ;;  %v8605_v61 = vld [vmem:[%s14659_s3 + $0x13] ss:$0 sm:$0xff] }
 0x31c   :  { %v1002_v63 = vrot.slane %v943_v48, %v14299_v32  ;;  %v1009_v2 = vrot.slane %v995_v46, %v14299_v32  ;;  %v953_v17 = vrot.slane %v942_v37, %v14299_v32  ;;  %v960_v54 = vrot.slane %v946_v39, %v14299_v32 }
 0x31d   :  { %v486_v0 = vcombine.high %v478_v40, %v478_v40  ;;  %v487_v3 = vcombine.high %v485_v23, %v485_v23  ;;  %v494_v16 = vrot.slane %v478_v40, %v14299_v32  ;;  %v501_v47 = vrot.slane %v485_v23, %v14299_v32  ;;  %8568 = vst.sshfl [vmem:[#allocation2 + $0x80] sm:$0x1 pattern:$0x73625140] %v478_v40 }
 0x31e   :  { %8570 = vst.sshfl [vmem:[#allocation2 + $0xc0] sm:$0x1 pattern:$0x73625140] %v485_v23  ;;  %v437_v35 = vcombine.high %v429_v62, %v429_v62  ;;  %v438_v21 = vcombine.high %v436_v5, %v436_v5  ;;  %v445_v27 = vrot.slane %v429_v62, %v14299_v32  ;;  %v452_v55 = vrot.slane %v436_v5, %v14299_v32 }
 0x31f   :  { %8564 = vst.sshfl [vmem:[#allocation2] sm:$0x1 pattern:$0x73625140] %v429_v62  ;;  %v508_v49 = vrot.slane %v486_v0, %v14299_v32  ;;  %v515_v18 = vrot.slane %v487_v3, %v14299_v32  ;;  %v516_v41 = vcombine.high %v494_v16, %v494_v16  ;;  %v517_v58 = vcombine.high %v501_v47, %v501_v47 }
 0x320   :  { %8566 = vst.sshfl [vmem:[#allocation2 + $0x40] sm:$0x1 pattern:$0x73625140] %v436_v5  ;;  %v459_v34 = vrot.slane %v437_v35, %v14299_v32  ;;  %v466_v7 = vrot.slane %v438_v21, %v14299_v32  ;;  %v467_v57 = vcombine.high %v445_v27, %v445_v27  ;;  %v468_v59 = vcombine.high %v452_v55, %v452_v55 }
 0x321   :  { %8583 = vst.sshfl [vmem:[#allocation2 + $0x81] sm:$0x1 pattern:$0x73625140] %v1002_v63  ;;  %v518_v51 = vcombine.high %v508_v49, %v508_v49  ;;  %v519_v33 = vcombine.high %v515_v18, %v515_v18  ;;  %546 = vst [vmem:[#allocation2 + $0xa0] sm:$0x1] %v516_v41  ;;  %v1010_v22 = vcombine.high %v1002_v63, %v1002_v63 }
 0x322   :  { %8585 = vst.sshfl [vmem:[#allocation2 + $0xc1] sm:$0x1 pattern:$0x73625140] %v1009_v2  ;;  %550 = vst [vmem:[#allocation2 + $0xe0] sm:$0x1] %v517_v58  ;;  %v1011_v50 = vcombine.high %v1009_v2, %v1009_v2  ;;  %v469_v15 = vcombine.high %v459_v34, %v459_v34  ;;  %v470_v56 = vcombine.high %v466_v7, %v466_v7 }
 0x323   :  { %8579 = vst.sshfl [vmem:[#allocation2 + $0x1] sm:$0x1 pattern:$0x73625140] %v953_v17  ;;  %538 = vst [vmem:[#allocation2 + $0x20] sm:$0x1] %v467_v57  ;;  %v1018_v26 = vrot.slane %v1002_v63, %v14299_v32  ;;  %v1025_v36 = vrot.slane %v1009_v2, %v14299_v32  ;;  %v1032_v9 = vrot.slane %v1010_v22, %v14299_v32 }
 0x324   :  { %8581 = vst.sshfl [vmem:[#allocation2 + $0x41] sm:$0x1 pattern:$0x73625140] %v960_v54  ;;  %542 = vst [vmem:[#allocation2 + $0x60] sm:$0x1] %v468_v59  ;;  %v1039_v28 = vrot.slane %v1011_v50, %v14299_v32  ;;  %v961_v30 = vcombine.high %v953_v17, %v953_v17  ;;  %v962_v10 = vcombine.high %v960_v54, %v960_v54  ;;  %v8875_v44 = vpop.f32.mrf.mxu1 }
 0x325   :  { %8569 = vst.sshfl [vmem:[#allocation2 + $0x90] sm:$0x1 pattern:$0x73625140] %v486_v0  ;;  %547 = vst [vmem:[#allocation2 + $0xb0] sm:$0x1] %v518_v51  ;;  %v1040_v52 = vcombine.high %v1018_v26, %v1018_v26  ;;  %v1041_v24 = vcombine.high %v1025_v36, %v1025_v36  ;;  %v969_v43 = vrot.slane %v953_v17, %v14299_v32 }
 0x326   :  { %8571 = vst.sshfl [vmem:[#allocation2 + $0xd0] sm:$0x1 pattern:$0x73625140] %v487_v3  ;;  %551 = vst [vmem:[#allocation2 + $0xf0] sm:$0x1] %v519_v33  ;;  %v976_v6 = vrot.slane %v960_v54, %v14299_v32  ;;  %v1042_v45 = vcombine.high %v1032_v9, %v1032_v9  ;;  %v1043_v20 = vcombine.high %v1039_v28, %v1039_v28  ;;  %v1981_v12 = vpop.f32.mrf.mxu1 }
 0x327   :  { %8565 = vst.sshfl [vmem:[#allocation2 + $0x10] sm:$0x1 pattern:$0x73625140] %v437_v35  ;;  %539 = vst [vmem:[#allocation2 + $0x30] sm:$0x1] %v469_v15  ;;  %v983_v53 = vrot.slane %v961_v30, %v14299_v32  ;;  %v990_v42 = vrot.slane %v962_v10, %v14299_v32  ;;  %v991_v19 = vcombine.high %v969_v43, %v969_v43 }
 0x328   :  { %8567 = vst.sshfl [vmem:[#allocation2 + $0x50] sm:$0x1 pattern:$0x73625140] %v438_v21  ;;  %543 = vst [vmem:[#allocation2 + $0x70] sm:$0x1] %v470_v56  ;;  %v992_v48 = vcombine.high %v976_v6, %v976_v6  ;;  %v1526_v11 = vrot.slane %v14295_v29, %v14299_v32  ;;  %v1533_v25 = vrot.slane %v1519_v13, %v14299_v32 }
 0x329   :  { %8584 = vst.sshfl [vmem:[#allocation2 + $0x91] sm:$0x1 pattern:$0x73625140] %v1010_v22  ;;  %1070 = vst [vmem:[#allocation2 + $0xa1] sm:$0x1] %v1040_v52  ;;  %v993_v14 = vcombine.high %v983_v53, %v983_v53  ;;  %v994_v37 = vcombine.high %v990_v42, %v990_v42  ;;  %v1987_v31 = vadd.f32 %v8875_v44, %v8605_v61 }
 0x32a   :  { %8586 = vst.sshfl [vmem:[#allocation2 + $0xd1] sm:$0x1 pattern:$0x73625140] %v1011_v50  ;;  %1074 = vst [vmem:[#allocation2 + $0xe1] sm:$0x1] %v1041_v24  ;;  %v1534_v4 = vcombine.high %v1526_v11, %v1526_v11  ;;  %v1535_v46 = vcombine.high %v1533_v25, %v1533_v25  ;;  %v1542_v38 = vrot.slane %v1526_v11, %v14299_v32 }
 0x32b   :  { %8580 = vst.sshfl [vmem:[#allocation2 + $0x11] sm:$0x1 pattern:$0x73625140] %v961_v30  ;;  %1071 = vst [vmem:[#allocation2 + $0xb1] sm:$0x1] %v1042_v45  ;;  %v1549_v39 = vrot.slane %v1533_v25, %v14299_v32  ;;  %v1982_v23 = vadd.f32 %v8605_v61, %v1981_v12 }
 0x32c   :  { %8582 = vst.sshfl [vmem:[#allocation2 + $0x51] sm:$0x1 pattern:$0x73625140] %v962_v10  ;;  %1075 = vst [vmem:[#allocation2 + $0xf1] sm:$0x1] %v1043_v20  ;;  %v1563_v62 = vrot.slane %v1535_v46, %v14299_v32  ;;  %v1564_v5 = vcombine.high %v1542_v38, %v1542_v38 }
 0x32d   :  { %v1466_v8 = vmax.f32 %v14304_v1, -1e+30  ;;  %1062 = vst [vmem:[#allocation2 + $0x21] sm:$0x1] %v991_v19  ;;  %1066 = vst [vmem:[#allocation2 + $0x61] sm:$0x1] %v992_v48  ;;  %v1556_v1 = vrot.slane %v1534_v4, %v14299_v32  ;;  %v1565_v63 = vcombine.high %v1549_v39, %v1549_v39 }
 0x32e   :  { %8598 = vst.sshfl [vmem:[#allocation2 + $0x82] sm:$0x1 pattern:$0x73625140] %v1526_v11  ;;  %1063 = vst [vmem:[#allocation2 + $0x31] sm:$0x1] %v993_v14  ;;  %v1567_v16 = vcombine.high %v1563_v62, %v1563_v62 }
 0x32f   :  { %8600 = vst.sshfl [vmem:[#allocation2 + $0xc2] sm:$0x1 pattern:$0x73625140] %v1533_v25  ;;  %1067 = vst [vmem:[#allocation2 + $0x71] sm:$0x1] %v994_v37  ;;  %v1470_v29 = vcombine.high %v1466_v8, %v1466_v8  ;;  %v1477_v13 = vrot.slane %v1466_v8, %v14299_v32  ;;  %v1566_v3 = vcombine.high %v1556_v1, %v1556_v1 }
 0x330   :  { %v1991_v40 = vmax.f32 %v1987_v31, -1e+30  ;;  %8599 = vst.sshfl [vmem:[#allocation2 + $0x92] sm:$0x1 pattern:$0x73625140] %v1534_v4 }
 0x331   :  { %8601 = vst.sshfl [vmem:[#allocation2 + $0xd2] sm:$0x1 pattern:$0x73625140] %v1535_v46  ;;  %v1484_v2 = vrot.slane %v1470_v29, %v14299_v32  ;;  %v1485_v17 = vcombine.high %v1477_v13, %v1477_v13  ;;  %v1493_v54 = vrot.slane %v1477_v13, %v14299_v32  ;;  %1594 = vst [vmem:[#allocation2 + $0xa2] sm:$0x1] %v1564_v5 }
 0x332   :  { %8594 = vst.sshfl [vmem:[#allocation2 + $0x2] sm:$0x1 pattern:$0x73625140] %v1477_v13  ;;  %v2043_v0 = vcombine.high %v1991_v40, %v1991_v40  ;;  %1598 = vst [vmem:[#allocation2 + $0xe2] sm:$0x1] %v1565_v63  ;;  %v2050_v47 = vrot.slane %v1991_v40, %v14299_v32 }
 0x333   :  { %v1990_v35 = vmax.f32 %v1982_v23, -1e+30  ;;  %v1486_v21 = vcombine.high %v1484_v2, %v1484_v2  ;;  %v1500_v27 = vrot.slane %v1484_v2, %v14299_v32  ;;  %v1507_v55 = vrot.slane %v1485_v17, %v14299_v32  ;;  %8595 = vst.sshfl [vmem:[#allocation2 + $0x12] sm:$0x1 pattern:$0x73625140] %v1485_v17 }
 0x334   :  { %v1515_v49 = vcombine.high %v1493_v54, %v1493_v54  ;;  %8596 = vst.sshfl [vmem:[#allocation2 + $0x42] sm:$0x1 pattern:$0x73625140] %v1484_v2  ;;  %1595 = vst [vmem:[#allocation2 + $0xb2] sm:$0x1] %v1566_v3  ;;  %v2057_v18 = vrot.slane %v2043_v0, %v14299_v32  ;;  %v2058_v41 = vcombine.high %v2050_v47, %v2050_v47  ;;  %v8880_v45 = vpop.f32.mrf.mxu0 }
 0x335   :  { %1599 = vst [vmem:[#allocation2 + $0xf2] sm:$0x1] %v1567_v16  ;;  %v2066_v58 = vrot.slane %v2050_v47, %v14299_v32  ;;  %8613 = vst.sshfl [vmem:[#allocation2 + $0x83] sm:$0x1 pattern:$0x73625140] %v2050_v47  ;;  %v1994_v34 = vcombine.high %v1990_v35, %v1990_v35  ;;  %v1514_v7 = vrot.slane %v1486_v21, %v14299_v32 }
 0x336   :  { %v1516_v57 = vcombine.high %v1500_v27, %v1500_v27  ;;  %v1517_v59 = vcombine.high %v1507_v55, %v1507_v55  ;;  %1586 = vst [vmem:[#allocation2 + $0x22] sm:$0x1] %v1515_v49  ;;  %8597 = vst.sshfl [vmem:[#allocation2 + $0x52] sm:$0x1 pattern:$0x73625140] %v1486_v21  ;;  %v2001_v51 = vrot.slane %v1990_v35, %v14299_v32  ;;  %v2505_v48 = vpop.f32.mrf.mxu0 }
 0x337   :  { %v2059_v33 = vcombine.high %v2057_v18, %v2057_v18  ;;  %v2073_v22 = vrot.slane %v2057_v18, %v14299_v32  ;;  %v2080_v50 = vrot.slane %v2058_v41, %v14299_v32  ;;  %v2088_v15 = vcombine.high %v2066_v58, %v2066_v58  ;;  %8614 = vst.sshfl [vmem:[#allocation2 + $0x93] sm:$0x1 pattern:$0x73625140] %v2058_v41  ;;  %v8620_v52 = vld [vmem:[%s14659_s3 + $0x14] ss:$0 sm:$0xff] }
 0x338   :  { %8615 = vst.sshfl [vmem:[#allocation2 + $0xc3] sm:$0x1 pattern:$0x73625140] %v2057_v18  ;;  %v1518_v56 = vcombine.high %v1514_v7, %v1514_v7  ;;  %1587 = vst [vmem:[#allocation2 + $0x32] sm:$0x1] %v1517_v59  ;;  %v2008_v26 = vrot.slane %v1994_v34, %v14299_v32  ;;  %v2009_v36 = vcombine.high %v2001_v51, %v2001_v51 }
 0x339   :  { %1590 = vst [vmem:[#allocation2 + $0x62] sm:$0x1] %v1516_v57  ;;  %v2017_v9 = vrot.slane %v2001_v51, %v14299_v32  ;;  %8609 = vst.sshfl [vmem:[#allocation2 + $0x3] sm:$0x1 pattern:$0x73625140] %v2001_v51  ;;  %v2087_v28 = vrot.slane %v2059_v33, %v14299_v32  ;;  %v2089_v30 = vcombine.high %v2073_v22, %v2073_v22 }
 0x33a   :  { %v2090_v10 = vcombine.high %v2080_v50, %v2080_v50  ;;  %2118 = vst [vmem:[#allocation2 + $0xa3] sm:$0x1] %v2088_v15  ;;  %8616 = vst.sshfl [vmem:[#allocation2 + $0xd3] sm:$0x1 pattern:$0x73625140] %v2059_v33  ;;  %v2010_v24 = vcombine.high %v2008_v26, %v2008_v26  ;;  %v2024_v43 = vrot.slane %v2008_v26, %v14299_v32 }
 0x33b   :  { %1591 = vst [vmem:[#allocation2 + $0x72] sm:$0x1] %v1518_v56  ;;  %v2031_v6 = vrot.slane %v2009_v36, %v14299_v32  ;;  %v2039_v44 = vcombine.high %v2017_v9, %v2017_v9  ;;  %8610 = vst.sshfl [vmem:[#allocation2 + $0x13] sm:$0x1 pattern:$0x73625140] %v2009_v36  ;;  %v2091_v61 = vcombine.high %v2087_v28, %v2087_v28 }
 0x33c   :  { %8611 = vst.sshfl [vmem:[#allocation2 + $0x43] sm:$0x1 pattern:$0x73625140] %v2008_v26  ;;  %2119 = vst [vmem:[#allocation2 + $0xb3] sm:$0x1] %v2090_v10  ;;  %v2038_v20 = vrot.slane %v2010_v24, %v14299_v32  ;;  %v2040_v53 = vcombine.high %v2024_v43, %v2024_v43  ;;  %v2511_v19 = vadd.f32 %v8880_v45, %v8620_v52 }
 0x33d   :  { %2122 = vst [vmem:[#allocation2 + $0xe3] sm:$0x1] %v2089_v30  ;;  %v2041_v42 = vcombine.high %v2031_v6, %v2031_v6  ;;  %2110 = vst [vmem:[#allocation2 + $0x23] sm:$0x1] %v2039_v44  ;;  %v2506_v12 = vadd.f32 %v8620_v52, %v2505_v48  ;;  %v8635_v35 = vld [vmem:[%s14659_s3 + $0x15] ss:$0 sm:$0xff] }
 0x33e   :  { %8612 = vst.sshfl [vmem:[#allocation2 + $0x53] sm:$0x1 pattern:$0x73625140] %v2010_v24  ;;  %2123 = vst [vmem:[#allocation2 + $0xf3] sm:$0x1] %v2091_v61  ;;  %v2042_v11 = vcombine.high %v2038_v20, %v2038_v20 }
 0x33f   :  { %2111 = vst [vmem:[#allocation2 + $0x33] sm:$0x1] %v2041_v42  ;;  %2114 = vst [vmem:[#allocation2 + $0x63] sm:$0x1] %v2040_v53  ;;  %v2515_v25 = vmax.f32 %v2511_v19, -1e+30 }
 0x340   :  { %2115 = vst [vmem:[#allocation2 + $0x73] sm:$0x1] %v2042_v11  ;;  %v2514_v8 = vmax.f32 %v2506_v12, -1e+30  ;;  %v8650_v11 = vld [vmem:[%s14659_s3 + $0x16] ss:$0 sm:$0xff] }
 0x341   :  { %v2567_v14 = vcombine.high %v2515_v25, %v2515_v25  ;;  %v2574_v37 = vrot.slane %v2515_v25, %v14299_v32 }
 0x342   :  { %v2518_v38 = vcombine.high %v2514_v8, %v2514_v8  ;;  %v2525_v39 = vrot.slane %v2514_v8, %v14299_v32 }
 0x343   :  { %v2581_v31 = vrot.slane %v2567_v14, %v14299_v32  ;;  %v2582_v4 = vcombine.high %v2574_v37, %v2574_v37  ;;  %v2590_v46 = vrot.slane %v2574_v37, %v14299_v32  ;;  %8628 = vst.sshfl [vmem:[#allocation2 + $0x84] sm:$0x1 pattern:$0x73625140] %v2574_v37  ;;  %v8885_v49 = vpop.f32.mrf.mxu1 }
 0x344   :  { %v2532_v1 = vrot.slane %v2518_v38, %v14299_v32  ;;  %v2533_v62 = vcombine.high %v2525_v39, %v2525_v39  ;;  %v2541_v5 = vrot.slane %v2525_v39, %v14299_v32  ;;  %8624 = vst.sshfl [vmem:[#allocation2 + $0x4] sm:$0x1 pattern:$0x73625140] %v2525_v39  ;;  %v3035_v41 = vadd.f32 %v8885_v49, %v8635_v35 }
 0x345   :  { %v2583_v29 = vcombine.high %v2581_v31, %v2581_v31  ;;  %v2597_v13 = vrot.slane %v2581_v31, %v14299_v32  ;;  %v2604_v40 = vrot.slane %v2582_v4, %v14299_v32  ;;  %v2612_v23 = vcombine.high %v2590_v46, %v2590_v46  ;;  %8629 = vst.sshfl [vmem:[#allocation2 + $0x94] sm:$0x1 pattern:$0x73625140] %v2582_v4  ;;  %v3029_v58 = vpop.f32.mrf.mxu1 }
 0x346   :  { %8630 = vst.sshfl [vmem:[#allocation2 + $0xc4] sm:$0x1 pattern:$0x73625140] %v2581_v31  ;;  %v2534_v54 = vcombine.high %v2532_v1, %v2532_v1  ;;  %v2548_v0 = vrot.slane %v2532_v1, %v14299_v32  ;;  %v2555_v3 = vrot.slane %v2533_v62, %v14299_v32  ;;  %v2563_v16 = vcombine.high %v2541_v5, %v2541_v5 }
 0x347   :  { %v2611_v63 = vrot.slane %v2583_v29, %v14299_v32  ;;  %v2613_v2 = vcombine.high %v2597_v13, %v2597_v13  ;;  %v2614_v17 = vcombine.high %v2604_v40, %v2604_v40  ;;  %2642 = vst [vmem:[#allocation2 + $0xa4] sm:$0x1] %v2612_v23  ;;  %8631 = vst.sshfl [vmem:[#allocation2 + $0xd4] sm:$0x1 pattern:$0x73625140] %v2583_v29 }
 0x348   :  { %8625 = vst.sshfl [vmem:[#allocation2 + $0x14] sm:$0x1 pattern:$0x73625140] %v2533_v62  ;;  %v2562_v21 = vrot.slane %v2534_v54, %v14299_v32  ;;  %v2564_v27 = vcombine.high %v2548_v0, %v2548_v0  ;;  %v2565_v55 = vcombine.high %v2555_v3, %v2555_v3  ;;  %2634 = vst [vmem:[#allocation2 + $0x24] sm:$0x1] %v2563_v16 }
 0x349   :  { %8626 = vst.sshfl [vmem:[#allocation2 + $0x44] sm:$0x1 pattern:$0x73625140] %v2532_v1  ;;  %v2615_v47 = vcombine.high %v2611_v63, %v2611_v63  ;;  %2643 = vst [vmem:[#allocation2 + $0xb4] sm:$0x1] %v2614_v17  ;;  %v3030_v7 = vadd.f32 %v8635_v35, %v3029_v58 }
 0x34a   :  { %2646 = vst [vmem:[#allocation2 + $0xe4] sm:$0x1] %v2613_v2  ;;  %8627 = vst.sshfl [vmem:[#allocation2 + $0x54] sm:$0x1 pattern:$0x73625140] %v2534_v54  ;;  %v2566_v18 = vcombine.high %v2562_v21, %v2562_v21 }
 0x34b   :  { %2647 = vst [vmem:[#allocation2 + $0xf4] sm:$0x1] %v2615_v47  ;;  %2635 = vst [vmem:[#allocation2 + $0x34] sm:$0x1] %v2565_v55  ;;  %v3039_v34 = vmax.f32 %v3035_v41, -1e+30 }
 0x34c   :  { %2638 = vst [vmem:[#allocation2 + $0x64] sm:$0x1] %v2564_v27  ;;  %2639 = vst [vmem:[#allocation2 + $0x74] sm:$0x1] %v2566_v18  ;;  %v3038_v51 = vmax.f32 %v3030_v7, -1e+30 }
 0x34d   :  { %v3091_v57 = vcombine.high %v3039_v34, %v3039_v34  ;;  %v3098_v59 = vrot.slane %v3039_v34, %v14299_v32  ;;  %v8665_v58 = vld [vmem:[%s14659_s3 + $0x17] ss:$0 sm:$0xff] }
 0x34e   :  { %v3042_v15 = vcombine.high %v3038_v51, %v3038_v51  ;;  %v3049_v56 = vrot.slane %v3038_v51, %v14299_v32 }
 0x34f   :  { %v3105_v33 = vrot.slane %v3091_v57, %v14299_v32  ;;  %v3106_v22 = vcombine.high %v3098_v59, %v3098_v59  ;;  %v3114_v50 = vrot.slane %v3098_v59, %v14299_v32  ;;  %8643 = vst.sshfl [vmem:[#allocation2 + $0x85] sm:$0x1 pattern:$0x73625140] %v3098_v59 }
 0x350   :  { %v3056_v30 = vrot.slane %v3042_v15, %v14299_v32  ;;  %v3057_v10 = vcombine.high %v3049_v56, %v3049_v56  ;;  %v3065_v52 = vrot.slane %v3049_v56, %v14299_v32  ;;  %8639 = vst.sshfl [vmem:[#allocation2 + $0x5] sm:$0x1 pattern:$0x73625140] %v3049_v56 }
 0x351   :  { %v3107_v26 = vcombine.high %v3105_v33, %v3105_v33  ;;  %v3121_v36 = vrot.slane %v3105_v33, %v14299_v32  ;;  %v3128_v9 = vrot.slane %v3106_v22, %v14299_v32  ;;  %v3136_v28 = vcombine.high %v3114_v50, %v3114_v50  ;;  %8644 = vst.sshfl [vmem:[#allocation2 + $0x95] sm:$0x1 pattern:$0x73625140] %v3106_v22 }
 0x352   :  { %8645 = vst.sshfl [vmem:[#allocation2 + $0xc5] sm:$0x1 pattern:$0x73625140] %v3105_v33  ;;  %v3058_v44 = vcombine.high %v3056_v30, %v3056_v30  ;;  %v3072_v61 = vrot.slane %v3056_v30, %v14299_v32  ;;  %v3079_v45 = vrot.slane %v3057_v10, %v14299_v32  ;;  %v3087_v20 = vcombine.high %v3065_v52, %v3065_v52 }
 0x353   :  { %v3135_v24 = vrot.slane %v3107_v26, %v14299_v32  ;;  %v3137_v43 = vcombine.high %v3121_v36, %v3121_v36  ;;  %v3138_v6 = vcombine.high %v3128_v9, %v3128_v9  ;;  %3166 = vst [vmem:[#allocation2 + $0xa5] sm:$0x1] %v3136_v28  ;;  %8646 = vst.sshfl [vmem:[#allocation2 + $0xd5] sm:$0x1 pattern:$0x73625140] %v3107_v26  ;;  %v8890_v12 = vpop.f32.mrf.mxu0 }
 0x354   :  { %8640 = vst.sshfl [vmem:[#allocation2 + $0x15] sm:$0x1 pattern:$0x73625140] %v3057_v10  ;;  %v3086_v42 = vrot.slane %v3058_v44, %v14299_v32  ;;  %v3088_v19 = vcombine.high %v3072_v61, %v3072_v61  ;;  %v3089_v48 = vcombine.high %v3079_v45, %v3079_v45  ;;  %3158 = vst [vmem:[#allocation2 + $0x25] sm:$0x1] %v3087_v20 }
 0x355   :  { %8641 = vst.sshfl [vmem:[#allocation2 + $0x45] sm:$0x1 pattern:$0x73625140] %v3056_v30  ;;  %v3139_v53 = vcombine.high %v3135_v24, %v3135_v24  ;;  %3167 = vst [vmem:[#allocation2 + $0xb5] sm:$0x1] %v3138_v6  ;;  %v3559_v14 = vadd.f32 %v8890_v12, %v8650_v11  ;;  %v3553_v37 = vpop.f32.mrf.mxu0 }
 0x356   :  { %3170 = vst [vmem:[#allocation2 + $0xe5] sm:$0x1] %v3137_v43  ;;  %8642 = vst.sshfl [vmem:[#allocation2 + $0x55] sm:$0x1 pattern:$0x73625140] %v3058_v44  ;;  %v3090_v25 = vcombine.high %v3086_v42, %v3086_v42  ;;  %v3554_v31 = vadd.f32 %v8650_v11, %v3553_v37 }
 0x357   :  { %3171 = vst [vmem:[#allocation2 + $0xf5] sm:$0x1] %v3139_v53  ;;  %3159 = vst [vmem:[#allocation2 + $0x35] sm:$0x1] %v3089_v48  ;;  %v3563_v8 = vmax.f32 %v3559_v14, -1e+30 }
 0x358   :  { %3162 = vst [vmem:[#allocation2 + $0x65] sm:$0x1] %v3088_v19  ;;  %3163 = vst [vmem:[#allocation2 + $0x75] sm:$0x1] %v3090_v25  ;;  %v3562_v38 = vmax.f32 %v3554_v31, -1e+30 }
 0x359   :  { %v3615_v4 = vcombine.high %v3563_v8, %v3563_v8  ;;  %v3622_v46 = vrot.slane %v3563_v8, %v14299_v32  ;;  %v14425_v53 = vld [vmem:[%s14659_s3] sm:$0xff]  ;;  %v14430_v42 = vld [vmem:[%s14659_s3 + $0x8] sm:$0xff] }
 0x35a   :  { %v3566_v40 = vcombine.high %v3562_v38, %v3562_v38  ;;  %v3573_v23 = vrot.slane %v3562_v38, %v14299_v32  ;;  %v14435_v19 = vld [vmem:[%s14659_s3 + $0x20] sm:$0xff]  ;;  %v14442_v14 = vld [vmem:[%s14659_s3 + $0x28] sm:$0xff] }
 0x35b   :  { %v3629_v39 = vrot.slane %v3615_v4, %v14299_v32  ;;  %v3630_v29 = vcombine.high %v3622_v46, %v3622_v46  ;;  %v3638_v13 = vrot.slane %v3622_v46, %v14299_v32  ;;  %8658 = vst.sshfl [vmem:[#allocation2 + $0x86] sm:$0x1 pattern:$0x73625140] %v3622_v46  ;;  %v14447_v37 = vld [vmem:[%s14659_s3 + $0x40] sm:$0xff]  ;;  %v14452_v8 = vld [vmem:[%s14659_s3 + $0x48] sm:$0xff] }
 0x35c   :  { %v3580_v2 = vrot.slane %v3566_v40, %v14299_v32  ;;  %v3581_v17 = vcombine.high %v3573_v23, %v3573_v23  ;;  %v3589_v54 = vrot.slane %v3573_v23, %v14299_v32  ;;  %8654 = vst.sshfl [vmem:[#allocation2 + $0x6] sm:$0x1 pattern:$0x73625140] %v3573_v23 }
 0x35d   :  { %v3631_v1 = vcombine.high %v3629_v39, %v3629_v39  ;;  %v3645_v62 = vrot.slane %v3629_v39, %v14299_v32  ;;  %v3652_v5 = vrot.slane %v3630_v29, %v14299_v32  ;;  %v3660_v63 = vcombine.high %v3638_v13, %v3638_v13  ;;  %8659 = vst.sshfl [vmem:[#allocation2 + $0x96] sm:$0x1 pattern:$0x73625140] %v3630_v29  ;;  %v8797_v29 = vld [vmem:[%s14659_s3 + $0x30] sm:$0xff] }
 0x35e   :  { %8660 = vst.sshfl [vmem:[#allocation2 + $0xc6] sm:$0x1 pattern:$0x73625140] %v3629_v39  ;;  %v3582_v47 = vcombine.high %v3580_v2, %v3580_v2  ;;  %v3596_v35 = vrot.slane %v3580_v2, %v14299_v32  ;;  %v3603_v21 = vrot.slane %v3581_v17, %v14299_v32  ;;  %v3611_v27 = vcombine.high %v3589_v54, %v3589_v54  ;;  %v8680_v39 = vld [vmem:[%s14659_s3 + $0x18] ss:$0 sm:$0xff] }
 0x35f   :  { %v3659_v0 = vrot.slane %v3631_v1, %v14299_v32  ;;  %v3661_v3 = vcombine.high %v3645_v62, %v3645_v62  ;;  %v3662_v16 = vcombine.high %v3652_v5, %v3652_v5  ;;  %3690 = vst [vmem:[#allocation2 + $0xa6] sm:$0x1] %v3660_v63  ;;  %8661 = vst.sshfl [vmem:[#allocation2 + $0xd6] sm:$0x1 pattern:$0x73625140] %v3631_v1 }
 0x360   :  { %8655 = vst.sshfl [vmem:[#allocation2 + $0x16] sm:$0x1 pattern:$0x73625140] %v3581_v17  ;;  %v3610_v49 = vrot.slane %v3582_v47, %v14299_v32  ;;  %v3612_v18 = vcombine.high %v3596_v35, %v3596_v35  ;;  %v3613_v41 = vcombine.high %v3603_v21, %v3603_v21  ;;  %3682 = vst [vmem:[#allocation2 + $0x26] sm:$0x1] %v3611_v27 }
 0x361   :  { %8656 = vst.sshfl [vmem:[#allocation2 + $0x46] sm:$0x1 pattern:$0x73625140] %v3580_v2  ;;  %v3663_v55 = vcombine.high %v3659_v0, %v3659_v0  ;;  %3691 = vst [vmem:[#allocation2 + $0xb6] sm:$0x1] %v3662_v16 }
 0x362   :  { %3694 = vst [vmem:[#allocation2 + $0xe6] sm:$0x1] %v3661_v3  ;;  %8657 = vst.sshfl [vmem:[#allocation2 + $0x56] sm:$0x1 pattern:$0x73625140] %v3582_v47  ;;  %v3614_v34 = vcombine.high %v3610_v49, %v3610_v49 }
 0x363   :  { %3695 = vst [vmem:[#allocation2 + $0xf6] sm:$0x1] %v3663_v55  ;;  %3683 = vst [vmem:[#allocation2 + $0x36] sm:$0x1] %v3613_v41  ;;  %v8895_v7 = vpop.f32.mrf.mxu1 }
 0x364   :  { %3686 = vst [vmem:[#allocation2 + $0x66] sm:$0x1] %v3612_v18  ;;  %v4083_v57 = vadd.f32 %v8895_v7, %v8665_v58  ;;  %3687 = vst [vmem:[#allocation2 + $0x76] sm:$0x1] %v3614_v34 }
 0x365   :  { %v4077_v59 = vpop.f32.mrf.mxu1 }
 0x366   :  { %v4087_v51 = vmax.f32 %v4083_v57, -1e+30  ;;  %v4078_v33 = vadd.f32 %v8665_v58, %v4077_v59 }
 0x368   :  { %v4139_v22 = vcombine.high %v4087_v51, %v4087_v51  ;;  %v4146_v50 = vrot.slane %v4087_v51, %v14299_v32  ;;  %v4086_v15 = vmax.f32 %v4078_v33, -1e+30 }
 0x36a   :  { %v4153_v56 = vrot.slane %v4139_v22, %v14299_v32  ;;  %v4154_v26 = vcombine.high %v4146_v50, %v4146_v50  ;;  %v4162_v36 = vrot.slane %v4146_v50, %v14299_v32  ;;  %8673 = vst.sshfl [vmem:[#allocation2 + $0x87] sm:$0x1 pattern:$0x73625140] %v4146_v50  ;;  %v4090_v9 = vcombine.high %v4086_v15, %v4086_v15 }
 0x36b   :  { %v4097_v28 = vrot.slane %v4086_v15, %v14299_v32 }
 0x36c   :  { %v4155_v30 = vcombine.high %v4153_v56, %v4153_v56  ;;  %v4169_v10 = vrot.slane %v4153_v56, %v14299_v32  ;;  %v4176_v52 = vrot.slane %v4154_v26, %v14299_v32  ;;  %v4184_v24 = vcombine.high %v4162_v36, %v4162_v36  ;;  %8674 = vst.sshfl [vmem:[#allocation2 + $0x97] sm:$0x1 pattern:$0x73625140] %v4154_v26  ;;  %v8695_v26 = vld [vmem:[%s14659_s3 + $0x19] ss:$0 sm:$0xff] }
 0x36d   :  { %8675 = vst.sshfl [vmem:[#allocation2 + $0xc7] sm:$0x1 pattern:$0x73625140] %v4153_v56  ;;  %v4104_v43 = vrot.slane %v4090_v9, %v14299_v32  ;;  %v4105_v6 = vcombine.high %v4097_v28, %v4097_v28  ;;  %v4113_v44 = vrot.slane %v4097_v28, %v14299_v32 }
 0x36e   :  { %8669 = vst.sshfl [vmem:[#allocation2 + $0x7] sm:$0x1 pattern:$0x73625140] %v4097_v28  ;;  %v4183_v61 = vrot.slane %v4155_v30, %v14299_v32  ;;  %v4185_v45 = vcombine.high %v4169_v10, %v4169_v10  ;;  %v4186_v20 = vcombine.high %v4176_v52, %v4176_v52  ;;  %4214 = vst [vmem:[#allocation2 + $0xa7] sm:$0x1] %v4184_v24 }
 0x36f   :  { %8676 = vst.sshfl [vmem:[#allocation2 + $0xd7] sm:$0x1 pattern:$0x73625140] %v4155_v30  ;;  %v4106_v48 = vcombine.high %v4104_v43, %v4104_v43  ;;  %v4120_v11 = vrot.slane %v4104_v43, %v14299_v32  ;;  %v4127_v25 = vrot.slane %v4105_v6, %v14299_v32  ;;  %v4135_v12 = vcombine.high %v4113_v44, %v4113_v44 }
 0x370   :  { %8670 = vst.sshfl [vmem:[#allocation2 + $0x17] sm:$0x1 pattern:$0x73625140] %v4105_v6  ;;  %v4187_v31 = vcombine.high %v4183_v61, %v4183_v61  ;;  %4215 = vst [vmem:[#allocation2 + $0xb7] sm:$0x1] %v4186_v20 }
 0x371   :  { %8671 = vst.sshfl [vmem:[#allocation2 + $0x47] sm:$0x1 pattern:$0x73625140] %v4104_v43  ;;  %4218 = vst [vmem:[#allocation2 + $0xe7] sm:$0x1] %v4185_v45  ;;  %v4134_v4 = vrot.slane %v4106_v48, %v14299_v32  ;;  %v4136_v46 = vcombine.high %v4120_v11, %v4120_v11  ;;  %v4137_v38 = vcombine.high %v4127_v25, %v4127_v25 }
 0x372   :  { %4206 = vst [vmem:[#allocation2 + $0x27] sm:$0x1] %v4135_v12  ;;  %8672 = vst.sshfl [vmem:[#allocation2 + $0x57] sm:$0x1 pattern:$0x73625140] %v4106_v48 }
 0x373   :  { %4219 = vst [vmem:[#allocation2 + $0xf7] sm:$0x1] %v4187_v31  ;;  %v4138_v13 = vcombine.high %v4134_v4, %v4134_v4  ;;  %4207 = vst [vmem:[#allocation2 + $0x37] sm:$0x1] %v4137_v38  ;;  %v8900_v40 = vpop.f32.mrf.mxu0 }
 0x374   :  { %4210 = vst [vmem:[#allocation2 + $0x67] sm:$0x1] %v4136_v46  ;;  %v4607_v1 = vadd.f32 %v8900_v40, %v8680_v39 }
 0x375   :  { %v8427_v23 = vld [vmem:[#allocation2] sm:$0xff]  ;;  %4211 = vst [vmem:[#allocation2 + $0x77] sm:$0x1] %v4138_v13  ;;  %v4601_v5 = vpop.f32.mrf.mxu0 }
 0x376   :  { %v14470_v62 = vadd.f32 %v8797_v29, %v8427_v23  ;;  %v4611_v63 = vmax.f32 %v4607_v1, -1e+30  ;;  %v4602_v2 = vadd.f32 %v8680_v39, %v4601_v5 }
 0x378   :  { %v8431_v17 = vmax.f32 %v14470_v62, -1e+30   ;;  %v4663_v54 = vcombine.high %v4611_v63, %v4611_v63  ;;  %v4670_v0 = vrot.slane %v4611_v63, %v14299_v32  ;;  %v4610_v3 = vmax.f32 %v4602_v2, -1e+30 }
 0x37a   :  { %v4677_v16 = vrot.slane %v4663_v54, %v14299_v32  ;;  %v4678_v47 = vcombine.high %v4670_v0, %v4670_v0  ;;  %v4686_v35 = vrot.slane %v4670_v0, %v14299_v32  ;;  %8688 = vst.sshfl [vmem:[#allocation2 + $0x88] sm:$0x1 pattern:$0x73625140] %v4670_v0  ;;  %v4614_v21 = vcombine.high %v4610_v3, %v4610_v3  ;;  %v8710_v0 = vld [vmem:[%s14659_s3 + $0x1a] ss:$0 sm:$0xff] }
 0x37b   :  { %v4621_v27 = vrot.slane %v4610_v3, %v14299_v32 }
 0x37c   :  { %v4679_v55 = vcombine.high %v4677_v16, %v4677_v16  ;;  %v4693_v49 = vrot.slane %v4677_v16, %v14299_v32  ;;  %v4700_v18 = vrot.slane %v4678_v47, %v14299_v32  ;;  %v4708_v41 = vcombine.high %v4686_v35, %v4686_v35  ;;  %8689 = vst.sshfl [vmem:[#allocation2 + $0x98] sm:$0x1 pattern:$0x73625140] %v4678_v47 }
 0x37d   :  { %8690 = vst.sshfl [vmem:[#allocation2 + $0xc8] sm:$0x1 pattern:$0x73625140] %v4677_v16  ;;  %v4628_v58 = vrot.slane %v4614_v21, %v14299_v32  ;;  %v4629_v34 = vcombine.high %v4621_v27, %v4621_v27  ;;  %v4637_v7 = vrot.slane %v4621_v27, %v14299_v32 }
 0x37e   :  { %8684 = vst.sshfl [vmem:[#allocation2 + $0x8] sm:$0x1 pattern:$0x73625140] %v4621_v27  ;;  %v4707_v57 = vrot.slane %v4679_v55, %v14299_v32  ;;  %v4709_v59 = vcombine.high %v4693_v49, %v4693_v49  ;;  %v4710_v51 = vcombine.high %v4700_v18, %v4700_v18  ;;  %4738 = vst [vmem:[#allocation2 + $0xa8] sm:$0x1] %v4708_v41 }
 0x37f   :  { %8691 = vst.sshfl [vmem:[#allocation2 + $0xd8] sm:$0x1 pattern:$0x73625140] %v4679_v55  ;;  %v4630_v33 = vcombine.high %v4628_v58, %v4628_v58  ;;  %v4644_v22 = vrot.slane %v4628_v58, %v14299_v32  ;;  %v4651_v50 = vrot.slane %v4629_v34, %v14299_v32  ;;  %v4659_v15 = vcombine.high %v4637_v7, %v4637_v7 }
 0x380   :  { %8685 = vst.sshfl [vmem:[#allocation2 + $0x18] sm:$0x1 pattern:$0x73625140] %v4629_v34  ;;  %v4711_v56 = vcombine.high %v4707_v57, %v4707_v57  ;;  %4739 = vst [vmem:[#allocation2 + $0xb8] sm:$0x1] %v4710_v51 }
 0x381   :  { %8686 = vst.sshfl [vmem:[#allocation2 + $0x48] sm:$0x1 pattern:$0x73625140] %v4628_v58  ;;  %4742 = vst [vmem:[#allocation2 + $0xe8] sm:$0x1] %v4709_v59  ;;  %v4658_v36 = vrot.slane %v4630_v33, %v14299_v32  ;;  %v4660_v9 = vcombine.high %v4644_v22, %v4644_v22  ;;  %v4661_v28 = vcombine.high %v4651_v50, %v4651_v50 }
 0x382   :  { %4730 = vst [vmem:[#allocation2 + $0x28] sm:$0x1] %v4659_v15  ;;  %8687 = vst.sshfl [vmem:[#allocation2 + $0x58] sm:$0x1 pattern:$0x73625140] %v4630_v33  ;;  %v8905_v30 = vpop.f32.mrf.mxu1 }
 0x383   :  { %4743 = vst [vmem:[#allocation2 + $0xf8] sm:$0x1] %v4711_v56  ;;  %v4662_v10 = vcombine.high %v4658_v36, %v4658_v36  ;;  %4731 = vst [vmem:[#allocation2 + $0x38] sm:$0x1] %v4661_v28  ;;  %v5131_v52 = vadd.f32 %v8905_v30, %v8695_v26 }
 0x384   :  { %4734 = vst [vmem:[#allocation2 + $0x68] sm:$0x1] %v4660_v9  ;;  %v5125_v24 = vpop.f32.mrf.mxu1 }
 0x385   :  { %4735 = vst [vmem:[#allocation2 + $0x78] sm:$0x1] %v4662_v10  ;;  %v5135_v43 = vmax.f32 %v5131_v52, -1e+30  ;;  %v5126_v6 = vadd.f32 %v8695_v26, %v5125_v24 }
 0x387   :  { %v5187_v44 = vcombine.high %v5135_v43, %v5135_v43  ;;  %v5194_v61 = vrot.slane %v5135_v43, %v14299_v32  ;;  %v5134_v45 = vmax.f32 %v5126_v6, -1e+30 }
 0x389   :  { %v5201_v20 = vrot.slane %v5187_v44, %v14299_v32  ;;  %v5202_v48 = vcombine.high %v5194_v61, %v5194_v61  ;;  %v5210_v11 = vrot.slane %v5194_v61, %v14299_v32  ;;  %8703 = vst.sshfl [vmem:[#allocation2 + $0x89] sm:$0x1 pattern:$0x73625140] %v5194_v61  ;;  %v5138_v25 = vcombine.high %v5134_v45, %v5134_v45 }
 0x38a   :  { %v5145_v12 = vrot.slane %v5134_v45, %v14299_v32  ;;  %v8725_v45 = vld [vmem:[%s14659_s3 + $0x1b] ss:$0 sm:$0xff] }
 0x38b   :  { %v5203_v31 = vcombine.high %v5201_v20, %v5201_v20  ;;  %v5217_v4 = vrot.slane %v5201_v20, %v14299_v32  ;;  %v5224_v46 = vrot.slane %v5202_v48, %v14299_v32  ;;  %v5232_v38 = vcombine.high %v5210_v11, %v5210_v11  ;;  %8704 = vst.sshfl [vmem:[#allocation2 + $0x99] sm:$0x1 pattern:$0x73625140] %v5202_v48 }
 0x38c   :  { %8705 = vst.sshfl [vmem:[#allocation2 + $0xc9] sm:$0x1 pattern:$0x73625140] %v5201_v20  ;;  %v5152_v39 = vrot.slane %v5138_v25, %v14299_v32  ;;  %v5153_v29 = vcombine.high %v5145_v12, %v5145_v12  ;;  %v5161_v13 = vrot.slane %v5145_v12, %v14299_v32 }
 0x38d   :  { %8699 = vst.sshfl [vmem:[#allocation2 + $0x9] sm:$0x1 pattern:$0x73625140] %v5145_v12  ;;  %v5231_v40 = vrot.slane %v5203_v31, %v14299_v32  ;;  %v5233_v23 = vcombine.high %v5217_v4, %v5217_v4  ;;  %v5234_v1 = vcombine.high %v5224_v46, %v5224_v46  ;;  %5262 = vst [vmem:[#allocation2 + $0xa9] sm:$0x1] %v5232_v38 }
 0x38e   :  { %8706 = vst.sshfl [vmem:[#allocation2 + $0xd9] sm:$0x1 pattern:$0x73625140] %v5203_v31  ;;  %v5154_v5 = vcombine.high %v5152_v39, %v5152_v39  ;;  %v5168_v63 = vrot.slane %v5152_v39, %v14299_v32  ;;  %v5175_v2 = vrot.slane %v5153_v29, %v14299_v32  ;;  %v5183_v54 = vcombine.high %v5161_v13, %v5161_v13 }
 0x38f   :  { %8700 = vst.sshfl [vmem:[#allocation2 + $0x19] sm:$0x1 pattern:$0x73625140] %v5153_v29  ;;  %v5235_v3 = vcombine.high %v5231_v40, %v5231_v40  ;;  %5263 = vst [vmem:[#allocation2 + $0xb9] sm:$0x1] %v5234_v1 }
 0x390   :  { %8701 = vst.sshfl [vmem:[#allocation2 + $0x49] sm:$0x1 pattern:$0x73625140] %v5152_v39  ;;  %5266 = vst [vmem:[#allocation2 + $0xe9] sm:$0x1] %v5233_v23  ;;  %v5182_v16 = vrot.slane %v5154_v5, %v14299_v32  ;;  %v5184_v47 = vcombine.high %v5168_v63, %v5168_v63  ;;  %v5185_v35 = vcombine.high %v5175_v2, %v5175_v2  ;;  %v8910_v21 = vpop.f32.mrf.mxu0 }
 0x391   :  { %5254 = vst [vmem:[#allocation2 + $0x29] sm:$0x1] %v5183_v54  ;;  %8702 = vst.sshfl [vmem:[#allocation2 + $0x59] sm:$0x1 pattern:$0x73625140] %v5154_v5  ;;  %v5655_v27 = vadd.f32 %v8910_v21, %v8710_v0 }
 0x392   :  { %5267 = vst [vmem:[#allocation2 + $0xf9] sm:$0x1] %v5235_v3  ;;  %v5186_v55 = vcombine.high %v5182_v16, %v5182_v16  ;;  %5255 = vst [vmem:[#allocation2 + $0x39] sm:$0x1] %v5185_v35  ;;  %v5649_v49 = vpop.f32.mrf.mxu0 }
 0x393   :  { %5258 = vst [vmem:[#allocation2 + $0x69] sm:$0x1] %v5184_v47  ;;  %v5659_v18 = vmax.f32 %v5655_v27, -1e+30  ;;  %v5650_v41 = vadd.f32 %v8710_v0, %v5649_v49 }
 0x394   :  { %5259 = vst [vmem:[#allocation2 + $0x79] sm:$0x1] %v5186_v55 }
 0x395   :  { %v5711_v58 = vcombine.high %v5659_v18, %v5659_v18  ;;  %v5718_v34 = vrot.slane %v5659_v18, %v14299_v32  ;;  %v5658_v7 = vmax.f32 %v5650_v41, -1e+30 }
 0x397   :  { %v5725_v57 = vrot.slane %v5711_v58, %v14299_v32  ;;  %v5726_v59 = vcombine.high %v5718_v34, %v5718_v34  ;;  %v5734_v51 = vrot.slane %v5718_v34, %v14299_v32  ;;  %8718 = vst.sshfl [vmem:[#allocation2 + $0x8a] sm:$0x1 pattern:$0x73625140] %v5718_v34  ;;  %v5662_v33 = vcombine.high %v5658_v7, %v5658_v7 }
 0x398   :  { %v5669_v22 = vrot.slane %v5658_v7, %v14299_v32  ;;  %v8740_v7 = vld [vmem:[%s14659_s3 + $0x1c] ss:$0 sm:$0xff] }
 0x399   :  { %v5727_v50 = vcombine.high %v5725_v57, %v5725_v57  ;;  %v5741_v15 = vrot.slane %v5725_v57, %v14299_v32  ;;  %v5748_v56 = vrot.slane %v5726_v59, %v14299_v32  ;;  %v5756_v26 = vcombine.high %v5734_v51, %v5734_v51  ;;  %8719 = vst.sshfl [vmem:[#allocation2 + $0x9a] sm:$0x1 pattern:$0x73625140] %v5726_v59 }
 0x39a   :  { %8720 = vst.sshfl [vmem:[#allocation2 + $0xca] sm:$0x1 pattern:$0x73625140] %v5725_v57  ;;  %v5676_v36 = vrot.slane %v5662_v33, %v14299_v32  ;;  %v5677_v9 = vcombine.high %v5669_v22, %v5669_v22  ;;  %v5685_v28 = vrot.slane %v5669_v22, %v14299_v32 }
 0x39b   :  { %8714 = vst.sshfl [vmem:[#allocation2 + $0xa] sm:$0x1 pattern:$0x73625140] %v5669_v22  ;;  %v5755_v30 = vrot.slane %v5727_v50, %v14299_v32  ;;  %v5757_v10 = vcombine.high %v5741_v15, %v5741_v15  ;;  %v5758_v52 = vcombine.high %v5748_v56, %v5748_v56  ;;  %5786 = vst [vmem:[#allocation2 + $0xaa] sm:$0x1] %v5756_v26 }
 0x39c   :  { %8721 = vst.sshfl [vmem:[#allocation2 + $0xda] sm:$0x1 pattern:$0x73625140] %v5727_v50  ;;  %v5678_v24 = vcombine.high %v5676_v36, %v5676_v36  ;;  %v5692_v43 = vrot.slane %v5676_v36, %v14299_v32  ;;  %v5699_v6 = vrot.slane %v5677_v9, %v14299_v32  ;;  %v5707_v44 = vcombine.high %v5685_v28, %v5685_v28 }
 0x39d   :  { %8715 = vst.sshfl [vmem:[#allocation2 + $0x1a] sm:$0x1 pattern:$0x73625140] %v5677_v9  ;;  %v5759_v61 = vcombine.high %v5755_v30, %v5755_v30  ;;  %5787 = vst [vmem:[#allocation2 + $0xba] sm:$0x1] %v5758_v52 }
 0x39e   :  { %8716 = vst.sshfl [vmem:[#allocation2 + $0x4a] sm:$0x1 pattern:$0x73625140] %v5676_v36  ;;  %5790 = vst [vmem:[#allocation2 + $0xea] sm:$0x1] %v5757_v10  ;;  %v5706_v20 = vrot.slane %v5678_v24, %v14299_v32  ;;  %v5708_v48 = vcombine.high %v5692_v43, %v5692_v43  ;;  %v5709_v11 = vcombine.high %v5699_v6, %v5699_v6 }
 0x39f   :  { %5778 = vst [vmem:[#allocation2 + $0x2a] sm:$0x1] %v5707_v44  ;;  %8717 = vst.sshfl [vmem:[#allocation2 + $0x5a] sm:$0x1 pattern:$0x73625140] %v5678_v24  ;;  %v8915_v25 = vpop.f32.mrf.mxu1 }
 0x3a0   :  { %5791 = vst [vmem:[#allocation2 + $0xfa] sm:$0x1] %v5759_v61  ;;  %v5710_v12 = vcombine.high %v5706_v20, %v5706_v20  ;;  %5779 = vst [vmem:[#allocation2 + $0x3a] sm:$0x1] %v5709_v11  ;;  %v6179_v31 = vadd.f32 %v8915_v25, %v8725_v45 }
 0x3a1   :  { %5782 = vst [vmem:[#allocation2 + $0x6a] sm:$0x1] %v5708_v48  ;;  %v6173_v4 = vpop.f32.mrf.mxu1 }
 0x3a2   :  { %5783 = vst [vmem:[#allocation2 + $0x7a] sm:$0x1] %v5710_v12  ;;  %v6183_v46 = vmax.f32 %v6179_v31, -1e+30  ;;  %v6174_v38 = vadd.f32 %v8725_v45, %v6173_v4 }
 0x3a4   :  { %v6235_v39 = vcombine.high %v6183_v46, %v6183_v46  ;;  %v6242_v29 = vrot.slane %v6183_v46, %v14299_v32  ;;  %v6182_v13 = vmax.f32 %v6174_v38, -1e+30 }
 0x3a6   :  { %v6249_v40 = vrot.slane %v6235_v39, %v14299_v32  ;;  %v6250_v23 = vcombine.high %v6242_v29, %v6242_v29  ;;  %v6258_v1 = vrot.slane %v6242_v29, %v14299_v32  ;;  %8733 = vst.sshfl [vmem:[#allocation2 + $0x8b] sm:$0x1 pattern:$0x73625140] %v6242_v29  ;;  %v6186_v5 = vcombine.high %v6182_v13, %v6182_v13 }
 0x3a7   :  { %v6193_v63 = vrot.slane %v6182_v13, %v14299_v32  ;;  %v8755_v13 = vld [vmem:[%s14659_s3 + $0x1d] ss:$0 sm:$0xff] }
 0x3a8   :  { %v6251_v2 = vcombine.high %v6249_v40, %v6249_v40  ;;  %v6265_v54 = vrot.slane %v6249_v40, %v14299_v32  ;;  %v6272_v0 = vrot.slane %v6250_v23, %v14299_v32  ;;  %v6280_v3 = vcombine.high %v6258_v1, %v6258_v1  ;;  %8734 = vst.sshfl [vmem:[#allocation2 + $0x9b] sm:$0x1 pattern:$0x73625140] %v6250_v23 }
 0x3a9   :  { %8735 = vst.sshfl [vmem:[#allocation2 + $0xcb] sm:$0x1 pattern:$0x73625140] %v6249_v40  ;;  %v6200_v16 = vrot.slane %v6186_v5, %v14299_v32  ;;  %v6201_v47 = vcombine.high %v6193_v63, %v6193_v63  ;;  %v6209_v35 = vrot.slane %v6193_v63, %v14299_v32 }
 0x3aa   :  { %8729 = vst.sshfl [vmem:[#allocation2 + $0xb] sm:$0x1 pattern:$0x73625140] %v6193_v63  ;;  %v6279_v21 = vrot.slane %v6251_v2, %v14299_v32  ;;  %v6281_v27 = vcombine.high %v6265_v54, %v6265_v54  ;;  %v6282_v55 = vcombine.high %v6272_v0, %v6272_v0  ;;  %6310 = vst [vmem:[#allocation2 + $0xab] sm:$0x1] %v6280_v3 }
 0x3ab   :  { %8736 = vst.sshfl [vmem:[#allocation2 + $0xdb] sm:$0x1 pattern:$0x73625140] %v6251_v2  ;;  %v6202_v49 = vcombine.high %v6200_v16, %v6200_v16  ;;  %v6216_v18 = vrot.slane %v6200_v16, %v14299_v32  ;;  %v6223_v41 = vrot.slane %v6201_v47, %v14299_v32  ;;  %v6231_v58 = vcombine.high %v6209_v35, %v6209_v35 }
 0x3ac   :  { %8730 = vst.sshfl [vmem:[#allocation2 + $0x1b] sm:$0x1 pattern:$0x73625140] %v6201_v47  ;;  %v6283_v34 = vcombine.high %v6279_v21, %v6279_v21  ;;  %6311 = vst [vmem:[#allocation2 + $0xbb] sm:$0x1] %v6282_v55 }
 0x3ad   :  { %8731 = vst.sshfl [vmem:[#allocation2 + $0x4b] sm:$0x1 pattern:$0x73625140] %v6200_v16  ;;  %6314 = vst [vmem:[#allocation2 + $0xeb] sm:$0x1] %v6281_v27  ;;  %v6230_v57 = vrot.slane %v6202_v49, %v14299_v32  ;;  %v6232_v59 = vcombine.high %v6216_v18, %v6216_v18  ;;  %v6233_v51 = vcombine.high %v6223_v41, %v6223_v41 }
 0x3ae   :  { %6302 = vst [vmem:[#allocation2 + $0x2b] sm:$0x1] %v6231_v58  ;;  %8732 = vst.sshfl [vmem:[#allocation2 + $0x5b] sm:$0x1 pattern:$0x73625140] %v6202_v49  ;;  %v8920_v33 = vpop.f32.mrf.mxu0 }
 0x3af   :  { %6315 = vst [vmem:[#allocation2 + $0xfb] sm:$0x1] %v6283_v34  ;;  %v6234_v22 = vcombine.high %v6230_v57, %v6230_v57  ;;  %6303 = vst [vmem:[#allocation2 + $0x3b] sm:$0x1] %v6233_v51  ;;  %v6703_v50 = vadd.f32 %v8920_v33, %v8740_v7 }
 0x3b0   :  { %6306 = vst [vmem:[#allocation2 + $0x6b] sm:$0x1] %v6232_v59  ;;  %v6697_v15 = vpop.f32.mrf.mxu0 }
 0x3b1   :  { %6307 = vst [vmem:[#allocation2 + $0x7b] sm:$0x1] %v6234_v22  ;;  %v6707_v56 = vmax.f32 %v6703_v50, -1e+30  ;;  %v6698_v26 = vadd.f32 %v8740_v7, %v6697_v15 }
 0x3b3   :  { %v6759_v36 = vcombine.high %v6707_v56, %v6707_v56  ;;  %v6766_v9 = vrot.slane %v6707_v56, %v14299_v32  ;;  %v6706_v28 = vmax.f32 %v6698_v26, -1e+30 }
 0x3b5   :  { %v6773_v30 = vrot.slane %v6759_v36, %v14299_v32  ;;  %v6774_v10 = vcombine.high %v6766_v9, %v6766_v9  ;;  %v6782_v52 = vrot.slane %v6766_v9, %v14299_v32  ;;  %8748 = vst.sshfl [vmem:[#allocation2 + $0x8c] sm:$0x1 pattern:$0x73625140] %v6766_v9  ;;  %v6710_v24 = vcombine.high %v6706_v28, %v6706_v28 }
 0x3b6   :  { %v6717_v43 = vrot.slane %v6706_v28, %v14299_v32  ;;  %v8770_v28 = vld [vmem:[%s14659_s3 + $0x1e] ss:$0 sm:$0xff] }
 0x3b7   :  { %v6775_v6 = vcombine.high %v6773_v30, %v6773_v30  ;;  %v6789_v44 = vrot.slane %v6773_v30, %v14299_v32  ;;  %v6796_v61 = vrot.slane %v6774_v10, %v14299_v32  ;;  %v6804_v45 = vcombine.high %v6782_v52, %v6782_v52  ;;  %8749 = vst.sshfl [vmem:[#allocation2 + $0x9c] sm:$0x1 pattern:$0x73625140] %v6774_v10 }
 0x3b8   :  { %8750 = vst.sshfl [vmem:[#allocation2 + $0xcc] sm:$0x1 pattern:$0x73625140] %v6773_v30  ;;  %v6724_v20 = vrot.slane %v6710_v24, %v14299_v32  ;;  %v6725_v48 = vcombine.high %v6717_v43, %v6717_v43  ;;  %v6733_v11 = vrot.slane %v6717_v43, %v14299_v32 }
 0x3b9   :  { %8744 = vst.sshfl [vmem:[#allocation2 + $0xc] sm:$0x1 pattern:$0x73625140] %v6717_v43  ;;  %v6803_v25 = vrot.slane %v6775_v6, %v14299_v32  ;;  %v6805_v12 = vcombine.high %v6789_v44, %v6789_v44  ;;  %v6806_v31 = vcombine.high %v6796_v61, %v6796_v61  ;;  %6834 = vst [vmem:[#allocation2 + $0xac] sm:$0x1] %v6804_v45 }
 0x3ba   :  { %8751 = vst.sshfl [vmem:[#allocation2 + $0xdc] sm:$0x1 pattern:$0x73625140] %v6775_v6  ;;  %v6726_v4 = vcombine.high %v6724_v20, %v6724_v20  ;;  %v6740_v46 = vrot.slane %v6724_v20, %v14299_v32  ;;  %v6747_v38 = vrot.slane %v6725_v48, %v14299_v32  ;;  %v6755_v39 = vcombine.high %v6733_v11, %v6733_v11 }
 0x3bb   :  { %8745 = vst.sshfl [vmem:[#allocation2 + $0x1c] sm:$0x1 pattern:$0x73625140] %v6725_v48  ;;  %v6807_v29 = vcombine.high %v6803_v25, %v6803_v25  ;;  %6835 = vst [vmem:[#allocation2 + $0xbc] sm:$0x1] %v6806_v31 }
 0x3bc   :  { %8746 = vst.sshfl [vmem:[#allocation2 + $0x4c] sm:$0x1 pattern:$0x73625140] %v6724_v20  ;;  %6838 = vst [vmem:[#allocation2 + $0xec] sm:$0x1] %v6805_v12  ;;  %v6754_v40 = vrot.slane %v6726_v4, %v14299_v32  ;;  %v6756_v23 = vcombine.high %v6740_v46, %v6740_v46  ;;  %v6757_v1 = vcombine.high %v6747_v38, %v6747_v38  ;;  %v8925_v5 = vpop.f32.mrf.mxu1 }
 0x3bd   :  { %6826 = vst [vmem:[#allocation2 + $0x2c] sm:$0x1] %v6755_v39  ;;  %8747 = vst.sshfl [vmem:[#allocation2 + $0x5c] sm:$0x1 pattern:$0x73625140] %v6726_v4  ;;  %v7227_v2 = vadd.f32 %v8925_v5, %v8755_v13 }
 0x3be   :  { %6839 = vst [vmem:[#allocation2 + $0xfc] sm:$0x1] %v6807_v29  ;;  %v6758_v63 = vcombine.high %v6754_v40, %v6754_v40  ;;  %6827 = vst [vmem:[#allocation2 + $0x3c] sm:$0x1] %v6757_v1  ;;  %v7221_v54 = vpop.f32.mrf.mxu1 }
 0x3bf   :  { %6830 = vst [vmem:[#allocation2 + $0x6c] sm:$0x1] %v6756_v23  ;;  %v7231_v0 = vmax.f32 %v7227_v2, -1e+30  ;;  %v7222_v3 = vadd.f32 %v8755_v13, %v7221_v54 }
 0x3c0   :  { %6831 = vst [vmem:[#allocation2 + $0x7c] sm:$0x1] %v6758_v63 }
 0x3c1   :  { %v7283_v16 = vcombine.high %v7231_v0, %v7231_v0  ;;  %v7290_v47 = vrot.slane %v7231_v0, %v14299_v32  ;;  %v7230_v35 = vmax.f32 %v7222_v3, -1e+30 }
 0x3c3   :  { %v7297_v21 = vrot.slane %v7283_v16, %v14299_v32  ;;  %v7298_v27 = vcombine.high %v7290_v47, %v7290_v47  ;;  %v7306_v55 = vrot.slane %v7290_v47, %v14299_v32  ;;  %8763 = vst.sshfl [vmem:[#allocation2 + $0x8d] sm:$0x1 pattern:$0x73625140] %v7290_v47  ;;  %v7234_v49 = vcombine.high %v7230_v35, %v7230_v35  ;;  %v8785_v47 = vld [vmem:[%s14659_s3 + $0x1f] ss:$0 sm:$0xff] }
 0x3c4   :  { %v7241_v18 = vrot.slane %v7230_v35, %v14299_v32 }
 0x3c5   :  { %v7299_v41 = vcombine.high %v7297_v21, %v7297_v21  ;;  %v7313_v58 = vrot.slane %v7297_v21, %v14299_v32  ;;  %v7320_v34 = vrot.slane %v7298_v27, %v14299_v32  ;;  %v7328_v7 = vcombine.high %v7306_v55, %v7306_v55  ;;  %8764 = vst.sshfl [vmem:[#allocation2 + $0x9d] sm:$0x1 pattern:$0x73625140] %v7298_v27 }
 0x3c6   :  { %8765 = vst.sshfl [vmem:[#allocation2 + $0xcd] sm:$0x1 pattern:$0x73625140] %v7297_v21  ;;  %v7248_v57 = vrot.slane %v7234_v49, %v14299_v32  ;;  %v7249_v59 = vcombine.high %v7241_v18, %v7241_v18  ;;  %v7257_v51 = vrot.slane %v7241_v18, %v14299_v32 }
 0x3c7   :  { %8759 = vst.sshfl [vmem:[#allocation2 + $0xd] sm:$0x1 pattern:$0x73625140] %v7241_v18  ;;  %v7327_v33 = vrot.slane %v7299_v41, %v14299_v32  ;;  %v7329_v22 = vcombine.high %v7313_v58, %v7313_v58  ;;  %v7330_v50 = vcombine.high %v7320_v34, %v7320_v34  ;;  %7358 = vst [vmem:[#allocation2 + $0xad] sm:$0x1] %v7328_v7 }
 0x3c8   :  { %8766 = vst.sshfl [vmem:[#allocation2 + $0xdd] sm:$0x1 pattern:$0x73625140] %v7299_v41  ;;  %v7250_v15 = vcombine.high %v7248_v57, %v7248_v57  ;;  %v7264_v56 = vrot.slane %v7248_v57, %v14299_v32  ;;  %v7271_v26 = vrot.slane %v7249_v59, %v14299_v32  ;;  %v7279_v36 = vcombine.high %v7257_v51, %v7257_v51 }
 0x3c9   :  { %8760 = vst.sshfl [vmem:[#allocation2 + $0x1d] sm:$0x1 pattern:$0x73625140] %v7249_v59  ;;  %v7331_v9 = vcombine.high %v7327_v33, %v7327_v33  ;;  %7359 = vst [vmem:[#allocation2 + $0xbd] sm:$0x1] %v7330_v50 }
 0x3ca   :  { %8761 = vst.sshfl [vmem:[#allocation2 + $0x4d] sm:$0x1 pattern:$0x73625140] %v7248_v57  ;;  %7362 = vst [vmem:[#allocation2 + $0xed] sm:$0x1] %v7329_v22  ;;  %v7278_v30 = vrot.slane %v7250_v15, %v14299_v32  ;;  %v7280_v10 = vcombine.high %v7264_v56, %v7264_v56  ;;  %v7281_v52 = vcombine.high %v7271_v26, %v7271_v26 }
 0x3cb   :  { %7350 = vst [vmem:[#allocation2 + $0x2d] sm:$0x1] %v7279_v36  ;;  %8762 = vst.sshfl [vmem:[#allocation2 + $0x5d] sm:$0x1 pattern:$0x73625140] %v7250_v15  ;;  %v8930_v24 = vpop.f32.mrf.mxu0 }
 0x3cc   :  { %7363 = vst [vmem:[#allocation2 + $0xfd] sm:$0x1] %v7331_v9  ;;  %v7282_v43 = vcombine.high %v7278_v30, %v7278_v30  ;;  %7351 = vst [vmem:[#allocation2 + $0x3d] sm:$0x1] %v7281_v52  ;;  %v7751_v6 = vadd.f32 %v8930_v24, %v8770_v28 }
 0x3cd   :  { %7354 = vst [vmem:[#allocation2 + $0x6d] sm:$0x1] %v7280_v10  ;;  %v7745_v44 = vpop.f32.mrf.mxu0 }
 0x3ce   :  { %7355 = vst [vmem:[#allocation2 + $0x7d] sm:$0x1] %v7282_v43  ;;  %v7755_v61 = vmax.f32 %v7751_v6, -1e+30  ;;  %v7746_v45 = vadd.f32 %v8770_v28, %v7745_v44 }
 0x3d0   :  { %v7807_v20 = vcombine.high %v7755_v61, %v7755_v61  ;;  %v7814_v48 = vrot.slane %v7755_v61, %v14299_v32  ;;  %v7754_v11 = vmax.f32 %v7746_v45, -1e+30 }
 0x3d2   :  { %v7821_v25 = vrot.slane %v7807_v20, %v14299_v32  ;;  %v7822_v12 = vcombine.high %v7814_v48, %v7814_v48  ;;  %v7830_v31 = vrot.slane %v7814_v48, %v14299_v32  ;;  %8778 = vst.sshfl [vmem:[#allocation2 + $0x8e] sm:$0x1 pattern:$0x73625140] %v7814_v48  ;;  %v7758_v4 = vcombine.high %v7754_v11, %v7754_v11 }
 0x3d3   :  { %v7765_v46 = vrot.slane %v7754_v11, %v14299_v32 }
 0x3d4   :  { %v7823_v38 = vcombine.high %v7821_v25, %v7821_v25  ;;  %v7837_v39 = vrot.slane %v7821_v25, %v14299_v32  ;;  %v7844_v29 = vrot.slane %v7822_v12, %v14299_v32  ;;  %v7852_v13 = vcombine.high %v7830_v31, %v7830_v31  ;;  %8779 = vst.sshfl [vmem:[#allocation2 + $0x9e] sm:$0x1 pattern:$0x73625140] %v7822_v12  ;;  %v8798_v31 = vld [vmem:[%s14659_s3 + $0x38] sm:$0xff]  ;;  %s14608_s3 = smov (!%p8805_p1), 1  }
 0x3d5   :  { %8780 = vst.sshfl [vmem:[#allocation2 + $0xce] sm:$0x1 pattern:$0x73625140] %v7821_v25  ;;  %v7772_v40 = vrot.slane %v7758_v4, %v14299_v32  ;;  %v7773_v23 = vcombine.high %v7765_v46, %v7765_v46  ;;  %v7781_v1 = vrot.slane %v7765_v46, %v14299_v32 }
 0x3d6   :  { %8774 = vst.sshfl [vmem:[#allocation2 + $0xe] sm:$0x1 pattern:$0x73625140] %v7765_v46  ;;  %v7851_v5 = vrot.slane %v7823_v38, %v14299_v32  ;;  %v7853_v63 = vcombine.high %v7837_v39, %v7837_v39  ;;  %v7854_v2 = vcombine.high %v7844_v29, %v7844_v29  ;;  %7882 = vst [vmem:[#allocation2 + $0xae] sm:$0x1] %v7852_v13  ;;  %v14717_v29 = vmov %v8431_v17 }
 0x3d7   :  { %8781 = vst.sshfl [vmem:[#allocation2 + $0xde] sm:$0x1 pattern:$0x73625140] %v7823_v38  ;;  %v7774_v54 = vcombine.high %v7772_v40, %v7772_v40  ;;  %v7788_v0 = vrot.slane %v7772_v40, %v14299_v32  ;;  %v7795_v3 = vrot.slane %v7773_v23, %v14299_v32  ;;  %v7803_v16 = vcombine.high %v7781_v1, %v7781_v1 }
 0x3d8   :  { %8775 = vst.sshfl [vmem:[#allocation2 + $0x1e] sm:$0x1 pattern:$0x73625140] %v7773_v23  ;;  %v7855_v35 = vcombine.high %v7851_v5, %v7851_v5  ;;  %7883 = vst [vmem:[#allocation2 + $0xbe] sm:$0x1] %v7854_v2 }
 0x3d9   :  { %8776 = vst.sshfl [vmem:[#allocation2 + $0x4e] sm:$0x1 pattern:$0x73625140] %v7772_v40  ;;  %7886 = vst [vmem:[#allocation2 + $0xee] sm:$0x1] %v7853_v63  ;;  %v7802_v21 = vrot.slane %v7774_v54, %v14299_v32  ;;  %v7804_v27 = vcombine.high %v7788_v0, %v7788_v0  ;;  %v7805_v55 = vcombine.high %v7795_v3, %v7795_v3 }
 0x3da   :  { %7874 = vst [vmem:[#allocation2 + $0x2e] sm:$0x1] %v7803_v16  ;;  %8777 = vst.sshfl [vmem:[#allocation2 + $0x5e] sm:$0x1 pattern:$0x73625140] %v7774_v54  ;;  %v8935_v49 = vpop.f32.mrf.mxu1 }
 0x3db   :  { %7887 = vst [vmem:[#allocation2 + $0xfe] sm:$0x1] %v7855_v35  ;;  %v8275_v18 = vadd.f32 %v8935_v49, %v8785_v47  ;;  %v7806_v41 = vcombine.high %v7802_v21, %v7802_v21  ;;  %7875 = vst [vmem:[#allocation2 + $0x3e] sm:$0x1] %v7805_v55 }
 0x3dc   :  { %7878 = vst [vmem:[#allocation2 + $0x6e] sm:$0x1] %v7804_v27  ;;  %v8269_v58 = vpop.f32.mrf.mxu1 }
 0x3dd   :  { %v8279_v34 = vmax.f32 %v8275_v18, -1e+30  ;;  %v8270_v7 = vadd.f32 %v8785_v47, %v8269_v58  ;;  %7879 = vst [vmem:[#allocation2 + $0x7e] sm:$0x1] %v7806_v41 }
 0x3df   :  { %v8331_v57 = vcombine.high %v8279_v34, %v8279_v34  ;;  %v8338_v59 = vrot.slane %v8279_v34, %v14299_v32  ;;  %v8278_v51 = vmax.f32 %v8270_v7, -1e+30 }
 0x3e1   :  { %v8345_v33 = vrot.slane %v8331_v57, %v14299_v32  ;;  %v8346_v22 = vcombine.high %v8338_v59, %v8338_v59  ;;  %v8354_v50 = vrot.slane %v8338_v59, %v14299_v32  ;;  %8793 = vst.sshfl [vmem:[#allocation2 + $0x8f] sm:$0x1 pattern:$0x73625140] %v8338_v59  ;;  %v8282_v15 = vcombine.high %v8278_v51, %v8278_v51 }
 0x3e2   :  { %v8289_v56 = vrot.slane %v8278_v51, %v14299_v32 }
 0x3e3   :  { %v8347_v26 = vcombine.high %v8345_v33, %v8345_v33  ;;  %v8361_v36 = vrot.slane %v8345_v33, %v14299_v32  ;;  %v8368_v9 = vrot.slane %v8346_v22, %v14299_v32  ;;  %v8376_v28 = vcombine.high %v8354_v50, %v8354_v50  ;;  %8794 = vst.sshfl [vmem:[#allocation2 + $0x9f] sm:$0x1 pattern:$0x73625140] %v8346_v22 }
 0x3e4   :  { %8795 = vst.sshfl [vmem:[#allocation2 + $0xcf] sm:$0x1 pattern:$0x73625140] %v8345_v33  ;;  %v8296_v30 = vrot.slane %v8282_v15, %v14299_v32  ;;  %v8297_v10 = vcombine.high %v8289_v56, %v8289_v56  ;;  %v8305_v52 = vrot.slane %v8289_v56, %v14299_v32 }
 0x3e5   :  { %8789 = vst.sshfl [vmem:[#allocation2 + $0xf] sm:$0x1 pattern:$0x73625140] %v8289_v56  ;;  %v8375_v24 = vrot.slane %v8347_v26, %v14299_v32  ;;  %v8377_v43 = vcombine.high %v8361_v36, %v8361_v36  ;;  %v8378_v6 = vcombine.high %v8368_v9, %v8368_v9  ;;  %8406 = vst [vmem:[#allocation2 + $0xaf] sm:$0x1] %v8376_v28 }
 0x3e6   :  { %8796 = vst.sshfl [vmem:[#allocation2 + $0xdf] sm:$0x1 pattern:$0x73625140] %v8347_v26  ;;  %v8298_v44 = vcombine.high %v8296_v30, %v8296_v30  ;;  %v8312_v61 = vrot.slane %v8296_v30, %v14299_v32  ;;  %v8319_v45 = vrot.slane %v8297_v10, %v14299_v32  ;;  %v8327_v20 = vcombine.high %v8305_v52, %v8305_v52 }
 0x3e7   :  { %8790 = vst.sshfl [vmem:[#allocation2 + $0x1f] sm:$0x1 pattern:$0x73625140] %v8297_v10  ;;  %v8379_v48 = vcombine.high %v8375_v24, %v8375_v24  ;;  %8407 = vst [vmem:[#allocation2 + $0xbf] sm:$0x1] %v8378_v6 }
 0x3e8   :  { %8791 = vst.sshfl [vmem:[#allocation2 + $0x4f] sm:$0x1 pattern:$0x73625140] %v8296_v30  ;;  %8410 = vst [vmem:[#allocation2 + $0xef] sm:$0x1] %v8377_v43  ;;  %v8326_v11 = vrot.slane %v8298_v44, %v14299_v32  ;;  %v8328_v25 = vcombine.high %v8312_v61, %v8312_v61  ;;  %v8329_v12 = vcombine.high %v8319_v45, %v8319_v45 }
 0x3e9   :  { %8398 = vst [vmem:[#allocation2 + $0x2f] sm:$0x1] %v8327_v20  ;;  %8792 = vst.sshfl [vmem:[#allocation2 + $0x5f] sm:$0x1 pattern:$0x73625140] %v8298_v44 }
 0x3ea   :  { %8411 = vst [vmem:[#allocation2 + $0xff] sm:$0x1] %v8379_v48  ;;  %v8330_v4 = vcombine.high %v8326_v11, %v8326_v11  ;;  %8399 = vst [vmem:[#allocation2 + $0x3f] sm:$0x1] %v8329_v12 }
 0x3eb   :  { %8402 = vst [vmem:[#allocation2 + $0x6f] sm:$0x1] %v8328_v25 }
 0x3ec   :  { %v8428_v46 = vld [vmem:[#allocation2 + $0x8] sm:$0xff]  ;;  %8403 = vst [vmem:[#allocation2 + $0x7f] sm:$0x1] %v8330_v4 }
 0x3ed   :  { %v8430_v38 = vadd.f32 %v8798_v31, %v8428_v46  ;;  %8550 = sbr.rel (%p8805_p1) target bundleno = 1183 (0x49f), region = 38 }
 0x3ef   :  { %v8432_v39 = vmax.f32 %v8430_v38, -1e+30  }
 0x3f1   :  { %v14716_v32 = vmov %v8432_v39 }
 0x3f2 LB: > { %s10161_s0 = smov 1   ;;  %s10162_s22 = smov 2   ;;  %s10148_s3 = sphi %s14608_s3, %s8439_s3   ;;  %v10144_v17 = vphi %v8431_v17, %v14719_v17   ;;  %v10140_v39 = vphi %v8432_v39, %v14718_v39  }
 0x3f3   : > { %8448 = vrot.lane.b32.xlu0 %v10144_v17, %s10161_s0  ;;  %8454 = vrot.lane.b32.xlu1 %v10144_v17, %s10162_s22  ;;  %s8804_s23 = sshll.u32 %s10148_s3, 4  ;;  %s8496_s24 = scvt.s32.f32 %s10148_s3 }
 0x3f4   : > { %s8445_s1 = scalar_lea.vmem [#allocation2], %s8804_s23  ;;  %s8439_s3 = sadd.s32 1, %s10148_s3  }
 0x3f5   : > { %v8446_v10 = vld [vmem:[%s8445_s1] sm:$0xff]  ;;  %v8497_v52 = vstv %s8496_s24  ;;  %v8447_v61 = vld [vmem:[%s8445_s1 + $0x8] sm:$0xff]  ;;  %p8438_p2 = scmp.ge.s32.totalorder %s8439_s3, %s14461_s26 }
 0x3f6   : > { %vm8498_vm0 = vcmp.lt.f32.partialorder %v8497_v52, %v14447_v37  ;;  %vm8499_vm1 = vcmp.lt.f32.partialorder %v8497_v52, %v14452_v8 }
 0x3f7   : > { %8450 = vrot.lane.b32.xlu0 %v10140_v39, %s10161_s0  ;;  %8456 = vrot.lane.b32.xlu1 %v10140_v39, %s10162_s22 }
 0x465   : > { %v8449_v62 = vpop.permute.xlu0 %8448  ;;  %v8455_v13 = vpop.permute.xlu1 %8454 }
 0x466   : > { %v8452_v40 = vadd.f32 %v8449_v62, %v12763_v60  ;;  %v8458_v23 = vadd.f32 %v8455_v13, %v14425_v53 }
 0x468   : > { %v8460_v1 = vmax.f32 %v10144_v17, %v8452_v40 }
 0x469   : > { %v8451_v5 = vpop.permute.xlu0 %8450  ;;  %v8457_v63 = vpop.permute.xlu1 %8456 }
 0x46a   : > { %v8462_v2 = vmax.f32 %v8460_v1, %v8458_v23  ;;  %v8453_v54 = vadd.f32 %v8451_v5, %v12763_v60  ;;  %v8459_v0 = vadd.f32 %v8457_v63, %v14430_v42 }
 0x46c   : > { %v8464_v3 = vsub.f32 %v10144_v17, %v8462_v2  ;;  %v8470_v16 = vsub.f32 %v8452_v40, %v8462_v2  ;;  %v8478_v47 = vsub.f32 %v8458_v23, %v8462_v2  ;;  %v8461_v35 = vmax.f32 %v10140_v39, %v8453_v54 }
 0x46e   : > { %v8466_v21 = vmul.f32 1.442695, %v8464_v3  ;;  %v8472_v27 = vmul.f32 1.442695, %v8470_v16  ;;  %v8463_v55 = vmax.f32 %v8461_v35, %v8459_v0  ;;  %v8480_v49 = vmul.f32 1.442695, %v8478_v47 }
 0x470   : > { %10072 = vpow2.f32 %v8466_v21  ;;  %v8465_v18 = vsub.f32 %v10140_v39, %v8463_v55  ;;  %v8471_v41 = vsub.f32 %v8453_v54, %v8463_v55  ;;  %v8479_v58 = vsub.f32 %v8459_v0, %v8463_v55 }
 0x471   : > { %10074 = vpow2.f32 %v8472_v27 }
 0x472   : > { %v8468_v34 = vmul.f32 1.442695, %v8465_v18  ;;  %v8474_v7 = vmul.f32 1.442695, %v8471_v41  ;;  %10076 = vpow2.f32 %v8480_v49  ;;  %v8482_v57 = vmul.f32 1.442695, %v8479_v58 }
 0x474   : > { %10078 = vpow2.f32 %v8468_v34 }
 0x475   : > { %10080 = vpow2.f32 %v8474_v7 }
 0x476   : > { %10082 = vpow2.f32 %v8482_v57 }
 0x47d   : > { %v10073_v59 = vpop.eup %10072 }
 0x47e   : > { %v10075_v51 = vpop.eup %10074 }
 0x47f   : > { %v8476_v33 = vadd.f32 %v10075_v51, %v10073_v59  ;;  %v10077_v22 = vpop.eup %10076 }
 0x481   : > { %v10079_v50 = vpop.eup %10078  ;;  %v8484_v15 = vadd.f32 %v10077_v22, %v8476_v33 }
 0x482   : > { %v10081_v56 = vpop.eup %10080 }
 0x483   : > { %10084 = vlog2.f32 %v8484_v15  ;;  %v8477_v26 = vadd.f32 %v10081_v56, %v10079_v50  ;;  %v10083_v36 = vpop.eup %10082 }
 0x485   : > { %v8485_v9 = vadd.f32 %v10083_v36, %v8477_v26 }
 0x487   : > { %10086 = vlog2.f32 %v8485_v9 }
 0x490   : > { %v10085_v28 = vpop.eup %10084 }
 0x491   : > { %v8487_v30 = vmul.f32 0.6931472, %v10085_v28 }
 0x493   : > { %v8490_v24 = vadd.f32 %v8487_v30, %v8462_v2 }
 0x494   : > { %v10087_v43 = vpop.eup %10086 }
 0x495   : > { %v8492_v6 = vadd.f32 %v8490_v24, %v8446_v10  ;;  %v8489_v44 = vmul.f32 0.6931472, %v10087_v43 }
 0x497   : > { %v8494_v45 = vmax.f32 %v8492_v6, -1e+30  ;;  %v8491_v20 = vadd.f32 %v8489_v44, %v8463_v55 }
 0x499   : > { %v8500_v48 = vsel %vm8498_vm0, %v8494_v45, %v10144_v17   ;;  %v8493_v11 = vadd.f32 %v8491_v20, %v8447_v61 }
 0x49a   : > { %v14719_v17 = vmov %v8500_v48  ;;  %8441 = sbr.rel (!%p8438_p2) target bundleno = 1010 (0x3f2), region = 44  ;;  %v14721_v29 = vmov (%p8438_p2), %v8500_v48 }
 0x49b   : > { %v8495_v25 = vmax.f32 %v8493_v11, -1e+30 }
 0x49d   : > { %v8501_v12 = vsel %vm8499_vm1, %v8495_v25, %v10140_v39  }
 0x49e   : > { %v14718_v39 = vmov %v8501_v12  ;;  %v14720_v32 = vmov (%p8438_p2), %v8501_v12 }
 0x49f PF:  { %v8502_v17 = vadd.f32 %v10156_v29, %v14435_v19  ;;  %v8503_v31 = vadd.f32 %v10152_v32, %v14442_v14  ;;  %s10163_s25 = smov [#allocation5]   ;;  %v10156_v29 = vphi %v14717_v29, %v14721_v29   ;;  %v10152_v32 = vphi %v14716_v32, %v14720_v32  }
 0x4a0   :  { %s8533_s26 = sshll.u32 %s10163_s25, 4  ;;  %s8534_s26 = int_to_ptr.vmem [resolvable:$true] %s8533_s26 }
 0x4a1   :  { %8504 = vmax.xlane.f32.xlu0 %v8502_v17  ;;  %s10096_s2 = scalar_lea.vmem %s8534_s26, 256  ;;  %p10101_p4 = scmp.lt.s32.totalorder %s8534_s26, %s8534_s26 }
 0x4a2   :  { %p10097_p3 = scmp.ne.s32.totalorder %s8534_s26, %s10096_s2  ;;  %p10102_p5 = scmp.lt.s32.totalorder %s10096_s2, %s10096_s2 }
 0x4a4   :  { %p10103_p6 = por %p10102_p5, %p10101_p4 }
 0x4a5   :  { %8506 = vmax.xlane.f32.xlu0 %v8503_v31 }
 0x4a6   :  { %p10104_p7 = pnand %p10103_p6, %p10097_p3 }
 0x52a   :  { %v8505_v4 = vpop.xlane.xlu0 %8504 }
 0x52b   :  { %v8508_v46 = vsub.f32 %v8502_v17, %v8505_v4 }
 0x52d   :  { %v8510_v38 = vmul.f32 1.442695, %v8508_v46 }
 0x52e   :  { %v8507_v62 = vpop.xlane.xlu0 %8506 }
 0x52f   :  { %10088 = vpow2.f32 %v8510_v38  ;;  %v8509_v60 = vsub.f32 %v8503_v31, %v8507_v62 }
 0x531   :  { %v8512_v53 = vmul.f32 1.442695, %v8509_v60 }
 0x533   :  { %10090 = vpow2.f32 %v8512_v53 }
 0x53c   :  { %v10089_v42 = vpop.eup %10088 }
 0x53d   :  { %8514 = vadd.xlane.f32.xlu1 %v10089_v42 }
 0x540   :  { %v10091_v37 = vpop.eup %10090 }
 0x541   :  { %8516 = vadd.xlane.f32.xlu1 %v10091_v37 }
 0x5c6   :  { %v8515_v8 = vpop.xlane.xlu1 %8514 }
 0x5c7   :  { %10092 = vlog2.f32 %v8515_v8 }
 0x5ca   :  { %v8517_v39 = vpop.xlane.xlu1 %8516 }
 0x5cb   :  { %10094 = vlog2.f32 %v8517_v39 }
 0x5d4   :  { %v10093_v19 = vpop.eup %10092 }
 0x5d5   :  { %v8519_v29 = vmul.f32 0.6931472, %v10093_v19 }
 0x5d7   :  { %v8522_v14 = vadd.f32 %v8519_v29, %v8505_v4 }
 0x5d8   :  { %v10095_v32 = vpop.eup %10094 }
 0x5d9   :  { %v8521_v13 = vmul.f32 0.6931472, %v10095_v32  ;;  %v8524_v40 = vsub.f32 0.0, %v8522_v14 }
 0x5db   :  { %v8523_v23 = vadd.f32 %v8521_v13, %v8507_v62  ;;  %8526 = vst [vmem:[#allocation5] sm:$0xff] %v8524_v40 }
 0x5dd   :  { %v8525_v1 = vsub.f32 0.0, %v8523_v23 }
 0x5df   :  { %8527 = vst [vmem:[#allocation5 + $0x8] sm:$0xff] %v8525_v1 }
 0x5e0   :  { %10107 = shalt.err (!%p10104_p7)
}
 0x5e1   :  { %s10164_s27 = smov 128   ;;  %s10165_s28 = smov 8  }
 0x5e2   :  { %8539 = dma.vmem_to_hbm [thread:$0]  %s8534_s26, 256, %s14660_s4, [#allocation6], %s10164_s27, %s10164_s27, %s10165_s28  }
 0x5e3   :  { %10136 = dma.done.wait [#allocation6], 256  }
 0x5e4   :  { %10137 = vsyncadd [#allocation6], 4294967040 }
 0x5e5   :  { %8543 = vsyncpa [#allocation6], 1 }

</bundles_post_ra>
